<compile_context>
chip_gen: v7x
topology: tpu7x:2x2x1
jax: 0.10.0
libtpu: 0.0.40
codegen_flags: <defaults>
</compile_context>

<pallas_src>
import functools
import math

import jax
import jax.numpy as jnp
from jax.experimental import pallas as pl
from jax.experimental.pallas import tpu as pltpu

_EPS = 1e-5
_TM_TARGET = 512                       # M-tile target (v7x-safe with bf16 double buffering)
_VMEM_LIMIT = 48 * 1024 * 1024         # under v7x's 64 MiB physical VMEM, above 16/32 MiB defaults


def _compiler_params(semantics):
    return pltpu.CompilerParams(dimension_semantics=semantics,
                                vmem_limit_bytes=_VMEM_LIMIT)


def _choose_tm(m):
    # Largest divisor of m that is <= _TM_TARGET; m is always a multiple of 16
    # here so the tile is sublane-aligned and exactly tiles M (important for the
    # BN sum/sumsq accumulation -- no padded garbage rows).
    return math.gcd(m, _TM_TARGET)


# ------------------------------ kernels -------------------------------------


def _conv_act_kernel(p_ref, w_ref, o_ref, *, slope):
    # [TM, K] @ [K, Cout] on the MXU (bf16 in, f32 accumulate) + fused leaky_relu.
    y = jnp.dot(p_ref[...], w_ref[...], preferred_element_type=jnp.float32)
    o_ref[...] = jnp.where(y >= 0.0, y, slope * y).astype(o_ref.dtype)


def _conv_stats_kernel(p_ref, w_ref, raw_ref, sum_ref, ssq_ref):
    # Conv matmul tile + per-channel sum / sum-of-squares for training-mode BN.
    # The stats outputs have a constant block index, so they stay resident in
    # VMEM across the (arbitrary) M axis and flush once at the end.
    y = jnp.dot(p_ref[...], w_ref[...], preferred_element_type=jnp.float32)
    raw_ref[...] = y

    @pl.when(pl.program_id(0) == 0)
    def _():
        sum_ref[...] = jnp.zeros_like(sum_ref)
        ssq_ref[...] = jnp.zeros_like(ssq_ref)

    sum_ref[...] += jnp.sum(y, axis=0, keepdims=True)
    ssq_ref[...] += jnp.sum(y * y, axis=0, keepdims=True)


def _bn_act_kernel(raw_ref, scale_ref, shift_ref, o_ref, *, slope):
    # y = raw * scale + shift  (scale/shift fold gamma, beta, mean, rsqrt(var+eps))
    y = raw_ref[...] * scale_ref[...] + shift_ref[...]
    o_ref[...] = jnp.where(y >= 0.0, y, slope * y).astype(o_ref.dtype)


def _bn_act_head_kernel(raw_ref, scale_ref, shift_ref, w5_ref, o_ref, *, slope):
    # Fused: BN(conv4) -> leaky_relu -> conv5 (4x4 valid conv on a 4x4 map is a
    # full per-image dot product) -> sigmoid.  VPU multiply + XLU reduction
    # instead of an N=1 MXU matmul; act4 never touches HBM.
    y = raw_ref[...] * scale_ref[...] + shift_ref[...]       # (TB, 16, C4)
    y = jnp.where(y >= 0.0, y, slope * y)
    v = y * w5_ref[...]                                      # (TB, 16, C4)
    t = jnp.sum(v, axis=2)                                   # (TB, 16)  lane reduce
    logits = jnp.sum(t, axis=1, keepdims=True)               # (TB, 1)   sublane reduce
    o_ref[...] = 1.0 / (1.0 + jnp.exp(-logits))


# ------------------------------ glue ----------------------------------------


def _im2col_nhwc(x, kh, kw, stride, pad):
    """Channels-last im2col: x [B,H,W,C] -> ([B*Ho*Wo, kh*kw*C], Ho, Wo).

    K ordered (kh, kw, C): patch rows are lane-contiguous along C, no big
    6-D transpose, and no layout change needed between layers."""
    B, H, W, C = x.shape
    if pad:
        x = jnp.pad(x, ((0, 0), (pad, pad), (pad, pad), (0, 0)))
    Ho = (H + 2 * pad - kh) // stride + 1
    Wo = (W + 2 * pad - kw) // stride + 1
    slabs = []
    for i in range(kh):
        for j in range(kw):
            slabs.append(x[:, i:i + stride * (Ho - 1) + 1:stride,
                              j:j + stride * (Wo - 1) + 1:stride, :])
    patches = jnp.concatenate(slabs, axis=-1)                # [B, Ho, Wo, kh*kw*C]
    return patches.reshape(B * Ho * Wo, kh * kw * C), Ho, Wo


def _w2d(w):
    # PyTorch [Cout, Cin, kh, kw] -> [kh*kw*Cin, Cout], matching (kh, kw, Cin) K order.
    cout = w.shape[0]
    return jnp.transpose(w, (2, 3, 1, 0)).reshape(-1, cout).astype(jnp.bfloat16)


def _bn_scale_shift(s, ssq, m, gamma, beta):
    # PyTorch BatchNorm2d training-mode: biased batch stats over (N,H,W), eps=1e-5.
    mean = s / m
    var = jnp.maximum(ssq / m - mean * mean, 0.0)
    scale = gamma[None, :] * jax.lax.rsqrt(var + _EPS)
    shift = beta[None, :] - mean * scale
    return scale.astype(jnp.float32), shift.astype(jnp.float32)


def _conv_raw_stats(patches, w2d, cout, tm):
    m, k = patches.shape
    return pl.pallas_call(
        _conv_stats_kernel,
        grid=(m // tm,),
        in_specs=[pl.BlockSpec((tm, k), lambda i: (i, 0)),
                  pl.BlockSpec((k, cout), lambda i: (0, 0))],
        out_specs=[pl.BlockSpec((tm, cout), lambda i: (i, 0)),
                   pl.BlockSpec((1, cout), lambda i: (0, 0)),
                   pl.BlockSpec((1, cout), lambda i: (0, 0))],
        out_shape=[jax.ShapeDtypeStruct((m, cout), jnp.float32),
                   jax.ShapeDtypeStruct((1, cout), jnp.float32),
                   jax.ShapeDtypeStruct((1, cout), jnp.float32)],
        compiler_params=_compiler_params(("arbitrary",)),
    )(patches, w2d)


def _conv_act(x_nhwc, w, *, pad, slope):
    """conv(4x4, stride 2) + leaky_relu, no BN.  NHWC bf16 in/out."""
    B = x_nhwc.shape[0]
    cout = w.shape[0]
    patches, ho, wo = _im2col_nhwc(x_nhwc, 4, 4, 2, pad)
    m, k = patches.shape
    tm = _choose_tm(m)
    y = pl.pallas_call(
        functools.partial(_conv_act_kernel, slope=slope),
        grid=(m // tm,),
        in_specs=[pl.BlockSpec((tm, k), lambda i: (i, 0)),
                  pl.BlockSpec((k, cout), lambda i: (0, 0))],
        out_specs=pl.BlockSpec((tm, cout), lambda i: (i, 0)),
        out_shape=jax.ShapeDtypeStruct((m, cout), jnp.bfloat16),
        compiler_params=_compiler_params(("parallel",)),
    )(patches, _w2d(w))
    return y.reshape(B, ho, wo, cout)


def _conv_bn_act(x_nhwc, w, gamma, beta, *, slope):
    """conv(4x4, stride 2, pad 1) + training-mode BN + leaky_relu."""
    B = x_nhwc.shape[0]
    cout = w.shape[0]
    patches, ho, wo = _im2col_nhwc(x_nhwc, 4, 4, 2, 1)
    m, _ = patches.shape
    tm = _choose_tm(m)
    raw, s, ssq = _conv_raw_stats(patches, _w2d(w), cout, tm)
    scale, shift = _bn_scale_shift(s, ssq, m, gamma, beta)
    y = pl.pallas_call(
        functools.partial(_bn_act_kernel, slope=slope),
        grid=(m // tm,),
        in_specs=[pl.BlockSpec((tm, cout), lambda i: (i, 0)),
                  pl.BlockSpec((1, cout), lambda i: (0, 0)),
                  pl.BlockSpec((1, cout), lambda i: (0, 0))],
        out_specs=pl.BlockSpec((tm, cout), lambda i: (i, 0)),
        out_shape=jax.ShapeDtypeStruct((m, cout), jnp.bfloat16),
        compiler_params=_compiler_params(("parallel",)),
    )(raw, scale, shift)
    return y.reshape(B, ho, wo, cout)


def _conv_bn_act_head(x_nhwc, w4, gamma, beta, w5, *, slope):
    """conv4 + BN4 + leaky_relu fused with conv5 + sigmoid -> (B, 1)."""
    B = x_nhwc.shape[0]
    c4 = w4.shape[0]
    patches, ho, wo = _im2col_nhwc(x_nhwc, 4, 4, 2, 1)
    assert (ho, wo) == (4, 4), "architecture implies 64x64 inputs"
    m, _ = patches.shape
    tm = _choose_tm(m)
    raw, s, ssq = _conv_raw_stats(patches, _w2d(w4), c4, tm)
    scale, shift = _bn_scale_shift(s, ssq, m, gamma, beta)

    hw = ho * wo                                             # 16
    raw3 = raw.reshape(B, hw, c4)                            # free reshape, rows ordered (h, w)
    # w5 [1, C4, 4, 4] -> [1, 16, C4] matching the (h, w, c) order of raw3 rows.
    w5_3d = jnp.transpose(w5[0], (1, 2, 0)).reshape(1, hw, c4).astype(jnp.float32)
    scale3 = scale.reshape(1, 1, c4)
    shift3 = shift.reshape(1, 1, c4)

    tb = math.gcd(B, 64) if B % 8 == 0 else B                # (tb,1) out block stays legal
    return pl.pallas_call(
        functools.partial(_bn_act_head_kernel, slope=slope),
        grid=(B // tb,),
        in_specs=[pl.BlockSpec((tb, hw, c4), lambda i: (i, 0, 0)),
                  pl.BlockSpec((1, 1, c4), lambda i: (0, 0, 0)),
                  pl.BlockSpec((1, 1, c4), lambda i: (0, 0, 0)),
                  pl.BlockSpec((1, hw, c4), lambda i: (0, 0, 0))],
        out_specs=pl.BlockSpec((tb, 1), lambda i: (i, 0)),
        out_shape=jax.ShapeDtypeStruct((B, 1), jnp.float32),
        compiler_params=_compiler_params(("parallel",)),
    )(raw3, scale3, shift3, w5_3d)


# ------------------------------ model ---------------------------------------


def init_params(key):
    # Conv weights [Cout, Cin, 4, 4], bias=False; BN affine params (default 1/0).
    shapes = [(64, 3, 4, 4), (128, 64, 4, 4), (256, 128, 4, 4),
              (512, 256, 4, 4), (1, 512, 4, 4)]
    keys = jax.random.split(key, len(shapes))
    ws = [0.02 * jax.random.normal(k, s, jnp.float32) for k, s in zip(keys, shapes)]
    return {
        "w": ws,
        "gamma": [jnp.ones((c,), jnp.float32) for c in (128, 256, 512)],
        "beta": [jnp.zeros((c,), jnp.float32) for c in (128, 256, 512)],
    }


def discriminator_forward(params, x):
    w1, w2, w3, w4, w5 = params["w"]
    g2, g3, g4 = params["gamma"]
    b2, b3, b4 = params["beta"]

    B, C, H, W = x.shape
    assert (H, W) == (64, 64), "discriminatorNet expects 64x64 inputs"
    # NCHW -> NHWC once at the boundary; bf16 activations everywhere downstream.
    x = jnp.transpose(x, (0, 2, 3, 1)).astype(jnp.bfloat16)
    # Lane-align layer 1: zero-pad Cin 3 -> 8 so K = 16*8 = 128 (zero contribution).
    x = jnp.pad(x, ((0, 0), (0, 0), (0, 0), (0, 8 - C)))
    w1p = jnp.pad(w1, ((0, 0), (0, 8 - C), (0, 0), (0, 0)))

    x = _conv_act(x, w1p, pad=1, slope=0.01)                 # F.leaky_relu default slope
    x = _conv_bn_act(x, w2, g2, b2, slope=0.2)
    x = _conv_bn_act(x, w3, g3, b3, slope=0.2)
    out = _conv_bn_act_head(x, w4, g4, b4, w5, slope=0.2)    # bn4 + lrelu + conv5 + sigmoid
    return out                                               # (B, 1)  == torch .view(-1, 1)


if __name__ == "__main__":
    key = jax.random.PRNGKey(0)
    kp, kx = jax.random.split(key)
    params = init_params(kp)
    x = jax.random.normal(kx, (2, 3, 64, 64), jnp.float32)
    fwd = jax.jit(discriminator_forward)
    out = fwd(params, x)
    jax.block_until_ready(out)
    assert out.shape == (2, 1), out.shape
    assert bool(jnp.all(jnp.isfinite(out)))
    print("KERNEL_OK")
</pallas_src>

<mosaic_0001>
module attributes {stable_mosaic.version = 11 : i64} {
  func.func @_conv_act_kernel(%arg0: i32, %arg1: memref<512x128xbf16, #tpu.memory_space<vmem>>, %arg2: memref<128x64xbf16, #tpu.memory_space<vmem>>, %arg3: memref<512x64xbf16, #tpu.memory_space<vmem>>) attributes {dimension_semantics = [#tpu.dimension_semantics<parallel>], iteration_bounds = array<i64: 4>, scalar_prefetch = 0 : i64, scratch_operands = 0 : i64, tpu.core_type = #tpu.core_type<tc>, window_params = [{transform_indices = @transform_0, window_bounds = array<i64: 512, 128>}, {pipeline_mode = #tpu.pipeline_mode<synchronous>, transform_indices = @transform_1, window_bounds = array<i64: 128, 64>}, {transform_indices = @transform_2, window_bounds = array<i64: 512, 64>}]} {
    %c0 = arith.constant 0 : index
    %c0_0 = arith.constant 0 : index
    %0 = vector.load %arg1[%c0, %c0_0] : memref<512x128xbf16, #tpu.memory_space<vmem>>, vector<512x128xbf16>
    %c0_1 = arith.constant 0 : index
    %c0_2 = arith.constant 0 : index
    %1 = vector.load %arg2[%c0_1, %c0_2] : memref<128x64xbf16, #tpu.memory_space<vmem>>, vector<128x64xbf16>
    %cst = arith.constant dense<0.000000e+00> : vector<512x64xf32>
    %2 = tpu.matmul %0, %1, %cst {dimension_numbers = #tpu.dot_dimension_numbers<[1], [0], [0], [1], [0, 0, 1, 1], [], []>} : vector<512x128xbf16>, vector<128x64xbf16>, vector<512x64xf32> -> vector<512x64xf32>
    %cst_3 = arith.constant 0.000000e+00 : f32
    %3 = vector.broadcast %cst_3 : f32 to vector<512x64xf32>
    %4 = arith.cmpf oge, %2, %3 : vector<512x64xf32>
    %cst_4 = arith.constant 0.00999999977 : f32
    %5 = vector.broadcast %cst_4 : f32 to vector<512x64xf32>
    %6 = arith.mulf %5, %2 : vector<512x64xf32>
    %7 = arith.select %4, %2, %6 : vector<512x64xi1>, vector<512x64xf32>
    %8 = arith.truncf %7 : vector<512x64xf32> to vector<512x64xbf16>
    %c0_5 = arith.constant 0 : index
    %c0_6 = arith.constant 0 : index
    %9 = vector.load %arg3[%c0_5, %c0_6] : memref<512x64xbf16, #tpu.memory_space<vmem>>, vector<512x64xbf16>
    tpu.vector_store %arg3[%c0_5, %c0_6], %8 {strides = array<i32>} : memref<512x64xbf16, #tpu.memory_space<vmem>>, vector<512x64xbf16>,
    return
  }
  func.func @transform_0(%arg0: i32) -> (i32, i32) {
    %c0_i32 = arith.constant 0 : i32
    %c0_i32_0 = arith.constant 0 : i32
    return %arg0, %c0_i32 : i32, i32
  }
  func.func @transform_1(%arg0: i32) -> (i32, i32) {
    %c0_i32 = arith.constant 0 : i32
    %c0_i32_0 = arith.constant 0 : i32
    %c0_i32_1 = arith.constant 0 : i32
    return %c0_i32, %c0_i32_0 : i32, i32
  }
  func.func @transform_2(%arg0: i32) -> (i32, i32) {
    %c0_i32 = arith.constant 0 : i32
    %c0_i32_0 = arith.constant 0 : i32
    return %arg0, %c0_i32 : i32, i32
  }
}

module attributes {stable_mosaic.version = 11 : i64} {
  func.func @_bn_act_kernel(%arg0: i32, %arg1: memref<512x128xf32, #tpu.memory_space<vmem>>, %arg2: memref<1x128xf32, #tpu.memory_space<vmem>>, %arg3: memref<1x128xf32, #tpu.memory_space<vmem>>, %arg4: memref<512x128xbf16, #tpu.memory_space<vmem>>) attributes {dimension_semantics = [#tpu.dimension_semantics<parallel>], iteration_bounds = array<i64: 1>, scalar_prefetch = 0 : i64, scratch_operands = 0 : i64, tpu.core_type = #tpu.core_type<tc>, window_params = [{transform_indices = @transform_0, window_bounds = array<i64: 512, 128>}, {pipeline_mode = #tpu.pipeline_mode<synchronous>, transform_indices = @transform_1, window_bounds = array<i64: 1, 128>}, {pipeline_mode = #tpu.pipeline_mode<synchronous>, transform_indices = @transform_2, window_bounds = array<i64: 1, 128>}, {transform_indices = @transform_3, window_bounds = array<i64: 512, 128>}]} {
    %c0 = arith.constant 0 : index
    %c0_0 = arith.constant 0 : index
    %0 = vector.load %arg1[%c0, %c0_0] : memref<512x128xf32, #tpu.memory_space<vmem>>, vector<512x128xf32>
    %c0_1 = arith.constant 0 : index
    %c0_2 = arith.constant 0 : index
    %1 = vector.load %arg2[%c0_1, %c0_2] : memref<1x128xf32, #tpu.memory_space<vmem>>, vector<1x128xf32>
    %2 = vector.broadcast %1 : vector<1x128xf32> to vector<512x128xf32>
    %3 = arith.mulf %0, %2 : vector<512x128xf32>
    %c0_3 = arith.constant 0 : index
    %c0_4 = arith.constant 0 : index
    %4 = vector.load %arg3[%c0_3, %c0_4] : memref<1x128xf32, #tpu.memory_space<vmem>>, vector<1x128xf32>
    %5 = vector.broadcast %4 : vector<1x128xf32> to vector<512x128xf32>
    %6 = arith.addf %3, %5 : vector<512x128xf32>
    %cst = arith.constant 0.000000e+00 : f32
    %7 = vector.broadcast %cst : f32 to vector<512x128xf32>
    %8 = arith.cmpf oge, %6, %7 : vector<512x128xf32>
    %cst_5 = arith.constant 2.000000e-01 : f32
    %9 = vector.broadcast %cst_5 : f32 to vector<512x128xf32>
    %10 = arith.mulf %9, %6 : vector<512x128xf32>
    %11 = arith.select %8, %6, %10 : vector<512x128xi1>, vector<512x128xf32>
    %12 = arith.truncf %11 : vector<512x128xf32> to vector<512x128xbf16>
    %c0_6 = arith.constant 0 : index
    %c0_7 = arith.constant 0 : index
    %13 = vector.load %arg4[%c0_6, %c0_7] : memref<512x128xbf16, #tpu.memory_space<vmem>>, vector<512x128xbf16>
    tpu.vector_store %arg4[%c0_6, %c0_7], %12 {strides = array<i32>} : memref<512x128xbf16, #tpu.memory_space<vmem>>, vector<512x128xbf16>,
    return
  }
  func.func @transform_0(%arg0: i32) -> (i32, i32) {
    %c0_i32 = arith.constant 0 : i32
    %c0_i32_0 = arith.constant 0 : i32
    return %arg0, %c0_i32 : i32, i32
  }
  func.func @transform_1(%arg0: i32) -> (i32, i32) {
    %c0_i32 = arith.constant 0 : i32
    %c0_i32_0 = arith.constant 0 : i32
    %c0_i32_1 = arith.constant 0 : i32
    return %c0_i32, %c0_i32_0 : i32, i32
  }
  func.func @transform_2(%arg0: i32) -> (i32, i32) {
    %c0_i32 = arith.constant 0 : i32
    %c0_i32_0 = arith.constant 0 : i32
    %c0_i32_1 = arith.constant 0 : i32
    return %c0_i32, %c0_i32_0 : i32, i32
  }
  func.func @transform_3(%arg0: i32) -> (i32, i32) {
    %c0_i32 = arith.constant 0 : i32
    %c0_i32_0 = arith.constant 0 : i32
    return %arg0, %c0_i32 : i32, i32
  }
}

module attributes {stable_mosaic.version = 11 : i64} {
  func.func @_conv_stats_kernel(%arg0: i32, %arg1: memref<512x1024xbf16, #tpu.memory_space<vmem>>, %arg2: memref<1024x128xbf16, #tpu.memory_space<vmem>>, %arg3: memref<512x128xf32, #tpu.memory_space<vmem>>, %arg4: memref<1x128xf32, #tpu.memory_space<vmem>>, %arg5: memref<1x128xf32, #tpu.memory_space<vmem>>) attributes {dimension_semantics = [#tpu.dimension_semantics<arbitrary>], iteration_bounds = array<i64: 1>, scalar_prefetch = 0 : i64, scratch_operands = 0 : i64, tpu.core_type = #tpu.core_type<tc>, window_params = [{transform_indices = @transform_0, window_bounds = array<i64: 512, 1024>}, {pipeline_mode = #tpu.pipeline_mode<synchronous>, transform_indices = @transform_1, window_bounds = array<i64: 1024, 128>}, {transform_indices = @transform_2, window_bounds = array<i64: 512, 128>}, {pipeline_mode = #tpu.pipeline_mode<synchronous>, transform_indices = @transform_3, window_bounds = array<i64: 1, 128>}, {pipeline_mode = #tpu.pipeline_mode<synchronous>, transform_indices = @transform_4, window_bounds = array<i64: 1, 128>}]} {
    %c0 = arith.constant 0 : index
    %c0_0 = arith.constant 0 : index
    %0 = vector.load %arg1[%c0, %c0_0] : memref<512x1024xbf16, #tpu.memory_space<vmem>>, vector<512x1024xbf16>
    %c0_1 = arith.constant 0 : index
    %c0_2 = arith.constant 0 : index
    %1 = vector.load %arg2[%c0_1, %c0_2] : memref<1024x128xbf16, #tpu.memory_space<vmem>>, vector<1024x128xbf16>
    %cst = arith.constant dense<0.000000e+00> : vector<512x128xf32>
    %2 = tpu.matmul %0, %1, %cst {dimension_numbers = #tpu.dot_dimension_numbers<[1], [0], [0], [1], [0, 0, 1, 1], [], []>} : vector<512x1024xbf16>, vector<1024x128xbf16>, vector<512x128xf32> -> vector<512x128xf32>
    %c0_3 = arith.constant 0 : index
    %c0_4 = arith.constant 0 : index
    %3 = vector.load %arg3[%c0_3, %c0_4] : memref<512x128xf32, #tpu.memory_space<vmem>>, vector<512x128xf32>
    tpu.vector_store %arg3[%c0_3, %c0_4], %2 {strides = array<i32>} : memref<512x128xf32, #tpu.memory_space<vmem>>, vector<512x128xf32>,
    %c0_i32 = arith.constant 0 : i32
    %4 = arith.cmpi eq, %arg0, %c0_i32 : i32
    %5 = arith.extui %4 : i1 to i32
    %c0_i32_5 = arith.constant 0 : i32
    %6 = arith.cmpi ne, %5, %c0_i32_5 : i32
    scf.if %6 {
      %cst_16 = arith.constant 0.000000e+00 : f32
      %18 = vector.broadcast %cst_16 : f32 to vector<1x128xf32>
      %c0_17 = arith.constant 0 : index
      %c0_18 = arith.constant 0 : index
      %19 = vector.load %arg4[%c0_17, %c0_18] : memref<1x128xf32, #tpu.memory_space<vmem>>, vector<1x128xf32>
      tpu.vector_store %arg4[%c0_17, %c0_18], %18 {strides = array<i32>} : memref<1x128xf32, #tpu.memory_space<vmem>>, vector<1x128xf32>,
      %cst_19 = arith.constant 0.000000e+00 : f32
      %20 = vector.broadcast %cst_19 : f32 to vector<1x128xf32>
      %c0_20 = arith.constant 0 : index
      %c0_21 = arith.constant 0 : index
      %21 = vector.load %arg5[%c0_20, %c0_21] : memref<1x128xf32, #tpu.memory_space<vmem>>, vector<1x128xf32>
      tpu.vector_store %arg5[%c0_20, %c0_21], %20 {strides = array<i32>} : memref<1x128xf32, #tpu.memory_space<vmem>>, vector<1x128xf32>,
    } else {
    }
    %c0_6 = arith.constant 0 : index
    %c0_7 = arith.constant 0 : index
    %7 = vector.load %arg4[%c0_6, %c0_7] : memref<1x128xf32, #tpu.memory_space<vmem>>, vector<1x128xf32>
    %cst_8 = arith.constant dense<0.000000e+00> : vector<128xf32>
    %8 = vector.multi_reduction <add>, %2, %cst_8 [0] : vector<512x128xf32> to vector<128xf32>
    %9 = vector.shape_cast %8 : vector<128xf32> to vector<1x128xf32>
    %10 = arith.addf %7, %9 : vector<1x128xf32>
    %c0_9 = arith.constant 0 : index
    %c0_10 = arith.constant 0 : index
    %11 = vector.load %arg4[%c0_9, %c0_10] : memref<1x128xf32, #tpu.memory_space<vmem>>, vector<1x128xf32>
    tpu.vector_store %arg4[%c0_9, %c0_10], %10 {strides = array<i32>} : memref<1x128xf32, #tpu.memory_space<vmem>>, vector<1x128xf32>,
    %c0_11 = arith.constant 0 : index
    %c0_12 = arith.constant 0 : index
    %12 = vector.load %arg5[%c0_11, %c0_12] : memref<1x128xf32, #tpu.memory_space<vmem>>, vector<1x128xf32>
    %13 = arith.mulf %2, %2 : vector<512x128xf32>
    %cst_13 = arith.constant dense<0.000000e+00> : vector<128xf32>
    %14 = vector.multi_reduction <add>, %13, %cst_13 [0] : vector<512x128xf32> to vector<128xf32>
    %15 = vector.shape_cast %14 : vector<128xf32> to vector<1x128xf32>
    %16 = arith.addf %12, %15 : vector<1x128xf32>
    %c0_14 = arith.constant 0 : index
    %c0_15 = arith.constant 0 : index
    %17 = vector.load %arg5[%c0_14, %c0_15] : memref<1x128xf32, #tpu.memory_space<vmem>>, vector<1x128xf32>
    tpu.vector_store %arg5[%c0_14, %c0_15], %16 {strides = array<i32>} : memref<1x128xf32, #tpu.memory_space<vmem>>, vector<1x128xf32>,
    return
  }
  func.func @transform_0(%arg0: i32) -> (i32, i32) {
    %c0_i32 = arith.constant 0 : i32
    %c0_i32_0 = arith.constant 0 : i32
    return %arg0, %c0_i32 : i32, i32
  }
  func.func @transform_1(%arg0: i32) -> (i32, i32) {
    %c0_i32 = arith.constant 0 : i32
    %c0_i32_0 = arith.constant 0 : i32
    %c0_i32_1 = arith.constant 0 : i32
    return %c0_i32, %c0_i32_0 : i32, i32
  }
  func.func @transform_2(%arg0: i32) -> (i32, i32) {
    %c0_i32 = arith.constant 0 : i32
    %c0_i32_0 = arith.constant 0 : i32
    return %arg0, %c0_i32 : i32, i32
  }
  func.func @transform_3(%arg0: i32) -> (i32, i32) {
    %c0_i32 = arith.constant 0 : i32
    %c0_i32_0 = arith.constant 0 : i32
    %c0_i32_1 = arith.constant 0 : i32
    return %c0_i32, %c0_i32_0 : i32, i32
  }
  func.func @transform_4(%arg0: i32) -> (i32, i32) {
    %c0_i32 = arith.constant 0 : i32
    %c0_i32_0 = arith.constant 0 : i32
    %c0_i32_1 = arith.constant 0 : i32
    return %c0_i32, %c0_i32_0 : i32, i32
  }
}

module attributes {stable_mosaic.version = 11 : i64} {
  func.func @_conv_stats_kernel(%arg0: i32, %arg1: memref<128x2048xbf16, #tpu.memory_space<vmem>>, %arg2: memref<2048x256xbf16, #tpu.memory_space<vmem>>, %arg3: memref<128x256xf32, #tpu.memory_space<vmem>>, %arg4: memref<1x256xf32, #tpu.memory_space<vmem>>, %arg5: memref<1x256xf32, #tpu.memory_space<vmem>>) attributes {dimension_semantics = [#tpu.dimension_semantics<arbitrary>], iteration_bounds = array<i64: 1>, scalar_prefetch = 0 : i64, scratch_operands = 0 : i64, tpu.core_type = #tpu.core_type<tc>, window_params = [{transform_indices = @transform_0, window_bounds = array<i64: 128, 2048>}, {pipeline_mode = #tpu.pipeline_mode<synchronous>, transform_indices = @transform_1, window_bounds = array<i64: 2048, 256>}, {transform_indices = @transform_2, window_bounds = array<i64: 128, 256>}, {pipeline_mode = #tpu.pipeline_mode<synchronous>, transform_indices = @transform_3, window_bounds = array<i64: 1, 256>}, {pipeline_mode = #tpu.pipeline_mode<synchronous>, transform_indices = @transform_4, window_bounds = array<i64: 1, 256>}]} {
    %c0 = arith.constant 0 : index
    %c0_0 = arith.constant 0 : index
    %0 = vector.load %arg1[%c0, %c0_0] : memref<128x2048xbf16, #tpu.memory_space<vmem>>, vector<128x2048xbf16>
    %c0_1 = arith.constant 0 : index
    %c0_2 = arith.constant 0 : index
    %1 = vector.load %arg2[%c0_1, %c0_2] : memref<2048x256xbf16, #tpu.memory_space<vmem>>, vector<2048x256xbf16>
    %cst = arith.constant dense<0.000000e+00> : vector<128x256xf32>
    %2 = tpu.matmul %0, %1, %cst {dimension_numbers = #tpu.dot_dimension_numbers<[1], [0], [0], [1], [0, 0, 1, 1], [], []>} : vector<128x2048xbf16>, vector<2048x256xbf16>, vector<128x256xf32> -> vector<128x256xf32>
    %c0_3 = arith.constant 0 : index
    %c0_4 = arith.constant 0 : index
    %3 = vector.load %arg3[%c0_3, %c0_4] : memref<128x256xf32, #tpu.memory_space<vmem>>, vector<128x256xf32>
    tpu.vector_store %arg3[%c0_3, %c0_4], %2 {strides = array<i32>} : memref<128x256xf32, #tpu.memory_space<vmem>>, vector<128x256xf32>,
    %c0_i32 = arith.constant 0 : i32
    %4 = arith.cmpi eq, %arg0, %c0_i32 : i32
    %5 = arith.extui %4 : i1 to i32
    %c0_i32_5 = arith.constant 0 : i32
    %6 = arith.cmpi ne, %5, %c0_i32_5 : i32
    scf.if %6 {
      %cst_16 = arith.constant 0.000000e+00 : f32
      %18 = vector.broadcast %cst_16 : f32 to vector<1x256xf32>
      %c0_17 = arith.constant 0 : index
      %c0_18 = arith.constant 0 : index
      %19 = vector.load %arg4[%c0_17, %c0_18] : memref<1x256xf32, #tpu.memory_space<vmem>>, vector<1x256xf32>
      tpu.vector_store %arg4[%c0_17, %c0_18], %18 {strides = array<i32>} : memref<1x256xf32, #tpu.memory_space<vmem>>, vector<1x256xf32>,
      %cst_19 = arith.constant 0.000000e+00 : f32
      %20 = vector.broadcast %cst_19 : f32 to vector<1x256xf32>
      %c0_20 = arith.constant 0 : index
      %c0_21 = arith.constant 0 : index
      %21 = vector.load %arg5[%c0_20, %c0_21] : memref<1x256xf32, #tpu.memory_space<vmem>>, vector<1x256xf32>
      tpu.vector_store %arg5[%c0_20, %c0_21], %20 {strides = array<i32>} : memref<1x256xf32, #tpu.memory_space<vmem>>, vector<1x256xf32>,
    } else {
    }
    %c0_6 = arith.constant 0 : index
    %c0_7 = arith.constant 0 : index
    %7 = vector.load %arg4[%c0_6, %c0_7] : memref<1x256xf32, #tpu.memory_space<vmem>>, vector<1x256xf32>
    %cst_8 = arith.constant dense<0.000000e+00> : vector<256xf32>
    %8 = vector.multi_reduction <add>, %2, %cst_8 [0] : vector<128x256xf32> to vector<256xf32>
    %9 = vector.shape_cast %8 : vector<256xf32> to vector<1x256xf32>
    %10 = arith.addf %7, %9 : vector<1x256xf32>
    %c0_9 = arith.constant 0 : index
    %c0_10 = arith.constant 0 : index
    %11 = vector.load %arg4[%c0_9, %c0_10] : memref<1x256xf32, #tpu.memory_space<vmem>>, vector<1x256xf32>
    tpu.vector_store %arg4[%c0_9, %c0_10], %10 {strides = array<i32>} : memref<1x256xf32, #tpu.memory_space<vmem>>, vector<1x256xf32>,
    %c0_11 = arith.constant 0 : index
    %c0_12 = arith.constant 0 : index
    %12 = vector.load %arg5[%c0_11, %c0_12] : memref<1x256xf32, #tpu.memory_space<vmem>>, vector<1x256xf32>
    %13 = arith.mulf %2, %2 : vector<128x256xf32>
    %cst_13 = arith.constant dense<0.000000e+00> : vector<256xf32>
    %14 = vector.multi_reduction <add>, %13, %cst_13 [0] : vector<128x256xf32> to vector<256xf32>
    %15 = vector.shape_cast %14 : vector<256xf32> to vector<1x256xf32>
    %16 = arith.addf %12, %15 : vector<1x256xf32>
    %c0_14 = arith.constant 0 : index
    %c0_15 = arith.constant 0 : index
    %17 = vector.load %arg5[%c0_14, %c0_15] : memref<1x256xf32, #tpu.memory_space<vmem>>, vector<1x256xf32>
    tpu.vector_store %arg5[%c0_14, %c0_15], %16 {strides = array<i32>} : memref<1x256xf32, #tpu.memory_space<vmem>>, vector<1x256xf32>,
    return
  }
  func.func @transform_0(%arg0: i32) -> (i32, i32) {
    %c0_i32 = arith.constant 0 : i32
    %c0_i32_0 = arith.constant 0 : i32
    return %arg0, %c0_i32 : i32, i32
  }
  func.func @transform_1(%arg0: i32) -> (i32, i32) {
    %c0_i32 = arith.constant 0 : i32
    %c0_i32_0 = arith.constant 0 : i32
    %c0_i32_1 = arith.constant 0 : i32
    return %c0_i32, %c0_i32_0 : i32, i32
  }
  func.func @transform_2(%arg0: i32) -> (i32, i32) {
    %c0_i32 = arith.constant 0 : i32
    %c0_i32_0 = arith.constant 0 : i32
    return %arg0, %c0_i32 : i32, i32
  }
  func.func @transform_3(%arg0: i32) -> (i32, i32) {
    %c0_i32 = arith.constant 0 : i32
    %c0_i32_0 = arith.constant 0 : i32
    %c0_i32_1 = arith.constant 0 : i32
    return %c0_i32, %c0_i32_0 : i32, i32
  }
  func.func @transform_4(%arg0: i32) -> (i32, i32) {
    %c0_i32 = arith.constant 0 : i32
    %c0_i32_0 = arith.constant 0 : i32
    %c0_i32_1 = arith.constant 0 : i32
    return %c0_i32, %c0_i32_0 : i32, i32
  }
}

module attributes {stable_mosaic.version = 11 : i64} {
  func.func @_bn_act_kernel(%arg0: i32, %arg1: memref<128x256xf32, #tpu.memory_space<vmem>>, %arg2: memref<1x256xf32, #tpu.memory_space<vmem>>, %arg3: memref<1x256xf32, #tpu.memory_space<vmem>>, %arg4: memref<128x256xbf16, #tpu.memory_space<vmem>>) attributes {dimension_semantics = [#tpu.dimension_semantics<parallel>], iteration_bounds = array<i64: 1>, scalar_prefetch = 0 : i64, scratch_operands = 0 : i64, tpu.core_type = #tpu.core_type<tc>, window_params = [{transform_indices = @transform_0, window_bounds = array<i64: 128, 256>}, {pipeline_mode = #tpu.pipeline_mode<synchronous>, transform_indices = @transform_1, window_bounds = array<i64: 1, 256>}, {pipeline_mode = #tpu.pipeline_mode<synchronous>, transform_indices = @transform_2, window_bounds = array<i64: 1, 256>}, {transform_indices = @transform_3, window_bounds = array<i64: 128, 256>}]} {
    %c0 = arith.constant 0 : index
    %c0_0 = arith.constant 0 : index
    %0 = vector.load %arg1[%c0, %c0_0] : memref<128x256xf32, #tpu.memory_space<vmem>>, vector<128x256xf32>
    %c0_1 = arith.constant 0 : index
    %c0_2 = arith.constant 0 : index
    %1 = vector.load %arg2[%c0_1, %c0_2] : memref<1x256xf32, #tpu.memory_space<vmem>>, vector<1x256xf32>
    %2 = vector.broadcast %1 : vector<1x256xf32> to vector<128x256xf32>
    %3 = arith.mulf %0, %2 : vector<128x256xf32>
    %c0_3 = arith.constant 0 : index
    %c0_4 = arith.constant 0 : index
    %4 = vector.load %arg3[%c0_3, %c0_4] : memref<1x256xf32, #tpu.memory_space<vmem>>, vector<1x256xf32>
    %5 = vector.broadcast %4 : vector<1x256xf32> to vector<128x256xf32>
    %6 = arith.addf %3, %5 : vector<128x256xf32>
    %cst = arith.constant 0.000000e+00 : f32
    %7 = vector.broadcast %cst : f32 to vector<128x256xf32>
    %8 = arith.cmpf oge, %6, %7 : vector<128x256xf32>
    %cst_5 = arith.constant 2.000000e-01 : f32
    %9 = vector.broadcast %cst_5 : f32 to vector<128x256xf32>
    %10 = arith.mulf %9, %6 : vector<128x256xf32>
    %11 = arith.select %8, %6, %10 : vector<128x256xi1>, vector<128x256xf32>
    %12 = arith.truncf %11 : vector<128x256xf32> to vector<128x256xbf16>
    %c0_6 = arith.constant 0 : index
    %c0_7 = arith.constant 0 : index
    %13 = vector.load %arg4[%c0_6, %c0_7] : memref<128x256xbf16, #tpu.memory_space<vmem>>, vector<128x256xbf16>
    tpu.vector_store %arg4[%c0_6, %c0_7], %12 {strides = array<i32>} : memref<128x256xbf16, #tpu.memory_space<vmem>>, vector<128x256xbf16>,
    return
  }
  func.func @transform_0(%arg0: i32) -> (i32, i32) {
    %c0_i32 = arith.constant 0 : i32
    %c0_i32_0 = arith.constant 0 : i32
    return %arg0, %c0_i32 : i32, i32
  }
  func.func @transform_1(%arg0: i32) -> (i32, i32) {
    %c0_i32 = arith.constant 0 : i32
    %c0_i32_0 = arith.constant 0 : i32
    %c0_i32_1 = arith.constant 0 : i32
    return %c0_i32, %c0_i32_0 : i32, i32
  }
  func.func @transform_2(%arg0: i32) -> (i32, i32) {
    %c0_i32 = arith.constant 0 : i32
    %c0_i32_0 = arith.constant 0 : i32
    %c0_i32_1 = arith.constant 0 : i32
    return %c0_i32, %c0_i32_0 : i32, i32
  }
  func.func @transform_3(%arg0: i32) -> (i32, i32) {
    %c0_i32 = arith.constant 0 : i32
    %c0_i32_0 = arith.constant 0 : i32
    return %arg0, %c0_i32 : i32, i32
  }
}

module attributes {stable_mosaic.version = 11 : i64} {
  func.func @_conv_stats_kernel(%arg0: i32, %arg1: memref<32x4096xbf16, #tpu.memory_space<vmem>>, %arg2: memref<4096x512xbf16, #tpu.memory_space<vmem>>, %arg3: memref<32x512xf32, #tpu.memory_space<vmem>>, %arg4: memref<1x512xf32, #tpu.memory_space<vmem>>, %arg5: memref<1x512xf32, #tpu.memory_space<vmem>>) attributes {dimension_semantics = [#tpu.dimension_semantics<arbitrary>], iteration_bounds = array<i64: 1>, scalar_prefetch = 0 : i64, scratch_operands = 0 : i64, tpu.core_type = #tpu.core_type<tc>, window_params = [{transform_indices = @transform_0, window_bounds = array<i64: 32, 4096>}, {pipeline_mode = #tpu.pipeline_mode<synchronous>, transform_indices = @transform_1, window_bounds = array<i64: 4096, 512>}, {transform_indices = @transform_2, window_bounds = array<i64: 32, 512>}, {pipeline_mode = #tpu.pipeline_mode<synchronous>, transform_indices = @transform_3, window_bounds = array<i64: 1, 512>}, {pipeline_mode = #tpu.pipeline_mode<synchronous>, transform_indices = @transform_4, window_bounds = array<i64: 1, 512>}]} {
    %c0 = arith.constant 0 : index
    %c0_0 = arith.constant 0 : index
    %0 = vector.load %arg1[%c0, %c0_0] : memref<32x4096xbf16, #tpu.memory_space<vmem>>, vector<32x4096xbf16>
    %c0_1 = arith.constant 0 : index
    %c0_2 = arith.constant 0 : index
    %1 = vector.load %arg2[%c0_1, %c0_2] : memref<4096x512xbf16, #tpu.memory_space<vmem>>, vector<4096x512xbf16>
    %cst = arith.constant dense<0.000000e+00> : vector<32x512xf32>
    %2 = tpu.matmul %0, %1, %cst {dimension_numbers = #tpu.dot_dimension_numbers<[1], [0], [0], [1], [0, 0, 1, 1], [], []>} : vector<32x4096xbf16>, vector<4096x512xbf16>, vector<32x512xf32> -> vector<32x512xf32>
    %c0_3 = arith.constant 0 : index
    %c0_4 = arith.constant 0 : index
    %3 = vector.load %arg3[%c0_3, %c0_4] : memref<32x512xf32, #tpu.memory_space<vmem>>, vector<32x512xf32>
    tpu.vector_store %arg3[%c0_3, %c0_4], %2 {strides = array<i32>} : memref<32x512xf32, #tpu.memory_space<vmem>>, vector<32x512xf32>,
    %c0_i32 = arith.constant 0 : i32
    %4 = arith.cmpi eq, %arg0, %c0_i32 : i32
    %5 = arith.extui %4 : i1 to i32
    %c0_i32_5 = arith.constant 0 : i32
    %6 = arith.cmpi ne, %5, %c0_i32_5 : i32
    scf.if %6 {
      %cst_16 = arith.constant 0.000000e+00 : f32
      %18 = vector.broadcast %cst_16 : f32 to vector<1x512xf32>
      %c0_17 = arith.constant 0 : index
      %c0_18 = arith.constant 0 : index
      %19 = vector.load %arg4[%c0_17, %c0_18] : memref<1x512xf32, #tpu.memory_space<vmem>>, vector<1x512xf32>
      tpu.vector_store %arg4[%c0_17, %c0_18], %18 {strides = array<i32>} : memref<1x512xf32, #tpu.memory_space<vmem>>, vector<1x512xf32>,
      %cst_19 = arith.constant 0.000000e+00 : f32
      %20 = vector.broadcast %cst_19 : f32 to vector<1x512xf32>
      %c0_20 = arith.constant 0 : index
      %c0_21 = arith.constant 0 : index
      %21 = vector.load %arg5[%c0_20, %c0_21] : memref<1x512xf32, #tpu.memory_space<vmem>>, vector<1x512xf32>
      tpu.vector_store %arg5[%c0_20, %c0_21], %20 {strides = array<i32>} : memref<1x512xf32, #tpu.memory_space<vmem>>, vector<1x512xf32>,
    } else {
    }
    %c0_6 = arith.constant 0 : index
    %c0_7 = arith.constant 0 : index
    %7 = vector.load %arg4[%c0_6, %c0_7] : memref<1x512xf32, #tpu.memory_space<vmem>>, vector<1x512xf32>
    %cst_8 = arith.constant dense<0.000000e+00> : vector<512xf32>
    %8 = vector.multi_reduction <add>, %2, %cst_8 [0] : vector<32x512xf32> to vector<512xf32>
    %9 = vector.shape_cast %8 : vector<512xf32> to vector<1x512xf32>
    %10 = arith.addf %7, %9 : vector<1x512xf32>
    %c0_9 = arith.constant 0 : index
    %c0_10 = arith.constant 0 : index
    %11 = vector.load %arg4[%c0_9, %c0_10] : memref<1x512xf32, #tpu.memory_space<vmem>>, vector<1x512xf32>
    tpu.vector_store %arg4[%c0_9, %c0_10], %10 {strides = array<i32>} : memref<1x512xf32, #tpu.memory_space<vmem>>, vector<1x512xf32>,
    %c0_11 = arith.constant 0 : index
    %c0_12 = arith.constant 0 : index
    %12 = vector.load %arg5[%c0_11, %c0_12] : memref<1x512xf32, #tpu.memory_space<vmem>>, vector<1x512xf32>
    %13 = arith.mulf %2, %2 : vector<32x512xf32>
    %cst_13 = arith.constant dense<0.000000e+00> : vector<512xf32>
    %14 = vector.multi_reduction <add>, %13, %cst_13 [0] : vector<32x512xf32> to vector<512xf32>
    %15 = vector.shape_cast %14 : vector<512xf32> to vector<1x512xf32>
    %16 = arith.addf %12, %15 : vector<1x512xf32>
    %c0_14 = arith.constant 0 : index
    %c0_15 = arith.constant 0 : index
    %17 = vector.load %arg5[%c0_14, %c0_15] : memref<1x512xf32, #tpu.memory_space<vmem>>, vector<1x512xf32>
    tpu.vector_store %arg5[%c0_14, %c0_15], %16 {strides = array<i32>} : memref<1x512xf32, #tpu.memory_space<vmem>>, vector<1x512xf32>,
    return
  }
  func.func @transform_0(%arg0: i32) -> (i32, i32) {
    %c0_i32 = arith.constant 0 : i32
    %c0_i32_0 = arith.constant 0 : i32
    return %arg0, %c0_i32 : i32, i32
  }
  func.func @transform_1(%arg0: i32) -> (i32, i32) {
    %c0_i32 = arith.constant 0 : i32
    %c0_i32_0 = arith.constant 0 : i32
    %c0_i32_1 = arith.constant 0 : i32
    return %c0_i32, %c0_i32_0 : i32, i32
  }
  func.func @transform_2(%arg0: i32) -> (i32, i32) {
    %c0_i32 = arith.constant 0 : i32
    %c0_i32_0 = arith.constant 0 : i32
    return %arg0, %c0_i32 : i32, i32
  }
  func.func @transform_3(%arg0: i32) -> (i32, i32) {
    %c0_i32 = arith.constant 0 : i32
    %c0_i32_0 = arith.constant 0 : i32
    %c0_i32_1 = arith.constant 0 : i32
    return %c0_i32, %c0_i32_0 : i32, i32
  }
  func.func @transform_4(%arg0: i32) -> (i32, i32) {
    %c0_i32 = arith.constant 0 : i32
    %c0_i32_0 = arith.constant 0 : i32
    %c0_i32_1 = arith.constant 0 : i32
    return %c0_i32, %c0_i32_0 : i32, i32
  }
}

module attributes {stable_mosaic.version = 11 : i64} {
  func.func @_bn_act_head_kernel(%arg0: i32, %arg1: memref<2x16x512xf32, #tpu.memory_space<vmem>>, %arg2: memref<1x1x512xf32, #tpu.memory_space<vmem>>, %arg3: memref<1x1x512xf32, #tpu.memory_space<vmem>>, %arg4: memref<1x16x512xf32, #tpu.memory_space<vmem>>, %arg5: memref<2x1xf32, #tpu.memory_space<vmem>>) attributes {dimension_semantics = [#tpu.dimension_semantics<parallel>], iteration_bounds = array<i64: 1>, scalar_prefetch = 0 : i64, scratch_operands = 0 : i64, tpu.core_type = #tpu.core_type<tc>, window_params = [{transform_indices = @transform_0, window_bounds = array<i64: 2, 16, 512>}, {pipeline_mode = #tpu.pipeline_mode<synchronous>, transform_indices = @transform_1, window_bounds = array<i64: 1, 1, 512>}, {pipeline_mode = #tpu.pipeline_mode<synchronous>, transform_indices = @transform_2, window_bounds = array<i64: 1, 1, 512>}, {pipeline_mode = #tpu.pipeline_mode<synchronous>, transform_indices = @transform_3, window_bounds = array<i64: 1, 16, 512>}, {transform_indices = @transform_4, window_bounds = array<i64: 2, 1>}]} {
    %c0 = arith.constant 0 : index
    %c0_0 = arith.constant 0 : index
    %c0_1 = arith.constant 0 : index
    %0 = vector.load %arg1[%c0, %c0_0, %c0_1] : memref<2x16x512xf32, #tpu.memory_space<vmem>>, vector<2x16x512xf32>
    %c0_2 = arith.constant 0 : index
    %c0_3 = arith.constant 0 : index
    %c0_4 = arith.constant 0 : index
    %1 = vector.load %arg2[%c0_2, %c0_3, %c0_4] : memref<1x1x512xf32, #tpu.memory_space<vmem>>, vector<1x1x512xf32>
    %2 = vector.broadcast %1 : vector<1x1x512xf32> to vector<2x16x512xf32>
    %3 = arith.mulf %0, %2 : vector<2x16x512xf32>
    %c0_5 = arith.constant 0 : index
    %c0_6 = arith.constant 0 : index
    %c0_7 = arith.constant 0 : index
    %4 = vector.load %arg3[%c0_5, %c0_6, %c0_7] : memref<1x1x512xf32, #tpu.memory_space<vmem>>, vector<1x1x512xf32>
    %5 = vector.broadcast %4 : vector<1x1x512xf32> to vector<2x16x512xf32>
    %6 = arith.addf %3, %5 : vector<2x16x512xf32>
    %cst = arith.constant 0.000000e+00 : f32
    %7 = vector.broadcast %cst : f32 to vector<2x16x512xf32>
    %8 = arith.cmpf oge, %6, %7 : vector<2x16x512xf32>
    %cst_8 = arith.constant 2.000000e-01 : f32
    %9 = vector.broadcast %cst_8 : f32 to vector<2x16x512xf32>
    %10 = arith.mulf %9, %6 : vector<2x16x512xf32>
    %11 = arith.select %8, %6, %10 : vector<2x16x512xi1>, vector<2x16x512xf32>
    %c0_9 = arith.constant 0 : index
    %c0_10 = arith.constant 0 : index
    %c0_11 = arith.constant 0 : index
    %12 = vector.load %arg4[%c0_9, %c0_10, %c0_11] : memref<1x16x512xf32, #tpu.memory_space<vmem>>, vector<1x16x512xf32>
    %13 = vector.broadcast %12 : vector<1x16x512xf32> to vector<2x16x512xf32>
    %14 = arith.mulf %11, %13 : vector<2x16x512xf32>
    %cst_12 = arith.constant dense<0.000000e+00> : vector<2x16xf32>
    %15 = vector.multi_reduction <add>, %14, %cst_12 [2] : vector<2x16x512xf32> to vector<2x16xf32>
    %cst_13 = arith.constant dense<0.000000e+00> : vector<2xf32>
    %16 = vector.multi_reduction <add>, %15, %cst_13 [1] : vector<2x16xf32> to vector<2xf32>
    %17 = vector.shape_cast %16 : vector<2xf32> to vector<2x1xf32>
    %cst_14 = arith.constant 0.000000e+00 : f32
    %18 = vector.broadcast %cst_14 : f32 to vector<2x1xf32>
    %19 = arith.subf %18, %17 : vector<2x1xf32>
    %20 = math.exp %19 : vector<2x1xf32>
    %cst_15 = arith.constant 1.000000e+00 : f32
    %21 = vector.broadcast %cst_15 : f32 to vector<2x1xf32>
    %22 = arith.addf %21, %20 : vector<2x1xf32>
    %cst_16 = arith.constant 1.000000e+00 : f32
    %23 = vector.broadcast %cst_16 : f32 to vector<2x1xf32>
    %24 = arith.divf %23, %22 : vector<2x1xf32>
    %c0_17 = arith.constant 0 : index
    %c0_18 = arith.constant 0 : index
    %25 = vector.load %arg5[%c0_17, %c0_18] : memref<2x1xf32, #tpu.memory_space<vmem>>, vector<2x1xf32>
    tpu.vector_store %arg5[%c0_17, %c0_18], %24 {strides = array<i32>} : memref<2x1xf32, #tpu.memory_space<vmem>>, vector<2x1xf32>,
    return
  }
  func.func @transform_0(%arg0: i32) -> (i32, i32, i32) {
    %c0_i32 = arith.constant 0 : i32
    %c0_i32_0 = arith.constant 0 : i32
    %c0_i32_1 = arith.constant 0 : i32
    return %arg0, %c0_i32, %c0_i32_0 : i32, i32, i32
  }
  func.func @transform_1(%arg0: i32) -> (i32, i32, i32) {
    %c0_i32 = arith.constant 0 : i32
    %c0_i32_0 = arith.constant 0 : i32
    %c0_i32_1 = arith.constant 0 : i32
    %c0_i32_2 = arith.constant 0 : i32
    return %c0_i32, %c0_i32_0, %c0_i32_1 : i32, i32, i32
  }
  func.func @transform_2(%arg0: i32) -> (i32, i32, i32) {
    %c0_i32 = arith.constant 0 : i32
    %c0_i32_0 = arith.constant 0 : i32
    %c0_i32_1 = arith.constant 0 : i32
    %c0_i32_2 = arith.constant 0 : i32
    return %c0_i32, %c0_i32_0, %c0_i32_1 : i32, i32, i32
  }
  func.func @transform_3(%arg0: i32) -> (i32, i32, i32) {
    %c0_i32 = arith.constant 0 : i32
    %c0_i32_0 = arith.constant 0 : i32
    %c0_i32_1 = arith.constant 0 : i32
    %c0_i32_2 = arith.constant 0 : i32
    return %c0_i32, %c0_i32_0, %c0_i32_1 : i32, i32, i32
  }
  func.func @transform_4(%arg0: i32) -> (i32, i32) {
    %c0_i32 = arith.constant 0 : i32
    %c0_i32_0 = arith.constant 0 : i32
    return %arg0, %c0_i32 : i32, i32
  }
}

</mosaic_0001>

<bundles_post_ra>
// kernel: discriminator_forward.7
= control target key start
LH: loop header
LB: loop body
LE: loop exit
PB: predicated region body
PF: predicated region fallthrough
CT: control target
= control target key end

     0   :  { %s1712_s9 = smov 0   ;;  %s1925_s0 = inlined_call_operand.vmem [shape: bf16[2048,128], index: 0, kind: input, shape index: {}]   ;;  %s1926_s1 = inlined_call_operand.vmem [shape: bf16[128,64], index: 1, kind: input, shape index: {}]   ;;  %s1927_s2 = inlined_call_operand.vmem [shape: bf16[2048,64], index: 2, kind: output, shape index: {}]  }
   0x1 LB: > { %s1326_s10 = sadd.s32 4294967295, %s1695_s9   ;;  %p1330_p0 = scmp.ge.s32.totalorder %s1695_s9, 1  ;;  %s1695_s9 = sphi %s1712_s9, %s12_s9  }
   0x2   : > { %p113_p1 = scmp.lt.s32.totalorder %s1695_s9, 5 }
   0x4   : > { %p114_p2 = pnand %p1330_p0, %p113_p1 }
   0x5   : > { %v1649_v0 = vld [vmem:[%s1926_s1] sm:$0xff] (!%p114_p2)   ;;  %s1331_s13 = sshll.u32 (!%p114_p2), %s1326_s10, 6  ;;  %v1650_v1 = vld [vmem:[%s1926_s1 + $0x8] sm:$0xff] (!%p114_p2)   ;;  %v1651_v2 = vld [vmem:[%s1926_s1 + $0x10] sm:$0xff] (!%p114_p2)   ;;  %vm1205_vm2 = vcmask (!%p114_p2), 519168  }
   0x6   : > { %117 = sbr.rel (%p114_p2) target bundleno = 322 (0x142), region = 28  ;;  %p136_p3 = scmp.lt.s32.totalorder (!%p114_p2), %s1331_s13, 255  ;;  %1545 = vmatprep.subr.bf16.mxu0 (!%p114_p2), %v1649_v0  ;;  %1625 = vmatprep.subr.bf16.mxu1 (!%p114_p2), %v1649_v0  ;;  %v1652_v3 = vld [vmem:[%s1926_s1 + $0x18] sm:$0xff] (!%p114_p2)   ;;  %v1653_v6 = vld [vmem:[%s1926_s1 + $0x20] sm:$0xff] (!%p114_p2)   ;;  %v1654_v7 = vld [vmem:[%s1926_s1 + $0x28] sm:$0xff] (!%p114_p2)  }
   0x7   : > { %1546 = vmatpush3.bf16.msra.mxu0 (!%p114_p2), %v1649_v0  ;;  %1633 = vmatpush3.bf16.msra.mxu1 (!%p114_p2), %v1649_v0  ;;  %v1655_v8 = vld [vmem:[%s1926_s1 + $0x30] sm:$0xff] (!%p114_p2)   ;;  %v1656_v9 = vld [vmem:[%s1926_s1 + $0x38] sm:$0xff] (!%p114_p2)  }
   0x8   : > { %1547 = vmatprep.subr.bf16.mxu0 (!%p114_p2), %v1650_v1  ;;  %1626 = vmatprep.subr.bf16.mxu1 (!%p114_p2), %v1650_v1 }
   0xb   : > { %1548 = vmatpush3.bf16.msra.mxu0 (!%p114_p2), %v1650_v1  ;;  %1634 = vmatpush3.bf16.msra.mxu1 (!%p114_p2), %v1650_v1 }
   0xc   : > { %1549 = vmatprep.subr.bf16.mxu0 (!%p114_p2), %v1651_v2  ;;  %1627 = vmatprep.subr.bf16.mxu1 (!%p114_p2), %v1651_v2 }
   0xd   : > { %s1929_s13 = smov (!%p136_p3, %s1331_s13), 255 }
   0xe   : > { %s1332_s18 = sshll.u32 %s1929_s13, 2 }
   0xf   : > { %s1737_s21 = scalar_lea.vmem %s1925_s0, %s1332_s18  ;;  %1550 = vmatpush3.bf16.msra.mxu0 %v1651_v2  ;;  %1635 = vmatpush3.bf16.msra.mxu1 %v1651_v2  ;;  %s1791_s6 = scalar_lea.vmem %s1927_s2, %s1332_s18 }
  0x10   : > { %v1657_v4 = vld [vmem:[%s1737_s21] sm:$0xff]   ;;  %1551 = vmatprep.subr.bf16.mxu0 %v1652_v3  ;;  %1628 = vmatprep.subr.bf16.mxu1 %v1652_v3  ;;  %v1659_v10 = vld [vmem:[%s1737_s21 + $0x8] sm:$0xff]   ;;  %v1661_v12 = vld [vmem:[%s1737_s21 + $0x10] sm:$0xff]  }
  0x11   : > { %v1658_v5 = vld [vmem:[%s1737_s21 + $0x80] sm:$0xff]   ;;  %1561 = vmatprep.mubr.bf16.mxu0 %v1657_v4  ;;  %v1660_v11 = vld [vmem:[%s1737_s21 + $0x88] sm:$0xff]   ;;  %v1662_v13 = vld [vmem:[%s1737_s21 + $0x90] sm:$0xff]  }
  0x12   : > { %1593 = vmatprep.mubr.bf16.mxu1 %v1658_v5  ;;  %v1663_v14 = vld [vmem:[%s1737_s21 + $0x18] sm:$0xff]   ;;  %v1665_v16 = vld [vmem:[%s1737_s21 + $0x20] sm:$0xff]   ;;  %v1667_v18 = vld [vmem:[%s1737_s21 + $0x28] sm:$0xff]  }
  0x13   : > { %1552 = vmatpush3.bf16.msra.mxu0 %v1652_v3  ;;  %1636 = vmatpush3.bf16.msra.mxu1 %v1652_v3  ;;  %v1664_v15 = vld [vmem:[%s1737_s21 + $0x98] sm:$0xff]   ;;  %v1666_v17 = vld [vmem:[%s1737_s21 + $0xa0] sm:$0xff]   ;;  %v1668_v19 = vld [vmem:[%s1737_s21 + $0xa8] sm:$0xff]  }
  0x14   : > { %1553 = vmatprep.subr.bf16.mxu0 %v1653_v6  ;;  %1629 = vmatprep.subr.bf16.mxu1 %v1653_v6  ;;  %v1669_v20 = vld [vmem:[%s1737_s21 + $0x30] sm:$0xff]   ;;  %v1671_v22 = vld [vmem:[%s1737_s21 + $0x38] sm:$0xff]   ;;  %v1673_v24 = vld [vmem:[%s1737_s21 + $0x40] sm:$0xff]  }
  0x15   : > { %v1670_v21 = vld [vmem:[%s1737_s21 + $0xb0] sm:$0xff]   ;;  %v1672_v23 = vld [vmem:[%s1737_s21 + $0xb8] sm:$0xff]   ;;  %v1674_v25 = vld [vmem:[%s1737_s21 + $0xc0] sm:$0xff]  }
  0x16   : > { %v1675_v26 = vld [vmem:[%s1737_s21 + $0x48] sm:$0xff]   ;;  %v1677_v28 = vld [vmem:[%s1737_s21 + $0x50] sm:$0xff]   ;;  %v1679_v30 = vld [vmem:[%s1737_s21 + $0x58] sm:$0xff]  }
  0x17   : > { %1554 = vmatpush3.bf16.msra.mxu0 %v1653_v6  ;;  %1637 = vmatpush3.bf16.msra.mxu1 %v1653_v6  ;;  %v1676_v27 = vld [vmem:[%s1737_s21 + $0xc8] sm:$0xff]   ;;  %v1678_v29 = vld [vmem:[%s1737_s21 + $0xd0] sm:$0xff]   ;;  %v1680_v31 = vld [vmem:[%s1737_s21 + $0xd8] sm:$0xff]  }
  0x18   : > { %1555 = vmatprep.subr.bf16.mxu0 %v1654_v7  ;;  %1630 = vmatprep.subr.bf16.mxu1 %v1654_v7  ;;  %v1681_v32 = vld [vmem:[%s1737_s21 + $0x60] sm:$0xff]   ;;  %v1683_v34 = vld [vmem:[%s1737_s21 + $0x68] sm:$0xff]   ;;  %v1685_v36 = vld [vmem:[%s1737_s21 + $0x70] sm:$0xff]  }
  0x19   : > { %v1682_v33 = vld [vmem:[%s1737_s21 + $0xe0] sm:$0xff]   ;;  %v1684_v35 = vld [vmem:[%s1737_s21 + $0xe8] sm:$0xff]   ;;  %v1686_v37 = vld [vmem:[%s1737_s21 + $0xf0] sm:$0xff]  }
  0x1a   : > { %v1687_v38 = vld [vmem:[%s1737_s21 + $0x78] sm:$0xff]  }
  0x1b   : > { %1556 = vmatpush3.bf16.msra.mxu0 %v1654_v7  ;;  %1638 = vmatpush3.bf16.msra.mxu1 %v1654_v7  ;;  %v1688_v39 = vld [vmem:[%s1737_s21 + $0xf8] sm:$0xff]  }
  0x1c   : > { %1557 = vmatprep.subr.bf16.mxu0 %v1655_v8  ;;  %1631 = vmatprep.subr.bf16.mxu1 %v1655_v8 }
  0x1f   : > { %1558 = vmatpush3.bf16.msra.mxu0 %v1655_v8  ;;  %1639 = vmatpush3.bf16.msra.mxu1 %v1655_v8 }
  0x20   : > { %1559 = vmatprep.subr.bf16.mxu0 %v1656_v9  ;;  %1632 = vmatprep.subr.bf16.mxu1 %v1656_v9 }
  0x23   : > { %1560 = vmatpush3.bf16.msra.mxu0 %v1656_v9  ;;  %1640 = vmatpush3.bf16.msra.mxu1 %v1656_v9 }
  0x26   : > { %1562 = vmatmul.mubr.bf16.vlgmr.msra.gmra.mrb[0].mxu0 %v1659_v10  ;;  %1594 = vmatmul.mubr.bf16.vlgmr.msra.gmra.mrb[0].mxu1 %v1660_v11 }
  0x27   : > { %1565 = vmatprep.mubr.bf16.mxu0 %v1661_v12  ;;  %1597 = vmatprep.mubr.bf16.mxu1 %v1662_v13 }
  0x2e   : > { %1566 = vmatmul.mubr.bf16.gmra.mrb[4].mxu0 %v1663_v14  ;;  %1598 = vmatmul.mubr.bf16.gmra.mrb[4].mxu1 %v1664_v15 }
  0x2f   : > { %1569 = vmatprep.mubr.bf16.mxu0 %v1665_v16  ;;  %1601 = vmatprep.mubr.bf16.mxu1 %v1666_v17 }
  0x36   : > { %1570 = vmatmul.mubr.bf16.gmra.mrb[8].mxu0 %v1667_v18  ;;  %1602 = vmatmul.mubr.bf16.gmra.mrb[8].mxu1 %v1668_v19 }
  0x37   : > { %1573 = vmatprep.mubr.bf16.mxu0 %v1669_v20  ;;  %1605 = vmatprep.mubr.bf16.mxu1 %v1670_v21 }
  0x3e   : > { %1574 = vmatmul.mubr.bf16.gmra.mrb[12].mxu0 %v1671_v22  ;;  %1606 = vmatmul.mubr.bf16.gmra.mrb[12].mxu1 %v1672_v23 }
  0x3f   : > { %1577 = vmatprep.mubr.bf16.mxu0 %v1673_v24  ;;  %1609 = vmatprep.mubr.bf16.mxu1 %v1674_v25 }
  0x46   : > { %1578 = vmatmul.mubr.bf16.gmra.mrb[16].mxu0 %v1675_v26  ;;  %1610 = vmatmul.mubr.bf16.gmra.mrb[16].mxu1 %v1676_v27 }
  0x47   : > { %1581 = vmatprep.mubr.bf16.mxu0 %v1677_v28  ;;  %1613 = vmatprep.mubr.bf16.mxu1 %v1678_v29 }
  0x4e   : > { %1582 = vmatmul.mubr.bf16.gmra.mrb[20].mxu0 %v1679_v30  ;;  %1614 = vmatmul.mubr.bf16.gmra.mrb[20].mxu1 %v1680_v31 }
  0x4f   : > { %1585 = vmatprep.mubr.bf16.mxu0 %v1681_v32  ;;  %1617 = vmatprep.mubr.bf16.mxu1 %v1682_v33 }
  0x56   : > { %1586 = vmatmul.mubr.bf16.gmra.mrb[24].mxu0 %v1683_v34  ;;  %1618 = vmatmul.mubr.bf16.gmra.mrb[24].mxu1 %v1684_v35 }
  0x57   : > { %1589 = vmatprep.mubr.bf16.mxu0 %v1685_v36  ;;  %1621 = vmatprep.mubr.bf16.mxu1 %v1686_v37 }
  0x5e   : > { %1590 = vmatmul.mubr.bf16.gmra.mrb[28].mxu0 %v1687_v38  ;;  %1622 = vmatmul.mubr.bf16.gmra.mrb[28].mxu1 %v1688_v39 }
  0xf9   : > { %v1563_v40 = vpop.f32.mrb[0].mxu0  ;;  %v1595_v41 = vpop.f32.mrb[0].mxu1 }
  0xfa   : > { %vm759_vm0 = vcmp.ge.f32.partialorder %v1563_v40, 0.0  ;;  %v823_v42 = vmul.f32 0.01, %v1563_v40  ;;  %vm791_vm1 = vcmp.ge.f32.partialorder %v1595_v41, 0.0  ;;  %v855_v43 = vmul.f32 0.01, %v1595_v41 }
  0xfb   : > { %v502_v44 = vpop.f32.mrb[1].mxu0  ;;  %v630_v45 = vpop.f32.mrb[1].mxu1 }
  0xfc   : > { %v887_v46 = vsel %vm759_vm0, %v1563_v40, %v823_v42  ;;  %v919_v47 = vsel %vm791_vm1, %v1595_v41, %v855_v43  ;;  %vm757_vm3 = vcmp.ge.f32.partialorder %v502_v44, 0.0  ;;  %v821_v48 = vmul.f32 0.01, %v502_v44  ;;  %v1564_v49 = vpop.f32.mrb[2].mxu0  ;;  %v1596_v50 = vpop.f32.mrb[2].mxu1 }
  0xfd   : > { %v1443_v51 = vpack.c.bf16 %v887_v46, %v887_v46  ;;  %v1475_v52 = vpack.c.bf16 %v919_v47, %v919_v47  ;;  %vm789_vm4 = vcmp.ge.f32.partialorder %v630_v45, 0.0  ;;  %v853_v53 = vmul.f32 0.01, %v630_v45  ;;  %v505_v54 = vpop.f32.mrb[3].mxu0  ;;  %v633_v55 = vpop.f32.mrb[3].mxu1 }
  0xfe   : > { %v885_v56 = vsel %vm757_vm3, %v502_v44, %v821_v48  ;;  %vm760_vm5 = vcmp.ge.f32.partialorder %v1564_v49, 0.0  ;;  %v824_v57 = vmul.f32 0.01, %v1564_v49  ;;  %vm792_vm6 = vcmp.ge.f32.partialorder %v1596_v50, 0.0 }
  0xff   : > { %1208 = vst.msk [vmem:[%s1791_s6 + $0x8] sm:$0xf] %vm1205_vm2, %v1443_v51  ;;  %1240 = vst.msk [vmem:[%s1791_s6 + $0x88] sm:$0xf] %vm1205_vm2, %v1475_v52  ;;  %v1441_v58 = vpack.c.bf16 %v885_v56, %v885_v56  ;;  %v917_v59 = vsel %vm789_vm4, %v630_v45, %v853_v53  ;;  %v856_v60 = vmul.f32 0.01, %v1596_v50 }
 0x100   : > { %vm758_vm7 = vcmp.ge.f32.partialorder %v505_v54, 0.0  ;;  %v1473_v61 = vpack.c.bf16 %v917_v59, %v917_v59  ;;  %v888_v62 = vsel %vm760_vm5, %v1564_v49, %v824_v57  ;;  %v822_v63 = vmul.f32 0.01, %v505_v54 }
 0x101   : > { %vm790_vm8 = vcmp.ge.f32.partialorder %v633_v55, 0.0  ;;  %1206 = vst.msk [vmem:[%s1791_s6] sm:$0xf] %vm1205_vm2, %v1441_v58  ;;  %v1444_v0 = vpack.c.bf16 %v888_v62, %v888_v62  ;;  %v920_v1 = vsel %vm792_vm6, %v1596_v50, %v856_v60  ;;  %v854_v2 = vmul.f32 0.01, %v633_v55  ;;  %v1567_v3 = vpop.f32.mrb[4].mxu0 }
 0x102   : > { %v1599_v4 = vpop.f32.mrb[4].mxu1  ;;  %1238 = vst.msk [vmem:[%s1791_s6 + $0x80] sm:$0xf] %vm1205_vm2, %v1473_v61  ;;  %v1476_v5 = vpack.c.bf16 %v920_v1, %v920_v1  ;;  %v886_v6 = vsel %vm758_vm7, %v505_v54, %v822_v63  ;;  %vm763_vm9 = vcmp.ge.f32.partialorder %v1567_v3, 0.0  ;;  %v827_v7 = vmul.f32 0.01, %v1567_v3 }
 0x103   : > { %v518_v8 = vpop.f32.mrb[5].mxu0  ;;  %v646_v9 = vpop.f32.mrb[5].mxu1  ;;  %1209 = vst.msk [vmem:[%s1791_s6 + $0xc] sm:$0xf] %vm1205_vm2, %v1444_v0  ;;  %v1442_v10 = vpack.c.bf16 %v886_v6, %v886_v6  ;;  %v918_v11 = vsel %vm790_vm8, %v633_v55, %v854_v2  ;;  %vm795_vm10 = vcmp.ge.f32.partialorder %v1599_v4, 0.0 }
 0x104   : > { %v859_v12 = vmul.f32 0.01, %v1599_v4  ;;  %v1568_v13 = vpop.f32.mrb[6].mxu0  ;;  %v1600_v14 = vpop.f32.mrb[6].mxu1  ;;  %1241 = vst.msk [vmem:[%s1791_s6 + $0x8c] sm:$0xf] %vm1205_vm2, %v1476_v5  ;;  %v1474_v15 = vpack.c.bf16 %v918_v11, %v918_v11  ;;  %v891_v16 = vsel %vm763_vm9, %v1567_v3, %v827_v7 }
 0x105   : > { %vm761_vm11 = vcmp.ge.f32.partialorder %v518_v8, 0.0  ;;  %v825_v17 = vmul.f32 0.01, %v518_v8  ;;  %v521_v18 = vpop.f32.mrb[7].mxu0  ;;  %v649_v19 = vpop.f32.mrb[7].mxu1  ;;  %v1447_v20 = vpack.c.bf16 %v891_v16, %v891_v16  ;;  %vm793_vm12 = vcmp.ge.f32.partialorder %v646_v9, 0.0 }
 0x106   : > { %1207 = vst.msk [vmem:[%s1791_s6 + $0x4] sm:$0xf] %vm1205_vm2, %v1442_v10  ;;  %v923_v21 = vsel %vm795_vm10, %v1599_v4, %v859_v12  ;;  %v857_v22 = vmul.f32 0.01, %v646_v9  ;;  %1239 = vst.msk [vmem:[%s1791_s6 + $0x84] sm:$0xf] %vm1205_vm2, %v1474_v15 }
 0x107   : > { %v1479_v23 = vpack.c.bf16 %v923_v21, %v923_v21  ;;  %v889_v24 = vsel %vm761_vm11, %v518_v8, %v825_v17  ;;  %vm764_vm13 = vcmp.ge.f32.partialorder %v1568_v13, 0.0  ;;  %v828_v25 = vmul.f32 0.01, %v1568_v13  ;;  %1212 = vst.msk [vmem:[%s1791_s6 + $0x18] sm:$0xf] %vm1205_vm2, %v1447_v20 }
 0x108   : > { %v1445_v26 = vpack.c.bf16 %v889_v24, %v889_v24  ;;  %v921_v27 = vsel %vm793_vm12, %v646_v9, %v857_v22  ;;  %vm796_vm14 = vcmp.ge.f32.partialorder %v1600_v14, 0.0  ;;  %v860_v28 = vmul.f32 0.01, %v1600_v14 }
 0x109   : > { %1244 = vst.msk [vmem:[%s1791_s6 + $0x98] sm:$0xf] %vm1205_vm2, %v1479_v23  ;;  %v1477_v29 = vpack.c.bf16 %v921_v27, %v921_v27  ;;  %v892_v30 = vsel %vm764_vm13, %v1568_v13, %v828_v25  ;;  %vm762_vm15 = vcmp.ge.f32.partialorder %v521_v18, 0.0  ;;  %v826_v31 = vmul.f32 0.01, %v521_v18  ;;  %v1571_v35 = vpop.f32.mrb[8].mxu0 }
 0x10a   : > { %1210 = vst.msk [vmem:[%s1791_s6 + $0x10] sm:$0xf] %vm1205_vm2, %v1445_v26  ;;  %v1448_v32 = vpack.c.bf16 %v892_v30, %v892_v30  ;;  %v924_v33 = vsel %vm796_vm14, %v1600_v14, %v860_v28  ;;  %vm794_vm0 = vcmp.ge.f32.partialorder %v649_v19, 0.0  ;;  %v858_v34 = vmul.f32 0.01, %v649_v19  ;;  %v1603_v36 = vpop.f32.mrb[8].mxu1 }
 0x10b   : > { %1242 = vst.msk [vmem:[%s1791_s6 + $0x90] sm:$0xf] %vm1205_vm2, %v1477_v29  ;;  %v1480_v37 = vpack.c.bf16 %v924_v33, %v924_v33  ;;  %v890_v38 = vsel %vm762_vm15, %v521_v18, %v826_v31  ;;  %vm767_vm1 = vcmp.ge.f32.partialorder %v1571_v35, 0.0  ;;  %v831_v39 = vmul.f32 0.01, %v1571_v35  ;;  %v534_v40 = vpop.f32.mrb[9].mxu0 }
 0x10c   : > { %v662_v41 = vpop.f32.mrb[9].mxu1  ;;  %1213 = vst.msk [vmem:[%s1791_s6 + $0x1c] sm:$0xf] %vm1205_vm2, %v1448_v32  ;;  %v1446_v42 = vpack.c.bf16 %v890_v38, %v890_v38  ;;  %v922_v43 = vsel %vm794_vm0, %v649_v19, %v858_v34  ;;  %vm799_vm3 = vcmp.ge.f32.partialorder %v1603_v36, 0.0  ;;  %v863_v44 = vmul.f32 0.01, %v1603_v36 }
 0x10d   : > { %v1572_v45 = vpop.f32.mrb[10].mxu0  ;;  %v1604_v46 = vpop.f32.mrb[10].mxu1  ;;  %1245 = vst.msk [vmem:[%s1791_s6 + $0x9c] sm:$0xf] %vm1205_vm2, %v1480_v37  ;;  %v1478_v47 = vpack.c.bf16 %v922_v43, %v922_v43  ;;  %v895_v48 = vsel %vm767_vm1, %v1571_v35, %v831_v39  ;;  %vm765_vm4 = vcmp.ge.f32.partialorder %v534_v40, 0.0  ;;  %vm797_vm5 = vcmp.ge.f32.partialorder %v662_v41, 0.0 }
 0x10e   : > { %v829_v49 = vmul.f32 0.01, %v534_v40  ;;  %v537_v50 = vpop.f32.mrb[11].mxu0  ;;  %v665_v51 = vpop.f32.mrb[11].mxu1  ;;  %1211 = vst.msk [vmem:[%s1791_s6 + $0x14] sm:$0xf] %vm1205_vm2, %v1446_v42  ;;  %v1451_v52 = vpack.c.bf16 %v895_v48, %v895_v48  ;;  %v927_v53 = vsel %vm799_vm3, %v1603_v36, %v863_v44 }
 0x10f   : > { %v861_v54 = vmul.f32 0.01, %v662_v41  ;;  %1243 = vst.msk [vmem:[%s1791_s6 + $0x94] sm:$0xf] %vm1205_vm2, %v1478_v47  ;;  %v1483_v55 = vpack.c.bf16 %v927_v53, %v927_v53  ;;  %vm768_vm6 = vcmp.ge.f32.partialorder %v1572_v45, 0.0  ;;  %vm800_vm7 = vcmp.ge.f32.partialorder %v1604_v46, 0.0 }
 0x110   : > { %v893_v56 = vsel %vm765_vm4, %v534_v40, %v829_v49  ;;  %v832_v57 = vmul.f32 0.01, %v1572_v45  ;;  %1216 = vst.msk [vmem:[%s1791_s6 + $0x28] sm:$0xf] %vm1205_vm2, %v1451_v52  ;;  %v864_v60 = vmul.f32 0.01, %v1604_v46 }
 0x111   : > { %v1449_v58 = vpack.c.bf16 %v893_v56, %v893_v56  ;;  %v925_v59 = vsel %vm797_vm5, %v662_v41, %v861_v54  ;;  %1248 = vst.msk [vmem:[%s1791_s6 + $0xa8] sm:$0xf] %vm1205_vm2, %v1483_v55  ;;  %vm766_vm8 = vcmp.ge.f32.partialorder %v537_v50, 0.0  ;;  %v830_v63 = vmul.f32 0.01, %v537_v50  ;;  %v1575_v3 = vpop.f32.mrb[12].mxu0 }
 0x112   : > { %v1481_v61 = vpack.c.bf16 %v925_v59, %v925_v59  ;;  %v896_v62 = vsel %vm768_vm6, %v1572_v45, %v832_v57  ;;  %v928_v1 = vsel %vm800_vm7, %v1604_v46, %v864_v60  ;;  %vm798_vm9 = vcmp.ge.f32.partialorder %v665_v51, 0.0  ;;  %v1607_v4 = vpop.f32.mrb[12].mxu1  ;;  %v550_v8 = vpop.f32.mrb[13].mxu0 }
 0x113   : > { %1214 = vst.msk [vmem:[%s1791_s6 + $0x20] sm:$0xf] %vm1205_vm2, %v1449_v58  ;;  %v1452_v0 = vpack.c.bf16 %v896_v62, %v896_v62  ;;  %v862_v2 = vmul.f32 0.01, %v665_v51  ;;  %v1484_v5 = vpack.c.bf16 %v928_v1, %v928_v1  ;;  %v894_v6 = vsel %vm766_vm8, %v537_v50, %v830_v63  ;;  %v678_v9 = vpop.f32.mrb[13].mxu1  ;;  %v1576_v13 = vpop.f32.mrb[14].mxu0 }
 0x114   : > { %1246 = vst.msk [vmem:[%s1791_s6 + $0xa0] sm:$0xf] %vm1205_vm2, %v1481_v61  ;;  %vm771_vm10 = vcmp.ge.f32.partialorder %v1575_v3, 0.0  ;;  %v835_v7 = vmul.f32 0.01, %v1575_v3  ;;  %v1450_v10 = vpack.c.bf16 %v894_v6, %v894_v6  ;;  %vm803_vm11 = vcmp.ge.f32.partialorder %v1607_v4, 0.0 }
 0x115   : > { %1217 = vst.msk [vmem:[%s1791_s6 + $0x2c] sm:$0xf] %vm1205_vm2, %v1452_v0  ;;  %v926_v11 = vsel %vm798_vm9, %v665_v51, %v862_v2  ;;  %v867_v12 = vmul.f32 0.01, %v1607_v4  ;;  %v1608_v14 = vpop.f32.mrb[14].mxu1  ;;  %vm769_vm12 = vcmp.ge.f32.partialorder %v550_v8, 0.0 }
 0x116   : > { %1249 = vst.msk [vmem:[%s1791_s6 + $0xac] sm:$0xf] %vm1205_vm2, %v1484_v5  ;;  %v1482_v15 = vpack.c.bf16 %v926_v11, %v926_v11  ;;  %v899_v16 = vsel %vm771_vm10, %v1575_v3, %v835_v7  ;;  %v833_v17 = vmul.f32 0.01, %v550_v8  ;;  %v553_v18 = vpop.f32.mrb[15].mxu0  ;;  %v681_v19 = vpop.f32.mrb[15].mxu1 }
 0x117   : > { %1215 = vst.msk [vmem:[%s1791_s6 + $0x24] sm:$0xf] %vm1205_vm2, %v1450_v10  ;;  %v1455_v20 = vpack.c.bf16 %v899_v16, %v899_v16  ;;  %v931_v21 = vsel %vm803_vm11, %v1607_v4, %v867_v12  ;;  %vm801_vm13 = vcmp.ge.f32.partialorder %v678_v9, 0.0  ;;  %v865_v22 = vmul.f32 0.01, %v678_v9 }
 0x118   : > { %1247 = vst.msk [vmem:[%s1791_s6 + $0xa4] sm:$0xf] %vm1205_vm2, %v1482_v15  ;;  %v1487_v23 = vpack.c.bf16 %v931_v21, %v931_v21  ;;  %v897_v24 = vsel %vm769_vm12, %v550_v8, %v833_v17  ;;  %vm772_vm14 = vcmp.ge.f32.partialorder %v1576_v13, 0.0  ;;  %v836_v25 = vmul.f32 0.01, %v1576_v13 }
 0x119   : > { %1220 = vst.msk [vmem:[%s1791_s6 + $0x38] sm:$0xf] %vm1205_vm2, %v1455_v20  ;;  %v1453_v26 = vpack.c.bf16 %v897_v24, %v897_v24  ;;  %v929_v27 = vsel %vm801_vm13, %v678_v9, %v865_v22  ;;  %vm804_vm15 = vcmp.ge.f32.partialorder %v1608_v14, 0.0  ;;  %v868_v28 = vmul.f32 0.01, %v1608_v14  ;;  %v1579_v35 = vpop.f32.mrb[16].mxu0 }
 0x11a   : > { %1252 = vst.msk [vmem:[%s1791_s6 + $0xb8] sm:$0xf] %vm1205_vm2, %v1487_v23  ;;  %v1485_v29 = vpack.c.bf16 %v929_v27, %v929_v27  ;;  %v900_v30 = vsel %vm772_vm14, %v1576_v13, %v836_v25  ;;  %vm770_vm0 = vcmp.ge.f32.partialorder %v553_v18, 0.0  ;;  %v834_v31 = vmul.f32 0.01, %v553_v18  ;;  %v1611_v36 = vpop.f32.mrb[16].mxu1 }
 0x11b   : > { %1218 = vst.msk [vmem:[%s1791_s6 + $0x30] sm:$0xf] %vm1205_vm2, %v1453_v26  ;;  %v1456_v32 = vpack.c.bf16 %v900_v30, %v900_v30  ;;  %v932_v33 = vsel %vm804_vm15, %v1608_v14, %v868_v28  ;;  %vm802_vm1 = vcmp.ge.f32.partialorder %v681_v19, 0.0  ;;  %v866_v34 = vmul.f32 0.01, %v681_v19  ;;  %v566_v40 = vpop.f32.mrb[17].mxu0 }
 0x11c   : > { %1250 = vst.msk [vmem:[%s1791_s6 + $0xb0] sm:$0xf] %vm1205_vm2, %v1485_v29  ;;  %v1488_v37 = vpack.c.bf16 %v932_v33, %v932_v33  ;;  %v898_v38 = vsel %vm770_vm0, %v553_v18, %v834_v31  ;;  %vm775_vm3 = vcmp.ge.f32.partialorder %v1579_v35, 0.0  ;;  %v839_v39 = vmul.f32 0.01, %v1579_v35  ;;  %v694_v41 = vpop.f32.mrb[17].mxu1 }
 0x11d   : > { %1221 = vst.msk [vmem:[%s1791_s6 + $0x3c] sm:$0xf] %vm1205_vm2, %v1456_v32  ;;  %v1454_v42 = vpack.c.bf16 %v898_v38, %v898_v38  ;;  %v930_v43 = vsel %vm802_vm1, %v681_v19, %v866_v34  ;;  %vm807_vm4 = vcmp.ge.f32.partialorder %v1611_v36, 0.0  ;;  %v871_v44 = vmul.f32 0.01, %v1611_v36  ;;  %v1580_v45 = vpop.f32.mrb[18].mxu0 }
 0x11e   : > { %v1612_v46 = vpop.f32.mrb[18].mxu1  ;;  %1253 = vst.msk [vmem:[%s1791_s6 + $0xbc] sm:$0xf] %vm1205_vm2, %v1488_v37  ;;  %v1486_v47 = vpack.c.bf16 %v930_v43, %v930_v43  ;;  %v903_v48 = vsel %vm775_vm3, %v1579_v35, %v839_v39  ;;  %vm773_vm5 = vcmp.ge.f32.partialorder %v566_v40, 0.0  ;;  %v837_v49 = vmul.f32 0.01, %v566_v40 }
 0x11f   : > { %v569_v50 = vpop.f32.mrb[19].mxu0  ;;  %v697_v51 = vpop.f32.mrb[19].mxu1  ;;  %1219 = vst.msk [vmem:[%s1791_s6 + $0x34] sm:$0xf] %vm1205_vm2, %v1454_v42  ;;  %v1459_v52 = vpack.c.bf16 %v903_v48, %v903_v48  ;;  %v935_v53 = vsel %vm807_vm4, %v1611_v36, %v871_v44  ;;  %vm805_vm6 = vcmp.ge.f32.partialorder %v694_v41, 0.0  ;;  %vm776_vm7 = vcmp.ge.f32.partialorder %v1580_v45, 0.0 }
 0x120   : > { %v869_v54 = vmul.f32 0.01, %v694_v41  ;;  %1251 = vst.msk [vmem:[%s1791_s6 + $0xb4] sm:$0xf] %vm1205_vm2, %v1486_v47  ;;  %v1491_v55 = vpack.c.bf16 %v935_v53, %v935_v53  ;;  %v901_v56 = vsel %vm773_vm5, %v566_v40, %v837_v49  ;;  %v840_v57 = vmul.f32 0.01, %v1580_v45 }
 0x121   : > { %1224 = vst.msk [vmem:[%s1791_s6 + $0x48] sm:$0xf] %vm1205_vm2, %v1459_v52  ;;  %v1457_v58 = vpack.c.bf16 %v901_v56, %v901_v56  ;;  %vm808_vm8 = vcmp.ge.f32.partialorder %v1612_v46, 0.0  ;;  %v872_v60 = vmul.f32 0.01, %v1612_v46  ;;  %vm774_vm9 = vcmp.ge.f32.partialorder %v569_v50, 0.0 }
 0x122   : > { %v933_v59 = vsel %vm805_vm6, %v694_v41, %v869_v54  ;;  %1256 = vst.msk [vmem:[%s1791_s6 + $0xc8] sm:$0xf] %vm1205_vm2, %v1491_v55  ;;  %v904_v62 = vsel %vm776_vm7, %v1580_v45, %v840_v57  ;;  %v838_v63 = vmul.f32 0.01, %v569_v50  ;;  %vm806_vm10 = vcmp.ge.f32.partialorder %v697_v51, 0.0  ;;  %v1583_v3 = vpop.f32.mrb[20].mxu0 }
 0x123   : > { %v1489_v61 = vpack.c.bf16 %v933_v59, %v933_v59  ;;  %1222 = vst.msk [vmem:[%s1791_s6 + $0x40] sm:$0xf] %vm1205_vm2, %v1457_v58  ;;  %v1460_v0 = vpack.c.bf16 %v904_v62, %v904_v62  ;;  %v936_v1 = vsel %vm808_vm8, %v1612_v46, %v872_v60  ;;  %v870_v2 = vmul.f32 0.01, %v697_v51  ;;  %v1615_v4 = vpop.f32.mrb[20].mxu1  ;;  %v582_v8 = vpop.f32.mrb[21].mxu0 }
 0x124   : > { %v1492_v5 = vpack.c.bf16 %v936_v1, %v936_v1  ;;  %v902_v6 = vsel %vm774_vm9, %v569_v50, %v838_v63  ;;  %vm779_vm11 = vcmp.ge.f32.partialorder %v1583_v3, 0.0  ;;  %v843_v7 = vmul.f32 0.01, %v1583_v3  ;;  %v710_v9 = vpop.f32.mrb[21].mxu1  ;;  %v1584_v13 = vpop.f32.mrb[22].mxu0 }
 0x125   : > { %1254 = vst.msk [vmem:[%s1791_s6 + $0xc0] sm:$0xf] %vm1205_vm2, %v1489_v61  ;;  %1225 = vst.msk [vmem:[%s1791_s6 + $0x4c] sm:$0xf] %vm1205_vm2, %v1460_v0  ;;  %v1458_v10 = vpack.c.bf16 %v902_v6, %v902_v6  ;;  %v934_v11 = vsel %vm806_vm10, %v697_v51, %v870_v2  ;;  %vm811_vm12 = vcmp.ge.f32.partialorder %v1615_v4, 0.0  ;;  %v1616_v14 = vpop.f32.mrb[22].mxu1 }
 0x126   : > { %v875_v12 = vmul.f32 0.01, %v1615_v4  ;;  %1257 = vst.msk [vmem:[%s1791_s6 + $0xcc] sm:$0xf] %vm1205_vm2, %v1492_v5  ;;  %v1490_v15 = vpack.c.bf16 %v934_v11, %v934_v11  ;;  %v907_v16 = vsel %vm779_vm11, %v1583_v3, %v843_v7  ;;  %vm777_vm13 = vcmp.ge.f32.partialorder %v582_v8, 0.0  ;;  %v585_v18 = vpop.f32.mrb[23].mxu0 }
 0x127   : > { %v841_v17 = vmul.f32 0.01, %v582_v8  ;;  %v713_v19 = vpop.f32.mrb[23].mxu1  ;;  %1223 = vst.msk [vmem:[%s1791_s6 + $0x44] sm:$0xf] %vm1205_vm2, %v1458_v10  ;;  %v1463_v20 = vpack.c.bf16 %v907_v16, %v907_v16  ;;  %vm809_vm14 = vcmp.ge.f32.partialorder %v710_v9, 0.0 }
 0x128   : > { %v939_v21 = vsel %vm811_vm12, %v1615_v4, %v875_v12  ;;  %v873_v22 = vmul.f32 0.01, %v710_v9  ;;  %1255 = vst.msk [vmem:[%s1791_s6 + $0xc4] sm:$0xf] %vm1205_vm2, %v1490_v15  ;;  %vm780_vm15 = vcmp.ge.f32.partialorder %v1584_v13, 0.0  ;;  %vm812_vm0 = vcmp.ge.f32.partialorder %v1616_v14, 0.0 }
 0x129   : > { %v1495_v23 = vpack.c.bf16 %v939_v21, %v939_v21  ;;  %v905_v24 = vsel %vm777_vm13, %v582_v8, %v841_v17  ;;  %v844_v25 = vmul.f32 0.01, %v1584_v13  ;;  %1228 = vst.msk [vmem:[%s1791_s6 + $0x58] sm:$0xf] %vm1205_vm2, %v1463_v20  ;;  %v876_v28 = vmul.f32 0.01, %v1616_v14 }
 0x12a   : > { %v1461_v26 = vpack.c.bf16 %v905_v24, %v905_v24  ;;  %v937_v27 = vsel %vm809_vm14, %v710_v9, %v873_v22  ;;  %vm778_vm1 = vcmp.ge.f32.partialorder %v585_v18, 0.0  ;;  %v842_v31 = vmul.f32 0.01, %v585_v18  ;;  %v1587_v35 = vpop.f32.mrb[24].mxu0  ;;  %v1619_v36 = vpop.f32.mrb[24].mxu1 }
 0x12b   : > { %1260 = vst.msk [vmem:[%s1791_s6 + $0xd8] sm:$0xf] %vm1205_vm2, %v1495_v23  ;;  %v1493_v29 = vpack.c.bf16 %v937_v27, %v937_v27  ;;  %v908_v30 = vsel %vm780_vm15, %v1584_v13, %v844_v25  ;;  %v940_v33 = vsel %vm812_vm0, %v1616_v14, %v876_v28  ;;  %vm810_vm3 = vcmp.ge.f32.partialorder %v713_v19, 0.0  ;;  %v598_v40 = vpop.f32.mrb[25].mxu0  ;;  %v726_v41 = vpop.f32.mrb[25].mxu1 }
 0x12c   : > { %1226 = vst.msk [vmem:[%s1791_s6 + $0x50] sm:$0xf] %vm1205_vm2, %v1461_v26  ;;  %v1464_v32 = vpack.c.bf16 %v908_v30, %v908_v30  ;;  %v874_v34 = vmul.f32 0.01, %v713_v19  ;;  %v1496_v37 = vpack.c.bf16 %v940_v33, %v940_v33  ;;  %v906_v38 = vsel %vm778_vm1, %v585_v18, %v842_v31  ;;  %v1588_v45 = vpop.f32.mrb[26].mxu0  ;;  %v1620_v46 = vpop.f32.mrb[26].mxu1 }
 0x12d   : > { %1258 = vst.msk [vmem:[%s1791_s6 + $0xd0] sm:$0xf] %vm1205_vm2, %v1493_v29  ;;  %vm783_vm4 = vcmp.ge.f32.partialorder %v1587_v35, 0.0  ;;  %v847_v39 = vmul.f32 0.01, %v1587_v35  ;;  %v1462_v42 = vpack.c.bf16 %v906_v38, %v906_v38  ;;  %vm815_vm5 = vcmp.ge.f32.partialorder %v1619_v36, 0.0 }
 0x12e   : > { %1229 = vst.msk [vmem:[%s1791_s6 + $0x5c] sm:$0xf] %vm1205_vm2, %v1464_v32  ;;  %v938_v43 = vsel %vm810_vm3, %v713_v19, %v874_v34  ;;  %v879_v44 = vmul.f32 0.01, %v1619_v36  ;;  %1261 = vst.msk [vmem:[%s1791_s6 + $0xdc] sm:$0xf] %vm1205_vm2, %v1496_v37 }
 0x12f   : > { %v1494_v47 = vpack.c.bf16 %v938_v43, %v938_v43  ;;  %v911_v48 = vsel %vm783_vm4, %v1587_v35, %v847_v39  ;;  %vm781_vm6 = vcmp.ge.f32.partialorder %v598_v40, 0.0  ;;  %v845_v49 = vmul.f32 0.01, %v598_v40  ;;  %v601_v50 = vpop.f32.mrb[27].mxu0  ;;  %v729_v51 = vpop.f32.mrb[27].mxu1 }
 0x130   : > { %1227 = vst.msk [vmem:[%s1791_s6 + $0x54] sm:$0xf] %vm1205_vm2, %v1462_v42  ;;  %v1467_v52 = vpack.c.bf16 %v911_v48, %v911_v48  ;;  %v943_v53 = vsel %vm815_vm5, %v1619_v36, %v879_v44  ;;  %vm813_vm7 = vcmp.ge.f32.partialorder %v726_v41, 0.0  ;;  %v877_v54 = vmul.f32 0.01, %v726_v41 }
 0x131   : > { %1259 = vst.msk [vmem:[%s1791_s6 + $0xd4] sm:$0xf] %vm1205_vm2, %v1494_v47  ;;  %v1499_v55 = vpack.c.bf16 %v943_v53, %v943_v53  ;;  %v909_v56 = vsel %vm781_vm6, %v598_v40, %v845_v49  ;;  %vm784_vm8 = vcmp.ge.f32.partialorder %v1588_v45, 0.0  ;;  %v848_v57 = vmul.f32 0.01, %v1588_v45  ;;  %v1591_v3 = vpop.f32.mrb[28].mxu0 }
 0x132   : > { %1232 = vst.msk [vmem:[%s1791_s6 + $0x68] sm:$0xf] %vm1205_vm2, %v1467_v52  ;;  %v1465_v58 = vpack.c.bf16 %v909_v56, %v909_v56  ;;  %v941_v59 = vsel %vm813_vm7, %v726_v41, %v877_v54  ;;  %vm816_vm9 = vcmp.ge.f32.partialorder %v1620_v46, 0.0  ;;  %v880_v60 = vmul.f32 0.01, %v1620_v46  ;;  %v1623_v4 = vpop.f32.mrb[28].mxu1 }
 0x133   : > { %1264 = vst.msk [vmem:[%s1791_s6 + $0xe8] sm:$0xf] %vm1205_vm2, %v1499_v55  ;;  %v1497_v61 = vpack.c.bf16 %v941_v59, %v941_v59  ;;  %v912_v62 = vsel %vm784_vm8, %v1588_v45, %v848_v57  ;;  %vm782_vm10 = vcmp.ge.f32.partialorder %v601_v50, 0.0  ;;  %v846_v63 = vmul.f32 0.01, %v601_v50  ;;  %v614_v8 = vpop.f32.mrb[29].mxu0 }
 0x134   : > { %1230 = vst.msk [vmem:[%s1791_s6 + $0x60] sm:$0xf] %vm1205_vm2, %v1465_v58  ;;  %v1468_v0 = vpack.c.bf16 %v912_v62, %v912_v62  ;;  %v944_v1 = vsel %vm816_vm9, %v1620_v46, %v880_v60  ;;  %vm814_vm11 = vcmp.ge.f32.partialorder %v729_v51, 0.0  ;;  %v878_v2 = vmul.f32 0.01, %v729_v51  ;;  %v742_v9 = vpop.f32.mrb[29].mxu1 }
 0x135   : > { %1262 = vst.msk [vmem:[%s1791_s6 + $0xe0] sm:$0xf] %vm1205_vm2, %v1497_v61  ;;  %v1500_v5 = vpack.c.bf16 %v944_v1, %v944_v1  ;;  %v910_v6 = vsel %vm782_vm10, %v601_v50, %v846_v63  ;;  %vm787_vm12 = vcmp.ge.f32.partialorder %v1591_v3, 0.0  ;;  %v851_v7 = vmul.f32 0.01, %v1591_v3  ;;  %v1592_v13 = vpop.f32.mrb[30].mxu0 }
 0x136   : > { %1233 = vst.msk [vmem:[%s1791_s6 + $0x6c] sm:$0xf] %vm1205_vm2, %v1468_v0  ;;  %v1466_v10 = vpack.c.bf16 %v910_v6, %v910_v6  ;;  %v942_v11 = vsel %vm814_vm11, %v729_v51, %v878_v2  ;;  %vm819_vm13 = vcmp.ge.f32.partialorder %v1623_v4, 0.0  ;;  %v883_v12 = vmul.f32 0.01, %v1623_v4  ;;  %v1624_v14 = vpop.f32.mrb[30].mxu1 }
 0x137   : > { %1265 = vst.msk [vmem:[%s1791_s6 + $0xec] sm:$0xf] %vm1205_vm2, %v1500_v5  ;;  %v1498_v15 = vpack.c.bf16 %v942_v11, %v942_v11  ;;  %v915_v16 = vsel %vm787_vm12, %v1591_v3, %v851_v7  ;;  %vm785_vm14 = vcmp.ge.f32.partialorder %v614_v8, 0.0  ;;  %v849_v17 = vmul.f32 0.01, %v614_v8  ;;  %v617_v18 = vpop.f32.mrb[31].mxu0 }
 0x138   : > { %v745_v19 = vpop.f32.mrb[31].mxu1  ;;  %1231 = vst.msk [vmem:[%s1791_s6 + $0x64] sm:$0xf] %vm1205_vm2, %v1466_v10  ;;  %v1471_v20 = vpack.c.bf16 %v915_v16, %v915_v16  ;;  %v947_v21 = vsel %vm819_vm13, %v1623_v4, %v883_v12  ;;  %vm817_vm15 = vcmp.ge.f32.partialorder %v742_v9, 0.0  ;;  %v881_v22 = vmul.f32 0.01, %v742_v9 }
 0x139   : > { %1263 = vst.msk [vmem:[%s1791_s6 + $0xe4] sm:$0xf] %vm1205_vm2, %v1498_v15  ;;  %v1503_v23 = vpack.c.bf16 %v947_v21, %v947_v21  ;;  %v913_v24 = vsel %vm785_vm14, %v614_v8, %v849_v17  ;;  %vm788_vm0 = vcmp.ge.f32.partialorder %v1592_v13, 0.0  ;;  %v852_v25 = vmul.f32 0.01, %v1592_v13 }
 0x13a   : > { %1236 = vst.msk [vmem:[%s1791_s6 + $0x78] sm:$0xf] %vm1205_vm2, %v1471_v20  ;;  %v1469_v26 = vpack.c.bf16 %v913_v24, %v913_v24  ;;  %v945_v27 = vsel %vm817_vm15, %v742_v9, %v881_v22  ;;  %vm820_vm1 = vcmp.ge.f32.partialorder %v1624_v14, 0.0  ;;  %v884_v28 = vmul.f32 0.01, %v1624_v14 }
 0x13b   : > { %1268 = vst.msk [vmem:[%s1791_s6 + $0xf8] sm:$0xf] %vm1205_vm2, %v1503_v23  ;;  %v1501_v29 = vpack.c.bf16 %v945_v27, %v945_v27  ;;  %v916_v30 = vsel %vm788_vm0, %v1592_v13, %v852_v25  ;;  %vm786_vm3 = vcmp.ge.f32.partialorder %v617_v18, 0.0  ;;  %v850_v31 = vmul.f32 0.01, %v617_v18 }
 0x13c   : > { %1234 = vst.msk [vmem:[%s1791_s6 + $0x70] sm:$0xf] %vm1205_vm2, %v1469_v26  ;;  %v1472_v32 = vpack.c.bf16 %v916_v30, %v916_v30  ;;  %v948_v33 = vsel %vm820_vm1, %v1624_v14, %v884_v28  ;;  %vm818_vm4 = vcmp.ge.f32.partialorder %v745_v19, 0.0  ;;  %v882_v34 = vmul.f32 0.01, %v745_v19 }
 0x13d   : > { %1266 = vst.msk [vmem:[%s1791_s6 + $0xf0] sm:$0xf] %vm1205_vm2, %v1501_v29  ;;  %v1504_v35 = vpack.c.bf16 %v948_v33, %v948_v33  ;;  %v914_v36 = vsel %vm786_vm3, %v617_v18, %v850_v31 }
 0x13e   : > { %1237 = vst.msk [vmem:[%s1791_s6 + $0x7c] sm:$0xf] %vm1205_vm2, %v1472_v32  ;;  %v1470_v37 = vpack.c.bf16 %v914_v36, %v914_v36  ;;  %v946_v38 = vsel %vm818_vm4, %v745_v19, %v882_v34 }
 0x13f   : > { %1269 = vst.msk [vmem:[%s1791_s6 + $0xfc] sm:$0xf] %vm1205_vm2, %v1504_v35  ;;  %v1502_v39 = vpack.c.bf16 %v946_v38, %v946_v38 }
 0x140   : > { %1235 = vst.msk [vmem:[%s1791_s6 + $0x74] sm:$0xf] %vm1205_vm2, %v1470_v37 }
 0x141   : > { %1267 = vst.msk [vmem:[%s1791_s6 + $0xf4] sm:$0xf] %vm1205_vm2, %v1502_v39 }
 0x142 PF: > { %s12_s9 = sadd.s32 1, %s1695_s9  }
 0x143   : > { %p9_p4 = scmp.ge.s32.totalorder %s12_s9, 6  }
 0x145   :  { %11 = sbr.rel (!%p9_p4) target bundleno = 1 (0x1), region = 58 }

// kernel: discriminator_forward.9
= control target key start
LH: loop header
LB: loop body
LE: loop exit
PB: predicated region body
PF: predicated region fallthrough
CT: control target
= control target key end

     0   :  { %s1503_s0 = inlined_call_operand.vmem [shape: f32[512,128], index: 0, kind: input, shape index: {}]   ;;  %s1504_s1 = inlined_call_operand.vmem [shape: f32[1,128], index: 1, kind: input, shape index: {}]   ;;  %s1505_s2 = inlined_call_operand.vmem [shape: f32[1,128], index: 2, kind: input, shape index: {}]   ;;  %s1506_s3 = inlined_call_operand.vmem [shape: bf16[512,128], index: 3, kind: output, shape index: {}]  }
   0x1   :  { %v14_v0 = vld [vmem:[%s1503_s0] sm:$0xff]  ;;  %v15_v1 = vld [vmem:[%s1503_s0 + $0x8] sm:$0xff]  ;;  %v16_v6 = vld [vmem:[%s1503_s0 + $0x10] sm:$0xff] }
   0x2   :  { %v1086_v2 = vld [vmem:[%s1504_s1] ss:$0 sm:$0xff]  ;;  %v17_v7 = vld [vmem:[%s1503_s0 + $0x18] sm:$0xff]  ;;  %v19_v11 = vld [vmem:[%s1503_s0 + $0x28] sm:$0xff] }
   0x3   :  { %v85_v3 = vmul.f32 %v1086_v2, %v14_v0  ;;  %v86_v4 = vmul.f32 %v1086_v2, %v15_v1  ;;  %v1093_v5 = vld [vmem:[%s1505_s2] ss:$0 sm:$0xff]  ;;  %v87_v8 = vmul.f32 %v1086_v2, %v16_v6  ;;  %v88_v9 = vmul.f32 %v1086_v2, %v17_v7  ;;  %v20_v12 = vld [vmem:[%s1503_s0 + $0x30] sm:$0xff]  ;;  %v21_v17 = vld [vmem:[%s1503_s0 + $0x38] sm:$0xff] }
   0x4   :  { %v18_v10 = vld [vmem:[%s1503_s0 + $0x20] sm:$0xff]  ;;  %v90_v16 = vmul.f32 %v1086_v2, %v19_v11  ;;  %v91_v20 = vmul.f32 %v1086_v2, %v20_v12  ;;  %v92_v21 = vmul.f32 %v1086_v2, %v21_v17  ;;  %v23_v35 = vld [vmem:[%s1503_s0 + $0x48] sm:$0xff]  ;;  %v24_v36 = vld [vmem:[%s1503_s0 + $0x50] sm:$0xff] }
   0x5   :  { %v156_v13 = vadd.f32 %v1093_v5, %v85_v3  ;;  %v157_v14 = vadd.f32 %v1093_v5, %v86_v4  ;;  %v89_v15 = vmul.f32 %v1086_v2, %v18_v10  ;;  %v158_v18 = vadd.f32 %v1093_v5, %v87_v8  ;;  %v22_v34 = vld [vmem:[%s1503_s0 + $0x40] sm:$0xff]  ;;  %v25_v42 = vld [vmem:[%s1503_s0 + $0x58] sm:$0xff]  ;;  %v27_v48 = vld [vmem:[%s1503_s0 + $0x68] sm:$0xff] }
   0x6   :  { %v159_v19 = vadd.f32 %v1093_v5, %v88_v9  ;;  %v161_v29 = vadd.f32 %v1093_v5, %v90_v16  ;;  %v162_v33 = vadd.f32 %v1093_v5, %v91_v20  ;;  %v163_v40 = vadd.f32 %v1093_v5, %v92_v21  ;;  %v26_v47 = vld [vmem:[%s1503_s0 + $0x60] sm:$0xff]  ;;  %v28_v60 = vld [vmem:[%s1503_s0 + $0x70] sm:$0xff]  ;;  %v29_v7 = vld [vmem:[%s1503_s0 + $0x78] sm:$0xff] }
   0x7   :  { %vm220_vm0 = vcmp.ge.f32.partialorder %v156_v13, 0.0  ;;  %vm221_vm1 = vcmp.ge.f32.partialorder %v157_v14, 0.0  ;;  %v284_v22 = vmul.f32 0.2, %v156_v13  ;;  %v285_v23 = vmul.f32 0.2, %v157_v14 }
   0x8   :  { %vm222_vm2 = vcmp.ge.f32.partialorder %v158_v18, 0.0  ;;  %vm223_vm3 = vcmp.ge.f32.partialorder %v159_v19, 0.0  ;;  %v286_v24 = vmul.f32 0.2, %v158_v18  ;;  %v287_v25 = vmul.f32 0.2, %v159_v19 }
   0x9   :  { %v348_v26 = vsel %vm220_vm0, %v156_v13, %v284_v22  ;;  %v349_v27 = vsel %vm221_vm1, %v157_v14, %v285_v23  ;;  %v160_v28 = vadd.f32 %v1093_v5, %v89_v15  ;;  %vm225_vm5 = vcmp.ge.f32.partialorder %v161_v29, 0.0  ;;  %v30_v12 = vld [vmem:[%s1503_s0 + $0x80] sm:$0xff]  ;;  %v31_v13 = vld [vmem:[%s1503_s0 + $0x88] sm:$0xff]  ;;  %v32_v20 = vld [vmem:[%s1503_s0 + $0x90] sm:$0xff] }
   0xa   :  { %v869_v30 = vpack.c.bf16 %v349_v27, %v348_v26  ;;  %v350_v31 = vsel %vm222_vm2, %v158_v18, %v286_v24  ;;  %v351_v32 = vsel %vm223_vm3, %v159_v19, %v287_v25  ;;  %v289_v39 = vmul.f32 0.2, %v161_v29  ;;  %v33_v25 = vld [vmem:[%s1503_s0 + $0x98] sm:$0xff] }
   0xb   :  { %v874_v37 = vpack.c.bf16 %v351_v32, %v350_v31  ;;  %vm224_vm4 = vcmp.ge.f32.partialorder %v160_v28, 0.0  ;;  %v288_v38 = vmul.f32 0.2, %v160_v28  ;;  %vm226_vm6 = vcmp.ge.f32.partialorder %v162_v33, 0.0 }
   0xc   :  { %870 = vst [vmem:[%s1506_s3] sm:$0xff] %v869_v30   ;;  %v290_v41 = vmul.f32 0.2, %v162_v33  ;;  %v93_v44 = vmul.f32 %v1086_v2, %v22_v34  ;;  %v94_v45 = vmul.f32 %v1086_v2, %v23_v35  ;;  %v95_v46 = vmul.f32 %v1086_v2, %v24_v36 }
   0xd   :  { %1026 = vst [vmem:[%s1506_s3 + $0x8] sm:$0xff] %v874_v37   ;;  %v352_v43 = vsel %vm224_vm4, %v160_v28, %v288_v38  ;;  %v353_v49 = vsel %vm225_vm5, %v161_v29, %v289_v39  ;;  %vm227_vm7 = vcmp.ge.f32.partialorder %v163_v40, 0.0  ;;  %v291_v50 = vmul.f32 0.2, %v163_v40  ;;  %v35_v37 = vld [vmem:[%s1503_s0 + $0xa8] sm:$0xff] }
   0xe   :  { %v354_v51 = vsel %vm226_vm6, %v162_v33, %v290_v41  ;;  %v879_v52 = vpack.c.bf16 %v353_v49, %v352_v43  ;;  %v164_v53 = vadd.f32 %v1093_v5, %v93_v44  ;;  %v165_v54 = vadd.f32 %v1093_v5, %v94_v45  ;;  %v34_v33 = vld [vmem:[%s1503_s0 + $0xa0] sm:$0xff]  ;;  %v36_v44 = vld [vmem:[%s1503_s0 + $0xb0] sm:$0xff]  ;;  %v37_v49 = vld [vmem:[%s1503_s0 + $0xb8] sm:$0xff] }
   0xf   :  { %v96_v55 = vmul.f32 %v1086_v2, %v25_v42  ;;  %v355_v56 = vsel %vm227_vm7, %v163_v40, %v291_v50  ;;  %v166_v57 = vadd.f32 %v1093_v5, %v95_v46  ;;  %v97_v58 = vmul.f32 %v1086_v2, %v26_v47  ;;  %v38_v50 = vld [vmem:[%s1503_s0 + $0xc0] sm:$0xff] }
  0x10   :  { %v98_v59 = vmul.f32 %v1086_v2, %v27_v48  ;;  %1027 = vst [vmem:[%s1506_s3 + $0x10] sm:$0xff] %v879_v52   ;;  %v884_v61 = vpack.c.bf16 %v355_v56, %v354_v51  ;;  %vm228_vm8 = vcmp.ge.f32.partialorder %v164_v53, 0.0  ;;  %vm229_vm9 = vcmp.ge.f32.partialorder %v165_v54, 0.0  ;;  %v39_v51 = vld [vmem:[%s1503_s0 + $0xc8] sm:$0xff] }
  0x11   :  { %v292_v62 = vmul.f32 0.2, %v164_v53  ;;  %v293_v63 = vmul.f32 0.2, %v165_v54  ;;  %v167_v0 = vadd.f32 %v1093_v5, %v96_v55  ;;  %vm230_vm10 = vcmp.ge.f32.partialorder %v166_v57, 0.0 }
  0x12   :  { %v294_v1 = vmul.f32 0.2, %v166_v57  ;;  %1028 = vst [vmem:[%s1506_s3 + $0x18] sm:$0xff] %v884_v61   ;;  %v168_v4 = vadd.f32 %v1093_v5, %v97_v58  ;;  %v169_v6 = vadd.f32 %v1093_v5, %v98_v59  ;;  %v99_v8 = vmul.f32 %v1086_v2, %v28_v60 }
  0x13   :  { %v356_v3 = vsel %vm228_vm8, %v164_v53, %v292_v62  ;;  %v357_v9 = vsel %vm229_vm9, %v165_v54, %v293_v63  ;;  %vm231_vm11 = vcmp.ge.f32.partialorder %v167_v0, 0.0  ;;  %v295_v10 = vmul.f32 0.2, %v167_v0  ;;  %v40_v62 = vld [vmem:[%s1503_s0 + $0xd0] sm:$0xff] }
  0x14   :  { %v358_v11 = vsel %vm230_vm10, %v166_v57, %v294_v1  ;;  %v889_v14 = vpack.c.bf16 %v357_v9, %v356_v3  ;;  %vm232_vm12 = vcmp.ge.f32.partialorder %v168_v4, 0.0  ;;  %vm233_vm13 = vcmp.ge.f32.partialorder %v169_v6, 0.0 }
  0x15   :  { %v296_v15 = vmul.f32 0.2, %v168_v4  ;;  %v359_v16 = vsel %vm231_vm11, %v167_v0, %v295_v10  ;;  %v297_v17 = vmul.f32 0.2, %v169_v6  ;;  %v100_v18 = vmul.f32 %v1086_v2, %v29_v7  ;;  %v41_v10 = vld [vmem:[%s1503_s0 + $0xd8] sm:$0xff] }
  0x16   :  { %v170_v19 = vadd.f32 %v1093_v5, %v99_v8  ;;  %1029 = vst [vmem:[%s1506_s3 + $0x20] sm:$0xff] %v889_v14   ;;  %v894_v21 = vpack.c.bf16 %v359_v16, %v358_v11  ;;  %v101_v23 = vmul.f32 %v1086_v2, %v30_v12  ;;  %v102_v24 = vmul.f32 %v1086_v2, %v31_v13  ;;  %v42_v14 = vld [vmem:[%s1503_s0 + $0xe0] sm:$0xff] }
  0x17   :  { %v360_v22 = vsel %vm232_vm12, %v168_v4, %v296_v15  ;;  %v361_v26 = vsel %vm233_vm13, %v169_v6, %v297_v17  ;;  %v171_v27 = vadd.f32 %v1093_v5, %v100_v18  ;;  %v103_v32 = vmul.f32 %v1086_v2, %v32_v20  ;;  %v43_v15 = vld [vmem:[%s1503_s0 + $0xe8] sm:$0xff] }
  0x18   :  { %vm234_vm14 = vcmp.ge.f32.partialorder %v170_v19, 0.0  ;;  %v298_v28 = vmul.f32 0.2, %v170_v19  ;;  %1030 = vst [vmem:[%s1506_s3 + $0x28] sm:$0xff] %v894_v21   ;;  %v899_v29 = vpack.c.bf16 %v361_v26, %v360_v22  ;;  %v172_v30 = vadd.f32 %v1093_v5, %v101_v23  ;;  %v44_v26 = vld [vmem:[%s1503_s0 + $0xf0] sm:$0xff] }
  0x19   :  { %v173_v31 = vadd.f32 %v1093_v5, %v102_v24  ;;  %vm235_vm15 = vcmp.ge.f32.partialorder %v171_v27, 0.0  ;;  %v299_v34 = vmul.f32 0.2, %v171_v27  ;;  %v104_v36 = vmul.f32 %v1086_v2, %v33_v25 }
  0x1a   :  { %v362_v35 = vsel %vm234_vm14, %v170_v19, %v298_v28  ;;  %1031 = vst [vmem:[%s1506_s3 + $0x30] sm:$0xff] %v899_v29   ;;  %vm236_vm0 = vcmp.ge.f32.partialorder %v172_v30, 0.0  ;;  %v300_v38 = vmul.f32 0.2, %v172_v30  ;;  %v174_v41 = vadd.f32 %v1093_v5, %v103_v32 }
  0x1b   :  { %vm237_vm1 = vcmp.ge.f32.partialorder %v173_v31, 0.0  ;;  %v301_v39 = vmul.f32 0.2, %v173_v31  ;;  %v363_v40 = vsel %vm235_vm15, %v171_v27, %v299_v34  ;;  %v175_v42 = vadd.f32 %v1093_v5, %v104_v36 }
  0x1c   :  { %v105_v43 = vmul.f32 %v1086_v2, %v34_v33  ;;  %v904_v45 = vpack.c.bf16 %v363_v40, %v362_v35  ;;  %v364_v46 = vsel %vm236_vm0, %v172_v30, %v300_v38  ;;  %v106_v48 = vmul.f32 %v1086_v2, %v35_v37  ;;  %v46_v38 = vld [vmem:[%s1503_s0 + $0x100] sm:$0xff] }
  0x1d   :  { %v365_v47 = vsel %vm237_vm1, %v173_v31, %v301_v39  ;;  %vm238_vm2 = vcmp.ge.f32.partialorder %v174_v41, 0.0  ;;  %vm239_vm3 = vcmp.ge.f32.partialorder %v175_v42, 0.0  ;;  %v302_v53 = vmul.f32 0.2, %v174_v41  ;;  %v45_v31 = vld [vmem:[%s1503_s0 + $0xf8] sm:$0xff] }
  0x1e   :  { %v909_v52 = vpack.c.bf16 %v365_v47, %v364_v46  ;;  %1032 = vst [vmem:[%s1506_s3 + $0x38] sm:$0xff] %v904_v45   ;;  %v303_v54 = vmul.f32 0.2, %v175_v42  ;;  %v176_v55 = vadd.f32 %v1093_v5, %v105_v43  ;;  %v177_v56 = vadd.f32 %v1093_v5, %v106_v48 }
  0x1f   :  { %v107_v57 = vmul.f32 %v1086_v2, %v36_v44  ;;  %v366_v58 = vsel %vm238_vm2, %v174_v41, %v302_v53  ;;  %v108_v59 = vmul.f32 %v1086_v2, %v37_v49  ;;  %v109_v60 = vmul.f32 %v1086_v2, %v38_v50  ;;  %v48_v50 = vld [vmem:[%s1503_s0 + $0x110] sm:$0xff] }
  0x20   :  { %1033 = vst [vmem:[%s1506_s3 + $0x40] sm:$0xff] %v909_v52   ;;  %v110_v61 = vmul.f32 %v1086_v2, %v39_v51  ;;  %v367_v63 = vsel %vm239_vm3, %v175_v42, %v303_v54  ;;  %vm240_vm4 = vcmp.ge.f32.partialorder %v176_v55, 0.0  ;;  %vm241_vm5 = vcmp.ge.f32.partialorder %v177_v56, 0.0  ;;  %v47_v42 = vld [vmem:[%s1503_s0 + $0x108] sm:$0xff]  ;;  %v49_v51 = vld [vmem:[%s1503_s0 + $0x118] sm:$0xff] }
  0x21   :  { %v304_v0 = vmul.f32 0.2, %v176_v55  ;;  %v914_v1 = vpack.c.bf16 %v367_v63, %v366_v58  ;;  %v305_v3 = vmul.f32 0.2, %v177_v56  ;;  %v178_v4 = vadd.f32 %v1093_v5, %v107_v57  ;;  %v51_v63 = vld [vmem:[%s1503_s0 + $0x128] sm:$0xff] }
  0x22   :  { %v179_v6 = vadd.f32 %v1093_v5, %v108_v59  ;;  %v180_v8 = vadd.f32 %v1093_v5, %v109_v60  ;;  %v181_v9 = vadd.f32 %v1093_v5, %v110_v61  ;;  %v111_v11 = vmul.f32 %v1086_v2, %v40_v62 }
  0x23   :  { %v368_v7 = vsel %vm240_vm4, %v176_v55, %v304_v0  ;;  %1034 = vst [vmem:[%s1506_s3 + $0x48] sm:$0xff] %v914_v1   ;;  %v369_v12 = vsel %vm241_vm5, %v177_v56, %v305_v3  ;;  %vm242_vm6 = vcmp.ge.f32.partialorder %v178_v4, 0.0  ;;  %v306_v13 = vmul.f32 0.2, %v178_v4  ;;  %v50_v55 = vld [vmem:[%s1503_s0 + $0x120] sm:$0xff] }
  0x24   :  { %vm243_vm7 = vcmp.ge.f32.partialorder %v179_v6, 0.0  ;;  %v919_v16 = vpack.c.bf16 %v369_v12, %v368_v7  ;;  %v307_v17 = vmul.f32 0.2, %v179_v6  ;;  %vm244_vm8 = vcmp.ge.f32.partialorder %v180_v8, 0.0 }
  0x25   :  { %vm245_vm9 = vcmp.ge.f32.partialorder %v181_v9, 0.0  ;;  %v370_v18 = vsel %vm242_vm6, %v178_v4, %v306_v13  ;;  %v308_v19 = vmul.f32 0.2, %v180_v8  ;;  %v309_v20 = vmul.f32 0.2, %v181_v9  ;;  %v52_v4 = vld [vmem:[%s1503_s0 + $0x130] sm:$0xff] }
  0x26   :  { %v112_v21 = vmul.f32 %v1086_v2, %v41_v10  ;;  %1035 = vst [vmem:[%s1506_s3 + $0x50] sm:$0xff] %v919_v16   ;;  %v371_v22 = vsel %vm243_vm7, %v179_v6, %v307_v17  ;;  %v182_v23 = vadd.f32 %v1093_v5, %v111_v11  ;;  %v113_v24 = vmul.f32 %v1086_v2, %v42_v14  ;;  %v53_v13 = vld [vmem:[%s1503_s0 + $0x138] sm:$0xff] }
  0x27   :  { %v114_v25 = vmul.f32 %v1086_v2, %v43_v15  ;;  %v924_v27 = vpack.c.bf16 %v371_v22, %v370_v18  ;;  %v372_v28 = vsel %vm244_vm8, %v180_v8, %v308_v19  ;;  %v373_v29 = vsel %vm245_vm9, %v181_v9, %v309_v20  ;;  %v54_v20 = vld [vmem:[%s1503_s0 + $0x140] sm:$0xff] }
  0x28   :  { %v183_v30 = vadd.f32 %v1093_v5, %v112_v21  ;;  %v929_v32 = vpack.c.bf16 %v373_v29, %v372_v28  ;;  %vm246_vm10 = vcmp.ge.f32.partialorder %v182_v23, 0.0  ;;  %v310_v33 = vmul.f32 0.2, %v182_v23 }
  0x29   :  { %v184_v34 = vadd.f32 %v1093_v5, %v113_v24  ;;  %1036 = vst [vmem:[%s1506_s3 + $0x58] sm:$0xff] %v924_v27   ;;  %v185_v36 = vadd.f32 %v1093_v5, %v114_v25  ;;  %v115_v37 = vmul.f32 %v1086_v2, %v44_v26  ;;  %v116_v41 = vmul.f32 %v1086_v2, %v45_v31  ;;  %v55_v24 = vld [vmem:[%s1503_s0 + $0x148] sm:$0xff] }
  0x2a   :  { %vm247_vm11 = vcmp.ge.f32.partialorder %v183_v30, 0.0  ;;  %v311_v35 = vmul.f32 0.2, %v183_v30  ;;  %1037 = vst [vmem:[%s1506_s3 + $0x60] sm:$0xff] %v929_v32   ;;  %v374_v39 = vsel %vm246_vm10, %v182_v23, %v310_v33  ;;  %v117_v49 = vmul.f32 %v1086_v2, %v46_v38  ;;  %v56_v32 = vld [vmem:[%s1503_s0 + $0x150] sm:$0xff]  ;;  %v57_v33 = vld [vmem:[%s1503_s0 + $0x158] sm:$0xff] }
  0x2b   :  { %vm248_vm12 = vcmp.ge.f32.partialorder %v184_v34, 0.0  ;;  %v312_v40 = vmul.f32 0.2, %v184_v34  ;;  %vm249_vm13 = vcmp.ge.f32.partialorder %v185_v36, 0.0  ;;  %v313_v44 = vmul.f32 0.2, %v185_v36 }
  0x2c   :  { %v375_v43 = vsel %vm247_vm11, %v183_v30, %v311_v35  ;;  %v186_v45 = vadd.f32 %v1093_v5, %v115_v37  ;;  %v187_v48 = vadd.f32 %v1093_v5, %v116_v41  ;;  %v118_v54 = vmul.f32 %v1086_v2, %v47_v42  ;;  %v58_v37 = vld [vmem:[%s1503_s0 + $0x160] sm:$0xff] }
  0x2d   :  { %v934_v46 = vpack.c.bf16 %v375_v43, %v374_v39  ;;  %v376_v47 = vsel %vm248_vm12, %v184_v34, %v312_v40  ;;  %v377_v52 = vsel %vm249_vm13, %v185_v36, %v313_v44  ;;  %v188_v58 = vadd.f32 %v1093_v5, %v117_v49  ;;  %v60_v49 = vld [vmem:[%s1503_s0 + $0x170] sm:$0xff] }
  0x2e   :  { %vm250_vm14 = vcmp.ge.f32.partialorder %v186_v45, 0.0  ;;  %v314_v53 = vmul.f32 0.2, %v186_v45  ;;  %v939_v56 = vpack.c.bf16 %v377_v52, %v376_v47  ;;  %vm251_vm15 = vcmp.ge.f32.partialorder %v187_v48, 0.0 }
  0x2f   :  { %1038 = vst [vmem:[%s1506_s3 + $0x68] sm:$0xff] %v934_v46   ;;  %v315_v57 = vmul.f32 0.2, %v187_v48  ;;  %v189_v60 = vadd.f32 %v1093_v5, %v118_v54  ;;  %v119_v61 = vmul.f32 %v1086_v2, %v48_v50  ;;  %v120_v62 = vmul.f32 %v1086_v2, %v49_v51 }
  0x30   :  { %v378_v59 = vsel %vm250_vm14, %v186_v45, %v314_v53  ;;  %1039 = vst [vmem:[%s1506_s3 + $0x70] sm:$0xff] %v939_v56   ;;  %vm252_vm0 = vcmp.ge.f32.partialorder %v188_v58, 0.0  ;;  %v316_v1 = vmul.f32 0.2, %v188_v58  ;;  %v121_v3 = vmul.f32 %v1086_v2, %v50_v55  ;;  %v59_v45 = vld [vmem:[%s1503_s0 + $0x168] sm:$0xff] }
  0x31   :  { %v379_v0 = vsel %vm251_vm15, %v187_v48, %v315_v57  ;;  %vm253_vm1 = vcmp.ge.f32.partialorder %v189_v60, 0.0  ;;  %v317_v7 = vmul.f32 0.2, %v189_v60  ;;  %v190_v8 = vadd.f32 %v1093_v5, %v119_v61  ;;  %v61_v57 = vld [vmem:[%s1503_s0 + $0x178] sm:$0xff] }
  0x32   :  { %v944_v6 = vpack.c.bf16 %v379_v0, %v378_v59  ;;  %v380_v9 = vsel %vm252_vm0, %v188_v58, %v316_v1  ;;  %v191_v10 = vadd.f32 %v1093_v5, %v120_v62  ;;  %v122_v11 = vmul.f32 %v1086_v2, %v51_v63  ;;  %v62_v0 = vld [vmem:[%s1503_s0 + $0x180] sm:$0xff] }
  0x33   :  { %v192_v12 = vadd.f32 %v1093_v5, %v121_v3  ;;  %v381_v14 = vsel %vm253_vm1, %v189_v60, %v317_v7  ;;  %vm254_vm2 = vcmp.ge.f32.partialorder %v190_v8, 0.0  ;;  %v318_v15 = vmul.f32 0.2, %v190_v8 }
  0x34   :  { %1040 = vst [vmem:[%s1506_s3 + $0x78] sm:$0xff] %v944_v6   ;;  %v123_v16 = vmul.f32 %v1086_v2, %v52_v4  ;;  %v949_v17 = vpack.c.bf16 %v381_v14, %v380_v9  ;;  %vm255_vm3 = vcmp.ge.f32.partialorder %v191_v10, 0.0  ;;  %v319_v18 = vmul.f32 0.2, %v191_v10  ;;  %v63_v6 = vld [vmem:[%s1503_s0 + $0x188] sm:$0xff]  ;;  %v64_v14 = vld [vmem:[%s1503_s0 + $0x190] sm:$0xff] }
  0x35   :  { %v193_v19 = vadd.f32 %v1093_v5, %v122_v11  ;;  %v382_v21 = vsel %vm254_vm2, %v190_v8, %v318_v15  ;;  %vm256_vm4 = vcmp.ge.f32.partialorder %v192_v12, 0.0  ;;  %v320_v22 = vmul.f32 0.2, %v192_v12  ;;  %v65_v15 = vld [vmem:[%s1503_s0 + $0x198] sm:$0xff] }
  0x36   :  { %v124_v23 = vmul.f32 %v1086_v2, %v53_v13  ;;  %1041 = vst [vmem:[%s1506_s3 + $0x80] sm:$0xff] %v949_v17   ;;  %v383_v25 = vsel %vm255_vm3, %v191_v10, %v319_v18  ;;  %v194_v27 = vadd.f32 %v1093_v5, %v123_v16  ;;  %v125_v31 = vmul.f32 %v1086_v2, %v54_v20 }
  0x37   :  { %vm257_vm5 = vcmp.ge.f32.partialorder %v193_v19, 0.0  ;;  %v321_v26 = vmul.f32 0.2, %v193_v19  ;;  %v954_v28 = vpack.c.bf16 %v383_v25, %v382_v21  ;;  %v384_v29 = vsel %vm256_vm4, %v192_v12, %v320_v22 }
  0x38   :  { %v195_v30 = vadd.f32 %v1093_v5, %v124_v23  ;;  %vm258_vm6 = vcmp.ge.f32.partialorder %v194_v27, 0.0  ;;  %v322_v35 = vmul.f32 0.2, %v194_v27  ;;  %v126_v36 = vmul.f32 %v1086_v2, %v55_v24 }
  0x39   :  { %v385_v34 = vsel %vm257_vm5, %v193_v19, %v321_v26  ;;  %1042 = vst [vmem:[%s1506_s3 + $0x88] sm:$0xff] %v954_v28   ;;  %v196_v40 = vadd.f32 %v1093_v5, %v125_v31  ;;  %v127_v43 = vmul.f32 %v1086_v2, %v56_v32  ;;  %v128_v44 = vmul.f32 %v1086_v2, %v57_v33  ;;  %v66_v19 = vld [vmem:[%s1503_s0 + $0x1a0] sm:$0xff]  ;;  %v68_v31 = vld [vmem:[%s1503_s0 + $0x1b0] sm:$0xff] }
  0x3a   :  { %v959_v38 = vpack.c.bf16 %v385_v34, %v384_v29  ;;  %vm259_vm7 = vcmp.ge.f32.partialorder %v195_v30, 0.0  ;;  %v323_v39 = vmul.f32 0.2, %v195_v30  ;;  %v386_v41 = vsel %vm258_vm6, %v194_v27, %v322_v35  ;;  %v67_v27 = vld [vmem:[%s1503_s0 + $0x1a8] sm:$0xff] }
  0x3b   :  { %v197_v42 = vadd.f32 %v1093_v5, %v126_v36  ;;  %vm260_vm8 = vcmp.ge.f32.partialorder %v196_v40, 0.0  ;;  %v324_v47 = vmul.f32 0.2, %v196_v40  ;;  %v129_v48 = vmul.f32 %v1086_v2, %v58_v37 }
  0x3c   :  { %1043 = vst [vmem:[%s1506_s3 + $0x90] sm:$0xff] %v959_v38   ;;  %v387_v46 = vsel %vm259_vm7, %v195_v30, %v323_v39  ;;  %v198_v52 = vadd.f32 %v1093_v5, %v127_v43  ;;  %v199_v54 = vadd.f32 %v1093_v5, %v128_v44  ;;  %v130_v55 = vmul.f32 %v1086_v2, %v59_v45  ;;  %v69_v39 = vld [vmem:[%s1503_s0 + $0x1b8] sm:$0xff] }
  0x3d   :  { %v964_v50 = vpack.c.bf16 %v387_v46, %v386_v41  ;;  %vm261_vm9 = vcmp.ge.f32.partialorder %v197_v42, 0.0  ;;  %v325_v51 = vmul.f32 0.2, %v197_v42  ;;  %v388_v53 = vsel %vm260_vm8, %v196_v40, %v324_v47  ;;  %v70_v46 = vld [vmem:[%s1503_s0 + $0x1c0] sm:$0xff] }
  0x3e   :  { %v200_v56 = vadd.f32 %v1093_v5, %v129_v48  ;;  %vm262_vm10 = vcmp.ge.f32.partialorder %v198_v52, 0.0  ;;  %v326_v59 = vmul.f32 0.2, %v198_v52  ;;  %v131_v60 = vmul.f32 %v1086_v2, %v60_v49 }
  0x3f   :  { %1044 = vst [vmem:[%s1506_s3 + $0x98] sm:$0xff] %v964_v50   ;;  %v389_v58 = vsel %vm261_vm9, %v197_v42, %v325_v51  ;;  %vm263_vm11 = vcmp.ge.f32.partialorder %v199_v54, 0.0  ;;  %v327_v62 = vmul.f32 0.2, %v199_v54  ;;  %v201_v63 = vadd.f32 %v1093_v5, %v130_v55  ;;  %v71_v50 = vld [vmem:[%s1503_s0 + $0x1c8] sm:$0xff] }
  0x40   :  { %v969_v61 = vpack.c.bf16 %v389_v58, %v388_v53  ;;  %v390_v1 = vsel %vm262_vm10, %v198_v52, %v326_v59  ;;  %vm264_vm12 = vcmp.ge.f32.partialorder %v200_v56, 0.0  ;;  %v328_v3 = vmul.f32 0.2, %v200_v56  ;;  %v72_v58 = vld [vmem:[%s1503_s0 + $0x1d0] sm:$0xff]  ;;  %v73_v59 = vld [vmem:[%s1503_s0 + $0x1d8] sm:$0xff] }
  0x41   :  { %v132_v4 = vmul.f32 %v1086_v2, %v61_v57  ;;  %v391_v7 = vsel %vm263_vm11, %v199_v54, %v327_v62  ;;  %vm265_vm13 = vcmp.ge.f32.partialorder %v201_v63, 0.0  ;;  %v329_v8 = vmul.f32 0.2, %v201_v63 }
  0x42   :  { %1045 = vst [vmem:[%s1506_s3 + $0xa0] sm:$0xff] %v969_v61   ;;  %v202_v9 = vadd.f32 %v1093_v5, %v131_v60  ;;  %v974_v10 = vpack.c.bf16 %v391_v7, %v390_v1  ;;  %v392_v11 = vsel %vm264_vm12, %v200_v56, %v328_v3  ;;  %v133_v13 = vmul.f32 %v1086_v2, %v62_v0 }
  0x43   :  { %v203_v12 = vadd.f32 %v1093_v5, %v132_v4  ;;  %v393_v16 = vsel %vm265_vm13, %v201_v63, %v329_v8  ;;  %v134_v18 = vmul.f32 %v1086_v2, %v63_v6  ;;  %v135_v25 = vmul.f32 %v1086_v2, %v64_v14  ;;  %v74_v63 = vld [vmem:[%s1503_s0 + $0x1e0] sm:$0xff] }
  0x44   :  { %vm266_vm14 = vcmp.ge.f32.partialorder %v202_v9, 0.0  ;;  %v330_v17 = vmul.f32 0.2, %v202_v9  ;;  %1046 = vst [vmem:[%s1506_s3 + $0xa8] sm:$0xff] %v974_v10   ;;  %v979_v20 = vpack.c.bf16 %v393_v16, %v392_v11  ;;  %v204_v22 = vadd.f32 %v1093_v5, %v133_v13  ;;  %v76_v13 = vld [vmem:[%s1503_s0 + $0x1f0] sm:$0xff] }
  0x45   :  { %vm267_vm15 = vcmp.ge.f32.partialorder %v203_v12, 0.0  ;;  %v331_v21 = vmul.f32 0.2, %v203_v12  ;;  %v205_v24 = vadd.f32 %v1093_v5, %v134_v18  ;;  %v136_v26 = vmul.f32 %v1086_v2, %v65_v15 }
  0x46   :  { %v394_v23 = vsel %vm266_vm14, %v202_v9, %v330_v17  ;;  %1047 = vst [vmem:[%s1506_s3 + $0xb0] sm:$0xff] %v979_v20   ;;  %vm268_vm0 = vcmp.ge.f32.partialorder %v204_v22, 0.0  ;;  %v332_v29 = vmul.f32 0.2, %v204_v22  ;;  %v137_v30 = vmul.f32 %v1086_v2, %v66_v19  ;;  %v75_v9 = vld [vmem:[%s1503_s0 + $0x1e8] sm:$0xff] }
  0x47   :  { %v395_v28 = vsel %vm267_vm15, %v203_v12, %v331_v21  ;;  %vm269_vm1 = vcmp.ge.f32.partialorder %v205_v24, 0.0  ;;  %v333_v33 = vmul.f32 0.2, %v205_v24  ;;  %v206_v34 = vadd.f32 %v1093_v5, %v135_v25  ;;  %v77_v21 = vld [vmem:[%s1503_s0 + $0x1f8] sm:$0xff] }
  0x48   :  { %v984_v32 = vpack.c.bf16 %v395_v28, %v394_v23  ;;  %v396_v35 = vsel %vm268_vm0, %v204_v22, %v332_v29  ;;  %v207_v36 = vadd.f32 %v1093_v5, %v136_v26  ;;  %v138_v37 = vmul.f32 %v1086_v2, %v67_v27 }
  0x49   :  { %v208_v38 = vadd.f32 %v1093_v5, %v137_v30  ;;  %v397_v40 = vsel %vm269_vm1, %v205_v24, %v333_v33  ;;  %vm270_vm2 = vcmp.ge.f32.partialorder %v206_v34, 0.0  ;;  %v334_v41 = vmul.f32 0.2, %v206_v34 }
  0x4a   :  { %1048 = vst [vmem:[%s1506_s3 + $0xb8] sm:$0xff] %v984_v32   ;;  %v139_v42 = vmul.f32 %v1086_v2, %v68_v31  ;;  %v989_v43 = vpack.c.bf16 %v397_v40, %v396_v35  ;;  %vm271_vm3 = vcmp.ge.f32.partialorder %v207_v36, 0.0  ;;  %v335_v44 = vmul.f32 0.2, %v207_v36 }
  0x4b   :  { %v209_v45 = vadd.f32 %v1093_v5, %v138_v37  ;;  %v398_v47 = vsel %vm270_vm2, %v206_v34, %v334_v41  ;;  %vm272_vm4 = vcmp.ge.f32.partialorder %v208_v38, 0.0  ;;  %v336_v48 = vmul.f32 0.2, %v208_v38 }
  0x4c   :  { %v140_v49 = vmul.f32 %v1086_v2, %v69_v39  ;;  %1049 = vst [vmem:[%s1506_s3 + $0xc0] sm:$0xff] %v989_v43   ;;  %v399_v51 = vsel %vm271_vm3, %v207_v36, %v335_v44  ;;  %v210_v53 = vadd.f32 %v1093_v5, %v139_v42  ;;  %v141_v57 = vmul.f32 %v1086_v2, %v70_v46 }
  0x4d   :  { %vm273_vm5 = vcmp.ge.f32.partialorder %v209_v45, 0.0  ;;  %v337_v52 = vmul.f32 0.2, %v209_v45  ;;  %v994_v54 = vpack.c.bf16 %v399_v51, %v398_v47  ;;  %v400_v55 = vsel %vm272_vm4, %v208_v38, %v336_v48 }
  0x4e   :  { %v211_v56 = vadd.f32 %v1093_v5, %v140_v49  ;;  %vm274_vm6 = vcmp.ge.f32.partialorder %v210_v53, 0.0  ;;  %v338_v61 = vmul.f32 0.2, %v210_v53  ;;  %v142_v62 = vmul.f32 %v1086_v2, %v71_v50 }
  0x4f   :  { %v401_v60 = vsel %vm273_vm5, %v209_v45, %v337_v52  ;;  %1050 = vst [vmem:[%s1506_s3 + $0xc8] sm:$0xff] %v994_v54   ;;  %v212_v3 = vadd.f32 %v1093_v5, %v141_v57  ;;  %v143_v7 = vmul.f32 %v1086_v2, %v72_v58  ;;  %v144_v8 = vmul.f32 %v1086_v2, %v73_v59 }
  0x50   :  { %v999_v0 = vpack.c.bf16 %v401_v60, %v400_v55  ;;  %vm275_vm7 = vcmp.ge.f32.partialorder %v211_v56, 0.0  ;;  %v339_v1 = vmul.f32 0.2, %v211_v56  ;;  %v402_v4 = vsel %vm274_vm6, %v210_v53, %v338_v61 }
  0x51   :  { %v213_v6 = vadd.f32 %v1093_v5, %v142_v62  ;;  %vm276_vm8 = vcmp.ge.f32.partialorder %v212_v3, 0.0  ;;  %v340_v11 = vmul.f32 0.2, %v212_v3  ;;  %v145_v12 = vmul.f32 %v1086_v2, %v74_v63 }
  0x52   :  { %1051 = vst [vmem:[%s1506_s3 + $0xd0] sm:$0xff] %v999_v0   ;;  %v403_v10 = vsel %vm275_vm7, %v211_v56, %v339_v1  ;;  %v214_v16 = vadd.f32 %v1093_v5, %v143_v7  ;;  %v215_v18 = vadd.f32 %v1093_v5, %v144_v8  ;;  %v146_v19 = vmul.f32 %v1086_v2, %v75_v9 }
  0x53   :  { %v1004_v14 = vpack.c.bf16 %v403_v10, %v402_v4  ;;  %vm277_vm9 = vcmp.ge.f32.partialorder %v213_v6, 0.0  ;;  %v341_v15 = vmul.f32 0.2, %v213_v6  ;;  %v404_v17 = vsel %vm276_vm8, %v212_v3, %v340_v11 }
  0x54   :  { %v216_v20 = vadd.f32 %v1093_v5, %v145_v12  ;;  %vm278_vm10 = vcmp.ge.f32.partialorder %v214_v16, 0.0  ;;  %v342_v23 = vmul.f32 0.2, %v214_v16  ;;  %v147_v24 = vmul.f32 %v1086_v2, %v76_v13 }
  0x55   :  { %1052 = vst [vmem:[%s1506_s3 + $0xd8] sm:$0xff] %v1004_v14   ;;  %v405_v22 = vsel %vm277_vm9, %v213_v6, %v341_v15  ;;  %vm279_vm11 = vcmp.ge.f32.partialorder %v215_v18, 0.0  ;;  %v343_v26 = vmul.f32 0.2, %v215_v18  ;;  %v217_v27 = vadd.f32 %v1093_v5, %v146_v19 }
  0x56   :  { %v1009_v25 = vpack.c.bf16 %v405_v22, %v404_v17  ;;  %v406_v28 = vsel %vm278_vm10, %v214_v16, %v342_v23  ;;  %vm280_vm12 = vcmp.ge.f32.partialorder %v216_v20, 0.0  ;;  %v344_v29 = vmul.f32 0.2, %v216_v20 }
  0x57   :  { %v148_v30 = vmul.f32 %v1086_v2, %v77_v21  ;;  %v407_v31 = vsel %vm279_vm11, %v215_v18, %v343_v26  ;;  %vm281_vm13 = vcmp.ge.f32.partialorder %v217_v27, 0.0  ;;  %v345_v32 = vmul.f32 0.2, %v217_v27 }
  0x58   :  { %1053 = vst [vmem:[%s1506_s3 + $0xe0] sm:$0xff] %v1009_v25   ;;  %v218_v33 = vadd.f32 %v1093_v5, %v147_v24  ;;  %v1014_v34 = vpack.c.bf16 %v407_v31, %v406_v28  ;;  %v408_v35 = vsel %vm280_vm12, %v216_v20, %v344_v29 }
  0x59   :  { %v219_v36 = vadd.f32 %v1093_v5, %v148_v30  ;;  %v409_v37 = vsel %vm281_vm13, %v217_v27, %v345_v32 }
  0x5a   :  { %vm282_vm14 = vcmp.ge.f32.partialorder %v218_v33, 0.0  ;;  %v346_v38 = vmul.f32 0.2, %v218_v33  ;;  %1054 = vst [vmem:[%s1506_s3 + $0xe8] sm:$0xff] %v1014_v34   ;;  %v1019_v2 = vpack.c.bf16 %v409_v37, %v408_v35 }
  0x5b   :  { %vm283_vm15 = vcmp.ge.f32.partialorder %v219_v36, 0.0  ;;  %v347_v39 = vmul.f32 0.2, %v219_v36 }
  0x5c   :  { %v410_v40 = vsel %vm282_vm14, %v218_v33, %v346_v38  ;;  %1055 = vst [vmem:[%s1506_s3 + $0xf0] sm:$0xff] %v1019_v2  }
  0x5d   :  { %v411_v41 = vsel %vm283_vm15, %v219_v36, %v347_v39 }
  0x5e   :  { %v1024_v42 = vpack.c.bf16 %v411_v41, %v410_v40 }
  0x60   :  { %1056 = vst [vmem:[%s1506_s3 + $0xf8] sm:$0xff] %v1024_v42  }

// kernel: discriminator_forward.8
= control target key start
LH: loop header
LB: loop body
LE: loop exit
PB: predicated region body
PF: predicated region fallthrough
CT: control target
= control target key end

     0   :  { %v4215_v0 = vmov 0   ;;  %s5492_s1 = inlined_call_operand.vmem [shape: bf16[1024,128], index: 1, kind: input, shape index: {}]   ;;  %s5493_s0 = inlined_call_operand.vmem [shape: bf16[512,1024], index: 0, kind: input, shape index: {}]   ;;  %s5494_s2 = inlined_call_operand.vmem [shape: f32[512,128], index: 2, kind: output, shape index: {0}]   ;;  %s5495_s3 = inlined_call_operand.vmem [shape: f32[1,128], index: 3, kind: output, shape index: {1}]   ;;  %s5496_s4 = inlined_call_operand.vmem [shape: f32[1,128], index: 4, kind: output, shape index: {2}]  }
   0x1   :  { %2063 = vmatprep.subr.bf16.mxu1 %v4215_v0  ;;  %2641 = vmatprep.subr.bf16.mxu0 %v4215_v0  ;;  %v4151_v1 = vld [vmem:[%s5492_s1] sm:$0xff]   ;;  %v4153_v3 = vld [vmem:[%s5492_s1 + $0x8] sm:$0xff]   ;;  %v4155_v5 = vld [vmem:[%s5492_s1 + $0x10] sm:$0xff]  }
   0x2   :  { %v4152_v2 = vld [vmem:[%s5492_s1 + $0x100] sm:$0xff]   ;;  %2064 = vmatpush1.bf16.msra.mxu1 %v4151_v1  ;;  %v4154_v4 = vld [vmem:[%s5492_s1 + $0x108] sm:$0xff]   ;;  %v4156_v6 = vld [vmem:[%s5492_s1 + $0x110] sm:$0xff]  }
   0x3   :  { %2642 = vmatpush1.bf16.msra.mxu0 %v4152_v2  ;;  %2065 = vmatprep.subr.bf16.mxu1 %v4215_v0  ;;  %v4157_v7 = vld [vmem:[%s5492_s1 + $0x18] sm:$0xff]   ;;  %v4159_v9 = vld [vmem:[%s5492_s1 + $0x20] sm:$0xff]   ;;  %v4161_v11 = vld [vmem:[%s5492_s1 + $0x28] sm:$0xff]  }
   0x4   :  { %2643 = vmatprep.subr.bf16.mxu0 %v4215_v0  ;;  %v4158_v8 = vld [vmem:[%s5492_s1 + $0x118] sm:$0xff]   ;;  %v4160_v10 = vld [vmem:[%s5492_s1 + $0x120] sm:$0xff]   ;;  %v4162_v12 = vld [vmem:[%s5492_s1 + $0x128] sm:$0xff]  }
   0x5   :  { %v4163_v13 = vld [vmem:[%s5492_s1 + $0x30] sm:$0xff]   ;;  %v4165_v15 = vld [vmem:[%s5492_s1 + $0x38] sm:$0xff]   ;;  %v4167_v17 = vld [vmem:[%s5492_s1 + $0x40] sm:$0xff]  }
   0x6   :  { %2066 = vmatpush1.bf16.msra.mxu1 %v4153_v3  ;;  %v4164_v14 = vld [vmem:[%s5492_s1 + $0x130] sm:$0xff]   ;;  %v4166_v16 = vld [vmem:[%s5492_s1 + $0x138] sm:$0xff]   ;;  %v4168_v18 = vld [vmem:[%s5492_s1 + $0x140] sm:$0xff]  }
   0x7   :  { %2644 = vmatpush1.bf16.msra.mxu0 %v4154_v4  ;;  %2067 = vmatprep.subr.bf16.mxu1 %v4215_v0  ;;  %v4317_v19 = vld [vmem:[%s5493_s0] sm:$0xff]  ;;  %v4327_v21 = vld [vmem:[%s5493_s0 + $0x10] sm:$0xff]  ;;  %v4169_v24 = vld [vmem:[%s5492_s1 + $0x48] sm:$0xff]  }
   0x8   :  { %2645 = vmatprep.subr.bf16.mxu0 %v4215_v0  ;;  %v4322_v20 = vld [vmem:[%s5493_s0 + $0x20] sm:$0xff]  ;;  %v4334_v23 = vld [vmem:[%s5493_s0 + $0x30] sm:$0xff]  ;;  %v4170_v26 = vld [vmem:[%s5492_s1 + $0x148] sm:$0xff]  }
   0x9   :  { %v3510_v22 = vcombine.high %v4317_v19, %v4322_v20  ;;  %v3514_v25 = vcombine.high %v4327_v21, %v4334_v23  ;;  %v4171_v27 = vld [vmem:[%s5492_s1 + $0x50] sm:$0xff]   ;;  %v4173_v29 = vld [vmem:[%s5492_s1 + $0x58] sm:$0xff]   ;;  %v4175_v31 = vld [vmem:[%s5492_s1 + $0x60] sm:$0xff]   ;;  %v3509_v42 = vcombine.low %v4317_v19, %v4322_v20  ;;  %v3513_v44 = vcombine.low %v4327_v21, %v4334_v23 }
   0xa   :  { %2068 = vmatpush1.bf16.msra.mxu1 %v4155_v5  ;;  %v4172_v28 = vld [vmem:[%s5492_s1 + $0x150] sm:$0xff]   ;;  %v4174_v30 = vld [vmem:[%s5492_s1 + $0x158] sm:$0xff]   ;;  %v4176_v32 = vld [vmem:[%s5492_s1 + $0x160] sm:$0xff]  }
   0xb   :  { %2646 = vmatpush1.bf16.msra.mxu0 %v4156_v6  ;;  %2069 = vmatprep.subr.bf16.mxu1 %v4215_v0  ;;  %v4177_v33 = vld [vmem:[%s5492_s1 + $0x68] sm:$0xff]   ;;  %v4179_v35 = vld [vmem:[%s5492_s1 + $0x70] sm:$0xff]   ;;  %v4181_v37 = vld [vmem:[%s5492_s1 + $0x78] sm:$0xff]  }
   0xc   :  { %2647 = vmatprep.subr.bf16.mxu0 %v4215_v0  ;;  %2095 = vmatprep.mubr.bf16.mxu1 %v3510_v22  ;;  %v4178_v34 = vld [vmem:[%s5492_s1 + $0x168] sm:$0xff]   ;;  %v4180_v36 = vld [vmem:[%s5492_s1 + $0x170] sm:$0xff]   ;;  %v4182_v38 = vld [vmem:[%s5492_s1 + $0x178] sm:$0xff]  }
   0xd   :  { %2673 = vmatprep.mubr.bf16.mxu0 %v3514_v25  ;;  %v23_v39 = vld [vmem:[%s5493_s0 + $0x40] sm:$0xff]  ;;  %v25_v41 = vld [vmem:[%s5493_s0 + $0x50] sm:$0xff]  ;;  %v4185_v51 = vld [vmem:[%s5492_s1 + $0x88] sm:$0xff]  }
   0xe   :  { %2070 = vmatpush1.bf16.msra.mxu1 %v4157_v7  ;;  %v27_v40 = vld [vmem:[%s5493_s0 + $0x60] sm:$0xff]  ;;  %v29_v43 = vld [vmem:[%s5493_s0 + $0x70] sm:$0xff]  ;;  %v4186_v52 = vld [vmem:[%s5492_s1 + $0x188] sm:$0xff]  }
   0xf   :  { %2648 = vmatpush1.bf16.msra.mxu0 %v4158_v8  ;;  %2071 = vmatprep.subr.bf16.mxu1 %v4215_v0  ;;  %v4183_v45 = vld [vmem:[%s5492_s1 + $0x80] sm:$0xff]   ;;  %v3518_v47 = vcombine.high %v23_v39, %v27_v40  ;;  %v3522_v48 = vcombine.high %v25_v41, %v29_v43  ;;  %v33_v53 = vld [vmem:[%s5493_s0 + $0x90] sm:$0xff]  ;;  %v3517_v55 = vcombine.low %v23_v39, %v27_v40  ;;  %v4189_v2 = vld [vmem:[%s5492_s1 + $0x98] sm:$0xff]  }
  0x10   :  { %2649 = vmatprep.subr.bf16.mxu0 %v4215_v0  ;;  %v4184_v46 = vld [vmem:[%s5492_s1 + $0x180] sm:$0xff]   ;;  %v37_v54 = vld [vmem:[%s5493_s0 + $0xb0] sm:$0xff]  ;;  %v3521_v56 = vcombine.low %v25_v41, %v29_v43  ;;  %v4190_v3 = vld [vmem:[%s5492_s1 + $0x198] sm:$0xff]  }
  0x11   :  { %v31_v49 = vld [vmem:[%s5493_s0 + $0x80] sm:$0xff]  ;;  %v3530_v58 = vcombine.high %v33_v53, %v37_v54  ;;  %v4187_v59 = vld [vmem:[%s5492_s1 + $0x90] sm:$0xff]   ;;  %v3529_v6 = vcombine.low %v33_v53, %v37_v54  ;;  %v4202_v39 = vld [vmem:[%s5492_s1 + $0x1c8] sm:$0xff]  }
  0x12   :  { %2072 = vmatpush1.bf16.msra.mxu1 %v4159_v9  ;;  %v35_v50 = vld [vmem:[%s5493_s0 + $0xa0] sm:$0xff]  ;;  %v4188_v60 = vld [vmem:[%s5492_s1 + $0x190] sm:$0xff]   ;;  %v4205_v54 = vld [vmem:[%s5492_s1 + $0xd8] sm:$0xff]  }
  0x13   :  { %2650 = vmatpush1.bf16.msra.mxu0 %v4160_v10  ;;  %2073 = vmatprep.subr.bf16.mxu1 %v4215_v0  ;;  %v3526_v57 = vcombine.high %v31_v49, %v35_v50  ;;  %v39_v61 = vld [vmem:[%s5493_s0 + $0xc0] sm:$0xff]  ;;  %v41_v63 = vld [vmem:[%s5493_s0 + $0xd0] sm:$0xff]  ;;  %v3525_v4 = vcombine.low %v31_v49, %v35_v50 }
  0x14   :  { %2651 = vmatprep.subr.bf16.mxu0 %v4215_v0  ;;  %v43_v62 = vld [vmem:[%s5493_s0 + $0xe0] sm:$0xff]  ;;  %v45_v1 = vld [vmem:[%s5493_s0 + $0xf0] sm:$0xff] }
  0x15   :  { %v4191_v5 = vld [vmem:[%s5492_s1 + $0xa0] sm:$0xff]   ;;  %v3534_v7 = vcombine.high %v39_v61, %v43_v62  ;;  %v3538_v9 = vcombine.high %v41_v63, %v45_v1  ;;  %v4195_v20 = vld [vmem:[%s5492_s1 + $0xb0] sm:$0xff]  }
  0x16   :  { %2074 = vmatpush1.bf16.msra.mxu1 %v4161_v11  ;;  %v4192_v8 = vld [vmem:[%s5492_s1 + $0x1a0] sm:$0xff]   ;;  %v4196_v21 = vld [vmem:[%s5492_s1 + $0x1b0] sm:$0xff]  }
  0x17   :  { %2652 = vmatpush1.bf16.msra.mxu0 %v4162_v12  ;;  %2075 = vmatprep.subr.bf16.mxu1 %v4215_v0  ;;  %v47_v10 = vld [vmem:[%s5493_s0 + $0x100] sm:$0xff]  ;;  %v49_v12 = vld [vmem:[%s5493_s0 + $0x110] sm:$0xff] }
  0x18   :  { %2653 = vmatprep.subr.bf16.mxu0 %v4215_v0  ;;  %v51_v11 = vld [vmem:[%s5493_s0 + $0x120] sm:$0xff]  ;;  %v57_v25 = vld [vmem:[%s5493_s0 + $0x150] sm:$0xff] }
  0x19   :  { %v55_v22 = vld [vmem:[%s5493_s0 + $0x140] sm:$0xff]  ;;  %v77_v49 = vld [vmem:[%s5493_s0 + $0x1f0] sm:$0xff] }
  0x1a   :  { %2076 = vmatpush1.bf16.msra.mxu1 %v4163_v13  ;;  %v53_v13 = vld [vmem:[%s5493_s0 + $0x130] sm:$0xff]  ;;  %v59_v23 = vld [vmem:[%s5493_s0 + $0x160] sm:$0xff] }
  0x1b   :  { %2654 = vmatpush1.bf16.msra.mxu0 %v4164_v14  ;;  %2077 = vmatprep.subr.bf16.mxu1 %v4215_v0  ;;  %v4193_v14 = vld [vmem:[%s5492_s1 + $0xa8] sm:$0xff]   ;;  %v3546_v19 = vcombine.high %v49_v12, %v53_v13  ;;  %v3549_v40 = vcombine.low %v55_v22, %v59_v23 }
  0x1c   :  { %2655 = vmatprep.subr.bf16.mxu0 %v4215_v0 }
  0x1e   :  { %2078 = vmatpush1.bf16.msra.mxu1 %v4165_v15  ;;  %v4194_v15 = vld [vmem:[%s5492_s1 + $0x1a8] sm:$0xff]  }
  0x1f   :  { %2656 = vmatpush1.bf16.msra.mxu0 %v4166_v16  ;;  %2079 = vmatprep.subr.bf16.mxu1 %v4215_v0  ;;  %v3533_v16 = vcombine.low %v39_v61, %v43_v62 }
  0x20   :  { %2657 = vmatprep.subr.bf16.mxu0 %v4215_v0 }
  0x22   :  { %2080 = vmatpush1.bf16.msra.mxu1 %v4167_v17  ;;  %v3537_v17 = vcombine.low %v41_v63, %v45_v1  ;;  %v87_v1 = vld [vmem:[%s5493_s0 + $0x240] sm:$0xff] }
  0x23   :  { %2658 = vmatpush1.bf16.msra.mxu0 %v4168_v18  ;;  %2081 = vmatprep.subr.bf16.mxu1 %v4215_v0  ;;  %v3542_v18 = vcombine.high %v47_v10, %v51_v11 }
  0x24   :  { %2659 = vmatprep.subr.bf16.mxu0 %v4215_v0 }
  0x26   :  { %2082 = vmatpush1.bf16.msra.mxu1 %v4169_v24  ;;  %v4197_v24 = vld [vmem:[%s5492_s1 + $0xb8] sm:$0xff]  }
  0x27   :  { %2660 = vmatpush1.bf16.msra.mxu0 %v4170_v26  ;;  %2083 = vmatprep.subr.bf16.mxu1 %v4215_v0  ;;  %v61_v26 = vld [vmem:[%s5493_s0 + $0x170] sm:$0xff] }
  0x28   :  { %2661 = vmatprep.subr.bf16.mxu0 %v4215_v0  ;;  %v3553_v41 = vcombine.low %v57_v25, %v61_v26 }
  0x2a   :  { %2084 = vmatpush1.bf16.msra.mxu1 %v4171_v27  ;;  %v4198_v27 = vld [vmem:[%s5492_s1 + $0x1b8] sm:$0xff]  }
  0x2b   :  { %2662 = vmatpush1.bf16.msra.mxu0 %v4172_v28  ;;  %2085 = vmatprep.subr.bf16.mxu1 %v4215_v0  ;;  %v3541_v28 = vcombine.low %v47_v10, %v51_v11  ;;  %v4208_v10 = vld [vmem:[%s5492_s1 + $0x1e0] sm:$0xff]  }
  0x2c   :  { %2663 = vmatprep.subr.bf16.mxu0 %v4215_v0  ;;  %v95_v11 = vld [vmem:[%s5493_s0 + $0x280] sm:$0xff] }
  0x2e   :  { %2086 = vmatpush1.bf16.msra.mxu1 %v4173_v29  ;;  %v3545_v29 = vcombine.low %v49_v12, %v53_v13  ;;  %v99_v12 = vld [vmem:[%s5493_s0 + $0x2a0] sm:$0xff]  ;;  %v97_v13 = vld [vmem:[%s5493_s0 + $0x290] sm:$0xff] }
  0x2f   :  { %2664 = vmatpush1.bf16.msra.mxu0 %v4174_v30  ;;  %2087 = vmatprep.subr.bf16.mxu1 %v4215_v0  ;;  %v3550_v30 = vcombine.high %v55_v22, %v59_v23  ;;  %v109_v22 = vld [vmem:[%s5493_s0 + $0x2f0] sm:$0xff]  ;;  %v3589_v23 = vcombine.low %v95_v11, %v99_v12 }
  0x30   :  { %2665 = vmatprep.subr.bf16.mxu0 %v4215_v0 }
  0x32   :  { %2088 = vmatpush1.bf16.msra.mxu1 %v4175_v31  ;;  %v3554_v31 = vcombine.high %v57_v25, %v61_v26 }
  0x33   :  { %2666 = vmatpush1.bf16.msra.mxu0 %v4176_v32  ;;  %2089 = vmatprep.subr.bf16.mxu1 %v4215_v0  ;;  %v4199_v32 = vld [vmem:[%s5492_s1 + $0xc0] sm:$0xff]  }
  0x34   :  { %2667 = vmatprep.subr.bf16.mxu0 %v4215_v0 }
  0x36   :  { %2090 = vmatpush1.bf16.msra.mxu1 %v4177_v33  ;;  %v4200_v33 = vld [vmem:[%s5492_s1 + $0x1c0] sm:$0xff]  }
  0x37   :  { %2668 = vmatpush1.bf16.msra.mxu0 %v4178_v34  ;;  %2091 = vmatprep.subr.bf16.mxu1 %v4215_v0  ;;  %v63_v34 = vld [vmem:[%s5493_s0 + $0x180] sm:$0xff] }
  0x38   :  { %2669 = vmatprep.subr.bf16.mxu0 %v4215_v0 }
  0x3a   :  { %2092 = vmatpush1.bf16.msra.mxu1 %v4179_v35  ;;  %v67_v35 = vld [vmem:[%s5493_s0 + $0x1a0] sm:$0xff] }
  0x3b   :  { %2670 = vmatpush1.bf16.msra.mxu0 %v4180_v36  ;;  %2093 = vmatprep.subr.bf16.mxu1 %v4215_v0  ;;  %v4201_v36 = vld [vmem:[%s5492_s1 + $0xc8] sm:$0xff]   ;;  %v3557_v50 = vcombine.low %v63_v34, %v67_v35 }
  0x3c   :  { %2671 = vmatprep.subr.bf16.mxu0 %v4215_v0 }
  0x3e   :  { %2094 = vmatpush1.bf16.msra.mxu1 %v4181_v37  ;;  %v65_v37 = vld [vmem:[%s5493_s0 + $0x190] sm:$0xff] }
  0x3f   :  { %2672 = vmatpush1.bf16.msra.mxu0 %v4182_v38  ;;  %2352 = vmatprep.subr.bf16.mxu1 %v4215_v0  ;;  %v69_v38 = vld [vmem:[%s5493_s0 + $0x1b0] sm:$0xff] }
  0x40   :  { %2930 = vmatprep.subr.bf16.mxu0 %v4215_v0  ;;  %v3562_v43 = vcombine.high %v65_v37, %v69_v38 }
  0x41   :  { %2096 = vmatmul.mubr.bf16.vlgmr.msra.gmra.mrb[0].mxu1 %v3509_v42  ;;  %v3558_v42 = vcombine.high %v63_v34, %v67_v35 }
  0x42   :  { %2674 = vmatmul.mubr.bf16.vlgmr.msra.gmra.mrb[0].mxu0 %v3513_v44  ;;  %2353 = vmatpush1.bf16.msra.mxu1 %v4183_v45  ;;  %v4203_v44 = vld [vmem:[%s5492_s1 + $0xd0] sm:$0xff]  }
  0x43   :  { %2931 = vmatpush1.bf16.msra.mxu0 %v4184_v46  ;;  %2103 = vmatprep.mubr.bf16.mxu1 %v3518_v47  ;;  %v4204_v45 = vld [vmem:[%s5492_s1 + $0x1d0] sm:$0xff]   ;;  %v71_v46 = vld [vmem:[%s5493_s0 + $0x1c0] sm:$0xff] }
  0x44   :  { %2681 = vmatprep.mubr.bf16.mxu0 %v3522_v48  ;;  %2354 = vmatprep.subr.bf16.mxu1 %v4215_v0  ;;  %v75_v47 = vld [vmem:[%s5493_s0 + $0x1e0] sm:$0xff]  ;;  %v73_v48 = vld [vmem:[%s5493_s0 + $0x1d0] sm:$0xff] }
  0x45   :  { %2932 = vmatprep.subr.bf16.mxu0 %v4215_v0  ;;  %v3570_v53 = vcombine.high %v73_v48, %v77_v49  ;;  %v3569_v61 = vcombine.low %v73_v48, %v77_v49  ;;  %v131_v48 = vld [vmem:[%s5493_s0 + $0x3a0] sm:$0xff]  ;;  %v129_v49 = vld [vmem:[%s5493_s0 + $0x390] sm:$0xff] }
  0x46   :  { %2355 = vmatpush1.bf16.msra.mxu1 %v4185_v51  ;;  %v3561_v51 = vcombine.low %v65_v37, %v69_v38  ;;  %v119_v37 = vld [vmem:[%s5493_s0 + $0x340] sm:$0xff] }
  0x47   :  { %2933 = vmatpush1.bf16.msra.mxu0 %v4186_v52  ;;  %2356 = vmatprep.subr.bf16.mxu1 %v4215_v0  ;;  %v3566_v52 = vcombine.high %v71_v46, %v75_v47  ;;  %v123_v38 = vld [vmem:[%s5493_s0 + $0x360] sm:$0xff] }
  0x48   :  { %2934 = vmatprep.subr.bf16.mxu0 %v4215_v0 }
  0x49   :  { %2104 = vmatmul.mubr.bf16.gmra.mrb[4].mxu1 %v3517_v55  ;;  %v4206_v55 = vld [vmem:[%s5492_s1 + $0x1d8] sm:$0xff]  }
  0x4a   :  { %2682 = vmatmul.mubr.bf16.gmra.mrb[4].mxu0 %v3521_v56  ;;  %2111 = vmatprep.mubr.bf16.mxu1 %v3526_v57  ;;  %v79_v56 = vld [vmem:[%s5493_s0 + $0x200] sm:$0xff] }
  0x4b   :  { %2689 = vmatprep.mubr.bf16.mxu0 %v3530_v58  ;;  %2357 = vmatpush1.bf16.msra.mxu1 %v4187_v59  ;;  %v83_v57 = vld [vmem:[%s5493_s0 + $0x220] sm:$0xff]  ;;  %v81_v58 = vld [vmem:[%s5493_s0 + $0x210] sm:$0xff] }
  0x4c   :  { %2935 = vmatpush1.bf16.msra.mxu0 %v4188_v60  ;;  %2358 = vmatprep.subr.bf16.mxu1 %v4215_v0  ;;  %v85_v59 = vld [vmem:[%s5493_s0 + $0x230] sm:$0xff]  ;;  %v3565_v60 = vcombine.low %v71_v46, %v75_v47  ;;  %v3574_v62 = vcombine.high %v79_v56, %v83_v57  ;;  %v127_v47 = vld [vmem:[%s5493_s0 + $0x380] sm:$0xff] }
  0x4d   :  { %2936 = vmatprep.subr.bf16.mxu0 %v4215_v0  ;;  %v3578_v63 = vcombine.high %v81_v58, %v85_v59  ;;  %v4212_v46 = vld [vmem:[%s5492_s1 + $0x1f0] sm:$0xff]  }
  0x4f   :  { %2359 = vmatpush1.bf16.msra.mxu1 %v4189_v2  ;;  %v91_v2 = vld [vmem:[%s5493_s0 + $0x260] sm:$0xff] }
  0x50   :  { %2937 = vmatpush1.bf16.msra.mxu0 %v4190_v3  ;;  %2360 = vmatprep.subr.bf16.mxu1 %v4215_v0  ;;  %v89_v3 = vld [vmem:[%s5493_s0 + $0x250] sm:$0xff] }
  0x51   :  { %2112 = vmatmul.mubr.bf16.gmra.mrb[8].mxu1 %v3525_v4  ;;  %2938 = vmatprep.subr.bf16.mxu0 %v4215_v0  ;;  %v93_v4 = vld [vmem:[%s5493_s0 + $0x270] sm:$0xff] }
  0x52   :  { %2690 = vmatmul.mubr.bf16.gmra.mrb[8].mxu0 %v3529_v6  ;;  %2119 = vmatprep.mubr.bf16.mxu1 %v3534_v7  ;;  %v3577_v6 = vcombine.low %v81_v58, %v85_v59  ;;  %v3582_v7 = vcombine.high %v87_v1, %v91_v2  ;;  %v3621_v58 = vcombine.low %v127_v47, %v131_v48 }
  0x53   :  { %2697 = vmatprep.mubr.bf16.mxu0 %v3538_v9  ;;  %2361 = vmatpush1.bf16.msra.mxu1 %v4191_v5  ;;  %v3573_v5 = vcombine.low %v79_v56, %v83_v57  ;;  %v4207_v9 = vld [vmem:[%s5492_s1 + $0xe0] sm:$0xff]   ;;  %v137_v57 = vld [vmem:[%s5493_s0 + $0x3d0] sm:$0xff] }
  0x54   :  { %2939 = vmatpush1.bf16.msra.mxu0 %v4192_v8  ;;  %2362 = vmatprep.subr.bf16.mxu1 %v4215_v0  ;;  %v3586_v8 = vcombine.high %v89_v3, %v93_v4  ;;  %v139_v56 = vld [vmem:[%s5493_s0 + $0x3e0] sm:$0xff] }
  0x55   :  { %2940 = vmatprep.subr.bf16.mxu0 %v4215_v0 }
  0x57   :  { %2363 = vmatpush1.bf16.msra.mxu1 %v4193_v14  ;;  %v101_v14 = vld [vmem:[%s5493_s0 + $0x2b0] sm:$0xff] }
  0x58   :  { %2941 = vmatpush1.bf16.msra.mxu0 %v4194_v15  ;;  %2364 = vmatprep.subr.bf16.mxu1 %v4215_v0  ;;  %v3581_v15 = vcombine.low %v87_v1, %v91_v2  ;;  %v143_v1 = vld [vmem:[%s5493_s0 + $0x400] sm:$0xff] }
  0x59   :  { %2120 = vmatmul.mubr.bf16.gmra.mrb[12].mxu1 %v3533_v16  ;;  %2942 = vmatprep.subr.bf16.mxu0 %v4215_v0  ;;  %v3585_v16 = vcombine.low %v89_v3, %v93_v4  ;;  %v147_v2 = vld [vmem:[%s5493_s0 + $0x420] sm:$0xff]  ;;  %v145_v3 = vld [vmem:[%s5493_s0 + $0x410] sm:$0xff] }
  0x5a   :  { %2698 = vmatmul.mubr.bf16.gmra.mrb[12].mxu0 %v3537_v17  ;;  %2127 = vmatprep.mubr.bf16.mxu1 %v3542_v18  ;;  %v3590_v17 = vcombine.high %v95_v11, %v99_v12  ;;  %v3594_v18 = vcombine.high %v97_v13, %v101_v14  ;;  %v149_v4 = vld [vmem:[%s5493_s0 + $0x430] sm:$0xff] }
  0x5b   :  { %2705 = vmatprep.mubr.bf16.mxu0 %v3546_v19  ;;  %2365 = vmatpush1.bf16.msra.mxu1 %v4195_v20  ;;  %v103_v19 = vld [vmem:[%s5493_s0 + $0x2c0] sm:$0xff]  ;;  %v153_v11 = vld [vmem:[%s5493_s0 + $0x450] sm:$0xff] }
  0x5c   :  { %2943 = vmatpush1.bf16.msra.mxu0 %v4196_v21  ;;  %2366 = vmatprep.subr.bf16.mxu1 %v4215_v0  ;;  %v107_v20 = vld [vmem:[%s5493_s0 + $0x2e0] sm:$0xff]  ;;  %v105_v21 = vld [vmem:[%s5493_s0 + $0x2d0] sm:$0xff] }
  0x5d   :  { %2944 = vmatprep.subr.bf16.mxu0 %v4215_v0  ;;  %v3598_v25 = vcombine.high %v103_v19, %v107_v20  ;;  %v3602_v26 = vcombine.high %v105_v21, %v109_v22  ;;  %v3601_v34 = vcombine.low %v105_v21, %v109_v22  ;;  %v157_v12 = vld [vmem:[%s5493_s0 + $0x470] sm:$0xff] }
  0x5e   :  { %v3649_v22 = vcombine.low %v153_v11, %v157_v12 }
  0x5f   :  { %2367 = vmatpush1.bf16.msra.mxu1 %v4197_v24  ;;  %v3593_v24 = vcombine.low %v97_v13, %v101_v14  ;;  %v3637_v13 = vcombine.low %v143_v1, %v147_v2  ;;  %v3641_v14 = vcombine.low %v145_v3, %v149_v4 }
  0x60   :  { %2945 = vmatpush1.bf16.msra.mxu0 %v4198_v27  ;;  %2368 = vmatprep.subr.bf16.mxu1 %v4215_v0  ;;  %v4209_v27 = vld [vmem:[%s5492_s1 + $0xe8] sm:$0xff]  }
  0x61   :  { %2128 = vmatmul.mubr.bf16.gmra.mrb[16].mxu1 %v3541_v28  ;;  %2946 = vmatprep.subr.bf16.mxu0 %v4215_v0  ;;  %v4210_v28 = vld [vmem:[%s5492_s1 + $0x1e8] sm:$0xff]  }
  0x62   :  { %2706 = vmatmul.mubr.bf16.gmra.mrb[16].mxu0 %v3545_v29  ;;  %2135 = vmatprep.mubr.bf16.mxu1 %v3550_v30  ;;  %v111_v29 = vld [vmem:[%s5493_s0 + $0x300] sm:$0xff] }
  0x63   :  { %2713 = vmatprep.mubr.bf16.mxu0 %v3554_v31  ;;  %2369 = vmatpush1.bf16.msra.mxu1 %v4199_v32  ;;  %v115_v30 = vld [vmem:[%s5493_s0 + $0x320] sm:$0xff]  ;;  %v113_v31 = vld [vmem:[%s5493_s0 + $0x310] sm:$0xff] }
  0x64   :  { %2947 = vmatpush1.bf16.msra.mxu0 %v4200_v33  ;;  %2370 = vmatprep.subr.bf16.mxu1 %v4215_v0  ;;  %v117_v32 = vld [vmem:[%s5493_s0 + $0x330] sm:$0xff]  ;;  %v3597_v33 = vcombine.low %v103_v19, %v107_v20  ;;  %v3606_v35 = vcombine.high %v111_v29, %v115_v30 }
  0x65   :  { %2948 = vmatprep.subr.bf16.mxu0 %v4215_v0  ;;  %v161_v19 = vld [vmem:[%s5493_s0 + $0x490] sm:$0xff] }
  0x66   :  { %v165_v20 = vld [vmem:[%s5493_s0 + $0x4b0] sm:$0xff] }
  0x67   :  { %2371 = vmatpush1.bf16.msra.mxu1 %v4201_v36  ;;  %v3610_v36 = vcombine.high %v113_v31, %v117_v32 }
  0x68   :  { %2949 = vmatpush1.bf16.msra.mxu0 %v4202_v39  ;;  %2372 = vmatprep.subr.bf16.mxu1 %v4215_v0  ;;  %v121_v39 = vld [vmem:[%s5493_s0 + $0x350] sm:$0xff] }
  0x69   :  { %2136 = vmatmul.mubr.bf16.gmra.mrb[20].mxu1 %v3549_v40  ;;  %2950 = vmatprep.subr.bf16.mxu0 %v4215_v0  ;;  %v125_v40 = vld [vmem:[%s5493_s0 + $0x370] sm:$0xff] }
  0x6a   :  { %2714 = vmatmul.mubr.bf16.gmra.mrb[20].mxu0 %v3553_v41  ;;  %2143 = vmatprep.mubr.bf16.mxu1 %v3558_v42  ;;  %v3605_v41 = vcombine.low %v111_v29, %v115_v30  ;;  %v3609_v42 = vcombine.low %v113_v31, %v117_v32  ;;  %v3657_v30 = vcombine.low %v161_v19, %v165_v20 }
  0x6b   :  { %2721 = vmatprep.mubr.bf16.mxu0 %v3562_v43  ;;  %2373 = vmatpush1.bf16.msra.mxu1 %v4203_v44  ;;  %v3614_v43 = vcombine.high %v119_v37, %v123_v38  ;;  %v3618_v44 = vcombine.high %v121_v39, %v125_v40 }
  0x6c   :  { %2951 = vmatpush1.bf16.msra.mxu0 %v4204_v45  ;;  %2374 = vmatprep.subr.bf16.mxu1 %v4215_v0  ;;  %v4211_v45 = vld [vmem:[%s5492_s1 + $0xf0] sm:$0xff]  }
  0x6d   :  { %2952 = vmatprep.subr.bf16.mxu0 %v4215_v0 }
  0x6f   :  { %2375 = vmatpush1.bf16.msra.mxu1 %v4205_v54 }
  0x70   :  { %2953 = vmatpush1.bf16.msra.mxu0 %v4206_v55  ;;  %2376 = vmatprep.subr.bf16.mxu1 %v4215_v0  ;;  %v135_v55 = vld [vmem:[%s5493_s0 + $0x3c0] sm:$0xff] }
  0x71   :  { %2144 = vmatmul.mubr.bf16.gmra.mrb[24].mxu1 %v3557_v50  ;;  %2954 = vmatprep.subr.bf16.mxu0 %v4215_v0  ;;  %v133_v50 = vld [vmem:[%s5493_s0 + $0x3b0] sm:$0xff] }
  0x72   :  { %2722 = vmatmul.mubr.bf16.gmra.mrb[24].mxu0 %v3561_v51  ;;  %2151 = vmatprep.mubr.bf16.mxu1 %v3566_v52  ;;  %v3613_v51 = vcombine.low %v119_v37, %v123_v38  ;;  %v3617_v52 = vcombine.low %v121_v39, %v125_v40  ;;  %v3626_v54 = vcombine.high %v129_v49, %v133_v50 }
  0x73   :  { %2729 = vmatprep.mubr.bf16.mxu0 %v3570_v53  ;;  %2377 = vmatpush1.bf16.msra.mxu1 %v4207_v9  ;;  %v3622_v53 = vcombine.high %v127_v47, %v131_v48  ;;  %v3625_v59 = vcombine.low %v129_v49, %v133_v50  ;;  %v151_v9 = vld [vmem:[%s5493_s0 + $0x440] sm:$0xff] }
  0x74   :  { %2955 = vmatpush1.bf16.msra.mxu0 %v4208_v10  ;;  %2378 = vmatprep.subr.bf16.mxu1 %v4215_v0  ;;  %v155_v10 = vld [vmem:[%s5493_s0 + $0x460] sm:$0xff] }
  0x75   :  { %2956 = vmatprep.subr.bf16.mxu0 %v4215_v0  ;;  %v3645_v21 = vcombine.low %v151_v9, %v155_v10  ;;  %v191_v49 = vld [vmem:[%s5493_s0 + $0x580] sm:$0xff] }
  0x76   :  { %v195_v50 = vld [vmem:[%s5493_s0 + $0x5a0] sm:$0xff] }
  0x77   :  { %2379 = vmatpush1.bf16.msra.mxu1 %v4209_v27  ;;  %v169_v27 = vld [vmem:[%s5493_s0 + $0x4d0] sm:$0xff] }
  0x78   :  { %2957 = vmatpush1.bf16.msra.mxu0 %v4210_v28  ;;  %2380 = vmatprep.subr.bf16.mxu1 %v4215_v0  ;;  %v173_v28 = vld [vmem:[%s5493_s0 + $0x4f0] sm:$0xff] }
  0x79   :  { %2152 = vmatmul.mubr.bf16.gmra.mrb[28].mxu1 %v3565_v60  ;;  %2958 = vmatprep.subr.bf16.mxu0 %v4215_v0  ;;  %v3630_v60 = vcombine.high %v135_v55, %v139_v56  ;;  %v3666_v32 = vcombine.high %v169_v27, %v173_v28  ;;  %v3665_v38 = vcombine.low %v169_v27, %v173_v28  ;;  %v233_v27 = vld [vmem:[%s5493_s0 + $0x6d0] sm:$0xff] }
  0x7a   :  { %2730 = vmatmul.mubr.bf16.gmra.mrb[28].mxu0 %v3569_v61  ;;  %2159 = vmatprep.mubr.bf16.mxu1 %v3574_v62  ;;  %v4213_v62 = vld [vmem:[%s5492_s1 + $0xf8] sm:$0xff]   ;;  %v237_v28 = vld [vmem:[%s5493_s0 + $0x6f0] sm:$0xff] }
  0x7b   :  { %2737 = vmatprep.mubr.bf16.mxu0 %v3578_v63  ;;  %2381 = vmatpush1.bf16.msra.mxu1 %v4211_v45  ;;  %v4214_v63 = vld [vmem:[%s5492_s1 + $0x1f8] sm:$0xff]  }
  0x7c   :  { %2959 = vmatpush1.bf16.msra.mxu0 %v4212_v46  ;;  %2382 = vmatprep.subr.bf16.mxu1 %v4215_v0 }
  0x7d   :  { %2960 = vmatprep.subr.bf16.mxu0 %v4215_v0  ;;  %v141_v0 = vld [vmem:[%s5493_s0 + $0x3f0] sm:$0xff] }
  0x7e   :  { %v3634_v61 = vcombine.high %v137_v57, %v141_v0 }
  0x7f   :  { %2383 = vmatpush1.bf16.msra.mxu1 %v4213_v62 }
  0x80   :  { %2961 = vmatpush1.bf16.msra.mxu0 %v4214_v63 }
  0x81   :  { %2160 = vmatmul.mubr.bf16.gmra.mrb[32].mxu1 %v3573_v5  ;;  %v3629_v5 = vcombine.low %v135_v55, %v139_v56  ;;  %v3686_v55 = vcombine.high %v191_v49, %v195_v50 }
  0x82   :  { %2738 = vmatmul.mubr.bf16.gmra.mrb[32].mxu0 %v3577_v6  ;;  %2167 = vmatprep.mubr.bf16.mxu1 %v3582_v7  ;;  %v3633_v6 = vcombine.low %v137_v57, %v141_v0  ;;  %v3638_v7 = vcombine.high %v143_v1, %v147_v2  ;;  %v199_v57 = vld [vmem:[%s5493_s0 + $0x5c0] sm:$0xff] }
  0x83   :  { %2745 = vmatprep.mubr.bf16.mxu0 %v3586_v8  ;;  %v3642_v8 = vcombine.high %v145_v3, %v149_v4  ;;  %v203_v0 = vld [vmem:[%s5493_s0 + $0x5e0] sm:$0xff]  ;;  %v209_v3 = vld [vmem:[%s5493_s0 + $0x610] sm:$0xff] }
  0x84   :  { %v3694_v62 = vcombine.high %v199_v57, %v203_v0  ;;  %v207_v1 = vld [vmem:[%s5493_s0 + $0x600] sm:$0xff]  ;;  %v213_v4 = vld [vmem:[%s5493_s0 + $0x630] sm:$0xff] }
  0x85   :  { %v211_v2 = vld [vmem:[%s5493_s0 + $0x620] sm:$0xff] }
  0x89   :  { %2168 = vmatmul.mubr.bf16.gmra.mrb[36].mxu1 %v3581_v15  ;;  %v3646_v15 = vcombine.high %v151_v9, %v155_v10  ;;  %v215_v9 = vld [vmem:[%s5493_s0 + $0x640] sm:$0xff] }
  0x8a   :  { %2746 = vmatmul.mubr.bf16.gmra.mrb[36].mxu0 %v3585_v16  ;;  %2175 = vmatprep.mubr.bf16.mxu1 %v3590_v17  ;;  %v3650_v16 = vcombine.high %v153_v11, %v157_v12  ;;  %v159_v17 = vld [vmem:[%s5493_s0 + $0x480] sm:$0xff]  ;;  %v217_v11 = vld [vmem:[%s5493_s0 + $0x650] sm:$0xff] }
  0x8b   :  { %2753 = vmatprep.mubr.bf16.mxu0 %v3594_v18  ;;  %v163_v18 = vld [vmem:[%s5493_s0 + $0x4a0] sm:$0xff]  ;;  %v221_v12 = vld [vmem:[%s5493_s0 + $0x670] sm:$0xff] }
  0x8c   :  { %v3653_v29 = vcombine.low %v159_v17, %v163_v18  ;;  %v219_v10 = vld [vmem:[%s5493_s0 + $0x660] sm:$0xff] }
  0x91   :  { %2176 = vmatmul.mubr.bf16.gmra.mrb[40].mxu1 %v3589_v23  ;;  %v3654_v23 = vcombine.high %v159_v17, %v163_v18  ;;  %v223_v17 = vld [vmem:[%s5493_s0 + $0x680] sm:$0xff] }
  0x92   :  { %2754 = vmatmul.mubr.bf16.gmra.mrb[40].mxu0 %v3593_v24  ;;  %2183 = vmatprep.mubr.bf16.mxu1 %v3598_v25  ;;  %v3658_v24 = vcombine.high %v161_v19, %v165_v20  ;;  %v167_v25 = vld [vmem:[%s5493_s0 + $0x4c0] sm:$0xff]  ;;  %v225_v19 = vld [vmem:[%s5493_s0 + $0x690] sm:$0xff] }
  0x93   :  { %2761 = vmatprep.mubr.bf16.mxu0 %v3602_v26  ;;  %v171_v26 = vld [vmem:[%s5493_s0 + $0x4e0] sm:$0xff]  ;;  %v229_v20 = vld [vmem:[%s5493_s0 + $0x6b0] sm:$0xff] }
  0x94   :  { %v3662_v31 = vcombine.high %v167_v25, %v171_v26  ;;  %v3661_v37 = vcombine.low %v167_v25, %v171_v26  ;;  %v227_v18 = vld [vmem:[%s5493_s0 + $0x6a0] sm:$0xff] }
  0x95   :  { %v231_v25 = vld [vmem:[%s5493_s0 + $0x6c0] sm:$0xff] }
  0x96   :  { %v235_v26 = vld [vmem:[%s5493_s0 + $0x6e0] sm:$0xff] }
  0x99   :  { %2184 = vmatmul.mubr.bf16.gmra.mrb[44].mxu1 %v3597_v33  ;;  %v175_v33 = vld [vmem:[%s5493_s0 + $0x500] sm:$0xff] }
  0x9a   :  { %2762 = vmatmul.mubr.bf16.gmra.mrb[44].mxu0 %v3601_v34  ;;  %2191 = vmatprep.mubr.bf16.mxu1 %v3606_v35  ;;  %v179_v34 = vld [vmem:[%s5493_s0 + $0x520] sm:$0xff]  ;;  %v177_v35 = vld [vmem:[%s5493_s0 + $0x510] sm:$0xff] }
  0x9b   :  { %2769 = vmatprep.mubr.bf16.mxu0 %v3610_v36  ;;  %v181_v36 = vld [vmem:[%s5493_s0 + $0x530] sm:$0xff]  ;;  %v3670_v39 = vcombine.high %v175_v33, %v179_v34  ;;  %v3669_v45 = vcombine.low %v175_v33, %v179_v34  ;;  %v239_v33 = vld [vmem:[%s5493_s0 + $0x700] sm:$0xff] }
  0x9c   :  { %v3674_v40 = vcombine.high %v177_v35, %v181_v36  ;;  %v3673_v46 = vcombine.low %v177_v35, %v181_v36  ;;  %v243_v34 = vld [vmem:[%s5493_s0 + $0x720] sm:$0xff]  ;;  %v241_v35 = vld [vmem:[%s5493_s0 + $0x710] sm:$0xff] }
  0x9d   :  { %v245_v36 = vld [vmem:[%s5493_s0 + $0x730] sm:$0xff] }
  0xa1   :  { %2192 = vmatmul.mubr.bf16.gmra.mrb[48].mxu1 %v3605_v41  ;;  %v183_v41 = vld [vmem:[%s5493_s0 + $0x540] sm:$0xff] }
  0xa2   :  { %2770 = vmatmul.mubr.bf16.gmra.mrb[48].mxu0 %v3609_v42  ;;  %2199 = vmatprep.mubr.bf16.mxu1 %v3614_v43  ;;  %v187_v42 = vld [vmem:[%s5493_s0 + $0x560] sm:$0xff]  ;;  %v185_v43 = vld [vmem:[%s5493_s0 + $0x550] sm:$0xff] }
  0xa3   :  { %2777 = vmatprep.mubr.bf16.mxu0 %v3618_v44  ;;  %v189_v44 = vld [vmem:[%s5493_s0 + $0x570] sm:$0xff]  ;;  %v3678_v47 = vcombine.high %v183_v41, %v187_v42 }
  0xa4   :  { %v3682_v48 = vcombine.high %v185_v43, %v189_v44 }
  0xa9   :  { %2200 = vmatmul.mubr.bf16.gmra.mrb[52].mxu1 %v3613_v51  ;;  %v193_v51 = vld [vmem:[%s5493_s0 + $0x590] sm:$0xff] }
  0xaa   :  { %2778 = vmatmul.mubr.bf16.gmra.mrb[52].mxu0 %v3617_v52  ;;  %2207 = vmatprep.mubr.bf16.mxu1 %v3622_v53  ;;  %v197_v52 = vld [vmem:[%s5493_s0 + $0x5b0] sm:$0xff]  ;;  %v3677_v53 = vcombine.low %v183_v41, %v187_v42  ;;  %v247_v41 = vld [vmem:[%s5493_s0 + $0x740] sm:$0xff] }
  0xab   :  { %2785 = vmatprep.mubr.bf16.mxu0 %v3626_v54  ;;  %v3681_v54 = vcombine.low %v185_v43, %v189_v44  ;;  %v3690_v56 = vcombine.high %v193_v51, %v197_v52  ;;  %v251_v42 = vld [vmem:[%s5493_s0 + $0x760] sm:$0xff]  ;;  %v249_v43 = vld [vmem:[%s5493_s0 + $0x750] sm:$0xff] }
  0xac   :  { %v253_v44 = vld [vmem:[%s5493_s0 + $0x770] sm:$0xff] }
  0xb1   :  { %2208 = vmatmul.mubr.bf16.gmra.mrb[56].mxu1 %v3621_v58  ;;  %v201_v58 = vld [vmem:[%s5493_s0 + $0x5d0] sm:$0xff] }
  0xb2   :  { %2786 = vmatmul.mubr.bf16.gmra.mrb[56].mxu0 %v3625_v59  ;;  %2215 = vmatprep.mubr.bf16.mxu1 %v3630_v60  ;;  %v205_v59 = vld [vmem:[%s5493_s0 + $0x5f0] sm:$0xff]  ;;  %v3685_v60 = vcombine.low %v191_v49, %v195_v50  ;;  %v255_v49 = vld [vmem:[%s5493_s0 + $0x780] sm:$0xff] }
  0xb3   :  { %2793 = vmatprep.mubr.bf16.mxu0 %v3634_v61  ;;  %v3689_v61 = vcombine.low %v193_v51, %v197_v52  ;;  %v3698_v63 = vcombine.high %v201_v58, %v205_v59  ;;  %v259_v50 = vld [vmem:[%s5493_s0 + $0x7a0] sm:$0xff]  ;;  %v257_v51 = vld [vmem:[%s5493_s0 + $0x790] sm:$0xff] }
  0xb4   :  { %v261_v52 = vld [vmem:[%s5493_s0 + $0x7b0] sm:$0xff] }
  0xb9   :  { %2216 = vmatmul.mubr.bf16.gmra.mrb[60].mxu1 %v3629_v5  ;;  %v3693_v5 = vcombine.low %v199_v57, %v203_v0  ;;  %v263_v57 = vld [vmem:[%s5493_s0 + $0x7c0] sm:$0xff] }
  0xba   :  { %2794 = vmatmul.mubr.bf16.gmra.mrb[60].mxu0 %v3633_v6  ;;  %2223 = vmatprep.mubr.bf16.mxu1 %v3638_v7  ;;  %v3697_v6 = vcombine.low %v201_v58, %v205_v59  ;;  %v3702_v7 = vcombine.high %v207_v1, %v211_v2  ;;  %v267_v0 = vld [vmem:[%s5493_s0 + $0x7e0] sm:$0xff]  ;;  %v265_v58 = vld [vmem:[%s5493_s0 + $0x7d0] sm:$0xff] }
  0xbb   :  { %2801 = vmatprep.mubr.bf16.mxu0 %v3642_v8  ;;  %v3706_v8 = vcombine.high %v209_v3, %v213_v4  ;;  %v269_v59 = vld [vmem:[%s5493_s0 + $0x7f0] sm:$0xff] }
  0xc1   :  { %2224 = vmatmul.mubr.bf16.gmra.mrb[64].mxu1 %v3637_v13  ;;  %v3701_v13 = vcombine.low %v207_v1, %v211_v2  ;;  %v16_v1 = vld [vmem:[%s5493_s0 + $0x8] sm:$0xff] }
  0xc2   :  { %2802 = vmatmul.mubr.bf16.gmra.mrb[64].mxu0 %v3641_v14  ;;  %2231 = vmatprep.mubr.bf16.mxu1 %v3646_v15  ;;  %v3705_v14 = vcombine.low %v209_v3, %v213_v4  ;;  %v3710_v15 = vcombine.high %v215_v9, %v219_v10  ;;  %v20_v2 = vld [vmem:[%s5493_s0 + $0x28] sm:$0xff]  ;;  %v18_v3 = vld [vmem:[%s5493_s0 + $0x18] sm:$0xff] }
  0xc3   :  { %2809 = vmatprep.mubr.bf16.mxu0 %v3650_v16  ;;  %v3714_v16 = vcombine.high %v217_v11, %v221_v12  ;;  %v22_v4 = vld [vmem:[%s5493_s0 + $0x38] sm:$0xff] }
  0xc9   :  { %2232 = vmatmul.mubr.bf16.gmra.mrb[68].mxu1 %v3645_v21  ;;  %v3709_v21 = vcombine.low %v215_v9, %v219_v10  ;;  %v24_v9 = vld [vmem:[%s5493_s0 + $0x48] sm:$0xff] }
  0xca   :  { %2810 = vmatmul.mubr.bf16.gmra.mrb[68].mxu0 %v3649_v22  ;;  %2239 = vmatprep.mubr.bf16.mxu1 %v3654_v23  ;;  %v3713_v22 = vcombine.low %v217_v11, %v221_v12  ;;  %v3718_v23 = vcombine.high %v223_v17, %v227_v18  ;;  %v28_v10 = vld [vmem:[%s5493_s0 + $0x68] sm:$0xff]  ;;  %v26_v11 = vld [vmem:[%s5493_s0 + $0x58] sm:$0xff] }
  0xcb   :  { %2817 = vmatprep.mubr.bf16.mxu0 %v3658_v24  ;;  %v3722_v24 = vcombine.high %v225_v19, %v229_v20  ;;  %v30_v12 = vld [vmem:[%s5493_s0 + $0x78] sm:$0xff] }
  0xd1   :  { %2240 = vmatmul.mubr.bf16.gmra.mrb[72].mxu1 %v3653_v29  ;;  %v3717_v29 = vcombine.low %v223_v17, %v227_v18  ;;  %v32_v17 = vld [vmem:[%s5493_s0 + $0x88] sm:$0xff] }
  0xd2   :  { %2818 = vmatmul.mubr.bf16.gmra.mrb[72].mxu0 %v3657_v30  ;;  %2247 = vmatprep.mubr.bf16.mxu1 %v3662_v31  ;;  %v3721_v30 = vcombine.low %v225_v19, %v229_v20  ;;  %v3726_v31 = vcombine.high %v231_v25, %v235_v26  ;;  %v36_v18 = vld [vmem:[%s5493_s0 + $0xa8] sm:$0xff]  ;;  %v34_v19 = vld [vmem:[%s5493_s0 + $0x98] sm:$0xff] }
  0xd3   :  { %2825 = vmatprep.mubr.bf16.mxu0 %v3666_v32  ;;  %v3730_v32 = vcombine.high %v233_v27, %v237_v28  ;;  %v38_v20 = vld [vmem:[%s5493_s0 + $0xb8] sm:$0xff] }
  0xd9   :  { %2248 = vmatmul.mubr.bf16.gmra.mrb[76].mxu1 %v3661_v37  ;;  %v3725_v37 = vcombine.low %v231_v25, %v235_v26  ;;  %v40_v25 = vld [vmem:[%s5493_s0 + $0xc8] sm:$0xff] }
  0xda   :  { %2826 = vmatmul.mubr.bf16.gmra.mrb[76].mxu0 %v3665_v38  ;;  %2255 = vmatprep.mubr.bf16.mxu1 %v3670_v39  ;;  %v3729_v38 = vcombine.low %v233_v27, %v237_v28  ;;  %v3734_v39 = vcombine.high %v239_v33, %v243_v34  ;;  %v44_v26 = vld [vmem:[%s5493_s0 + $0xe8] sm:$0xff]  ;;  %v42_v27 = vld [vmem:[%s5493_s0 + $0xd8] sm:$0xff] }
  0xdb   :  { %2833 = vmatprep.mubr.bf16.mxu0 %v3674_v40  ;;  %v3738_v40 = vcombine.high %v241_v35, %v245_v36  ;;  %v46_v28 = vld [vmem:[%s5493_s0 + $0xf8] sm:$0xff] }
  0xe1   :  { %2256 = vmatmul.mubr.bf16.gmra.mrb[80].mxu1 %v3669_v45  ;;  %v3733_v45 = vcombine.low %v239_v33, %v243_v34  ;;  %v48_v33 = vld [vmem:[%s5493_s0 + $0x108] sm:$0xff] }
  0xe2   :  { %2834 = vmatmul.mubr.bf16.gmra.mrb[80].mxu0 %v3673_v46  ;;  %2263 = vmatprep.mubr.bf16.mxu1 %v3678_v47  ;;  %v3737_v46 = vcombine.low %v241_v35, %v245_v36  ;;  %v3742_v47 = vcombine.high %v247_v41, %v251_v42  ;;  %v52_v34 = vld [vmem:[%s5493_s0 + $0x128] sm:$0xff]  ;;  %v50_v35 = vld [vmem:[%s5493_s0 + $0x118] sm:$0xff] }
  0xe3   :  { %2841 = vmatprep.mubr.bf16.mxu0 %v3682_v48  ;;  %v3746_v48 = vcombine.high %v249_v43, %v253_v44  ;;  %v54_v36 = vld [vmem:[%s5493_s0 + $0x138] sm:$0xff] }
  0xe9   :  { %2264 = vmatmul.mubr.bf16.gmra.mrb[84].mxu1 %v3677_v53  ;;  %v3741_v53 = vcombine.low %v247_v41, %v251_v42  ;;  %v56_v41 = vld [vmem:[%s5493_s0 + $0x148] sm:$0xff] }
  0xea   :  { %2842 = vmatmul.mubr.bf16.gmra.mrb[84].mxu0 %v3681_v54  ;;  %2271 = vmatprep.mubr.bf16.mxu1 %v3686_v55  ;;  %v3745_v54 = vcombine.low %v249_v43, %v253_v44  ;;  %v3750_v55 = vcombine.high %v255_v49, %v259_v50  ;;  %v60_v42 = vld [vmem:[%s5493_s0 + $0x168] sm:$0xff]  ;;  %v58_v43 = vld [vmem:[%s5493_s0 + $0x158] sm:$0xff] }
  0xeb   :  { %2849 = vmatprep.mubr.bf16.mxu0 %v3690_v56  ;;  %v3754_v56 = vcombine.high %v257_v51, %v261_v52  ;;  %v62_v44 = vld [vmem:[%s5493_s0 + $0x178] sm:$0xff] }
  0xf1   :  { %2272 = vmatmul.mubr.bf16.gmra.mrb[88].mxu1 %v3685_v60  ;;  %v3749_v60 = vcombine.low %v255_v49, %v259_v50  ;;  %v64_v49 = vld [vmem:[%s5493_s0 + $0x188] sm:$0xff] }
  0xf2   :  { %2850 = vmatmul.mubr.bf16.gmra.mrb[88].mxu0 %v3689_v61  ;;  %2279 = vmatprep.mubr.bf16.mxu1 %v3694_v62  ;;  %v3753_v61 = vcombine.low %v257_v51, %v261_v52  ;;  %v3758_v62 = vcombine.high %v263_v57, %v267_v0  ;;  %v68_v50 = vld [vmem:[%s5493_s0 + $0x1a8] sm:$0xff]  ;;  %v66_v51 = vld [vmem:[%s5493_s0 + $0x198] sm:$0xff] }
  0xf3   :  { %2857 = vmatprep.mubr.bf16.mxu0 %v3698_v63  ;;  %v3762_v63 = vcombine.high %v265_v58, %v269_v59  ;;  %v70_v52 = vld [vmem:[%s5493_s0 + $0x1b8] sm:$0xff] }
  0xf9   :  { %2280 = vmatmul.mubr.bf16.gmra.mrb[92].mxu1 %v3693_v5  ;;  %v3757_v5 = vcombine.low %v263_v57, %v267_v0  ;;  %v72_v57 = vld [vmem:[%s5493_s0 + $0x1c8] sm:$0xff] }
  0xfa   :  { %2858 = vmatmul.mubr.bf16.gmra.mrb[92].mxu0 %v3697_v6  ;;  %2287 = vmatprep.mubr.bf16.mxu1 %v3702_v7  ;;  %v3761_v6 = vcombine.low %v265_v58, %v269_v59  ;;  %v3512_v7 = vcombine.high %v16_v1, %v20_v2  ;;  %v76_v0 = vld [vmem:[%s5493_s0 + $0x1e8] sm:$0xff]  ;;  %v74_v58 = vld [vmem:[%s5493_s0 + $0x1d8] sm:$0xff] }
  0xfb   :  { %2865 = vmatprep.mubr.bf16.mxu0 %v3706_v8  ;;  %v3516_v8 = vcombine.high %v18_v3, %v22_v4  ;;  %v78_v59 = vld [vmem:[%s5493_s0 + $0x1f8] sm:$0xff] }
 0x101   :  { %2288 = vmatmul.mubr.bf16.gmra.mrb[96].mxu1 %v3701_v13  ;;  %v3511_v13 = vcombine.low %v16_v1, %v20_v2  ;;  %v80_v1 = vld [vmem:[%s5493_s0 + $0x208] sm:$0xff] }
 0x102   :  { %2866 = vmatmul.mubr.bf16.gmra.mrb[96].mxu0 %v3705_v14  ;;  %2295 = vmatprep.mubr.bf16.mxu1 %v3710_v15  ;;  %v3515_v14 = vcombine.low %v18_v3, %v22_v4  ;;  %v3520_v15 = vcombine.high %v24_v9, %v28_v10  ;;  %v84_v2 = vld [vmem:[%s5493_s0 + $0x228] sm:$0xff]  ;;  %v82_v3 = vld [vmem:[%s5493_s0 + $0x218] sm:$0xff] }
 0x103   :  { %2873 = vmatprep.mubr.bf16.mxu0 %v3714_v16  ;;  %v3524_v16 = vcombine.high %v26_v11, %v30_v12  ;;  %v86_v4 = vld [vmem:[%s5493_s0 + $0x238] sm:$0xff] }
 0x109   :  { %2296 = vmatmul.mubr.bf16.gmra.mrb[100].mxu1 %v3709_v21  ;;  %v3519_v21 = vcombine.low %v24_v9, %v28_v10  ;;  %v88_v9 = vld [vmem:[%s5493_s0 + $0x248] sm:$0xff] }
 0x10a   :  { %2874 = vmatmul.mubr.bf16.gmra.mrb[100].mxu0 %v3713_v22  ;;  %2303 = vmatprep.mubr.bf16.mxu1 %v3718_v23  ;;  %v3523_v22 = vcombine.low %v26_v11, %v30_v12  ;;  %v3528_v23 = vcombine.high %v32_v17, %v36_v18  ;;  %v92_v10 = vld [vmem:[%s5493_s0 + $0x268] sm:$0xff]  ;;  %v90_v11 = vld [vmem:[%s5493_s0 + $0x258] sm:$0xff] }
 0x10b   :  { %2881 = vmatprep.mubr.bf16.mxu0 %v3722_v24  ;;  %v3532_v24 = vcombine.high %v34_v19, %v38_v20  ;;  %v94_v12 = vld [vmem:[%s5493_s0 + $0x278] sm:$0xff] }
 0x111   :  { %2304 = vmatmul.mubr.bf16.gmra.mrb[104].mxu1 %v3717_v29  ;;  %v3527_v29 = vcombine.low %v32_v17, %v36_v18  ;;  %v96_v17 = vld [vmem:[%s5493_s0 + $0x288] sm:$0xff] }
 0x112   :  { %2882 = vmatmul.mubr.bf16.gmra.mrb[104].mxu0 %v3721_v30  ;;  %2311 = vmatprep.mubr.bf16.mxu1 %v3726_v31  ;;  %v3531_v30 = vcombine.low %v34_v19, %v38_v20  ;;  %v3536_v31 = vcombine.high %v40_v25, %v44_v26  ;;  %v100_v18 = vld [vmem:[%s5493_s0 + $0x2a8] sm:$0xff]  ;;  %v98_v19 = vld [vmem:[%s5493_s0 + $0x298] sm:$0xff] }
 0x113   :  { %2889 = vmatprep.mubr.bf16.mxu0 %v3730_v32  ;;  %v3540_v32 = vcombine.high %v42_v27, %v46_v28  ;;  %v102_v20 = vld [vmem:[%s5493_s0 + $0x2b8] sm:$0xff] }
 0x119   :  { %2312 = vmatmul.mubr.bf16.gmra.mrb[108].mxu1 %v3725_v37  ;;  %v3535_v37 = vcombine.low %v40_v25, %v44_v26  ;;  %v104_v25 = vld [vmem:[%s5493_s0 + $0x2c8] sm:$0xff] }
 0x11a   :  { %2890 = vmatmul.mubr.bf16.gmra.mrb[108].mxu0 %v3729_v38  ;;  %2319 = vmatprep.mubr.bf16.mxu1 %v3734_v39  ;;  %v3539_v38 = vcombine.low %v42_v27, %v46_v28  ;;  %v3544_v39 = vcombine.high %v48_v33, %v52_v34  ;;  %v108_v26 = vld [vmem:[%s5493_s0 + $0x2e8] sm:$0xff]  ;;  %v106_v27 = vld [vmem:[%s5493_s0 + $0x2d8] sm:$0xff] }
 0x11b   :  { %2897 = vmatprep.mubr.bf16.mxu0 %v3738_v40  ;;  %v3548_v40 = vcombine.high %v50_v35, %v54_v36  ;;  %v110_v28 = vld [vmem:[%s5493_s0 + $0x2f8] sm:$0xff] }
 0x121   :  { %2320 = vmatmul.mubr.bf16.gmra.mrb[112].mxu1 %v3733_v45  ;;  %v3543_v45 = vcombine.low %v48_v33, %v52_v34  ;;  %v112_v33 = vld [vmem:[%s5493_s0 + $0x308] sm:$0xff] }
 0x122   :  { %2898 = vmatmul.mubr.bf16.gmra.mrb[112].mxu0 %v3737_v46  ;;  %2327 = vmatprep.mubr.bf16.mxu1 %v3742_v47  ;;  %v3547_v46 = vcombine.low %v50_v35, %v54_v36  ;;  %v3552_v47 = vcombine.high %v56_v41, %v60_v42  ;;  %v116_v34 = vld [vmem:[%s5493_s0 + $0x328] sm:$0xff]  ;;  %v114_v35 = vld [vmem:[%s5493_s0 + $0x318] sm:$0xff] }
 0x123   :  { %2905 = vmatprep.mubr.bf16.mxu0 %v3746_v48  ;;  %v3556_v48 = vcombine.high %v58_v43, %v62_v44  ;;  %v118_v36 = vld [vmem:[%s5493_s0 + $0x338] sm:$0xff] }
 0x129   :  { %2328 = vmatmul.mubr.bf16.gmra.mrb[116].mxu1 %v3741_v53  ;;  %v3551_v53 = vcombine.low %v56_v41, %v60_v42  ;;  %v120_v41 = vld [vmem:[%s5493_s0 + $0x348] sm:$0xff] }
 0x12a   :  { %2906 = vmatmul.mubr.bf16.gmra.mrb[116].mxu0 %v3745_v54  ;;  %2335 = vmatprep.mubr.bf16.mxu1 %v3750_v55  ;;  %v3555_v54 = vcombine.low %v58_v43, %v62_v44  ;;  %v3560_v55 = vcombine.high %v64_v49, %v68_v50  ;;  %v124_v42 = vld [vmem:[%s5493_s0 + $0x368] sm:$0xff]  ;;  %v122_v43 = vld [vmem:[%s5493_s0 + $0x358] sm:$0xff] }
 0x12b   :  { %2913 = vmatprep.mubr.bf16.mxu0 %v3754_v56  ;;  %v3564_v56 = vcombine.high %v66_v51, %v70_v52  ;;  %v126_v44 = vld [vmem:[%s5493_s0 + $0x378] sm:$0xff] }
 0x131   :  { %2336 = vmatmul.mubr.bf16.gmra.mrb[120].mxu1 %v3749_v60  ;;  %v3559_v60 = vcombine.low %v64_v49, %v68_v50  ;;  %v128_v49 = vld [vmem:[%s5493_s0 + $0x388] sm:$0xff] }
 0x132   :  { %2914 = vmatmul.mubr.bf16.gmra.mrb[120].mxu0 %v3753_v61  ;;  %2343 = vmatprep.mubr.bf16.mxu1 %v3758_v62  ;;  %v3563_v61 = vcombine.low %v66_v51, %v70_v52  ;;  %v3568_v62 = vcombine.high %v72_v57, %v76_v0  ;;  %v132_v50 = vld [vmem:[%s5493_s0 + $0x3a8] sm:$0xff]  ;;  %v130_v51 = vld [vmem:[%s5493_s0 + $0x398] sm:$0xff] }
 0x133   :  { %2921 = vmatprep.mubr.bf16.mxu0 %v3762_v63  ;;  %v3572_v63 = vcombine.high %v74_v58, %v78_v59  ;;  %v134_v52 = vld [vmem:[%s5493_s0 + $0x3b8] sm:$0xff] }
 0x139   :  { %2344 = vmatmul.mubr.bf16.gmra.mrb[124].mxu1 %v3757_v5  ;;  %v3567_v5 = vcombine.low %v72_v57, %v76_v0  ;;  %v136_v57 = vld [vmem:[%s5493_s0 + $0x3c8] sm:$0xff] }
 0x13a   :  { %2922 = vmatmul.mubr.bf16.gmra.mrb[124].mxu0 %v3761_v6  ;;  %2384 = vmatprep.mubr.bf16.mxu1 %v3512_v7  ;;  %v3571_v6 = vcombine.low %v74_v58, %v78_v59  ;;  %v3576_v7 = vcombine.high %v80_v1, %v84_v2  ;;  %v140_v0 = vld [vmem:[%s5493_s0 + $0x3e8] sm:$0xff]  ;;  %v138_v58 = vld [vmem:[%s5493_s0 + $0x3d8] sm:$0xff] }
 0x13b   :  { %2962 = vmatprep.mubr.bf16.mxu0 %v3516_v8  ;;  %v3580_v8 = vcombine.high %v82_v3, %v86_v4  ;;  %v142_v59 = vld [vmem:[%s5493_s0 + $0x3f8] sm:$0xff] }
 0x141   :  { %2385 = vmatmul.mubr.bf16.vlgmr.msra.gmra.mrb[0].mxu1 %v3511_v13  ;;  %v3575_v13 = vcombine.low %v80_v1, %v84_v2  ;;  %v144_v1 = vld [vmem:[%s5493_s0 + $0x408] sm:$0xff] }
 0x142   :  { %2963 = vmatmul.mubr.bf16.vlgmr.msra.gmra.mrb[0].mxu0 %v3515_v14  ;;  %2392 = vmatprep.mubr.bf16.mxu1 %v3520_v15  ;;  %v3579_v14 = vcombine.low %v82_v3, %v86_v4  ;;  %v3584_v15 = vcombine.high %v88_v9, %v92_v10  ;;  %v148_v2 = vld [vmem:[%s5493_s0 + $0x428] sm:$0xff]  ;;  %v146_v3 = vld [vmem:[%s5493_s0 + $0x418] sm:$0xff] }
 0x143   :  { %2970 = vmatprep.mubr.bf16.mxu0 %v3524_v16  ;;  %v3588_v16 = vcombine.high %v90_v11, %v94_v12  ;;  %v150_v4 = vld [vmem:[%s5493_s0 + $0x438] sm:$0xff] }
 0x149   :  { %2393 = vmatmul.mubr.bf16.gmra.mrb[4].mxu1 %v3519_v21  ;;  %v3583_v21 = vcombine.low %v88_v9, %v92_v10  ;;  %v152_v9 = vld [vmem:[%s5493_s0 + $0x448] sm:$0xff] }
 0x14a   :  { %2971 = vmatmul.mubr.bf16.gmra.mrb[4].mxu0 %v3523_v22  ;;  %2400 = vmatprep.mubr.bf16.mxu1 %v3528_v23  ;;  %v3587_v22 = vcombine.low %v90_v11, %v94_v12  ;;  %v3592_v23 = vcombine.high %v96_v17, %v100_v18  ;;  %v156_v10 = vld [vmem:[%s5493_s0 + $0x468] sm:$0xff]  ;;  %v154_v11 = vld [vmem:[%s5493_s0 + $0x458] sm:$0xff] }
 0x14b   :  { %2978 = vmatprep.mubr.bf16.mxu0 %v3532_v24  ;;  %v3596_v24 = vcombine.high %v98_v19, %v102_v20  ;;  %v158_v12 = vld [vmem:[%s5493_s0 + $0x478] sm:$0xff] }
 0x151   :  { %2401 = vmatmul.mubr.bf16.gmra.mrb[8].mxu1 %v3527_v29  ;;  %v3591_v29 = vcombine.low %v96_v17, %v100_v18  ;;  %v160_v17 = vld [vmem:[%s5493_s0 + $0x488] sm:$0xff] }
 0x152   :  { %2979 = vmatmul.mubr.bf16.gmra.mrb[8].mxu0 %v3531_v30  ;;  %2408 = vmatprep.mubr.bf16.mxu1 %v3536_v31  ;;  %v3595_v30 = vcombine.low %v98_v19, %v102_v20  ;;  %v3600_v31 = vcombine.high %v104_v25, %v108_v26  ;;  %v164_v18 = vld [vmem:[%s5493_s0 + $0x4a8] sm:$0xff]  ;;  %v162_v19 = vld [vmem:[%s5493_s0 + $0x498] sm:$0xff] }
 0x153   :  { %2986 = vmatprep.mubr.bf16.mxu0 %v3540_v32  ;;  %v3604_v32 = vcombine.high %v106_v27, %v110_v28  ;;  %v166_v20 = vld [vmem:[%s5493_s0 + $0x4b8] sm:$0xff] }
 0x159   :  { %2409 = vmatmul.mubr.bf16.gmra.mrb[12].mxu1 %v3535_v37  ;;  %v3599_v37 = vcombine.low %v104_v25, %v108_v26  ;;  %v168_v25 = vld [vmem:[%s5493_s0 + $0x4c8] sm:$0xff] }
 0x15a   :  { %2987 = vmatmul.mubr.bf16.gmra.mrb[12].mxu0 %v3539_v38  ;;  %2416 = vmatprep.mubr.bf16.mxu1 %v3544_v39  ;;  %v3603_v38 = vcombine.low %v106_v27, %v110_v28  ;;  %v3608_v39 = vcombine.high %v112_v33, %v116_v34  ;;  %v172_v26 = vld [vmem:[%s5493_s0 + $0x4e8] sm:$0xff]  ;;  %v170_v27 = vld [vmem:[%s5493_s0 + $0x4d8] sm:$0xff] }
 0x15b   :  { %2994 = vmatprep.mubr.bf16.mxu0 %v3548_v40  ;;  %v3612_v40 = vcombine.high %v114_v35, %v118_v36  ;;  %v174_v28 = vld [vmem:[%s5493_s0 + $0x4f8] sm:$0xff] }
 0x161   :  { %2417 = vmatmul.mubr.bf16.gmra.mrb[16].mxu1 %v3543_v45  ;;  %v3607_v45 = vcombine.low %v112_v33, %v116_v34  ;;  %v176_v33 = vld [vmem:[%s5493_s0 + $0x508] sm:$0xff] }
 0x162   :  { %2995 = vmatmul.mubr.bf16.gmra.mrb[16].mxu0 %v3547_v46  ;;  %2424 = vmatprep.mubr.bf16.mxu1 %v3552_v47  ;;  %v3611_v46 = vcombine.low %v114_v35, %v118_v36  ;;  %v3616_v47 = vcombine.high %v120_v41, %v124_v42  ;;  %v180_v34 = vld [vmem:[%s5493_s0 + $0x528] sm:$0xff]  ;;  %v178_v35 = vld [vmem:[%s5493_s0 + $0x518] sm:$0xff] }
 0x163   :  { %3002 = vmatprep.mubr.bf16.mxu0 %v3556_v48  ;;  %v3620_v48 = vcombine.high %v122_v43, %v126_v44  ;;  %v182_v36 = vld [vmem:[%s5493_s0 + $0x538] sm:$0xff] }
 0x169   :  { %2425 = vmatmul.mubr.bf16.gmra.mrb[20].mxu1 %v3551_v53  ;;  %v3615_v53 = vcombine.low %v120_v41, %v124_v42  ;;  %v184_v41 = vld [vmem:[%s5493_s0 + $0x548] sm:$0xff] }
 0x16a   :  { %3003 = vmatmul.mubr.bf16.gmra.mrb[20].mxu0 %v3555_v54  ;;  %2432 = vmatprep.mubr.bf16.mxu1 %v3560_v55  ;;  %v3619_v54 = vcombine.low %v122_v43, %v126_v44  ;;  %v3624_v55 = vcombine.high %v128_v49, %v132_v50  ;;  %v188_v42 = vld [vmem:[%s5493_s0 + $0x568] sm:$0xff]  ;;  %v186_v43 = vld [vmem:[%s5493_s0 + $0x558] sm:$0xff] }
 0x16b   :  { %3010 = vmatprep.mubr.bf16.mxu0 %v3564_v56  ;;  %v3628_v56 = vcombine.high %v130_v51, %v134_v52  ;;  %v190_v44 = vld [vmem:[%s5493_s0 + $0x578] sm:$0xff] }
 0x171   :  { %2433 = vmatmul.mubr.bf16.gmra.mrb[24].mxu1 %v3559_v60  ;;  %v3623_v60 = vcombine.low %v128_v49, %v132_v50  ;;  %v192_v49 = vld [vmem:[%s5493_s0 + $0x588] sm:$0xff] }
 0x172   :  { %3011 = vmatmul.mubr.bf16.gmra.mrb[24].mxu0 %v3563_v61  ;;  %2440 = vmatprep.mubr.bf16.mxu1 %v3568_v62  ;;  %v3627_v61 = vcombine.low %v130_v51, %v134_v52  ;;  %v3632_v62 = vcombine.high %v136_v57, %v140_v0  ;;  %v196_v50 = vld [vmem:[%s5493_s0 + $0x5a8] sm:$0xff]  ;;  %v194_v51 = vld [vmem:[%s5493_s0 + $0x598] sm:$0xff] }
 0x173   :  { %3018 = vmatprep.mubr.bf16.mxu0 %v3572_v63  ;;  %v3636_v63 = vcombine.high %v138_v58, %v142_v59  ;;  %v198_v52 = vld [vmem:[%s5493_s0 + $0x5b8] sm:$0xff] }
 0x179   :  { %2441 = vmatmul.mubr.bf16.gmra.mrb[28].mxu1 %v3567_v5  ;;  %v3631_v5 = vcombine.low %v136_v57, %v140_v0  ;;  %v200_v57 = vld [vmem:[%s5493_s0 + $0x5c8] sm:$0xff] }
 0x17a   :  { %3019 = vmatmul.mubr.bf16.gmra.mrb[28].mxu0 %v3571_v6  ;;  %2448 = vmatprep.mubr.bf16.mxu1 %v3576_v7  ;;  %v3635_v6 = vcombine.low %v138_v58, %v142_v59  ;;  %v3640_v7 = vcombine.high %v144_v1, %v148_v2  ;;  %v204_v0 = vld [vmem:[%s5493_s0 + $0x5e8] sm:$0xff]  ;;  %v202_v58 = vld [vmem:[%s5493_s0 + $0x5d8] sm:$0xff] }
 0x17b   :  { %3026 = vmatprep.mubr.bf16.mxu0 %v3580_v8  ;;  %v3644_v8 = vcombine.high %v146_v3, %v150_v4  ;;  %v206_v59 = vld [vmem:[%s5493_s0 + $0x5f8] sm:$0xff] }
 0x181   :  { %2449 = vmatmul.mubr.bf16.gmra.mrb[32].mxu1 %v3575_v13  ;;  %v3639_v13 = vcombine.low %v144_v1, %v148_v2  ;;  %v208_v1 = vld [vmem:[%s5493_s0 + $0x608] sm:$0xff] }
 0x182   :  { %3027 = vmatmul.mubr.bf16.gmra.mrb[32].mxu0 %v3579_v14  ;;  %2456 = vmatprep.mubr.bf16.mxu1 %v3584_v15  ;;  %v3643_v14 = vcombine.low %v146_v3, %v150_v4  ;;  %v3648_v15 = vcombine.high %v152_v9, %v156_v10  ;;  %v212_v2 = vld [vmem:[%s5493_s0 + $0x628] sm:$0xff]  ;;  %v210_v3 = vld [vmem:[%s5493_s0 + $0x618] sm:$0xff] }
 0x183   :  { %3034 = vmatprep.mubr.bf16.mxu0 %v3588_v16  ;;  %v3652_v16 = vcombine.high %v154_v11, %v158_v12  ;;  %v214_v4 = vld [vmem:[%s5493_s0 + $0x638] sm:$0xff] }
 0x189   :  { %2457 = vmatmul.mubr.bf16.gmra.mrb[36].mxu1 %v3583_v21  ;;  %v3647_v21 = vcombine.low %v152_v9, %v156_v10  ;;  %v216_v9 = vld [vmem:[%s5493_s0 + $0x648] sm:$0xff] }
 0x18a   :  { %3035 = vmatmul.mubr.bf16.gmra.mrb[36].mxu0 %v3587_v22  ;;  %2464 = vmatprep.mubr.bf16.mxu1 %v3592_v23  ;;  %v3651_v22 = vcombine.low %v154_v11, %v158_v12  ;;  %v3656_v23 = vcombine.high %v160_v17, %v164_v18  ;;  %v220_v10 = vld [vmem:[%s5493_s0 + $0x668] sm:$0xff]  ;;  %v218_v11 = vld [vmem:[%s5493_s0 + $0x658] sm:$0xff] }
 0x18b   :  { %3042 = vmatprep.mubr.bf16.mxu0 %v3596_v24  ;;  %v3660_v24 = vcombine.high %v162_v19, %v166_v20  ;;  %v222_v12 = vld [vmem:[%s5493_s0 + $0x678] sm:$0xff] }
 0x191   :  { %2465 = vmatmul.mubr.bf16.gmra.mrb[40].mxu1 %v3591_v29  ;;  %v3655_v29 = vcombine.low %v160_v17, %v164_v18  ;;  %v224_v17 = vld [vmem:[%s5493_s0 + $0x688] sm:$0xff] }
 0x192   :  { %3043 = vmatmul.mubr.bf16.gmra.mrb[40].mxu0 %v3595_v30  ;;  %2472 = vmatprep.mubr.bf16.mxu1 %v3600_v31  ;;  %v3659_v30 = vcombine.low %v162_v19, %v166_v20  ;;  %v3664_v31 = vcombine.high %v168_v25, %v172_v26  ;;  %v228_v18 = vld [vmem:[%s5493_s0 + $0x6a8] sm:$0xff]  ;;  %v226_v19 = vld [vmem:[%s5493_s0 + $0x698] sm:$0xff] }
 0x193   :  { %3050 = vmatprep.mubr.bf16.mxu0 %v3604_v32  ;;  %v3668_v32 = vcombine.high %v170_v27, %v174_v28  ;;  %v230_v20 = vld [vmem:[%s5493_s0 + $0x6b8] sm:$0xff] }
 0x199   :  { %2473 = vmatmul.mubr.bf16.gmra.mrb[44].mxu1 %v3599_v37  ;;  %v3663_v37 = vcombine.low %v168_v25, %v172_v26  ;;  %v232_v25 = vld [vmem:[%s5493_s0 + $0x6c8] sm:$0xff] }
 0x19a   :  { %3051 = vmatmul.mubr.bf16.gmra.mrb[44].mxu0 %v3603_v38  ;;  %2480 = vmatprep.mubr.bf16.mxu1 %v3608_v39  ;;  %v3667_v38 = vcombine.low %v170_v27, %v174_v28  ;;  %v3672_v39 = vcombine.high %v176_v33, %v180_v34  ;;  %v236_v26 = vld [vmem:[%s5493_s0 + $0x6e8] sm:$0xff]  ;;  %v234_v27 = vld [vmem:[%s5493_s0 + $0x6d8] sm:$0xff] }
 0x19b   :  { %3058 = vmatprep.mubr.bf16.mxu0 %v3612_v40  ;;  %v3676_v40 = vcombine.high %v178_v35, %v182_v36  ;;  %v238_v28 = vld [vmem:[%s5493_s0 + $0x6f8] sm:$0xff] }
 0x1a1   :  { %2481 = vmatmul.mubr.bf16.gmra.mrb[48].mxu1 %v3607_v45  ;;  %v3671_v45 = vcombine.low %v176_v33, %v180_v34  ;;  %v240_v33 = vld [vmem:[%s5493_s0 + $0x708] sm:$0xff] }
 0x1a2   :  { %3059 = vmatmul.mubr.bf16.gmra.mrb[48].mxu0 %v3611_v46  ;;  %2488 = vmatprep.mubr.bf16.mxu1 %v3616_v47  ;;  %v3675_v46 = vcombine.low %v178_v35, %v182_v36  ;;  %v3680_v47 = vcombine.high %v184_v41, %v188_v42  ;;  %v244_v34 = vld [vmem:[%s5493_s0 + $0x728] sm:$0xff]  ;;  %v242_v36 = vld [vmem:[%s5493_s0 + $0x718] sm:$0xff] }
 0x1a3   :  { %3066 = vmatprep.mubr.bf16.mxu0 %v3620_v48  ;;  %v3684_v48 = vcombine.high %v186_v43, %v190_v44 }
 0x1a9   :  { %2489 = vmatmul.mubr.bf16.gmra.mrb[52].mxu1 %v3615_v53  ;;  %v3679_v53 = vcombine.low %v184_v41, %v188_v42 }
 0x1aa   :  { %3067 = vmatmul.mubr.bf16.gmra.mrb[52].mxu0 %v3619_v54  ;;  %2496 = vmatprep.mubr.bf16.mxu1 %v3624_v55  ;;  %v3683_v54 = vcombine.low %v186_v43, %v190_v44  ;;  %v3688_v55 = vcombine.high %v192_v49, %v196_v50  ;;  %v3731_v44 = vcombine.low %v234_v27, %v238_v28 }
 0x1ab   :  { %3074 = vmatprep.mubr.bf16.mxu0 %v3628_v56  ;;  %v3692_v56 = vcombine.high %v194_v51, %v198_v52 }
 0x1b1   :  { %2497 = vmatmul.mubr.bf16.gmra.mrb[56].mxu1 %v3623_v60  ;;  %v3687_v60 = vcombine.low %v192_v49, %v196_v50 }
 0x1b2   :  { %3075 = vmatmul.mubr.bf16.gmra.mrb[56].mxu0 %v3627_v61  ;;  %2504 = vmatprep.mubr.bf16.mxu1 %v3632_v62  ;;  %v3691_v61 = vcombine.low %v194_v51, %v198_v52  ;;  %v3696_v62 = vcombine.high %v200_v57, %v204_v0 }
 0x1b3   :  { %3082 = vmatprep.mubr.bf16.mxu0 %v3636_v63  ;;  %v3700_v63 = vcombine.high %v202_v58, %v206_v59 }
 0x1b9   :  { %2505 = vmatmul.mubr.bf16.gmra.mrb[60].mxu1 %v3631_v5  ;;  %v3695_v5 = vcombine.low %v200_v57, %v204_v0  ;;  %v250_v0 = vld [vmem:[%s5493_s0 + $0x758] sm:$0xff] }
 0x1ba   :  { %3083 = vmatmul.mubr.bf16.gmra.mrb[60].mxu0 %v3635_v6  ;;  %2512 = vmatprep.mubr.bf16.mxu1 %v3640_v7  ;;  %v3699_v6 = vcombine.low %v202_v58, %v206_v59  ;;  %v3704_v7 = vcombine.high %v208_v1, %v212_v2  ;;  %v254_v58 = vld [vmem:[%s5493_s0 + $0x778] sm:$0xff] }
 0x1bb   :  { %3090 = vmatprep.mubr.bf16.mxu0 %v3644_v8  ;;  %v3708_v8 = vcombine.high %v210_v3, %v214_v4 }
 0x1c1   :  { %2513 = vmatmul.mubr.bf16.gmra.mrb[64].mxu1 %v3639_v13  ;;  %v3703_v13 = vcombine.low %v208_v1, %v212_v2 }
 0x1c2   :  { %3091 = vmatmul.mubr.bf16.gmra.mrb[64].mxu0 %v3643_v14  ;;  %2520 = vmatprep.mubr.bf16.mxu1 %v3648_v15  ;;  %v3707_v14 = vcombine.low %v210_v3, %v214_v4  ;;  %v3712_v15 = vcombine.high %v216_v9, %v220_v10 }
 0x1c3   :  { %3098 = vmatprep.mubr.bf16.mxu0 %v3652_v16  ;;  %v3716_v16 = vcombine.high %v218_v11, %v222_v12 }
 0x1c9   :  { %2521 = vmatmul.mubr.bf16.gmra.mrb[68].mxu1 %v3647_v21  ;;  %v3711_v21 = vcombine.low %v216_v9, %v220_v10 }
 0x1ca   :  { %3099 = vmatmul.mubr.bf16.gmra.mrb[68].mxu0 %v3651_v22  ;;  %2528 = vmatprep.mubr.bf16.mxu1 %v3656_v23  ;;  %v3715_v22 = vcombine.low %v218_v11, %v222_v12  ;;  %v3720_v23 = vcombine.high %v224_v17, %v228_v18 }
 0x1cb   :  { %3106 = vmatprep.mubr.bf16.mxu0 %v3660_v24  ;;  %v3724_v24 = vcombine.high %v226_v19, %v230_v20 }
 0x1d1   :  { %2529 = vmatmul.mubr.bf16.gmra.mrb[72].mxu1 %v3655_v29  ;;  %v3719_v29 = vcombine.low %v224_v17, %v228_v18  ;;  %v258_v18 = vld [vmem:[%s5493_s0 + $0x798] sm:$0xff] }
 0x1d2   :  { %3107 = vmatmul.mubr.bf16.gmra.mrb[72].mxu0 %v3659_v30  ;;  %2536 = vmatprep.mubr.bf16.mxu1 %v3664_v31  ;;  %v3723_v30 = vcombine.low %v226_v19, %v230_v20  ;;  %v3728_v31 = vcombine.high %v232_v25, %v236_v26  ;;  %v262_v19 = vld [vmem:[%s5493_s0 + $0x7b8] sm:$0xff] }
 0x1d3   :  { %3114 = vmatprep.mubr.bf16.mxu0 %v3668_v32  ;;  %v3732_v32 = vcombine.high %v234_v27, %v238_v28 }
 0x1d9   :  { %2537 = vmatmul.mubr.bf16.gmra.mrb[76].mxu1 %v3663_v37  ;;  %v246_v37 = vld [vmem:[%s5493_s0 + $0x738] sm:$0xff] }
 0x1da   :  { %3115 = vmatmul.mubr.bf16.gmra.mrb[76].mxu0 %v3667_v38  ;;  %2544 = vmatprep.mubr.bf16.mxu1 %v3672_v39  ;;  %v3739_v2 = vcombine.low %v242_v36, %v246_v37 }
 0x1db   :  { %3122 = vmatprep.mubr.bf16.mxu0 %v3676_v40  ;;  %v3727_v40 = vcombine.low %v232_v25, %v236_v26  ;;  %v3747_v26 = vcombine.low %v250_v0, %v254_v58 }
 0x1e1   :  { %2545 = vmatmul.mubr.bf16.gmra.mrb[80].mxu1 %v3671_v45  ;;  %v3736_v45 = vcombine.high %v240_v33, %v244_v34 }
 0x1e2   :  { %3123 = vmatmul.mubr.bf16.gmra.mrb[80].mxu0 %v3675_v46  ;;  %2552 = vmatprep.mubr.bf16.mxu1 %v3680_v47 }
 0x1e3   :  { %3130 = vmatprep.mubr.bf16.mxu0 %v3684_v48  ;;  %v3740_v48 = vcombine.high %v242_v36, %v246_v37 }
 0x1e9   :  { %2553 = vmatmul.mubr.bf16.gmra.mrb[84].mxu1 %v3679_v53 }
 0x1ea   :  { %3131 = vmatmul.mubr.bf16.gmra.mrb[84].mxu0 %v3683_v54  ;;  %2560 = vmatprep.mubr.bf16.mxu1 %v3688_v55  ;;  %v248_v54 = vld [vmem:[%s5493_s0 + $0x748] sm:$0xff] }
 0x1eb   :  { %3138 = vmatprep.mubr.bf16.mxu0 %v3692_v56  ;;  %v252_v55 = vld [vmem:[%s5493_s0 + $0x768] sm:$0xff] }
 0x1ec   :  { %v3744_v3 = vcombine.high %v248_v54, %v252_v55 }
 0x1f1   :  { %2561 = vmatmul.mubr.bf16.gmra.mrb[88].mxu1 %v3687_v60 }
 0x1f2   :  { %3139 = vmatmul.mubr.bf16.gmra.mrb[88].mxu0 %v3691_v61  ;;  %2568 = vmatprep.mubr.bf16.mxu1 %v3696_v62  ;;  %v3735_v61 = vcombine.low %v240_v33, %v244_v34 }
 0x1f3   :  { %3146 = vmatprep.mubr.bf16.mxu0 %v3700_v63 }
 0x1f9   :  { %2569 = vmatmul.mubr.bf16.gmra.mrb[92].mxu1 %v3695_v5 }
 0x1fa   :  { %3147 = vmatmul.mubr.bf16.gmra.mrb[92].mxu0 %v3699_v6  ;;  %2576 = vmatprep.mubr.bf16.mxu1 %v3704_v7  ;;  %v3748_v6 = vcombine.high %v250_v0, %v254_v58 }
 0x1fb   :  { %3154 = vmatprep.mubr.bf16.mxu0 %v3708_v8 }
 0x201   :  { %2577 = vmatmul.mubr.bf16.gmra.mrb[96].mxu1 %v3703_v13 }
 0x202   :  { %3155 = vmatmul.mubr.bf16.gmra.mrb[96].mxu0 %v3707_v14  ;;  %2584 = vmatprep.mubr.bf16.mxu1 %v3712_v15  ;;  %v256_v14 = vld [vmem:[%s5493_s0 + $0x788] sm:$0xff] }
 0x203   :  { %3162 = vmatprep.mubr.bf16.mxu0 %v3716_v16  ;;  %v260_v15 = vld [vmem:[%s5493_s0 + $0x7a8] sm:$0xff] }
 0x204   :  { %v3752_v27 = vcombine.high %v256_v14, %v260_v15 }
 0x209   :  { %2585 = vmatmul.mubr.bf16.gmra.mrb[100].mxu1 %v3711_v21 }
 0x20a   :  { %3163 = vmatmul.mubr.bf16.gmra.mrb[100].mxu0 %v3715_v22  ;;  %2592 = vmatprep.mubr.bf16.mxu1 %v3720_v23  ;;  %v3743_v22 = vcombine.low %v248_v54, %v252_v55 }
 0x20b   :  { %3170 = vmatprep.mubr.bf16.mxu0 %v3724_v24 }
 0x211   :  { %2593 = vmatmul.mubr.bf16.gmra.mrb[104].mxu1 %v3719_v29 }
 0x212   :  { %3171 = vmatmul.mubr.bf16.gmra.mrb[104].mxu0 %v3723_v30  ;;  %2600 = vmatprep.mubr.bf16.mxu1 %v3728_v31  ;;  %v3756_v30 = vcombine.high %v258_v18, %v262_v19 }
 0x213   :  { %3178 = vmatprep.mubr.bf16.mxu0 %v3732_v32 }
 0x214   :  { %v2386_v35 = vpop.f32.mrb[0].mxu1 }
 0x215   :  { %v2964_v38 = vpop.f32.mrb[0].mxu0  ;;  %v2388_v39 = vpop.f32.mrb[1].mxu1 }
 0x216   :  { %v3829_v41 = vadd.f32 %v2964_v38, %v2386_v35  ;;  %v2966_v42 = vpop.f32.mrb[1].mxu0  ;;  %v2389_v43 = vpop.f32.mrb[2].mxu1  ;;  %v264_v38 = vld [vmem:[%s5493_s0 + $0x7c8] sm:$0xff] }
 0x217   :  { %v2967_v46 = vpop.f32.mrb[2].mxu0  ;;  %v2391_v47 = vpop.f32.mrb[3].mxu1  ;;  %v268_v39 = vld [vmem:[%s5493_s0 + $0x7e8] sm:$0xff]  ;;  %v266_v42 = vld [vmem:[%s5493_s0 + $0x7d8] sm:$0xff] }
 0x218   :  { %3219 = vst [vmem:[%s5494_s2] sm:$0xff] %v3829_v41  ;;  %v3830_v49 = vadd.f32 %v2967_v46, %v2389_v43  ;;  %v2969_v50 = vpop.f32.mrb[3].mxu0  ;;  %v3362_v51 = vmul.f32 %v3829_v41, %v3829_v41  ;;  %v270_v43 = vld [vmem:[%s5493_s0 + $0x7f8] sm:$0xff]  ;;  %v3751_v46 = vcombine.low %v256_v14, %v260_v15 }
 0x219   :  { %2601 = vmatmul.mubr.bf16.gmra.mrb[108].mxu1 %v3727_v40  ;;  %v3755_v50 = vcombine.low %v258_v18, %v262_v19  ;;  %v3764_v54 = vcombine.high %v266_v42, %v270_v43 }
 0x21a   :  { %3220 = vst [vmem:[%s5494_s2 + $0x8] sm:$0xff] %v3830_v49  ;;  %v3290_v52 = vadd.f32 %v3830_v49, %v3829_v41  ;;  %v3363_v53 = vmul.f32 %v3830_v49, %v3830_v49  ;;  %3179 = vmatmul.mubr.bf16.gmra.mrb[108].mxu0 %v3731_v44  ;;  %2608 = vmatprep.mubr.bf16.mxu1 %v3736_v45 }
 0x21b   :  { %3186 = vmatprep.mubr.bf16.mxu0 %v3740_v48 }
 0x21c   :  { %v3426_v56 = vadd.f32 %v3363_v53, %v3362_v51  ;;  %v2394_v57 = vpop.f32.mrb[4].mxu1  ;;  %v3760_v51 = vcombine.high %v264_v38, %v268_v39 }
 0x21d   :  { %v2972_v59 = vpop.f32.mrb[4].mxu0  ;;  %v2396_v60 = vpop.f32.mrb[5].mxu1 }
 0x21e   :  { %v3831_v62 = vadd.f32 %v2972_v59, %v2394_v57  ;;  %v2974_v63 = vpop.f32.mrb[5].mxu0  ;;  %v2397_v1 = vpop.f32.mrb[6].mxu1 }
 0x21f   :  { %v2975_v4 = vpop.f32.mrb[6].mxu0  ;;  %v2399_v5 = vpop.f32.mrb[7].mxu1 }
 0x220   :  { %3221 = vst [vmem:[%s5494_s2 + $0x10] sm:$0xff] %v3831_v62  ;;  %v3291_v7 = vadd.f32 %v3831_v62, %v3290_v52  ;;  %v3364_v8 = vmul.f32 %v3831_v62, %v3831_v62  ;;  %v3832_v9 = vadd.f32 %v2975_v4, %v2397_v1  ;;  %v2977_v10 = vpop.f32.mrb[7].mxu0 }
 0x221   :  { %2609 = vmatmul.mubr.bf16.gmra.mrb[112].mxu1 %v3735_v61 }
 0x222   :  { %v3427_v11 = vadd.f32 %v3426_v56, %v3364_v8  ;;  %3222 = vst [vmem:[%s5494_s2 + $0x18] sm:$0xff] %v3832_v9  ;;  %v3292_v12 = vadd.f32 %v3832_v9, %v3291_v7  ;;  %v3365_v13 = vmul.f32 %v3832_v9, %v3832_v9  ;;  %3187 = vmatmul.mubr.bf16.gmra.mrb[112].mxu0 %v3739_v2 }
 0x223   :  { %2616 = vmatprep.mubr.bf16.mxu1 %v3744_v3  ;;  %3194 = vmatprep.mubr.bf16.mxu0 %v3748_v6  ;;  %v3759_v2 = vcombine.low %v264_v38, %v268_v39  ;;  %v3763_v6 = vcombine.low %v266_v42, %v270_v43 }
 0x224   :  { %v3428_v16 = vadd.f32 %v3427_v11, %v3365_v13  ;;  %v2402_v17 = vpop.f32.mrb[8].mxu1 }
 0x225   :  { %v2980_v20 = vpop.f32.mrb[8].mxu0  ;;  %v2404_v21 = vpop.f32.mrb[9].mxu1 }
 0x226   :  { %v3833_v23 = vadd.f32 %v2980_v20, %v2402_v17  ;;  %v2982_v24 = vpop.f32.mrb[9].mxu0  ;;  %v2405_v25 = vpop.f32.mrb[10].mxu1 }
 0x227   :  { %v2983_v28 = vpop.f32.mrb[10].mxu0  ;;  %v2407_v29 = vpop.f32.mrb[11].mxu1 }
 0x228   :  { %3223 = vst [vmem:[%s5494_s2 + $0x20] sm:$0xff] %v3833_v23  ;;  %v3293_v31 = vadd.f32 %v3833_v23, %v3292_v12  ;;  %v3366_v32 = vmul.f32 %v3833_v23, %v3833_v23  ;;  %v3834_v33 = vadd.f32 %v2983_v28, %v2405_v25  ;;  %v2985_v34 = vpop.f32.mrb[11].mxu0 }
 0x229   :  { %2617 = vmatmul.mubr.bf16.gmra.mrb[116].mxu1 %v3743_v22 }
 0x22a   :  { %v3429_v35 = vadd.f32 %v3428_v16, %v3366_v32  ;;  %3224 = vst [vmem:[%s5494_s2 + $0x28] sm:$0xff] %v3834_v33  ;;  %v3294_v36 = vadd.f32 %v3834_v33, %v3293_v31  ;;  %v3367_v37 = vmul.f32 %v3834_v33, %v3834_v33  ;;  %3195 = vmatmul.mubr.bf16.gmra.mrb[116].mxu0 %v3747_v26 }
 0x22b   :  { %2624 = vmatprep.mubr.bf16.mxu1 %v3752_v27  ;;  %3202 = vmatprep.mubr.bf16.mxu0 %v3756_v30 }
 0x22c   :  { %v3430_v40 = vadd.f32 %v3429_v35, %v3367_v37  ;;  %v2410_v41 = vpop.f32.mrb[12].mxu1 }
 0x22d   :  { %v2988_v44 = vpop.f32.mrb[12].mxu0  ;;  %v2412_v45 = vpop.f32.mrb[13].mxu1 }
 0x22e   :  { %v3835_v47 = vadd.f32 %v2988_v44, %v2410_v41  ;;  %v2990_v48 = vpop.f32.mrb[13].mxu0  ;;  %v2413_v49 = vpop.f32.mrb[14].mxu1 }
 0x22f   :  { %v2991_v52 = vpop.f32.mrb[14].mxu0  ;;  %v2415_v53 = vpop.f32.mrb[15].mxu1 }
 0x230   :  { %3225 = vst [vmem:[%s5494_s2 + $0x30] sm:$0xff] %v3835_v47  ;;  %v3295_v55 = vadd.f32 %v3835_v47, %v3294_v36  ;;  %v3368_v56 = vmul.f32 %v3835_v47, %v3835_v47  ;;  %v3836_v57 = vadd.f32 %v2991_v52, %v2413_v49  ;;  %v2993_v0 = vpop.f32.mrb[15].mxu0 }
 0x231   :  { %2625 = vmatmul.mubr.bf16.gmra.mrb[120].mxu1 %v3751_v46 }
 0x232   :  { %v3431_v58 = vadd.f32 %v3430_v40, %v3368_v56  ;;  %3226 = vst [vmem:[%s5494_s2 + $0x38] sm:$0xff] %v3836_v57  ;;  %v3296_v59 = vadd.f32 %v3836_v57, %v3295_v55  ;;  %v3369_v60 = vmul.f32 %v3836_v57, %v3836_v57  ;;  %3203 = vmatmul.mubr.bf16.gmra.mrb[120].mxu0 %v3755_v50 }
 0x233   :  { %2632 = vmatprep.mubr.bf16.mxu1 %v3760_v51  ;;  %3210 = vmatprep.mubr.bf16.mxu0 %v3764_v54 }
 0x234   :  { %v3432_v61 = vadd.f32 %v3431_v58, %v3369_v60  ;;  %v2418_v62 = vpop.f32.mrb[16].mxu1 }
 0x235   :  { %v2996_v63 = vpop.f32.mrb[16].mxu0  ;;  %v2420_v1 = vpop.f32.mrb[17].mxu1 }
 0x236   :  { %v3837_v3 = vadd.f32 %v2996_v63, %v2418_v62  ;;  %v2998_v4 = vpop.f32.mrb[17].mxu0  ;;  %v2421_v5 = vpop.f32.mrb[18].mxu1 }
 0x237   :  { %v2999_v7 = vpop.f32.mrb[18].mxu0  ;;  %v2423_v8 = vpop.f32.mrb[19].mxu1 }
 0x238   :  { %3227 = vst [vmem:[%s5494_s2 + $0x40] sm:$0xff] %v3837_v3  ;;  %v3297_v9 = vadd.f32 %v3837_v3, %v3296_v59  ;;  %v3370_v10 = vmul.f32 %v3837_v3, %v3837_v3  ;;  %v3838_v11 = vadd.f32 %v2999_v7, %v2421_v5  ;;  %v3001_v12 = vpop.f32.mrb[19].mxu0 }
 0x239   :  { %2633 = vmatmul.mubr.bf16.gmra.mrb[124].mxu1 %v3759_v2 }
 0x23a   :  { %v3433_v13 = vadd.f32 %v3432_v61, %v3370_v10  ;;  %3228 = vst [vmem:[%s5494_s2 + $0x48] sm:$0xff] %v3838_v11  ;;  %v3298_v14 = vadd.f32 %v3838_v11, %v3297_v9  ;;  %v3371_v15 = vmul.f32 %v3838_v11, %v3838_v11  ;;  %3211 = vmatmul.mubr.bf16.gmra.mrb[124].mxu0 %v3763_v6 }
 0x23c   :  { %v3434_v16 = vadd.f32 %v3433_v13, %v3371_v15  ;;  %v2426_v17 = vpop.f32.mrb[20].mxu1 }
 0x23d   :  { %v3004_v18 = vpop.f32.mrb[20].mxu0  ;;  %v2428_v19 = vpop.f32.mrb[21].mxu1 }
 0x23e   :  { %v3839_v20 = vadd.f32 %v3004_v18, %v2426_v17  ;;  %v3006_v21 = vpop.f32.mrb[21].mxu0  ;;  %v2429_v22 = vpop.f32.mrb[22].mxu1 }
 0x23f   :  { %v3007_v23 = vpop.f32.mrb[22].mxu0  ;;  %v2431_v24 = vpop.f32.mrb[23].mxu1 }
 0x240   :  { %3229 = vst [vmem:[%s5494_s2 + $0x50] sm:$0xff] %v3839_v20  ;;  %v3299_v25 = vadd.f32 %v3839_v20, %v3298_v14  ;;  %v3372_v26 = vmul.f32 %v3839_v20, %v3839_v20  ;;  %v3840_v27 = vadd.f32 %v3007_v23, %v2429_v22  ;;  %v3009_v28 = vpop.f32.mrb[23].mxu0 }
 0x242   :  { %v3435_v29 = vadd.f32 %v3434_v16, %v3372_v26  ;;  %3230 = vst [vmem:[%s5494_s2 + $0x58] sm:$0xff] %v3840_v27  ;;  %v3300_v30 = vadd.f32 %v3840_v27, %v3299_v25  ;;  %v3373_v31 = vmul.f32 %v3840_v27, %v3840_v27 }
 0x244   :  { %v3436_v32 = vadd.f32 %v3435_v29, %v3373_v31  ;;  %v2434_v33 = vpop.f32.mrb[24].mxu1 }
 0x245   :  { %v3012_v34 = vpop.f32.mrb[24].mxu0  ;;  %v2436_v35 = vpop.f32.mrb[25].mxu1 }
 0x246   :  { %v3841_v36 = vadd.f32 %v3012_v34, %v2434_v33  ;;  %v3014_v37 = vpop.f32.mrb[25].mxu0  ;;  %v2437_v38 = vpop.f32.mrb[26].mxu1 }
 0x247   :  { %v3015_v39 = vpop.f32.mrb[26].mxu0  ;;  %v2439_v40 = vpop.f32.mrb[27].mxu1 }
 0x248   :  { %3231 = vst [vmem:[%s5494_s2 + $0x60] sm:$0xff] %v3841_v36  ;;  %v3301_v41 = vadd.f32 %v3841_v36, %v3300_v30  ;;  %v3374_v42 = vmul.f32 %v3841_v36, %v3841_v36  ;;  %v3842_v43 = vadd.f32 %v3015_v39, %v2437_v38  ;;  %v3017_v44 = vpop.f32.mrb[27].mxu0 }
 0x24a   :  { %v3437_v45 = vadd.f32 %v3436_v32, %v3374_v42  ;;  %3232 = vst [vmem:[%s5494_s2 + $0x68] sm:$0xff] %v3842_v43  ;;  %v3302_v46 = vadd.f32 %v3842_v43, %v3301_v41  ;;  %v3375_v47 = vmul.f32 %v3842_v43, %v3842_v43 }
 0x24c   :  { %v3438_v48 = vadd.f32 %v3437_v45, %v3375_v47  ;;  %v2442_v49 = vpop.f32.mrb[28].mxu1 }
 0x24d   :  { %v3020_v50 = vpop.f32.mrb[28].mxu0  ;;  %v2444_v51 = vpop.f32.mrb[29].mxu1 }
 0x24e   :  { %v3843_v52 = vadd.f32 %v3020_v50, %v2442_v49  ;;  %v3022_v53 = vpop.f32.mrb[29].mxu0  ;;  %v2445_v54 = vpop.f32.mrb[30].mxu1 }
 0x24f   :  { %v3023_v55 = vpop.f32.mrb[30].mxu0  ;;  %v2447_v56 = vpop.f32.mrb[31].mxu1 }
 0x250   :  { %3233 = vst [vmem:[%s5494_s2 + $0x70] sm:$0xff] %v3843_v52  ;;  %v3303_v57 = vadd.f32 %v3843_v52, %v3302_v46  ;;  %v3376_v0 = vmul.f32 %v3843_v52, %v3843_v52  ;;  %v3844_v58 = vadd.f32 %v3023_v55, %v2445_v54  ;;  %v3025_v59 = vpop.f32.mrb[31].mxu0 }
 0x252   :  { %v3439_v60 = vadd.f32 %v3438_v48, %v3376_v0  ;;  %3234 = vst [vmem:[%s5494_s2 + $0x78] sm:$0xff] %v3844_v58  ;;  %v3304_v61 = vadd.f32 %v3844_v58, %v3303_v57  ;;  %v3377_v62 = vmul.f32 %v3844_v58, %v3844_v58 }
 0x254   :  { %v3440_v63 = vadd.f32 %v3439_v60, %v3377_v62  ;;  %v2450_v1 = vpop.f32.mrb[32].mxu1 }
 0x255   :  { %v3028_v2 = vpop.f32.mrb[32].mxu0  ;;  %v2452_v3 = vpop.f32.mrb[33].mxu1 }
 0x256   :  { %v3845_v4 = vadd.f32 %v3028_v2, %v2450_v1  ;;  %v3030_v5 = vpop.f32.mrb[33].mxu0  ;;  %v2453_v6 = vpop.f32.mrb[34].mxu1 }
 0x257   :  { %v3031_v7 = vpop.f32.mrb[34].mxu0  ;;  %v2455_v8 = vpop.f32.mrb[35].mxu1 }
 0x258   :  { %3235 = vst [vmem:[%s5494_s2 + $0x80] sm:$0xff] %v3845_v4  ;;  %v3305_v9 = vadd.f32 %v3845_v4, %v3304_v61  ;;  %v3378_v10 = vmul.f32 %v3845_v4, %v3845_v4  ;;  %v3846_v11 = vadd.f32 %v3031_v7, %v2453_v6  ;;  %v3033_v12 = vpop.f32.mrb[35].mxu0 }
 0x25a   :  { %v3441_v13 = vadd.f32 %v3440_v63, %v3378_v10  ;;  %3236 = vst [vmem:[%s5494_s2 + $0x88] sm:$0xff] %v3846_v11  ;;  %v3306_v14 = vadd.f32 %v3846_v11, %v3305_v9  ;;  %v3379_v15 = vmul.f32 %v3846_v11, %v3846_v11 }
 0x25c   :  { %v3442_v16 = vadd.f32 %v3441_v13, %v3379_v15  ;;  %v2458_v17 = vpop.f32.mrb[36].mxu1 }
 0x25d   :  { %v3036_v18 = vpop.f32.mrb[36].mxu0  ;;  %v2460_v19 = vpop.f32.mrb[37].mxu1 }
 0x25e   :  { %v3847_v20 = vadd.f32 %v3036_v18, %v2458_v17  ;;  %v3038_v21 = vpop.f32.mrb[37].mxu0  ;;  %v2461_v22 = vpop.f32.mrb[38].mxu1 }
 0x25f   :  { %v3039_v23 = vpop.f32.mrb[38].mxu0  ;;  %v2463_v24 = vpop.f32.mrb[39].mxu1 }
 0x260   :  { %3237 = vst [vmem:[%s5494_s2 + $0x90] sm:$0xff] %v3847_v20  ;;  %v3307_v25 = vadd.f32 %v3847_v20, %v3306_v14  ;;  %v3380_v26 = vmul.f32 %v3847_v20, %v3847_v20  ;;  %v3848_v27 = vadd.f32 %v3039_v23, %v2461_v22  ;;  %v3041_v28 = vpop.f32.mrb[39].mxu0 }
 0x262   :  { %v3443_v29 = vadd.f32 %v3442_v16, %v3380_v26  ;;  %3238 = vst [vmem:[%s5494_s2 + $0x98] sm:$0xff] %v3848_v27  ;;  %v3308_v30 = vadd.f32 %v3848_v27, %v3307_v25  ;;  %v3381_v31 = vmul.f32 %v3848_v27, %v3848_v27 }
 0x264   :  { %v3444_v32 = vadd.f32 %v3443_v29, %v3381_v31  ;;  %v2466_v33 = vpop.f32.mrb[40].mxu1 }
 0x265   :  { %v3044_v34 = vpop.f32.mrb[40].mxu0  ;;  %v2468_v35 = vpop.f32.mrb[41].mxu1 }
 0x266   :  { %v3849_v36 = vadd.f32 %v3044_v34, %v2466_v33  ;;  %v3046_v37 = vpop.f32.mrb[41].mxu0  ;;  %v2469_v38 = vpop.f32.mrb[42].mxu1 }
 0x267   :  { %v3047_v39 = vpop.f32.mrb[42].mxu0  ;;  %v2471_v40 = vpop.f32.mrb[43].mxu1 }
 0x268   :  { %3239 = vst [vmem:[%s5494_s2 + $0xa0] sm:$0xff] %v3849_v36  ;;  %v3309_v41 = vadd.f32 %v3849_v36, %v3308_v30  ;;  %v3382_v42 = vmul.f32 %v3849_v36, %v3849_v36  ;;  %v3850_v43 = vadd.f32 %v3047_v39, %v2469_v38  ;;  %v3049_v44 = vpop.f32.mrb[43].mxu0 }
 0x26a   :  { %v3445_v45 = vadd.f32 %v3444_v32, %v3382_v42  ;;  %3240 = vst [vmem:[%s5494_s2 + $0xa8] sm:$0xff] %v3850_v43  ;;  %v3310_v46 = vadd.f32 %v3850_v43, %v3309_v41  ;;  %v3383_v47 = vmul.f32 %v3850_v43, %v3850_v43 }
 0x26c   :  { %v3446_v48 = vadd.f32 %v3445_v45, %v3383_v47  ;;  %v2474_v49 = vpop.f32.mrb[44].mxu1 }
 0x26d   :  { %v3052_v50 = vpop.f32.mrb[44].mxu0  ;;  %v2476_v51 = vpop.f32.mrb[45].mxu1 }
 0x26e   :  { %v3851_v52 = vadd.f32 %v3052_v50, %v2474_v49  ;;  %v3054_v53 = vpop.f32.mrb[45].mxu0  ;;  %v2477_v54 = vpop.f32.mrb[46].mxu1 }
 0x26f   :  { %v3055_v55 = vpop.f32.mrb[46].mxu0  ;;  %v2479_v56 = vpop.f32.mrb[47].mxu1 }
 0x270   :  { %3241 = vst [vmem:[%s5494_s2 + $0xb0] sm:$0xff] %v3851_v52  ;;  %v3311_v57 = vadd.f32 %v3851_v52, %v3310_v46  ;;  %v3384_v0 = vmul.f32 %v3851_v52, %v3851_v52  ;;  %v3852_v58 = vadd.f32 %v3055_v55, %v2477_v54  ;;  %v3057_v59 = vpop.f32.mrb[47].mxu0 }
 0x272   :  { %v3447_v60 = vadd.f32 %v3446_v48, %v3384_v0  ;;  %3242 = vst [vmem:[%s5494_s2 + $0xb8] sm:$0xff] %v3852_v58  ;;  %v3312_v61 = vadd.f32 %v3852_v58, %v3311_v57  ;;  %v3385_v62 = vmul.f32 %v3852_v58, %v3852_v58 }
 0x274   :  { %v3448_v63 = vadd.f32 %v3447_v60, %v3385_v62  ;;  %v2482_v1 = vpop.f32.mrb[48].mxu1 }
 0x275   :  { %v3060_v2 = vpop.f32.mrb[48].mxu0  ;;  %v2484_v3 = vpop.f32.mrb[49].mxu1 }
 0x276   :  { %v3853_v4 = vadd.f32 %v3060_v2, %v2482_v1  ;;  %v3062_v5 = vpop.f32.mrb[49].mxu0  ;;  %v2485_v6 = vpop.f32.mrb[50].mxu1 }
 0x277   :  { %v3063_v7 = vpop.f32.mrb[50].mxu0  ;;  %v2487_v8 = vpop.f32.mrb[51].mxu1 }
 0x278   :  { %3243 = vst [vmem:[%s5494_s2 + $0xc0] sm:$0xff] %v3853_v4  ;;  %v3313_v9 = vadd.f32 %v3853_v4, %v3312_v61  ;;  %v3386_v10 = vmul.f32 %v3853_v4, %v3853_v4  ;;  %v3854_v11 = vadd.f32 %v3063_v7, %v2485_v6  ;;  %v3065_v12 = vpop.f32.mrb[51].mxu0 }
 0x27a   :  { %v3449_v13 = vadd.f32 %v3448_v63, %v3386_v10  ;;  %3244 = vst [vmem:[%s5494_s2 + $0xc8] sm:$0xff] %v3854_v11  ;;  %v3314_v14 = vadd.f32 %v3854_v11, %v3313_v9  ;;  %v3387_v15 = vmul.f32 %v3854_v11, %v3854_v11  ;;  %v4216_v63 = vmov 0.0  }
 0x27b   :  { %3287 = vst [vmem:[%s5495_s3] sm:$0x1] %v4216_v63  ;;  %3288 = vst [vmem:[%s5496_s4] sm:$0x1] %v4216_v63 }
 0x27c   :  { %v3450_v16 = vadd.f32 %v3449_v13, %v3387_v15  ;;  %v2490_v17 = vpop.f32.mrb[52].mxu1 }
 0x27d   :  { %v3068_v18 = vpop.f32.mrb[52].mxu0  ;;  %v2492_v19 = vpop.f32.mrb[53].mxu1 }
 0x27e   :  { %v3855_v20 = vadd.f32 %v3068_v18, %v2490_v17  ;;  %v3070_v21 = vpop.f32.mrb[53].mxu0  ;;  %v2493_v22 = vpop.f32.mrb[54].mxu1 }
 0x27f   :  { %v3071_v23 = vpop.f32.mrb[54].mxu0  ;;  %v2495_v24 = vpop.f32.mrb[55].mxu1 }
 0x280   :  { %3245 = vst [vmem:[%s5494_s2 + $0xd0] sm:$0xff] %v3855_v20  ;;  %v3315_v25 = vadd.f32 %v3855_v20, %v3314_v14  ;;  %v3388_v26 = vmul.f32 %v3855_v20, %v3855_v20  ;;  %v3856_v27 = vadd.f32 %v3071_v23, %v2493_v22  ;;  %v3073_v28 = vpop.f32.mrb[55].mxu0 }
 0x282   :  { %v3451_v29 = vadd.f32 %v3450_v16, %v3388_v26  ;;  %3246 = vst [vmem:[%s5494_s2 + $0xd8] sm:$0xff] %v3856_v27  ;;  %v3316_v30 = vadd.f32 %v3856_v27, %v3315_v25  ;;  %v3389_v31 = vmul.f32 %v3856_v27, %v3856_v27 }
 0x284   :  { %v3452_v32 = vadd.f32 %v3451_v29, %v3389_v31  ;;  %v2498_v33 = vpop.f32.mrb[56].mxu1 }
 0x285   :  { %v3076_v34 = vpop.f32.mrb[56].mxu0  ;;  %v2500_v35 = vpop.f32.mrb[57].mxu1 }
 0x286   :  { %v3857_v36 = vadd.f32 %v3076_v34, %v2498_v33  ;;  %v3078_v37 = vpop.f32.mrb[57].mxu0  ;;  %v2501_v38 = vpop.f32.mrb[58].mxu1 }
 0x287   :  { %v3079_v39 = vpop.f32.mrb[58].mxu0  ;;  %v2503_v40 = vpop.f32.mrb[59].mxu1 }
 0x288   :  { %3247 = vst [vmem:[%s5494_s2 + $0xe0] sm:$0xff] %v3857_v36  ;;  %v3317_v41 = vadd.f32 %v3857_v36, %v3316_v30  ;;  %v3390_v42 = vmul.f32 %v3857_v36, %v3857_v36  ;;  %v3858_v43 = vadd.f32 %v3079_v39, %v2501_v38  ;;  %v3081_v44 = vpop.f32.mrb[59].mxu0 }
 0x28a   :  { %v3453_v45 = vadd.f32 %v3452_v32, %v3390_v42  ;;  %3248 = vst [vmem:[%s5494_s2 + $0xe8] sm:$0xff] %v3858_v43  ;;  %v3318_v46 = vadd.f32 %v3858_v43, %v3317_v41  ;;  %v3391_v47 = vmul.f32 %v3858_v43, %v3858_v43 }
 0x28c   :  { %v3454_v48 = vadd.f32 %v3453_v45, %v3391_v47  ;;  %v2506_v49 = vpop.f32.mrb[60].mxu1 }
 0x28d   :  { %v3084_v50 = vpop.f32.mrb[60].mxu0  ;;  %v2508_v51 = vpop.f32.mrb[61].mxu1 }
 0x28e   :  { %v3859_v52 = vadd.f32 %v3084_v50, %v2506_v49  ;;  %v3086_v53 = vpop.f32.mrb[61].mxu0  ;;  %v2509_v54 = vpop.f32.mrb[62].mxu1 }
 0x28f   :  { %v3087_v55 = vpop.f32.mrb[62].mxu0  ;;  %v2511_v56 = vpop.f32.mrb[63].mxu1 }
 0x290   :  { %3249 = vst [vmem:[%s5494_s2 + $0xf0] sm:$0xff] %v3859_v52  ;;  %v3319_v57 = vadd.f32 %v3859_v52, %v3318_v46  ;;  %v3392_v0 = vmul.f32 %v3859_v52, %v3859_v52  ;;  %v3860_v58 = vadd.f32 %v3087_v55, %v2509_v54  ;;  %v3089_v59 = vpop.f32.mrb[63].mxu0 }
 0x292   :  { %v3455_v60 = vadd.f32 %v3454_v48, %v3392_v0  ;;  %3250 = vst [vmem:[%s5494_s2 + $0xf8] sm:$0xff] %v3860_v58  ;;  %v3320_v61 = vadd.f32 %v3860_v58, %v3319_v57  ;;  %v3393_v62 = vmul.f32 %v3860_v58, %v3860_v58 }
 0x294   :  { %v3456_v1 = vadd.f32 %v3455_v60, %v3393_v62  ;;  %v2514_v2 = vpop.f32.mrb[64].mxu1 }
 0x295   :  { %v3092_v3 = vpop.f32.mrb[64].mxu0  ;;  %v2516_v4 = vpop.f32.mrb[65].mxu1 }
 0x296   :  { %v3861_v5 = vadd.f32 %v3092_v3, %v2514_v2  ;;  %v3094_v6 = vpop.f32.mrb[65].mxu0  ;;  %v2517_v7 = vpop.f32.mrb[66].mxu1 }
 0x297   :  { %v3095_v8 = vpop.f32.mrb[66].mxu0  ;;  %v2519_v9 = vpop.f32.mrb[67].mxu1 }
 0x298   :  { %3251 = vst [vmem:[%s5494_s2 + $0x100] sm:$0xff] %v3861_v5  ;;  %v3321_v10 = vadd.f32 %v3861_v5, %v3320_v61  ;;  %v3394_v11 = vmul.f32 %v3861_v5, %v3861_v5  ;;  %v3862_v12 = vadd.f32 %v3095_v8, %v2517_v7  ;;  %v3097_v13 = vpop.f32.mrb[67].mxu0 }
 0x29a   :  { %v3457_v14 = vadd.f32 %v3456_v1, %v3394_v11  ;;  %3252 = vst [vmem:[%s5494_s2 + $0x108] sm:$0xff] %v3862_v12  ;;  %v3322_v15 = vadd.f32 %v3862_v12, %v3321_v10  ;;  %v3395_v16 = vmul.f32 %v3862_v12, %v3862_v12 }
 0x29c   :  { %v3458_v17 = vadd.f32 %v3457_v14, %v3395_v16  ;;  %v2522_v18 = vpop.f32.mrb[68].mxu1 }
 0x29d   :  { %v3100_v19 = vpop.f32.mrb[68].mxu0  ;;  %v2524_v20 = vpop.f32.mrb[69].mxu1 }
 0x29e   :  { %v3863_v21 = vadd.f32 %v3100_v19, %v2522_v18  ;;  %v3102_v22 = vpop.f32.mrb[69].mxu0  ;;  %v2525_v23 = vpop.f32.mrb[70].mxu1 }
 0x29f   :  { %v3103_v24 = vpop.f32.mrb[70].mxu0  ;;  %v2527_v25 = vpop.f32.mrb[71].mxu1 }
 0x2a0   :  { %3253 = vst [vmem:[%s5494_s2 + $0x110] sm:$0xff] %v3863_v21  ;;  %v3323_v26 = vadd.f32 %v3863_v21, %v3322_v15  ;;  %v3396_v27 = vmul.f32 %v3863_v21, %v3863_v21  ;;  %v3864_v28 = vadd.f32 %v3103_v24, %v2525_v23  ;;  %v3105_v29 = vpop.f32.mrb[71].mxu0 }
 0x2a2   :  { %v3459_v30 = vadd.f32 %v3458_v17, %v3396_v27  ;;  %3254 = vst [vmem:[%s5494_s2 + $0x118] sm:$0xff] %v3864_v28  ;;  %v3324_v31 = vadd.f32 %v3864_v28, %v3323_v26  ;;  %v3397_v32 = vmul.f32 %v3864_v28, %v3864_v28 }
 0x2a4   :  { %v3460_v33 = vadd.f32 %v3459_v30, %v3397_v32  ;;  %v2530_v34 = vpop.f32.mrb[72].mxu1 }
 0x2a5   :  { %v3108_v35 = vpop.f32.mrb[72].mxu0  ;;  %v2532_v36 = vpop.f32.mrb[73].mxu1 }
 0x2a6   :  { %v3865_v37 = vadd.f32 %v3108_v35, %v2530_v34  ;;  %v3110_v38 = vpop.f32.mrb[73].mxu0  ;;  %v2533_v39 = vpop.f32.mrb[74].mxu1 }
 0x2a7   :  { %v3111_v40 = vpop.f32.mrb[74].mxu0  ;;  %v2535_v41 = vpop.f32.mrb[75].mxu1 }
 0x2a8   :  { %3255 = vst [vmem:[%s5494_s2 + $0x120] sm:$0xff] %v3865_v37  ;;  %v3325_v42 = vadd.f32 %v3865_v37, %v3324_v31  ;;  %v3398_v43 = vmul.f32 %v3865_v37, %v3865_v37  ;;  %v3866_v44 = vadd.f32 %v3111_v40, %v2533_v39  ;;  %v3113_v45 = vpop.f32.mrb[75].mxu0 }
 0x2aa   :  { %v3461_v46 = vadd.f32 %v3460_v33, %v3398_v43  ;;  %3256 = vst [vmem:[%s5494_s2 + $0x128] sm:$0xff] %v3866_v44  ;;  %v3326_v47 = vadd.f32 %v3866_v44, %v3325_v42  ;;  %v3399_v48 = vmul.f32 %v3866_v44, %v3866_v44 }
 0x2ac   :  { %v3462_v49 = vadd.f32 %v3461_v46, %v3399_v48  ;;  %v2538_v50 = vpop.f32.mrb[76].mxu1 }
 0x2ad   :  { %v3116_v51 = vpop.f32.mrb[76].mxu0  ;;  %v2540_v52 = vpop.f32.mrb[77].mxu1 }
 0x2ae   :  { %v3867_v53 = vadd.f32 %v3116_v51, %v2538_v50  ;;  %v3118_v54 = vpop.f32.mrb[77].mxu0  ;;  %v2541_v55 = vpop.f32.mrb[78].mxu1 }
 0x2af   :  { %v3119_v56 = vpop.f32.mrb[78].mxu0  ;;  %v2543_v57 = vpop.f32.mrb[79].mxu1 }
 0x2b0   :  { %3257 = vst [vmem:[%s5494_s2 + $0x130] sm:$0xff] %v3867_v53  ;;  %v3327_v0 = vadd.f32 %v3867_v53, %v3326_v47  ;;  %v3400_v58 = vmul.f32 %v3867_v53, %v3867_v53  ;;  %v3868_v59 = vadd.f32 %v3119_v56, %v2541_v55  ;;  %v3121_v60 = vpop.f32.mrb[79].mxu0 }
 0x2b2   :  { %v3463_v61 = vadd.f32 %v3462_v49, %v3400_v58  ;;  %3258 = vst [vmem:[%s5494_s2 + $0x138] sm:$0xff] %v3868_v59  ;;  %v3328_v62 = vadd.f32 %v3868_v59, %v3327_v0  ;;  %v3401_v63 = vmul.f32 %v3868_v59, %v3868_v59 }
 0x2b4   :  { %v3464_v1 = vadd.f32 %v3463_v61, %v3401_v63  ;;  %v2546_v2 = vpop.f32.mrb[80].mxu1 }
 0x2b5   :  { %v3124_v3 = vpop.f32.mrb[80].mxu0  ;;  %v2548_v4 = vpop.f32.mrb[81].mxu1 }
 0x2b6   :  { %v3869_v5 = vadd.f32 %v3124_v3, %v2546_v2  ;;  %v3126_v6 = vpop.f32.mrb[81].mxu0  ;;  %v2549_v7 = vpop.f32.mrb[82].mxu1 }
 0x2b7   :  { %v3127_v8 = vpop.f32.mrb[82].mxu0  ;;  %v2551_v9 = vpop.f32.mrb[83].mxu1 }
 0x2b8   :  { %3259 = vst [vmem:[%s5494_s2 + $0x140] sm:$0xff] %v3869_v5  ;;  %v3329_v10 = vadd.f32 %v3869_v5, %v3328_v62  ;;  %v3402_v11 = vmul.f32 %v3869_v5, %v3869_v5  ;;  %v3870_v12 = vadd.f32 %v3127_v8, %v2549_v7  ;;  %v3129_v13 = vpop.f32.mrb[83].mxu0 }
 0x2ba   :  { %v3465_v14 = vadd.f32 %v3464_v1, %v3402_v11  ;;  %3260 = vst [vmem:[%s5494_s2 + $0x148] sm:$0xff] %v3870_v12  ;;  %v3330_v15 = vadd.f32 %v3870_v12, %v3329_v10  ;;  %v3403_v16 = vmul.f32 %v3870_v12, %v3870_v12 }
 0x2bc   :  { %v3466_v17 = vadd.f32 %v3465_v14, %v3403_v16  ;;  %v2554_v18 = vpop.f32.mrb[84].mxu1 }
 0x2bd   :  { %v3132_v19 = vpop.f32.mrb[84].mxu0  ;;  %v2556_v20 = vpop.f32.mrb[85].mxu1 }
 0x2be   :  { %v3871_v21 = vadd.f32 %v3132_v19, %v2554_v18  ;;  %v3134_v22 = vpop.f32.mrb[85].mxu0  ;;  %v2557_v23 = vpop.f32.mrb[86].mxu1 }
 0x2bf   :  { %v3135_v24 = vpop.f32.mrb[86].mxu0  ;;  %v2559_v25 = vpop.f32.mrb[87].mxu1 }
 0x2c0   :  { %3261 = vst [vmem:[%s5494_s2 + $0x150] sm:$0xff] %v3871_v21  ;;  %v3331_v26 = vadd.f32 %v3871_v21, %v3330_v15  ;;  %v3404_v27 = vmul.f32 %v3871_v21, %v3871_v21  ;;  %v3872_v28 = vadd.f32 %v3135_v24, %v2557_v23  ;;  %v3137_v29 = vpop.f32.mrb[87].mxu0 }
 0x2c2   :  { %v3467_v30 = vadd.f32 %v3466_v17, %v3404_v27  ;;  %3262 = vst [vmem:[%s5494_s2 + $0x158] sm:$0xff] %v3872_v28  ;;  %v3332_v31 = vadd.f32 %v3872_v28, %v3331_v26  ;;  %v3405_v32 = vmul.f32 %v3872_v28, %v3872_v28 }
 0x2c4   :  { %v3468_v33 = vadd.f32 %v3467_v30, %v3405_v32  ;;  %v2562_v34 = vpop.f32.mrb[88].mxu1 }
 0x2c5   :  { %v3140_v35 = vpop.f32.mrb[88].mxu0  ;;  %v2564_v36 = vpop.f32.mrb[89].mxu1 }
 0x2c6   :  { %v3873_v37 = vadd.f32 %v3140_v35, %v2562_v34  ;;  %v3142_v38 = vpop.f32.mrb[89].mxu0  ;;  %v2565_v39 = vpop.f32.mrb[90].mxu1 }
 0x2c7   :  { %v3143_v40 = vpop.f32.mrb[90].mxu0  ;;  %v2567_v41 = vpop.f32.mrb[91].mxu1 }
 0x2c8   :  { %3263 = vst [vmem:[%s5494_s2 + $0x160] sm:$0xff] %v3873_v37  ;;  %v3333_v42 = vadd.f32 %v3873_v37, %v3332_v31  ;;  %v3406_v43 = vmul.f32 %v3873_v37, %v3873_v37  ;;  %v3874_v44 = vadd.f32 %v3143_v40, %v2565_v39  ;;  %v3145_v45 = vpop.f32.mrb[91].mxu0 }
 0x2ca   :  { %v3469_v46 = vadd.f32 %v3468_v33, %v3406_v43  ;;  %3264 = vst [vmem:[%s5494_s2 + $0x168] sm:$0xff] %v3874_v44  ;;  %v3334_v47 = vadd.f32 %v3874_v44, %v3333_v42  ;;  %v3407_v48 = vmul.f32 %v3874_v44, %v3874_v44 }
 0x2cc   :  { %v3470_v49 = vadd.f32 %v3469_v46, %v3407_v48  ;;  %v2570_v50 = vpop.f32.mrb[92].mxu1 }
 0x2cd   :  { %v3148_v51 = vpop.f32.mrb[92].mxu0  ;;  %v2572_v52 = vpop.f32.mrb[93].mxu1 }
 0x2ce   :  { %v3875_v53 = vadd.f32 %v3148_v51, %v2570_v50  ;;  %v3150_v54 = vpop.f32.mrb[93].mxu0  ;;  %v2573_v55 = vpop.f32.mrb[94].mxu1 }
 0x2cf   :  { %v3151_v56 = vpop.f32.mrb[94].mxu0  ;;  %v2575_v57 = vpop.f32.mrb[95].mxu1 }
 0x2d0   :  { %3265 = vst [vmem:[%s5494_s2 + $0x170] sm:$0xff] %v3875_v53  ;;  %v3335_v0 = vadd.f32 %v3875_v53, %v3334_v47  ;;  %v3408_v58 = vmul.f32 %v3875_v53, %v3875_v53  ;;  %v3876_v59 = vadd.f32 %v3151_v56, %v2573_v55  ;;  %v3153_v60 = vpop.f32.mrb[95].mxu0 }
 0x2d2   :  { %v3471_v61 = vadd.f32 %v3470_v49, %v3408_v58  ;;  %3266 = vst [vmem:[%s5494_s2 + $0x178] sm:$0xff] %v3876_v59  ;;  %v3336_v62 = vadd.f32 %v3876_v59, %v3335_v0  ;;  %v3409_v63 = vmul.f32 %v3876_v59, %v3876_v59 }
 0x2d4   :  { %v3472_v1 = vadd.f32 %v3471_v61, %v3409_v63  ;;  %v2578_v2 = vpop.f32.mrb[96].mxu1 }
 0x2d5   :  { %v3156_v3 = vpop.f32.mrb[96].mxu0  ;;  %v2580_v4 = vpop.f32.mrb[97].mxu1 }
 0x2d6   :  { %v3877_v5 = vadd.f32 %v3156_v3, %v2578_v2  ;;  %v3158_v6 = vpop.f32.mrb[97].mxu0  ;;  %v2581_v7 = vpop.f32.mrb[98].mxu1 }
 0x2d7   :  { %v3159_v8 = vpop.f32.mrb[98].mxu0  ;;  %v2583_v9 = vpop.f32.mrb[99].mxu1 }
 0x2d8   :  { %3267 = vst [vmem:[%s5494_s2 + $0x180] sm:$0xff] %v3877_v5  ;;  %v3337_v10 = vadd.f32 %v3877_v5, %v3336_v62  ;;  %v3410_v11 = vmul.f32 %v3877_v5, %v3877_v5  ;;  %v3878_v12 = vadd.f32 %v3159_v8, %v2581_v7  ;;  %v3161_v13 = vpop.f32.mrb[99].mxu0 }
 0x2da   :  { %v3473_v14 = vadd.f32 %v3472_v1, %v3410_v11  ;;  %3268 = vst [vmem:[%s5494_s2 + $0x188] sm:$0xff] %v3878_v12  ;;  %v3338_v15 = vadd.f32 %v3878_v12, %v3337_v10  ;;  %v3411_v16 = vmul.f32 %v3878_v12, %v3878_v12 }
 0x2dc   :  { %v3474_v17 = vadd.f32 %v3473_v14, %v3411_v16  ;;  %v2586_v18 = vpop.f32.mrb[100].mxu1 }
 0x2dd   :  { %v3164_v19 = vpop.f32.mrb[100].mxu0  ;;  %v2588_v20 = vpop.f32.mrb[101].mxu1 }
 0x2de   :  { %v3879_v21 = vadd.f32 %v3164_v19, %v2586_v18  ;;  %v3166_v22 = vpop.f32.mrb[101].mxu0  ;;  %v2589_v23 = vpop.f32.mrb[102].mxu1 }
 0x2df   :  { %v3167_v24 = vpop.f32.mrb[102].mxu0  ;;  %v2591_v25 = vpop.f32.mrb[103].mxu1 }
 0x2e0   :  { %3269 = vst [vmem:[%s5494_s2 + $0x190] sm:$0xff] %v3879_v21  ;;  %v3339_v26 = vadd.f32 %v3879_v21, %v3338_v15  ;;  %v3412_v27 = vmul.f32 %v3879_v21, %v3879_v21  ;;  %v3880_v28 = vadd.f32 %v3167_v24, %v2589_v23  ;;  %v3169_v29 = vpop.f32.mrb[103].mxu0 }
 0x2e2   :  { %v3475_v30 = vadd.f32 %v3474_v17, %v3412_v27  ;;  %3270 = vst [vmem:[%s5494_s2 + $0x198] sm:$0xff] %v3880_v28  ;;  %v3340_v31 = vadd.f32 %v3880_v28, %v3339_v26  ;;  %v3413_v32 = vmul.f32 %v3880_v28, %v3880_v28 }
 0x2e4   :  { %v3476_v33 = vadd.f32 %v3475_v30, %v3413_v32  ;;  %v2594_v34 = vpop.f32.mrb[104].mxu1 }
 0x2e5   :  { %v3172_v35 = vpop.f32.mrb[104].mxu0  ;;  %v2596_v36 = vpop.f32.mrb[105].mxu1 }
 0x2e6   :  { %v3881_v37 = vadd.f32 %v3172_v35, %v2594_v34  ;;  %v3174_v38 = vpop.f32.mrb[105].mxu0  ;;  %v2597_v39 = vpop.f32.mrb[106].mxu1 }
 0x2e7   :  { %v3175_v40 = vpop.f32.mrb[106].mxu0  ;;  %v2599_v41 = vpop.f32.mrb[107].mxu1 }
 0x2e8   :  { %3271 = vst [vmem:[%s5494_s2 + $0x1a0] sm:$0xff] %v3881_v37  ;;  %v3341_v42 = vadd.f32 %v3881_v37, %v3340_v31  ;;  %v3414_v43 = vmul.f32 %v3881_v37, %v3881_v37  ;;  %v3882_v44 = vadd.f32 %v3175_v40, %v2597_v39  ;;  %v3177_v45 = vpop.f32.mrb[107].mxu0 }
 0x2ea   :  { %v3477_v46 = vadd.f32 %v3476_v33, %v3414_v43  ;;  %3272 = vst [vmem:[%s5494_s2 + $0x1a8] sm:$0xff] %v3882_v44  ;;  %v3342_v47 = vadd.f32 %v3882_v44, %v3341_v42  ;;  %v3415_v48 = vmul.f32 %v3882_v44, %v3882_v44 }
 0x2ec   :  { %v3478_v49 = vadd.f32 %v3477_v46, %v3415_v48  ;;  %v2602_v50 = vpop.f32.mrb[108].mxu1 }
 0x2ed   :  { %v3180_v51 = vpop.f32.mrb[108].mxu0  ;;  %v2604_v52 = vpop.f32.mrb[109].mxu1 }
 0x2ee   :  { %v3883_v53 = vadd.f32 %v3180_v51, %v2602_v50  ;;  %v3182_v54 = vpop.f32.mrb[109].mxu0  ;;  %v2605_v55 = vpop.f32.mrb[110].mxu1 }
 0x2ef   :  { %v3183_v56 = vpop.f32.mrb[110].mxu0  ;;  %v2607_v57 = vpop.f32.mrb[111].mxu1 }
 0x2f0   :  { %3273 = vst [vmem:[%s5494_s2 + $0x1b0] sm:$0xff] %v3883_v53  ;;  %v3343_v0 = vadd.f32 %v3883_v53, %v3342_v47  ;;  %v3416_v58 = vmul.f32 %v3883_v53, %v3883_v53  ;;  %v3884_v59 = vadd.f32 %v3183_v56, %v2605_v55  ;;  %v3185_v60 = vpop.f32.mrb[111].mxu0 }
 0x2f2   :  { %v3479_v61 = vadd.f32 %v3478_v49, %v3416_v58  ;;  %3274 = vst [vmem:[%s5494_s2 + $0x1b8] sm:$0xff] %v3884_v59  ;;  %v3344_v62 = vadd.f32 %v3884_v59, %v3343_v0  ;;  %v3417_v63 = vmul.f32 %v3884_v59, %v3884_v59 }
 0x2f4   :  { %v3480_v1 = vadd.f32 %v3479_v61, %v3417_v63  ;;  %v2610_v2 = vpop.f32.mrb[112].mxu1 }
 0x2f5   :  { %v3188_v3 = vpop.f32.mrb[112].mxu0  ;;  %v2612_v4 = vpop.f32.mrb[113].mxu1 }
 0x2f6   :  { %v3885_v5 = vadd.f32 %v3188_v3, %v2610_v2  ;;  %v3190_v6 = vpop.f32.mrb[113].mxu0  ;;  %v2613_v7 = vpop.f32.mrb[114].mxu1 }
 0x2f7   :  { %v3191_v8 = vpop.f32.mrb[114].mxu0  ;;  %v2615_v9 = vpop.f32.mrb[115].mxu1 }
 0x2f8   :  { %3275 = vst [vmem:[%s5494_s2 + $0x1c0] sm:$0xff] %v3885_v5  ;;  %v3345_v10 = vadd.f32 %v3885_v5, %v3344_v62  ;;  %v3418_v11 = vmul.f32 %v3885_v5, %v3885_v5  ;;  %v3886_v12 = vadd.f32 %v3191_v8, %v2613_v7  ;;  %v3193_v13 = vpop.f32.mrb[115].mxu0 }
 0x2fa   :  { %v3481_v14 = vadd.f32 %v3480_v1, %v3418_v11  ;;  %3276 = vst [vmem:[%s5494_s2 + $0x1c8] sm:$0xff] %v3886_v12  ;;  %v3346_v15 = vadd.f32 %v3886_v12, %v3345_v10  ;;  %v3419_v16 = vmul.f32 %v3886_v12, %v3886_v12  ;;  %v3289_v11 = vld [vmem:[%s5495_s3] sm:$0x1] }
 0x2fc   :  { %v3482_v17 = vadd.f32 %v3481_v14, %v3419_v16  ;;  %v2618_v18 = vpop.f32.mrb[116].mxu1  ;;  %v3361_v14 = vld [vmem:[%s5496_s4] sm:$0x1] }
 0x2fd   :  { %v3196_v19 = vpop.f32.mrb[116].mxu0  ;;  %v2620_v20 = vpop.f32.mrb[117].mxu1 }
 0x2fe   :  { %v3887_v21 = vadd.f32 %v3196_v19, %v2618_v18  ;;  %v3198_v22 = vpop.f32.mrb[117].mxu0  ;;  %v2621_v23 = vpop.f32.mrb[118].mxu1 }
 0x2ff   :  { %v3199_v24 = vpop.f32.mrb[118].mxu0  ;;  %v2623_v25 = vpop.f32.mrb[119].mxu1 }
 0x300   :  { %3277 = vst [vmem:[%s5494_s2 + $0x1d0] sm:$0xff] %v3887_v21  ;;  %v3347_v26 = vadd.f32 %v3887_v21, %v3346_v15  ;;  %v3420_v27 = vmul.f32 %v3887_v21, %v3887_v21  ;;  %v3888_v28 = vadd.f32 %v3199_v24, %v2621_v23  ;;  %v3201_v29 = vpop.f32.mrb[119].mxu0 }
 0x302   :  { %v3483_v30 = vadd.f32 %v3482_v17, %v3420_v27  ;;  %3278 = vst [vmem:[%s5494_s2 + $0x1d8] sm:$0xff] %v3888_v28  ;;  %v3348_v31 = vadd.f32 %v3888_v28, %v3347_v26  ;;  %v3421_v32 = vmul.f32 %v3888_v28, %v3888_v28 }
 0x304   :  { %v3484_v33 = vadd.f32 %v3483_v30, %v3421_v32  ;;  %v2626_v34 = vpop.f32.mrb[120].mxu1 }
 0x305   :  { %v3204_v35 = vpop.f32.mrb[120].mxu0  ;;  %v2628_v36 = vpop.f32.mrb[121].mxu1 }
 0x306   :  { %v3889_v37 = vadd.f32 %v3204_v35, %v2626_v34  ;;  %v3206_v38 = vpop.f32.mrb[121].mxu0  ;;  %v2629_v39 = vpop.f32.mrb[122].mxu1 }
 0x307   :  { %v3207_v40 = vpop.f32.mrb[122].mxu0  ;;  %v2631_v41 = vpop.f32.mrb[123].mxu1 }
 0x308   :  { %3279 = vst [vmem:[%s5494_s2 + $0x1e0] sm:$0xff] %v3889_v37  ;;  %v3349_v42 = vadd.f32 %v3889_v37, %v3348_v31  ;;  %v3422_v43 = vmul.f32 %v3889_v37, %v3889_v37  ;;  %v3890_v44 = vadd.f32 %v3207_v40, %v2629_v39  ;;  %v3209_v45 = vpop.f32.mrb[123].mxu0 }
 0x30a   :  { %v3485_v46 = vadd.f32 %v3484_v33, %v3422_v43  ;;  %3280 = vst [vmem:[%s5494_s2 + $0x1e8] sm:$0xff] %v3890_v44  ;;  %v3350_v47 = vadd.f32 %v3890_v44, %v3349_v42  ;;  %v3423_v48 = vmul.f32 %v3890_v44, %v3890_v44 }
 0x30c   :  { %v3486_v49 = vadd.f32 %v3485_v46, %v3423_v48  ;;  %v2634_v50 = vpop.f32.mrb[124].mxu1 }
 0x30d   :  { %v3212_v51 = vpop.f32.mrb[124].mxu0  ;;  %v2636_v52 = vpop.f32.mrb[125].mxu1 }
 0x30e   :  { %v3891_v53 = vadd.f32 %v3212_v51, %v2634_v50  ;;  %v3214_v54 = vpop.f32.mrb[125].mxu0  ;;  %v2637_v55 = vpop.f32.mrb[126].mxu1 }
 0x30f   :  { %v3215_v56 = vpop.f32.mrb[126].mxu0  ;;  %v2639_v57 = vpop.f32.mrb[127].mxu1 }
 0x310   :  { %3281 = vst [vmem:[%s5494_s2 + $0x1f0] sm:$0xff] %v3891_v53  ;;  %v3351_v0 = vadd.f32 %v3891_v53, %v3350_v47  ;;  %v3424_v58 = vmul.f32 %v3891_v53, %v3891_v53  ;;  %v3892_v59 = vadd.f32 %v3215_v56, %v2637_v55  ;;  %v3217_v60 = vpop.f32.mrb[127].mxu0 }
 0x312   :  { %v3487_v61 = vadd.f32 %v3486_v49, %v3424_v58  ;;  %3282 = vst [vmem:[%s5494_s2 + $0x1f8] sm:$0xff] %v3892_v59  ;;  %v3352_v62 = vadd.f32 %v3892_v59, %v3351_v0  ;;  %v3425_v63 = vmul.f32 %v3892_v59, %v3892_v59 }
 0x314   :  { %v3353_v1 = vrot.slane %v3352_v62, 4  ;;  %v3488_v2 = vadd.f32 %v3487_v61, %v3425_v63 }
 0x316   :  { %v3354_v3 = vadd.f32 %v3353_v1, %v3352_v62  ;;  %v3489_v4 = vrot.slane %v3488_v2, 4 }
 0x318   :  { %v3355_v5 = vrot.slane %v3354_v3, 2  ;;  %v3490_v6 = vadd.f32 %v3489_v4, %v3488_v2 }
 0x31a   :  { %v3356_v7 = vadd.f32 %v3355_v5, %v3354_v3  ;;  %v3491_v8 = vrot.slane %v3490_v6, 2 }
 0x31c   :  { %v3357_v9 = vrot.slane %v3356_v7, 1  ;;  %v3492_v10 = vadd.f32 %v3491_v8, %v3490_v6 }
 0x31e   :  { %v3358_v12 = vadd.f32 %v3357_v9, %v3356_v7  ;;  %v3493_v13 = vrot.slane %v3492_v10, 1 }
 0x320   :  { %v3359_v15 = vadd.f32 %v3358_v12, %v3289_v11  ;;  %v3494_v16 = vadd.f32 %v3493_v13, %v3492_v10 }
 0x322   :  { %3360 = vst [vmem:[%s5495_s3] sm:$0x1] %v3359_v15  ;;  %v3495_v17 = vadd.f32 %v3494_v16, %v3361_v14 }
 0x324   :  { %3496 = vst [vmem:[%s5496_s4] sm:$0x1] %v3495_v17 }

// kernel: discriminator_forward.10
= control target key start
LH: loop header
LB: loop body
LE: loop exit
PB: predicated region body
PF: predicated region fallthrough
CT: control target
= control target key end

     0   :  { %s5739_s1 = inlined_call_operand.vmem [shape: bf16[2048,256], index: 1, kind: input, shape index: {}]   ;;  %s5740_s0 = inlined_call_operand.vmem [shape: bf16[128,2048], index: 0, kind: input, shape index: {}]   ;;  %s5741_s3 = inlined_call_operand.vmem [shape: f32[1,256], index: 3, kind: output, shape index: {1}]   ;;  %s5742_s4 = inlined_call_operand.vmem [shape: f32[1,256], index: 4, kind: output, shape index: {2}]   ;;  %s5743_s2 = inlined_call_operand.vmem [shape: f32[128,256], index: 2, kind: output, shape index: {0}]  }
   0x1   :  { %v4048_v0 = vld [vmem:[%s5739_s1 + $0x4] ss:$8 sps:$4 sm:$0xff]   ;;  %v4052_v2 = vld [vmem:[%s5739_s1] ss:$8 sps:$4 sm:$0xff]   ;;  %v4054_v4 = vld [vmem:[%s5739_s1 + $0x14] ss:$8 sps:$4 sm:$0xff]  }
   0x2   :  { %v4050_v1 = vld [vmem:[%s5739_s1 + $0x404] ss:$8 sps:$4 sm:$0xff]   ;;  %2318 = vmatprep.subr.bf16.mxu1 %v4048_v0  ;;  %v4053_v3 = vld [vmem:[%s5739_s1 + $0x400] ss:$8 sps:$4 sm:$0xff]   ;;  %v4056_v5 = vld [vmem:[%s5739_s1 + $0x414] ss:$8 sps:$4 sm:$0xff]  }
   0x3   :  { %2770 = vmatprep.subr.bf16.mxu0 %v4050_v1  ;;  %2319 = vmatpush1.bf16.msra.mxu1 %v4052_v2  ;;  %v4058_v6 = vld [vmem:[%s5739_s1 + $0x10] ss:$8 sps:$4 sm:$0xff]   ;;  %v4060_v8 = vld [vmem:[%s5739_s1 + $0x24] ss:$8 sps:$4 sm:$0xff]   ;;  %v4064_v10 = vld [vmem:[%s5739_s1 + $0x20] ss:$8 sps:$4 sm:$0xff]  }
   0x4   :  { %2771 = vmatpush1.bf16.msra.mxu0 %v4053_v3  ;;  %2320 = vmatprep.subr.bf16.mxu1 %v4054_v4  ;;  %v4059_v7 = vld [vmem:[%s5739_s1 + $0x410] ss:$8 sps:$4 sm:$0xff]   ;;  %v4062_v9 = vld [vmem:[%s5739_s1 + $0x424] ss:$8 sps:$4 sm:$0xff]   ;;  %v4065_v11 = vld [vmem:[%s5739_s1 + $0x420] ss:$8 sps:$4 sm:$0xff]  }
   0x5   :  { %2772 = vmatprep.subr.bf16.mxu0 %v4056_v5  ;;  %v4066_v12 = vld [vmem:[%s5739_s1 + $0x34] ss:$8 sps:$4 sm:$0xff]   ;;  %v4070_v14 = vld [vmem:[%s5739_s1 + $0x30] ss:$8 sps:$4 sm:$0xff]   ;;  %v4072_v16 = vld [vmem:[%s5739_s1 + $0x44] ss:$8 sps:$4 sm:$0xff]  }
   0x6   :  { %v4068_v13 = vld [vmem:[%s5739_s1 + $0x434] ss:$8 sps:$4 sm:$0xff]   ;;  %v4071_v15 = vld [vmem:[%s5739_s1 + $0x430] ss:$8 sps:$4 sm:$0xff]   ;;  %v4074_v17 = vld [vmem:[%s5739_s1 + $0x444] ss:$8 sps:$4 sm:$0xff]  }
   0x7   :  { %2321 = vmatpush1.bf16.msra.mxu1 %v4058_v6  ;;  %v4076_v18 = vld [vmem:[%s5739_s1 + $0x40] ss:$8 sps:$4 sm:$0xff]   ;;  %v4078_v20 = vld [vmem:[%s5739_s1 + $0x54] ss:$8 sps:$4 sm:$0xff]   ;;  %v4082_v22 = vld [vmem:[%s5739_s1 + $0x50] ss:$8 sps:$4 sm:$0xff]  }
   0x8   :  { %2773 = vmatpush1.bf16.msra.mxu0 %v4059_v7  ;;  %2322 = vmatprep.subr.bf16.mxu1 %v4060_v8  ;;  %v4077_v19 = vld [vmem:[%s5739_s1 + $0x440] ss:$8 sps:$4 sm:$0xff]   ;;  %v4080_v21 = vld [vmem:[%s5739_s1 + $0x454] ss:$8 sps:$4 sm:$0xff]   ;;  %v4083_v23 = vld [vmem:[%s5739_s1 + $0x450] ss:$8 sps:$4 sm:$0xff]  }
   0x9   :  { %2774 = vmatprep.subr.bf16.mxu0 %v4062_v9  ;;  %v4084_v24 = vld [vmem:[%s5739_s1 + $0x64] ss:$8 sps:$4 sm:$0xff]   ;;  %v4088_v26 = vld [vmem:[%s5739_s1 + $0x60] ss:$8 sps:$4 sm:$0xff]   ;;  %v4090_v28 = vld [vmem:[%s5739_s1 + $0x74] ss:$8 sps:$4 sm:$0xff]  }
   0xa   :  { %v4086_v25 = vld [vmem:[%s5739_s1 + $0x464] ss:$8 sps:$4 sm:$0xff]   ;;  %v4089_v27 = vld [vmem:[%s5739_s1 + $0x460] ss:$8 sps:$4 sm:$0xff]   ;;  %v4092_v29 = vld [vmem:[%s5739_s1 + $0x474] ss:$8 sps:$4 sm:$0xff]  }
   0xb   :  { %2323 = vmatpush1.bf16.msra.mxu1 %v4064_v10  ;;  %v4094_v30 = vld [vmem:[%s5739_s1 + $0x70] ss:$8 sps:$4 sm:$0xff]   ;;  %v4096_v32 = vld [vmem:[%s5739_s1 + $0x84] ss:$8 sps:$4 sm:$0xff]   ;;  %v4100_v34 = vld [vmem:[%s5739_s1 + $0x80] ss:$8 sps:$4 sm:$0xff]  }
   0xc   :  { %2775 = vmatpush1.bf16.msra.mxu0 %v4065_v11  ;;  %2324 = vmatprep.subr.bf16.mxu1 %v4066_v12  ;;  %v4095_v31 = vld [vmem:[%s5739_s1 + $0x470] ss:$8 sps:$4 sm:$0xff]   ;;  %v4098_v33 = vld [vmem:[%s5739_s1 + $0x484] ss:$8 sps:$4 sm:$0xff]   ;;  %v4101_v35 = vld [vmem:[%s5739_s1 + $0x480] ss:$8 sps:$4 sm:$0xff]  }
   0xd   :  { %2776 = vmatprep.subr.bf16.mxu0 %v4068_v13  ;;  %v4102_v36 = vld [vmem:[%s5739_s1 + $0x94] ss:$8 sps:$4 sm:$0xff]   ;;  %v4106_v38 = vld [vmem:[%s5739_s1 + $0x90] ss:$8 sps:$4 sm:$0xff]   ;;  %v4108_v40 = vld [vmem:[%s5739_s1 + $0xa4] ss:$8 sps:$4 sm:$0xff]  }
   0xe   :  { %v4104_v37 = vld [vmem:[%s5739_s1 + $0x494] ss:$8 sps:$4 sm:$0xff]   ;;  %v4107_v39 = vld [vmem:[%s5739_s1 + $0x490] ss:$8 sps:$4 sm:$0xff]   ;;  %v4110_v41 = vld [vmem:[%s5739_s1 + $0x4a4] ss:$8 sps:$4 sm:$0xff]  }
   0xf   :  { %2325 = vmatpush1.bf16.msra.mxu1 %v4070_v14  ;;  %v4112_v42 = vld [vmem:[%s5739_s1 + $0xa0] ss:$8 sps:$4 sm:$0xff]   ;;  %v4114_v44 = vld [vmem:[%s5739_s1 + $0xb4] ss:$8 sps:$4 sm:$0xff]   ;;  %v4118_v46 = vld [vmem:[%s5739_s1 + $0xb0] ss:$8 sps:$4 sm:$0xff]  }
  0x10   :  { %2777 = vmatpush1.bf16.msra.mxu0 %v4071_v15  ;;  %2326 = vmatprep.subr.bf16.mxu1 %v4072_v16  ;;  %v4113_v43 = vld [vmem:[%s5739_s1 + $0x4a0] ss:$8 sps:$4 sm:$0xff]   ;;  %v4116_v45 = vld [vmem:[%s5739_s1 + $0x4b4] ss:$8 sps:$4 sm:$0xff]   ;;  %v4119_v47 = vld [vmem:[%s5739_s1 + $0x4b0] ss:$8 sps:$4 sm:$0xff]  }
  0x11   :  { %2778 = vmatprep.subr.bf16.mxu0 %v4074_v17  ;;  %v14_v48 = vld [vmem:[%s5740_s0] sm:$0xff]  ;;  %v4126_v58 = vld [vmem:[%s5739_s1 + $0xd4] ss:$8 sps:$4 sm:$0xff]   ;;  %v4130_v60 = vld [vmem:[%s5739_s1 + $0xd0] ss:$8 sps:$4 sm:$0xff]  }
  0x12   :  { %v22_v49 = vld [vmem:[%s5740_s0 + $0x40] sm:$0xff]  ;;  %v4128_v59 = vld [vmem:[%s5739_s1 + $0x4d4] ss:$8 sps:$4 sm:$0xff]   ;;  %v4131_v61 = vld [vmem:[%s5739_s1 + $0x4d0] ss:$8 sps:$4 sm:$0xff]  }
  0x13   :  { %2327 = vmatpush1.bf16.msra.mxu1 %v4076_v18  ;;  %v18_v50 = vld [vmem:[%s5740_s0 + $0x20] sm:$0xff]  ;;  %v3439_v53 = vcombine.high %v14_v48, %v22_v49  ;;  %v4138_v2 = vld [vmem:[%s5739_s1 + $0xf4] ss:$8 sps:$4 sm:$0xff]   ;;  %v4142_v4 = vld [vmem:[%s5739_s1 + $0xf0] ss:$8 sps:$4 sm:$0xff]   ;;  %v3438_v11 = vcombine.low %v14_v48, %v22_v49 }
  0x14   :  { %2779 = vmatpush1.bf16.msra.mxu0 %v4077_v19  ;;  %2328 = vmatprep.subr.bf16.mxu1 %v4078_v20  ;;  %v26_v51 = vld [vmem:[%s5740_s0 + $0x60] sm:$0xff]  ;;  %v4140_v3 = vld [vmem:[%s5739_s1 + $0x4f4] ss:$8 sps:$4 sm:$0xff]   ;;  %v4143_v5 = vld [vmem:[%s5739_s1 + $0x4f0] ss:$8 sps:$4 sm:$0xff]  }
  0x15   :  { %2780 = vmatprep.subr.bf16.mxu0 %v4080_v21  ;;  %v4120_v52 = vld [vmem:[%s5739_s1 + $0xc4] ss:$8 sps:$4 sm:$0xff]   ;;  %v3447_v55 = vcombine.high %v18_v50, %v26_v51  ;;  %2350 = vmatprep.mubr.bf16.mxu1 %v3439_v53  ;;  %v4124_v56 = vld [vmem:[%s5739_s1 + $0xc0] ss:$8 sps:$4 sm:$0xff]   ;;  %v3446_v12 = vcombine.low %v18_v50, %v26_v51  ;;  %v4152_v16 = vld [vmem:[%s5739_s1 + $0x114] ss:$8 sps:$4 sm:$0xff]  }
  0x16   :  { %v4122_v54 = vld [vmem:[%s5739_s1 + $0x4c4] ss:$8 sps:$4 sm:$0xff]   ;;  %v4125_v57 = vld [vmem:[%s5739_s1 + $0x4c0] ss:$8 sps:$4 sm:$0xff]   ;;  %v4155_v17 = vld [vmem:[%s5739_s1 + $0x514] ss:$8 sps:$4 sm:$0xff]  }
  0x17   :  { %2329 = vmatpush1.bf16.msra.mxu1 %v4082_v22  ;;  %2802 = vmatprep.mubr.bf16.mxu0 %v3447_v55  ;;  %v4132_v62 = vld [vmem:[%s5739_s1 + $0xe4] ss:$8 sps:$4 sm:$0xff]   ;;  %v4136_v0 = vld [vmem:[%s5739_s1 + $0xe0] ss:$8 sps:$4 sm:$0xff]   ;;  %v4150_v20 = vld [vmem:[%s5739_s1 + $0x110] ss:$8 sps:$4 sm:$0xff]  }
  0x18   :  { %2781 = vmatpush1.bf16.msra.mxu0 %v4083_v23  ;;  %2330 = vmatprep.subr.bf16.mxu1 %v4084_v24  ;;  %v4134_v63 = vld [vmem:[%s5739_s1 + $0x4e4] ss:$8 sps:$4 sm:$0xff]   ;;  %v4137_v1 = vld [vmem:[%s5739_s1 + $0x4e0] ss:$8 sps:$4 sm:$0xff]   ;;  %v4153_v21 = vld [vmem:[%s5739_s1 + $0x510] ss:$8 sps:$4 sm:$0xff]  }
  0x19   :  { %2782 = vmatprep.subr.bf16.mxu0 %v4086_v25  ;;  %v4146_v6 = vld [vmem:[%s5739_s1 + $0x104] ss:$8 sps:$4 sm:$0xff]   ;;  %v4144_v8 = vld [vmem:[%s5739_s1 + $0x100] ss:$8 sps:$4 sm:$0xff]   ;;  %v4176_v48 = vld [vmem:[%s5739_s1 + $0x154] ss:$8 sps:$4 sm:$0xff]  }
  0x1a   :  { %v4149_v7 = vld [vmem:[%s5739_s1 + $0x504] ss:$8 sps:$4 sm:$0xff]   ;;  %v4147_v9 = vld [vmem:[%s5739_s1 + $0x500] ss:$8 sps:$4 sm:$0xff]   ;;  %v4179_v49 = vld [vmem:[%s5739_s1 + $0x554] ss:$8 sps:$4 sm:$0xff]  }
  0x1b   :  { %2331 = vmatpush1.bf16.msra.mxu1 %v4088_v26  ;;  %v30_v10 = vld [vmem:[%s5740_s0 + $0x80] sm:$0xff]  ;;  %v4177_v53 = vld [vmem:[%s5739_s1 + $0x550] ss:$8 sps:$4 sm:$0xff]  }
  0x1c   :  { %2783 = vmatpush1.bf16.msra.mxu0 %v4089_v27  ;;  %2332 = vmatprep.subr.bf16.mxu1 %v4090_v28  ;;  %v38_v13 = vld [vmem:[%s5740_s0 + $0xc0] sm:$0xff] }
  0x1d   :  { %2784 = vmatprep.subr.bf16.mxu0 %v4092_v29  ;;  %v34_v14 = vld [vmem:[%s5740_s0 + $0xa0] sm:$0xff]  ;;  %v3455_v18 = vcombine.high %v30_v10, %v38_v13  ;;  %v3454_v28 = vcombine.low %v30_v10, %v38_v13 }
  0x1e   :  { %v42_v15 = vld [vmem:[%s5740_s0 + $0xe0] sm:$0xff] }
  0x1f   :  { %2333 = vmatpush1.bf16.msra.mxu1 %v4094_v30  ;;  %v3463_v19 = vcombine.high %v34_v14, %v42_v15  ;;  %v4158_v22 = vld [vmem:[%s5739_s1 + $0x124] ss:$8 sps:$4 sm:$0xff]   ;;  %v4156_v24 = vld [vmem:[%s5739_s1 + $0x120] ss:$8 sps:$4 sm:$0xff]   ;;  %v3462_v29 = vcombine.low %v34_v14, %v42_v15 }
  0x20   :  { %2785 = vmatpush1.bf16.msra.mxu0 %v4095_v31  ;;  %2334 = vmatprep.subr.bf16.mxu1 %v4096_v32  ;;  %v4161_v23 = vld [vmem:[%s5739_s1 + $0x524] ss:$8 sps:$4 sm:$0xff]   ;;  %v4159_v25 = vld [vmem:[%s5739_s1 + $0x520] ss:$8 sps:$4 sm:$0xff]   ;;  %v4164_v32 = vld [vmem:[%s5739_s1 + $0x134] ss:$8 sps:$4 sm:$0xff]  }
  0x21   :  { %2786 = vmatprep.subr.bf16.mxu0 %v4098_v33  ;;  %v46_v26 = vld [vmem:[%s5740_s0 + $0x100] sm:$0xff]  ;;  %v4167_v33 = vld [vmem:[%s5739_s1 + $0x534] ss:$8 sps:$4 sm:$0xff]  }
  0x22   :  { %v54_v27 = vld [vmem:[%s5740_s0 + $0x140] sm:$0xff] }
  0x23   :  { %2335 = vmatpush1.bf16.msra.mxu1 %v4100_v34  ;;  %v50_v30 = vld [vmem:[%s5740_s0 + $0x120] sm:$0xff]  ;;  %v3471_v34 = vcombine.high %v46_v26, %v54_v27 }
  0x24   :  { %2787 = vmatpush1.bf16.msra.mxu0 %v4101_v35  ;;  %2336 = vmatprep.subr.bf16.mxu1 %v4102_v36  ;;  %v58_v31 = vld [vmem:[%s5740_s0 + $0x160] sm:$0xff]  ;;  %v4162_v36 = vld [vmem:[%s5739_s1 + $0x130] ss:$8 sps:$4 sm:$0xff]  }
  0x25   :  { %2788 = vmatprep.subr.bf16.mxu0 %v4104_v37  ;;  %v3479_v35 = vcombine.high %v50_v30, %v58_v31  ;;  %v4165_v37 = vld [vmem:[%s5739_s1 + $0x530] ss:$8 sps:$4 sm:$0xff]   ;;  %v4185_v55 = vld [vmem:[%s5739_s1 + $0x564] ss:$8 sps:$4 sm:$0xff]   ;;  %v4192_v14 = vld [vmem:[%s5739_s1 + $0x180] ss:$8 sps:$4 sm:$0xff]  }
  0x26   :  { %v106_v13 = vld [vmem:[%s5740_s0 + $0x2e0] sm:$0xff] }
  0x27   :  { %2337 = vmatpush1.bf16.msra.mxu1 %v4106_v38  ;;  %v4170_v38 = vld [vmem:[%s5739_s1 + $0x144] ss:$8 sps:$4 sm:$0xff]   ;;  %v4195_v15 = vld [vmem:[%s5739_s1 + $0x580] ss:$8 sps:$4 sm:$0xff]  }
  0x28   :  { %2789 = vmatpush1.bf16.msra.mxu0 %v4107_v39  ;;  %2338 = vmatprep.subr.bf16.mxu1 %v4108_v40  ;;  %v4173_v39 = vld [vmem:[%s5739_s1 + $0x544] ss:$8 sps:$4 sm:$0xff]   ;;  %v4168_v40 = vld [vmem:[%s5739_s1 + $0x140] ss:$8 sps:$4 sm:$0xff]  }
  0x29   :  { %2790 = vmatprep.subr.bf16.mxu0 %v4110_v41  ;;  %v4171_v41 = vld [vmem:[%s5739_s1 + $0x540] ss:$8 sps:$4 sm:$0xff]  }
  0x2b   :  { %2339 = vmatpush1.bf16.msra.mxu1 %v4112_v42  ;;  %v62_v42 = vld [vmem:[%s5740_s0 + $0x180] sm:$0xff] }
  0x2c   :  { %2791 = vmatpush1.bf16.msra.mxu0 %v4113_v43  ;;  %2340 = vmatprep.subr.bf16.mxu1 %v4114_v44  ;;  %v70_v43 = vld [vmem:[%s5740_s0 + $0x1c0] sm:$0xff]  ;;  %v3470_v44 = vcombine.low %v46_v26, %v54_v27 }
  0x2d   :  { %2792 = vmatprep.subr.bf16.mxu0 %v4116_v45  ;;  %v3478_v45 = vcombine.low %v50_v30, %v58_v31  ;;  %v3487_v50 = vcombine.high %v62_v42, %v70_v43  ;;  %v110_v26 = vld [vmem:[%s5740_s0 + $0x300] sm:$0xff] }
  0x2e   :  { %v114_v30 = vld [vmem:[%s5740_s0 + $0x320] sm:$0xff] }
  0x2f   :  { %2341 = vmatpush1.bf16.msra.mxu1 %v4118_v46  ;;  %v66_v46 = vld [vmem:[%s5740_s0 + $0x1a0] sm:$0xff] }
  0x30   :  { %2793 = vmatpush1.bf16.msra.mxu0 %v4119_v47  ;;  %2342 = vmatprep.subr.bf16.mxu1 %v4120_v52  ;;  %v74_v47 = vld [vmem:[%s5740_s0 + $0x1e0] sm:$0xff]  ;;  %v4174_v52 = vld [vmem:[%s5739_s1 + $0x150] ss:$8 sps:$4 sm:$0xff]  }
  0x31   :  { %2794 = vmatprep.subr.bf16.mxu0 %v4122_v54  ;;  %v3495_v51 = vcombine.high %v66_v46, %v74_v47  ;;  %v4182_v54 = vld [vmem:[%s5739_s1 + $0x164] ss:$8 sps:$4 sm:$0xff]  }
  0x32   :  { %v122_v31 = vld [vmem:[%s5740_s0 + $0x360] sm:$0xff] }
  0x33   :  { %2343 = vmatpush1.bf16.msra.mxu1 %v4124_v56  ;;  %v4180_v56 = vld [vmem:[%s5739_s1 + $0x160] ss:$8 sps:$4 sm:$0xff]  }
  0x34   :  { %2795 = vmatpush1.bf16.msra.mxu0 %v4125_v57  ;;  %2344 = vmatprep.subr.bf16.mxu1 %v4126_v58  ;;  %v78_v57 = vld [vmem:[%s5740_s0 + $0x200] sm:$0xff] }
  0x35   :  { %2796 = vmatprep.subr.bf16.mxu0 %v4128_v59  ;;  %v86_v58 = vld [vmem:[%s5740_s0 + $0x240] sm:$0xff]  ;;  %v3486_v59 = vcombine.low %v62_v42, %v70_v43 }
  0x36   :  { %v3502_v10 = vcombine.low %v78_v57, %v86_v58  ;;  %v126_v42 = vld [vmem:[%s5740_s0 + $0x380] sm:$0xff] }
  0x37   :  { %2345 = vmatpush1.bf16.msra.mxu1 %v4130_v60  ;;  %v3494_v60 = vcombine.low %v66_v46, %v74_v47  ;;  %v134_v43 = vld [vmem:[%s5740_s0 + $0x3c0] sm:$0xff] }
  0x38   :  { %2797 = vmatpush1.bf16.msra.mxu0 %v4131_v61  ;;  %2346 = vmatprep.subr.bf16.mxu1 %v4132_v62  ;;  %v82_v61 = vld [vmem:[%s5740_s0 + $0x220] sm:$0xff] }
  0x39   :  { %2798 = vmatprep.subr.bf16.mxu0 %v4134_v63  ;;  %v90_v62 = vld [vmem:[%s5740_s0 + $0x260] sm:$0xff] }
  0x3a   :  { %v4183_v63 = vld [vmem:[%s5739_s1 + $0x560] ss:$8 sps:$4 sm:$0xff]  }
  0x3b   :  { %2347 = vmatpush1.bf16.msra.mxu1 %v4136_v0  ;;  %v4188_v0 = vld [vmem:[%s5739_s1 + $0x174] ss:$8 sps:$4 sm:$0xff]   ;;  %v130_v46 = vld [vmem:[%s5740_s0 + $0x3a0] sm:$0xff] }
  0x3c   :  { %2799 = vmatpush1.bf16.msra.mxu0 %v4137_v1  ;;  %2348 = vmatprep.subr.bf16.mxu1 %v4138_v2  ;;  %v4191_v1 = vld [vmem:[%s5739_s1 + $0x574] ss:$8 sps:$4 sm:$0xff]   ;;  %v3503_v2 = vcombine.high %v78_v57, %v86_v58  ;;  %v138_v47 = vld [vmem:[%s5740_s0 + $0x3e0] sm:$0xff]  ;;  %v15_v58 = vld [vmem:[%s5740_s0 + $0x8] sm:$0xff] }
  0x3d   :  { %2800 = vmatprep.subr.bf16.mxu0 %v4140_v3  ;;  %v3511_v3 = vcombine.high %v82_v61, %v90_v62  ;;  %v4231_v57 = vld [vmem:[%s5739_s1 + $0x5e0] ss:$8 sps:$4 sm:$0xff]  }
  0x3f   :  { %2349 = vmatpush1.bf16.msra.mxu1 %v4142_v4  ;;  %v4186_v4 = vld [vmem:[%s5739_s1 + $0x170] ss:$8 sps:$4 sm:$0xff]  }
  0x40   :  { %2801 = vmatpush1.bf16.msra.mxu0 %v4143_v5  ;;  %2431 = vmatprep.subr.bf16.mxu1 %v4146_v6  ;;  %v4189_v5 = vld [vmem:[%s5739_s1 + $0x570] ss:$8 sps:$4 sm:$0xff]   ;;  %v4194_v6 = vld [vmem:[%s5739_s1 + $0x184] ss:$8 sps:$4 sm:$0xff]  }
  0x41   :  { %2883 = vmatprep.subr.bf16.mxu0 %v4149_v7  ;;  %v4197_v7 = vld [vmem:[%s5739_s1 + $0x584] ss:$8 sps:$4 sm:$0xff]  }
  0x42   :  { %2351 = vmatmul.mubr.bf16.vlgmr.msra.gmra.mrb[0].mxu1 %v3438_v11  ;;  %v3510_v11 = vcombine.low %v82_v61, %v90_v62  ;;  %v3558_v61 = vcombine.low %v130_v46, %v138_v47  ;;  %v19_v62 = vld [vmem:[%s5740_s0 + $0x28] sm:$0xff] }
  0x43   :  { %2803 = vmatmul.mubr.bf16.vlgmr.msra.gmra.mrb[0].mxu0 %v3446_v12  ;;  %2432 = vmatpush1.bf16.msra.mxu1 %v4144_v8  ;;  %v94_v8 = vld [vmem:[%s5740_s0 + $0x280] sm:$0xff] }
  0x44   :  { %2884 = vmatpush1.bf16.msra.mxu0 %v4147_v9  ;;  %2433 = vmatprep.subr.bf16.mxu1 %v4152_v16  ;;  %v102_v9 = vld [vmem:[%s5740_s0 + $0x2c0] sm:$0xff]  ;;  %v4200_v16 = vld [vmem:[%s5739_s1 + $0x194] ss:$8 sps:$4 sm:$0xff]  }
  0x45   :  { %2885 = vmatprep.subr.bf16.mxu0 %v4155_v17  ;;  %2360 = vmatprep.mubr.bf16.mxu1 %v3455_v18  ;;  %v98_v12 = vld [vmem:[%s5740_s0 + $0x2a0] sm:$0xff]  ;;  %v4203_v17 = vld [vmem:[%s5739_s1 + $0x594] ss:$8 sps:$4 sm:$0xff]   ;;  %v3519_v18 = vcombine.high %v94_v8, %v102_v9  ;;  %v3518_v27 = vcombine.low %v94_v8, %v102_v9  ;;  %v31_v9 = vld [vmem:[%s5740_s0 + $0x88] sm:$0xff] }
  0x46   :  { %2812 = vmatprep.mubr.bf16.mxu0 %v3463_v19  ;;  %v3527_v19 = vcombine.high %v98_v12, %v106_v13  ;;  %v4240_v8 = vld [vmem:[%s5739_s1 + $0x200] ss:$8 sps:$4 sm:$0xff]  }
  0x47   :  { %2434 = vmatpush1.bf16.msra.mxu1 %v4150_v20  ;;  %v4198_v20 = vld [vmem:[%s5739_s1 + $0x190] ss:$8 sps:$4 sm:$0xff]  }
  0x48   :  { %2886 = vmatpush1.bf16.msra.mxu0 %v4153_v21  ;;  %2435 = vmatprep.subr.bf16.mxu1 %v4158_v22  ;;  %v4201_v21 = vld [vmem:[%s5739_s1 + $0x590] ss:$8 sps:$4 sm:$0xff]   ;;  %v4206_v22 = vld [vmem:[%s5739_s1 + $0x1a4] ss:$8 sps:$4 sm:$0xff]  }
  0x49   :  { %2887 = vmatprep.subr.bf16.mxu0 %v4161_v23  ;;  %v4209_v23 = vld [vmem:[%s5739_s1 + $0x5a4] ss:$8 sps:$4 sm:$0xff]  }
  0x4a   :  { %2361 = vmatmul.mubr.bf16.gmra.mrb[4].mxu1 %v3454_v28  ;;  %v3526_v28 = vcombine.low %v98_v12, %v106_v13  ;;  %v35_v13 = vld [vmem:[%s5740_s0 + $0xa8] sm:$0xff] }
  0x4b   :  { %2813 = vmatmul.mubr.bf16.gmra.mrb[4].mxu0 %v3462_v29  ;;  %2436 = vmatpush1.bf16.msra.mxu1 %v4156_v24  ;;  %v4204_v24 = vld [vmem:[%s5739_s1 + $0x1a0] ss:$8 sps:$4 sm:$0xff]  }
  0x4c   :  { %2888 = vmatpush1.bf16.msra.mxu0 %v4159_v25  ;;  %2437 = vmatprep.subr.bf16.mxu1 %v4164_v32  ;;  %v4207_v25 = vld [vmem:[%s5739_s1 + $0x5a0] ss:$8 sps:$4 sm:$0xff]   ;;  %v4212_v32 = vld [vmem:[%s5739_s1 + $0x1b4] ss:$8 sps:$4 sm:$0xff]  }
  0x4d   :  { %2889 = vmatprep.subr.bf16.mxu0 %v4167_v33  ;;  %2370 = vmatprep.mubr.bf16.mxu1 %v3471_v34  ;;  %v118_v29 = vld [vmem:[%s5740_s0 + $0x340] sm:$0xff]  ;;  %v4215_v33 = vld [vmem:[%s5739_s1 + $0x5b4] ss:$8 sps:$4 sm:$0xff]  }
  0x4e   :  { %2822 = vmatprep.mubr.bf16.mxu0 %v3479_v35  ;;  %v3535_v34 = vcombine.high %v110_v26, %v118_v29  ;;  %v3543_v35 = vcombine.high %v114_v30, %v122_v31 }
  0x4f   :  { %2438 = vmatpush1.bf16.msra.mxu1 %v4162_v36  ;;  %v4210_v36 = vld [vmem:[%s5739_s1 + $0x1b0] ss:$8 sps:$4 sm:$0xff]  }
  0x50   :  { %2890 = vmatpush1.bf16.msra.mxu0 %v4165_v37  ;;  %2439 = vmatprep.subr.bf16.mxu1 %v4170_v38  ;;  %v4213_v37 = vld [vmem:[%s5739_s1 + $0x5b0] ss:$8 sps:$4 sm:$0xff]   ;;  %v4218_v38 = vld [vmem:[%s5739_s1 + $0x1c4] ss:$8 sps:$4 sm:$0xff]  }
  0x51   :  { %2891 = vmatprep.subr.bf16.mxu0 %v4173_v39  ;;  %v4221_v39 = vld [vmem:[%s5739_s1 + $0x5c4] ss:$8 sps:$4 sm:$0xff]  }
  0x52   :  { %2371 = vmatmul.mubr.bf16.gmra.mrb[8].mxu1 %v3470_v44  ;;  %v3534_v44 = vcombine.low %v110_v26, %v118_v29  ;;  %v59_v29 = vld [vmem:[%s5740_s0 + $0x168] sm:$0xff] }
  0x53   :  { %2823 = vmatmul.mubr.bf16.gmra.mrb[8].mxu0 %v3478_v45  ;;  %2440 = vmatpush1.bf16.msra.mxu1 %v4168_v40  ;;  %v4216_v40 = vld [vmem:[%s5739_s1 + $0x1c0] ss:$8 sps:$4 sm:$0xff]   ;;  %v3542_v45 = vcombine.low %v114_v30, %v122_v31 }
  0x54   :  { %2892 = vmatpush1.bf16.msra.mxu0 %v4171_v41  ;;  %2441 = vmatprep.subr.bf16.mxu1 %v4176_v48  ;;  %v4219_v41 = vld [vmem:[%s5739_s1 + $0x5c0] ss:$8 sps:$4 sm:$0xff]   ;;  %v4224_v48 = vld [vmem:[%s5739_s1 + $0x1d4] ss:$8 sps:$4 sm:$0xff]  }
  0x55   :  { %2893 = vmatprep.subr.bf16.mxu0 %v4179_v49  ;;  %2380 = vmatprep.mubr.bf16.mxu1 %v3487_v50  ;;  %v4227_v49 = vld [vmem:[%s5739_s1 + $0x5d4] ss:$8 sps:$4 sm:$0xff]   ;;  %v3551_v50 = vcombine.high %v126_v42, %v134_v43  ;;  %v4252_v30 = vld [vmem:[%s5739_s1 + $0x220] ss:$8 sps:$4 sm:$0xff]  }
  0x56   :  { %2832 = vmatprep.mubr.bf16.mxu0 %v3495_v51  ;;  %v3559_v51 = vcombine.high %v130_v46, %v138_v47  ;;  %v4255_v31 = vld [vmem:[%s5739_s1 + $0x620] ss:$8 sps:$4 sm:$0xff]  }
  0x57   :  { %2442 = vmatpush1.bf16.msra.mxu1 %v4174_v52  ;;  %v4222_v52 = vld [vmem:[%s5739_s1 + $0x1d0] ss:$8 sps:$4 sm:$0xff]   ;;  %v67_v46 = vld [vmem:[%s5740_s0 + $0x1a8] sm:$0xff] }
  0x58   :  { %2894 = vmatpush1.bf16.msra.mxu0 %v4177_v53  ;;  %2443 = vmatprep.subr.bf16.mxu1 %v4182_v54  ;;  %v4225_v53 = vld [vmem:[%s5739_s1 + $0x5d0] ss:$8 sps:$4 sm:$0xff]   ;;  %v4230_v54 = vld [vmem:[%s5739_s1 + $0x1e4] ss:$8 sps:$4 sm:$0xff]  }
  0x59   :  { %2895 = vmatprep.subr.bf16.mxu0 %v4185_v55  ;;  %v4233_v55 = vld [vmem:[%s5739_s1 + $0x5e4] ss:$8 sps:$4 sm:$0xff]  }
  0x5a   :  { %2381 = vmatmul.mubr.bf16.gmra.mrb[12].mxu1 %v3486_v59  ;;  %v23_v59 = vld [vmem:[%s5740_s0 + $0x48] sm:$0xff] }
  0x5b   :  { %2833 = vmatmul.mubr.bf16.gmra.mrb[12].mxu0 %v3494_v60  ;;  %2444 = vmatpush1.bf16.msra.mxu1 %v4180_v56  ;;  %v4228_v56 = vld [vmem:[%s5739_s1 + $0x1e0] ss:$8 sps:$4 sm:$0xff]   ;;  %v3550_v60 = vcombine.low %v126_v42, %v134_v43 }
  0x5c   :  { %2896 = vmatpush1.bf16.msra.mxu0 %v4183_v63  ;;  %2445 = vmatprep.subr.bf16.mxu1 %v4188_v0  ;;  %v27_v63 = vld [vmem:[%s5740_s0 + $0x68] sm:$0xff]  ;;  %v4236_v0 = vld [vmem:[%s5739_s1 + $0x1f4] ss:$8 sps:$4 sm:$0xff]  }
  0x5d   :  { %2897 = vmatprep.subr.bf16.mxu0 %v4191_v1  ;;  %2390 = vmatprep.mubr.bf16.mxu1 %v3503_v2  ;;  %v4239_v1 = vld [vmem:[%s5739_s1 + $0x5f4] ss:$8 sps:$4 sm:$0xff]   ;;  %v3441_v2 = vcombine.high %v15_v58, %v23_v59  ;;  %v3448_v12 = vcombine.low %v19_v62, %v27_v63  ;;  %v63_v42 = vld [vmem:[%s5740_s0 + $0x188] sm:$0xff] }
  0x5e   :  { %2842 = vmatprep.mubr.bf16.mxu0 %v3511_v3  ;;  %v3449_v3 = vcombine.high %v19_v62, %v27_v63  ;;  %v75_v47 = vld [vmem:[%s5740_s0 + $0x1e8] sm:$0xff] }
  0x5f   :  { %2446 = vmatpush1.bf16.msra.mxu1 %v4186_v4  ;;  %v4234_v4 = vld [vmem:[%s5739_s1 + $0x1f0] ss:$8 sps:$4 sm:$0xff]   ;;  %v83_v62 = vld [vmem:[%s5740_s0 + $0x228] sm:$0xff] }
  0x60   :  { %2898 = vmatpush1.bf16.msra.mxu0 %v4189_v5  ;;  %2447 = vmatprep.subr.bf16.mxu1 %v4194_v6  ;;  %v4237_v5 = vld [vmem:[%s5739_s1 + $0x5f0] ss:$8 sps:$4 sm:$0xff]   ;;  %v4242_v6 = vld [vmem:[%s5739_s1 + $0x204] ss:$8 sps:$4 sm:$0xff]  }
  0x61   :  { %2899 = vmatprep.subr.bf16.mxu0 %v4197_v7  ;;  %v4245_v7 = vld [vmem:[%s5739_s1 + $0x604] ss:$8 sps:$4 sm:$0xff]  }
  0x62   :  { %2391 = vmatmul.mubr.bf16.gmra.mrb[16].mxu1 %v3502_v10  ;;  %v39_v10 = vld [vmem:[%s5740_s0 + $0xc8] sm:$0xff] }
  0x63   :  { %2843 = vmatmul.mubr.bf16.gmra.mrb[16].mxu0 %v3510_v11  ;;  %2448 = vmatpush1.bf16.msra.mxu1 %v4192_v14  ;;  %v3440_v11 = vcombine.low %v15_v58, %v23_v59  ;;  %v43_v14 = vld [vmem:[%s5740_s0 + $0xe8] sm:$0xff]  ;;  %v3456_v26 = vcombine.low %v31_v9, %v39_v10 }
  0x64   :  { %2900 = vmatpush1.bf16.msra.mxu0 %v4195_v15  ;;  %2449 = vmatprep.subr.bf16.mxu1 %v4200_v16  ;;  %v4243_v15 = vld [vmem:[%s5739_s1 + $0x600] ss:$8 sps:$4 sm:$0xff]   ;;  %v4248_v16 = vld [vmem:[%s5739_s1 + $0x214] ss:$8 sps:$4 sm:$0xff]  }
  0x65   :  { %2901 = vmatprep.subr.bf16.mxu0 %v4203_v17  ;;  %2400 = vmatprep.mubr.bf16.mxu1 %v3519_v18  ;;  %v4251_v17 = vld [vmem:[%s5739_s1 + $0x614] ss:$8 sps:$4 sm:$0xff]   ;;  %v3457_v18 = vcombine.high %v31_v9, %v39_v10  ;;  %v79_v58 = vld [vmem:[%s5740_s0 + $0x208] sm:$0xff] }
  0x66   :  { %2852 = vmatprep.mubr.bf16.mxu0 %v3527_v19  ;;  %v3465_v19 = vcombine.high %v35_v13, %v43_v14  ;;  %v87_v59 = vld [vmem:[%s5740_s0 + $0x248] sm:$0xff] }
  0x67   :  { %2450 = vmatpush1.bf16.msra.mxu1 %v4198_v20  ;;  %v4246_v20 = vld [vmem:[%s5739_s1 + $0x210] ss:$8 sps:$4 sm:$0xff]   ;;  %v91_v63 = vld [vmem:[%s5740_s0 + $0x268] sm:$0xff] }
  0x68   :  { %2902 = vmatpush1.bf16.msra.mxu0 %v4201_v21  ;;  %2451 = vmatprep.subr.bf16.mxu1 %v4206_v22  ;;  %v4249_v21 = vld [vmem:[%s5739_s1 + $0x610] ss:$8 sps:$4 sm:$0xff]   ;;  %v4254_v22 = vld [vmem:[%s5739_s1 + $0x224] ss:$8 sps:$4 sm:$0xff]   ;;  %v4291_v9 = vld [vmem:[%s5739_s1 + $0x680] ss:$8 sps:$4 sm:$0xff]  }
  0x69   :  { %2903 = vmatprep.subr.bf16.mxu0 %v4209_v23  ;;  %v4257_v23 = vld [vmem:[%s5739_s1 + $0x624] ss:$8 sps:$4 sm:$0xff]  }
  0x6a   :  { %2401 = vmatmul.mubr.bf16.gmra.mrb[20].mxu1 %v3518_v27  ;;  %v3464_v27 = vcombine.low %v35_v13, %v43_v14  ;;  %v95_v10 = vld [vmem:[%s5740_s0 + $0x288] sm:$0xff]  ;;  %v3512_v13 = vcombine.low %v83_v62, %v91_v63 }
  0x6b   :  { %2853 = vmatmul.mubr.bf16.gmra.mrb[20].mxu0 %v3526_v28  ;;  %2452 = vmatpush1.bf16.msra.mxu1 %v4204_v24  ;;  %v47_v24 = vld [vmem:[%s5740_s0 + $0x108] sm:$0xff] }
  0x6c   :  { %2904 = vmatpush1.bf16.msra.mxu0 %v4207_v25  ;;  %2453 = vmatprep.subr.bf16.mxu1 %v4212_v32  ;;  %v55_v25 = vld [vmem:[%s5740_s0 + $0x148] sm:$0xff]  ;;  %v4260_v32 = vld [vmem:[%s5739_s1 + $0x234] ss:$8 sps:$4 sm:$0xff]  }
  0x6d   :  { %2905 = vmatprep.subr.bf16.mxu0 %v4215_v33  ;;  %2410 = vmatprep.mubr.bf16.mxu1 %v3535_v34  ;;  %v51_v28 = vld [vmem:[%s5740_s0 + $0x128] sm:$0xff]  ;;  %v4263_v33 = vld [vmem:[%s5739_s1 + $0x634] ss:$8 sps:$4 sm:$0xff]   ;;  %v3473_v34 = vcombine.high %v47_v24, %v55_v25  ;;  %v3472_v43 = vcombine.low %v47_v24, %v55_v25 }
  0x6e   :  { %2862 = vmatprep.mubr.bf16.mxu0 %v3543_v35  ;;  %v3481_v35 = vcombine.high %v51_v28, %v59_v29  ;;  %v99_v14 = vld [vmem:[%s5740_s0 + $0x2a8] sm:$0xff] }
  0x6f   :  { %2454 = vmatpush1.bf16.msra.mxu1 %v4210_v36  ;;  %v4258_v36 = vld [vmem:[%s5739_s1 + $0x230] ss:$8 sps:$4 sm:$0xff]   ;;  %v4300_v24 = vld [vmem:[%s5739_s1 + $0x2a0] ss:$8 sps:$4 sm:$0xff]  }
  0x70   :  { %2906 = vmatpush1.bf16.msra.mxu0 %v4213_v37  ;;  %2455 = vmatprep.subr.bf16.mxu1 %v4218_v38  ;;  %v4261_v37 = vld [vmem:[%s5739_s1 + $0x630] ss:$8 sps:$4 sm:$0xff]   ;;  %v4266_v38 = vld [vmem:[%s5739_s1 + $0x244] ss:$8 sps:$4 sm:$0xff]  }
  0x71   :  { %2907 = vmatprep.subr.bf16.mxu0 %v4221_v39  ;;  %v4269_v39 = vld [vmem:[%s5739_s1 + $0x644] ss:$8 sps:$4 sm:$0xff]  }
  0x72   :  { %2411 = vmatmul.mubr.bf16.gmra.mrb[24].mxu1 %v3534_v44  ;;  %v3480_v44 = vcombine.low %v51_v28, %v59_v29  ;;  %v111_v25 = vld [vmem:[%s5740_s0 + $0x308] sm:$0xff] }
  0x73   :  { %2863 = vmatmul.mubr.bf16.gmra.mrb[24].mxu0 %v3542_v45  ;;  %2456 = vmatpush1.bf16.msra.mxu1 %v4216_v40  ;;  %v4264_v40 = vld [vmem:[%s5739_s1 + $0x240] ss:$8 sps:$4 sm:$0xff]  }
  0x74   :  { %2908 = vmatpush1.bf16.msra.mxu0 %v4219_v41  ;;  %2457 = vmatprep.subr.bf16.mxu1 %v4224_v48  ;;  %v4267_v41 = vld [vmem:[%s5739_s1 + $0x640] ss:$8 sps:$4 sm:$0xff]   ;;  %v4272_v48 = vld [vmem:[%s5739_s1 + $0x254] ss:$8 sps:$4 sm:$0xff]  }
  0x75   :  { %2909 = vmatprep.subr.bf16.mxu0 %v4227_v49  ;;  %2420 = vmatprep.mubr.bf16.mxu1 %v3551_v50  ;;  %v71_v45 = vld [vmem:[%s5740_s0 + $0x1c8] sm:$0xff]  ;;  %v4275_v49 = vld [vmem:[%s5739_s1 + $0x654] ss:$8 sps:$4 sm:$0xff]  }
  0x76   :  { %2872 = vmatprep.mubr.bf16.mxu0 %v3559_v51  ;;  %v3489_v50 = vcombine.high %v63_v42, %v71_v45  ;;  %v3497_v51 = vcombine.high %v67_v46, %v75_v47  ;;  %v115_v29 = vld [vmem:[%s5740_s0 + $0x328] sm:$0xff] }
  0x77   :  { %2458 = vmatpush1.bf16.msra.mxu1 %v4222_v52  ;;  %v4270_v52 = vld [vmem:[%s5739_s1 + $0x250] ss:$8 sps:$4 sm:$0xff]  }
  0x78   :  { %2910 = vmatpush1.bf16.msra.mxu0 %v4225_v53  ;;  %2459 = vmatprep.subr.bf16.mxu1 %v4230_v54  ;;  %v4273_v53 = vld [vmem:[%s5739_s1 + $0x650] ss:$8 sps:$4 sm:$0xff]   ;;  %v4278_v54 = vld [vmem:[%s5739_s1 + $0x264] ss:$8 sps:$4 sm:$0xff]  }
  0x79   :  { %2911 = vmatprep.subr.bf16.mxu0 %v4233_v55  ;;  %v4281_v55 = vld [vmem:[%s5739_s1 + $0x664] ss:$8 sps:$4 sm:$0xff]  }
  0x7a   :  { %2421 = vmatmul.mubr.bf16.gmra.mrb[28].mxu1 %v3550_v60  ;;  %v3488_v60 = vcombine.low %v63_v42, %v71_v45  ;;  %v139_v45 = vld [vmem:[%s5740_s0 + $0x3e8] sm:$0xff] }
  0x7b   :  { %2873 = vmatmul.mubr.bf16.gmra.mrb[28].mxu0 %v3558_v61  ;;  %2460 = vmatpush1.bf16.msra.mxu1 %v4228_v56  ;;  %v4276_v56 = vld [vmem:[%s5739_s1 + $0x260] ss:$8 sps:$4 sm:$0xff]   ;;  %v3496_v61 = vcombine.low %v67_v46, %v75_v47 }
  0x7c   :  { %2912 = vmatpush1.bf16.msra.mxu0 %v4231_v57  ;;  %2461 = vmatprep.subr.bf16.mxu1 %v4236_v0  ;;  %v4279_v57 = vld [vmem:[%s5739_s1 + $0x660] ss:$8 sps:$4 sm:$0xff]   ;;  %v4284_v0 = vld [vmem:[%s5739_s1 + $0x274] ss:$8 sps:$4 sm:$0xff]  }
  0x7d   :  { %2913 = vmatprep.subr.bf16.mxu0 %v4239_v1  ;;  %2463 = vmatprep.mubr.bf16.mxu1 %v3441_v2  ;;  %v4287_v1 = vld [vmem:[%s5739_s1 + $0x674] ss:$8 sps:$4 sm:$0xff]   ;;  %v3505_v2 = vcombine.high %v79_v58, %v87_v59  ;;  %v4312_v46 = vld [vmem:[%s5739_s1 + $0x2c0] ss:$8 sps:$4 sm:$0xff]  }
  0x7e   :  { %2915 = vmatprep.mubr.bf16.mxu0 %v3449_v3  ;;  %v3513_v3 = vcombine.high %v83_v62, %v91_v63  ;;  %v4315_v47 = vld [vmem:[%s5739_s1 + $0x6c0] ss:$8 sps:$4 sm:$0xff]   ;;  %v20_v62 = vld [vmem:[%s5740_s0 + $0x30] sm:$0xff] }
  0x7f   :  { %2462 = vmatpush1.bf16.msra.mxu1 %v4234_v4  ;;  %v4282_v4 = vld [vmem:[%s5739_s1 + $0x270] ss:$8 sps:$4 sm:$0xff]  }
  0x80   :  { %2914 = vmatpush1.bf16.msra.mxu0 %v4237_v5  ;;  %2544 = vmatprep.subr.bf16.mxu1 %v4242_v6  ;;  %v4285_v5 = vld [vmem:[%s5739_s1 + $0x670] ss:$8 sps:$4 sm:$0xff]   ;;  %v4290_v6 = vld [vmem:[%s5739_s1 + $0x284] ss:$8 sps:$4 sm:$0xff]  }
  0x81   :  { %2996 = vmatprep.subr.bf16.mxu0 %v4245_v7  ;;  %v4293_v7 = vld [vmem:[%s5739_s1 + $0x684] ss:$8 sps:$4 sm:$0xff]   ;;  %v28_v63 = vld [vmem:[%s5740_s0 + $0x70] sm:$0xff] }
  0x82   :  { %2464 = vmatmul.mubr.bf16.vlgmr.msra.gmra.mrb[0].mxu1 %v3440_v11  ;;  %v103_v11 = vld [vmem:[%s5740_s0 + $0x2c8] sm:$0xff] }
  0x83   :  { %2916 = vmatmul.mubr.bf16.vlgmr.msra.gmra.mrb[0].mxu0 %v3448_v12  ;;  %2545 = vmatpush1.bf16.msra.mxu1 %v4240_v8  ;;  %v4288_v8 = vld [vmem:[%s5739_s1 + $0x280] ss:$8 sps:$4 sm:$0xff]   ;;  %v3504_v12 = vcombine.low %v79_v58, %v87_v59  ;;  %v16_v58 = vld [vmem:[%s5740_s0 + $0x10] sm:$0xff] }
  0x84   :  { %2997 = vmatpush1.bf16.msra.mxu0 %v4243_v15  ;;  %2546 = vmatprep.subr.bf16.mxu1 %v4248_v16  ;;  %v107_v15 = vld [vmem:[%s5740_s0 + $0x2e8] sm:$0xff]  ;;  %v4296_v16 = vld [vmem:[%s5739_s1 + $0x294] ss:$8 sps:$4 sm:$0xff]  }
  0x85   :  { %2998 = vmatprep.subr.bf16.mxu0 %v4251_v17  ;;  %2473 = vmatprep.mubr.bf16.mxu1 %v3457_v18  ;;  %v4299_v17 = vld [vmem:[%s5739_s1 + $0x694] ss:$8 sps:$4 sm:$0xff]   ;;  %v3521_v18 = vcombine.high %v95_v10, %v103_v11  ;;  %v3528_v28 = vcombine.low %v99_v14, %v107_v15 }
  0x86   :  { %2925 = vmatprep.mubr.bf16.mxu0 %v3465_v19  ;;  %v3529_v19 = vcombine.high %v99_v14, %v107_v15  ;;  %v36_v14 = vld [vmem:[%s5740_s0 + $0xb0] sm:$0xff] }
  0x87   :  { %2547 = vmatpush1.bf16.msra.mxu1 %v4246_v20  ;;  %v4294_v20 = vld [vmem:[%s5739_s1 + $0x290] ss:$8 sps:$4 sm:$0xff]  }
  0x88   :  { %2999 = vmatpush1.bf16.msra.mxu0 %v4249_v21  ;;  %2548 = vmatprep.subr.bf16.mxu1 %v4254_v22  ;;  %v4297_v21 = vld [vmem:[%s5739_s1 + $0x690] ss:$8 sps:$4 sm:$0xff]   ;;  %v4302_v22 = vld [vmem:[%s5739_s1 + $0x2a4] ss:$8 sps:$4 sm:$0xff]  }
  0x89   :  { %3000 = vmatprep.subr.bf16.mxu0 %v4257_v23  ;;  %v4305_v23 = vld [vmem:[%s5739_s1 + $0x6a4] ss:$8 sps:$4 sm:$0xff]   ;;  %v44_v15 = vld [vmem:[%s5740_s0 + $0xf0] sm:$0xff] }
  0x8a   :  { %2474 = vmatmul.mubr.bf16.gmra.mrb[4].mxu1 %v3456_v26  ;;  %v119_v26 = vld [vmem:[%s5740_s0 + $0x348] sm:$0xff] }
  0x8b   :  { %2926 = vmatmul.mubr.bf16.gmra.mrb[4].mxu0 %v3464_v27  ;;  %2549 = vmatpush1.bf16.msra.mxu1 %v4252_v30  ;;  %v3520_v27 = vcombine.low %v95_v10, %v103_v11  ;;  %v123_v30 = vld [vmem:[%s5740_s0 + $0x368] sm:$0xff]  ;;  %v3536_v42 = vcombine.low %v111_v25, %v119_v26  ;;  %v32_v10 = vld [vmem:[%s5740_s0 + $0x90] sm:$0xff] }
  0x8c   :  { %3001 = vmatpush1.bf16.msra.mxu0 %v4255_v31  ;;  %2550 = vmatprep.subr.bf16.mxu1 %v4260_v32  ;;  %v4303_v31 = vld [vmem:[%s5739_s1 + $0x6a0] ss:$8 sps:$4 sm:$0xff]   ;;  %v4308_v32 = vld [vmem:[%s5739_s1 + $0x2b4] ss:$8 sps:$4 sm:$0xff]  }
  0x8d   :  { %3002 = vmatprep.subr.bf16.mxu0 %v4263_v33  ;;  %2483 = vmatprep.mubr.bf16.mxu1 %v3473_v34  ;;  %v4311_v33 = vld [vmem:[%s5739_s1 + $0x6b4] ss:$8 sps:$4 sm:$0xff]   ;;  %v3537_v34 = vcombine.high %v111_v25, %v119_v26  ;;  %v4351_v25 = vld [vmem:[%s5739_s1 + $0x720] ss:$8 sps:$4 sm:$0xff]  }
  0x8e   :  { %2935 = vmatprep.mubr.bf16.mxu0 %v3481_v35  ;;  %v3545_v35 = vcombine.high %v115_v29, %v123_v30  ;;  %v40_v11 = vld [vmem:[%s5740_s0 + $0xd0] sm:$0xff] }
  0x8f   :  { %2551 = vmatpush1.bf16.msra.mxu1 %v4258_v36  ;;  %v4306_v36 = vld [vmem:[%s5739_s1 + $0x2b0] ss:$8 sps:$4 sm:$0xff]  }
  0x90   :  { %3003 = vmatpush1.bf16.msra.mxu0 %v4261_v37  ;;  %2552 = vmatprep.subr.bf16.mxu1 %v4266_v38  ;;  %v4309_v37 = vld [vmem:[%s5739_s1 + $0x6b0] ss:$8 sps:$4 sm:$0xff]   ;;  %v4314_v38 = vld [vmem:[%s5739_s1 + $0x2c4] ss:$8 sps:$4 sm:$0xff]  }
  0x91   :  { %3004 = vmatprep.subr.bf16.mxu0 %v4269_v39  ;;  %v4317_v39 = vld [vmem:[%s5739_s1 + $0x6c4] ss:$8 sps:$4 sm:$0xff]   ;;  %v48_v26 = vld [vmem:[%s5740_s0 + $0x110] sm:$0xff] }
  0x92   :  { %2484 = vmatmul.mubr.bf16.gmra.mrb[8].mxu1 %v3472_v43  ;;  %v3544_v43 = vcombine.low %v115_v29, %v123_v30  ;;  %v3466_v29 = vcombine.low %v36_v14, %v44_v15  ;;  %v52_v30 = vld [vmem:[%s5740_s0 + $0x130] sm:$0xff] }
  0x93   :  { %2936 = vmatmul.mubr.bf16.gmra.mrb[8].mxu0 %v3480_v44  ;;  %2553 = vmatpush1.bf16.msra.mxu1 %v4264_v40  ;;  %v127_v40 = vld [vmem:[%s5740_s0 + $0x388] sm:$0xff] }
  0x94   :  { %3005 = vmatpush1.bf16.msra.mxu0 %v4267_v41  ;;  %2554 = vmatprep.subr.bf16.mxu1 %v4272_v48  ;;  %v135_v41 = vld [vmem:[%s5740_s0 + $0x3c8] sm:$0xff]  ;;  %v4320_v48 = vld [vmem:[%s5739_s1 + $0x2d4] ss:$8 sps:$4 sm:$0xff]  }
  0x95   :  { %3006 = vmatprep.subr.bf16.mxu0 %v4275_v49  ;;  %2493 = vmatprep.mubr.bf16.mxu1 %v3489_v50  ;;  %v131_v44 = vld [vmem:[%s5740_s0 + $0x3a8] sm:$0xff]  ;;  %v4323_v49 = vld [vmem:[%s5739_s1 + $0x6d4] ss:$8 sps:$4 sm:$0xff]   ;;  %v3553_v50 = vcombine.high %v127_v40, %v135_v41  ;;  %v3552_v59 = vcombine.low %v127_v40, %v135_v41 }
  0x96   :  { %2945 = vmatprep.mubr.bf16.mxu0 %v3497_v51  ;;  %v3561_v51 = vcombine.high %v131_v44, %v139_v45  ;;  %v64_v40 = vld [vmem:[%s5740_s0 + $0x190] sm:$0xff] }
  0x97   :  { %2555 = vmatpush1.bf16.msra.mxu1 %v4270_v52  ;;  %v4318_v52 = vld [vmem:[%s5739_s1 + $0x2d0] ss:$8 sps:$4 sm:$0xff]  }
  0x98   :  { %3007 = vmatpush1.bf16.msra.mxu0 %v4273_v53  ;;  %2556 = vmatprep.subr.bf16.mxu1 %v4278_v54  ;;  %v4321_v53 = vld [vmem:[%s5739_s1 + $0x6d0] ss:$8 sps:$4 sm:$0xff]   ;;  %v4326_v54 = vld [vmem:[%s5739_s1 + $0x2e4] ss:$8 sps:$4 sm:$0xff]  }
  0x99   :  { %3008 = vmatprep.subr.bf16.mxu0 %v4281_v55  ;;  %v4329_v55 = vld [vmem:[%s5739_s1 + $0x6e4] ss:$8 sps:$4 sm:$0xff]  }
  0x9a   :  { %2494 = vmatmul.mubr.bf16.gmra.mrb[12].mxu1 %v3488_v60  ;;  %v3560_v60 = vcombine.low %v131_v44, %v139_v45  ;;  %v68_v44 = vld [vmem:[%s5740_s0 + $0x1b0] sm:$0xff] }
  0x9b   :  { %2946 = vmatmul.mubr.bf16.gmra.mrb[12].mxu0 %v3496_v61  ;;  %2557 = vmatpush1.bf16.msra.mxu1 %v4276_v56  ;;  %v4324_v56 = vld [vmem:[%s5739_s1 + $0x2e0] ss:$8 sps:$4 sm:$0xff]   ;;  %v24_v61 = vld [vmem:[%s5740_s0 + $0x50] sm:$0xff] }
  0x9c   :  { %3009 = vmatpush1.bf16.msra.mxu0 %v4279_v57  ;;  %2558 = vmatprep.subr.bf16.mxu1 %v4284_v0  ;;  %v4327_v57 = vld [vmem:[%s5739_s1 + $0x6e0] ss:$8 sps:$4 sm:$0xff]   ;;  %v4332_v0 = vld [vmem:[%s5739_s1 + $0x2f4] ss:$8 sps:$4 sm:$0xff]  }
  0x9d   :  { %3010 = vmatprep.subr.bf16.mxu0 %v4287_v1  ;;  %2503 = vmatprep.mubr.bf16.mxu1 %v3505_v2  ;;  %v4335_v1 = vld [vmem:[%s5739_s1 + $0x6f4] ss:$8 sps:$4 sm:$0xff]   ;;  %v3443_v2 = vcombine.high %v16_v58, %v24_v61 }
  0x9e   :  { %2955 = vmatprep.mubr.bf16.mxu0 %v3513_v3  ;;  %v3451_v3 = vcombine.high %v20_v62, %v28_v63  ;;  %v76_v45 = vld [vmem:[%s5740_s0 + $0x1f0] sm:$0xff] }
  0x9f   :  { %2559 = vmatpush1.bf16.msra.mxu1 %v4282_v4  ;;  %v4330_v4 = vld [vmem:[%s5739_s1 + $0x2f0] ss:$8 sps:$4 sm:$0xff]  }
  0xa0   :  { %3011 = vmatpush1.bf16.msra.mxu0 %v4285_v5  ;;  %2560 = vmatprep.subr.bf16.mxu1 %v4290_v6  ;;  %v4333_v5 = vld [vmem:[%s5739_s1 + $0x6f0] ss:$8 sps:$4 sm:$0xff]   ;;  %v4338_v6 = vld [vmem:[%s5739_s1 + $0x304] ss:$8 sps:$4 sm:$0xff]  }
  0xa1   :  { %3012 = vmatprep.subr.bf16.mxu0 %v4293_v7  ;;  %v4341_v7 = vld [vmem:[%s5739_s1 + $0x704] ss:$8 sps:$4 sm:$0xff]  }
  0xa2   :  { %2504 = vmatmul.mubr.bf16.gmra.mrb[16].mxu1 %v3504_v12  ;;  %v3442_v12 = vcombine.low %v16_v58, %v24_v61  ;;  %v3498_v58 = vcombine.low %v68_v44, %v76_v45  ;;  %v92_v61 = vld [vmem:[%s5740_s0 + $0x270] sm:$0xff] }
  0xa3   :  { %2956 = vmatmul.mubr.bf16.gmra.mrb[16].mxu0 %v3512_v13  ;;  %2561 = vmatpush1.bf16.msra.mxu1 %v4288_v8  ;;  %v4336_v8 = vld [vmem:[%s5739_s1 + $0x300] ss:$8 sps:$4 sm:$0xff]   ;;  %v3450_v13 = vcombine.low %v20_v62, %v28_v63 }
  0xa4   :  { %3013 = vmatpush1.bf16.msra.mxu0 %v4291_v9  ;;  %2562 = vmatprep.subr.bf16.mxu1 %v4296_v16  ;;  %v4339_v9 = vld [vmem:[%s5739_s1 + $0x700] ss:$8 sps:$4 sm:$0xff]   ;;  %v4344_v16 = vld [vmem:[%s5739_s1 + $0x314] ss:$8 sps:$4 sm:$0xff]  }
  0xa5   :  { %3014 = vmatprep.subr.bf16.mxu0 %v4299_v17  ;;  %2513 = vmatprep.mubr.bf16.mxu1 %v3521_v18  ;;  %v4347_v17 = vld [vmem:[%s5739_s1 + $0x714] ss:$8 sps:$4 sm:$0xff]   ;;  %v3459_v18 = vcombine.high %v32_v10, %v40_v11  ;;  %v4372_v62 = vld [vmem:[%s5739_s1 + $0x360] ss:$8 sps:$4 sm:$0xff]  }
  0xa6   :  { %2965 = vmatprep.mubr.bf16.mxu0 %v3529_v19  ;;  %v3467_v19 = vcombine.high %v36_v14, %v44_v15  ;;  %v4375_v63 = vld [vmem:[%s5739_s1 + $0x760] ss:$8 sps:$4 sm:$0xff]  }
  0xa7   :  { %2563 = vmatpush1.bf16.msra.mxu1 %v4294_v20  ;;  %v4342_v20 = vld [vmem:[%s5739_s1 + $0x310] ss:$8 sps:$4 sm:$0xff]   ;;  %v4384_v14 = vld [vmem:[%s5739_s1 + $0x380] ss:$8 sps:$4 sm:$0xff]  }
  0xa8   :  { %3015 = vmatpush1.bf16.msra.mxu0 %v4297_v21  ;;  %2564 = vmatprep.subr.bf16.mxu1 %v4302_v22  ;;  %v4345_v21 = vld [vmem:[%s5739_s1 + $0x710] ss:$8 sps:$4 sm:$0xff]   ;;  %v4350_v22 = vld [vmem:[%s5739_s1 + $0x324] ss:$8 sps:$4 sm:$0xff]   ;;  %v4387_v15 = vld [vmem:[%s5739_s1 + $0x780] ss:$8 sps:$4 sm:$0xff]  }
  0xa9   :  { %3016 = vmatprep.subr.bf16.mxu0 %v4305_v23  ;;  %v4353_v23 = vld [vmem:[%s5739_s1 + $0x724] ss:$8 sps:$4 sm:$0xff]  }
  0xaa   :  { %2514 = vmatmul.mubr.bf16.gmra.mrb[20].mxu1 %v3520_v27  ;;  %v56_v27 = vld [vmem:[%s5740_s0 + $0x150] sm:$0xff] }
  0xab   :  { %2966 = vmatmul.mubr.bf16.gmra.mrb[20].mxu0 %v3528_v28  ;;  %2565 = vmatpush1.bf16.msra.mxu1 %v4300_v24  ;;  %v4348_v24 = vld [vmem:[%s5739_s1 + $0x320] ss:$8 sps:$4 sm:$0xff]   ;;  %v3458_v28 = vcombine.low %v32_v10, %v40_v11  ;;  %v3474_v41 = vcombine.low %v48_v26, %v56_v27  ;;  %v104_v11 = vld [vmem:[%s5740_s0 + $0x2d0] sm:$0xff] }
  0xac   :  { %3017 = vmatpush1.bf16.msra.mxu0 %v4303_v31  ;;  %2566 = vmatprep.subr.bf16.mxu1 %v4308_v32  ;;  %v60_v31 = vld [vmem:[%s5740_s0 + $0x170] sm:$0xff] }
  0xad   :  { %3018 = vmatprep.subr.bf16.mxu0 %v4311_v33  ;;  %2523 = vmatprep.mubr.bf16.mxu1 %v3537_v34  ;;  %v4356_v32 = vld [vmem:[%s5739_s1 + $0x334] ss:$8 sps:$4 sm:$0xff]   ;;  %v3475_v34 = vcombine.high %v48_v26, %v56_v27 }
  0xae   :  { %2975 = vmatprep.mubr.bf16.mxu0 %v3545_v35  ;;  %v4359_v33 = vld [vmem:[%s5739_s1 + $0x734] ss:$8 sps:$4 sm:$0xff]   ;;  %v3483_v35 = vcombine.high %v52_v30, %v60_v31 }
  0xaf   :  { %2567 = vmatpush1.bf16.msra.mxu1 %v4306_v36  ;;  %v4354_v36 = vld [vmem:[%s5739_s1 + $0x330] ss:$8 sps:$4 sm:$0xff]  }
  0xb0   :  { %3019 = vmatpush1.bf16.msra.mxu0 %v4309_v37  ;;  %2568 = vmatprep.subr.bf16.mxu1 %v4314_v38  ;;  %v4357_v37 = vld [vmem:[%s5739_s1 + $0x730] ss:$8 sps:$4 sm:$0xff]   ;;  %v4362_v38 = vld [vmem:[%s5739_s1 + $0x344] ss:$8 sps:$4 sm:$0xff]  }
  0xb1   :  { %3020 = vmatprep.subr.bf16.mxu0 %v4317_v39  ;;  %v4365_v39 = vld [vmem:[%s5739_s1 + $0x744] ss:$8 sps:$4 sm:$0xff]   ;;  %v120_v27 = vld [vmem:[%s5740_s0 + $0x350] sm:$0xff] }
  0xb2   :  { %2524 = vmatmul.mubr.bf16.gmra.mrb[24].mxu1 %v3536_v42  ;;  %v3482_v42 = vcombine.low %v52_v30, %v60_v31  ;;  %v4396_v30 = vld [vmem:[%s5739_s1 + $0x3a0] ss:$8 sps:$4 sm:$0xff]  }
  0xb3   :  { %2976 = vmatmul.mubr.bf16.gmra.mrb[24].mxu0 %v3544_v43  ;;  %2569 = vmatpush1.bf16.msra.mxu1 %v4312_v46  ;;  %v72_v43 = vld [vmem:[%s5740_s0 + $0x1d0] sm:$0xff]  ;;  %v4360_v46 = vld [vmem:[%s5739_s1 + $0x340] ss:$8 sps:$4 sm:$0xff]  }
  0xb4   :  { %3021 = vmatpush1.bf16.msra.mxu0 %v4315_v47  ;;  %2570 = vmatprep.subr.bf16.mxu1 %v4320_v48  ;;  %v4363_v47 = vld [vmem:[%s5739_s1 + $0x740] ss:$8 sps:$4 sm:$0xff]   ;;  %v4368_v48 = vld [vmem:[%s5739_s1 + $0x354] ss:$8 sps:$4 sm:$0xff]  }
  0xb5   :  { %3022 = vmatprep.subr.bf16.mxu0 %v4323_v49  ;;  %2533 = vmatprep.mubr.bf16.mxu1 %v3553_v50  ;;  %v4371_v49 = vld [vmem:[%s5739_s1 + $0x754] ss:$8 sps:$4 sm:$0xff]   ;;  %v3491_v50 = vcombine.high %v64_v40, %v72_v43  ;;  %v4399_v31 = vld [vmem:[%s5739_s1 + $0x7a0] ss:$8 sps:$4 sm:$0xff]  }
  0xb6   :  { %2985 = vmatprep.mubr.bf16.mxu0 %v3561_v51  ;;  %v3499_v51 = vcombine.high %v68_v44, %v76_v45  ;;  %v132_v44 = vld [vmem:[%s5740_s0 + $0x3b0] sm:$0xff] }
  0xb7   :  { %2571 = vmatpush1.bf16.msra.mxu1 %v4318_v52  ;;  %v4366_v52 = vld [vmem:[%s5739_s1 + $0x350] ss:$8 sps:$4 sm:$0xff]  }
  0xb8   :  { %3023 = vmatpush1.bf16.msra.mxu0 %v4321_v53  ;;  %2572 = vmatprep.subr.bf16.mxu1 %v4326_v54  ;;  %v4369_v53 = vld [vmem:[%s5739_s1 + $0x750] ss:$8 sps:$4 sm:$0xff]   ;;  %v4374_v54 = vld [vmem:[%s5739_s1 + $0x364] ss:$8 sps:$4 sm:$0xff]  }
  0xb9   :  { %3024 = vmatprep.subr.bf16.mxu0 %v4329_v55  ;;  %v4377_v55 = vld [vmem:[%s5739_s1 + $0x764] ss:$8 sps:$4 sm:$0xff]   ;;  %v140_v45 = vld [vmem:[%s5740_s0 + $0x3f0] sm:$0xff] }
  0xba   :  { %2534 = vmatmul.mubr.bf16.gmra.mrb[28].mxu1 %v3552_v59  ;;  %v88_v59 = vld [vmem:[%s5740_s0 + $0x250] sm:$0xff] }
  0xbb   :  { %2986 = vmatmul.mubr.bf16.gmra.mrb[28].mxu0 %v3560_v60  ;;  %2573 = vmatpush1.bf16.msra.mxu1 %v4324_v56  ;;  %v80_v56 = vld [vmem:[%s5740_s0 + $0x210] sm:$0xff] }
  0xbc   :  { %3025 = vmatpush1.bf16.msra.mxu0 %v4327_v57  ;;  %2574 = vmatprep.subr.bf16.mxu1 %v4332_v0  ;;  %v3490_v57 = vcombine.low %v64_v40, %v72_v43  ;;  %v84_v60 = vld [vmem:[%s5740_s0 + $0x230] sm:$0xff] }
  0xbd   :  { %3026 = vmatprep.subr.bf16.mxu0 %v4335_v1  ;;  %2576 = vmatprep.mubr.bf16.mxu1 %v3443_v2  ;;  %v4380_v0 = vld [vmem:[%s5739_s1 + $0x374] ss:$8 sps:$4 sm:$0xff]   ;;  %v3507_v2 = vcombine.high %v80_v56, %v88_v59  ;;  %v3514_v10 = vcombine.low %v84_v60, %v92_v61 }
  0xbe   :  { %3028 = vmatprep.mubr.bf16.mxu0 %v3451_v3  ;;  %v4383_v1 = vld [vmem:[%s5739_s1 + $0x774] ss:$8 sps:$4 sm:$0xff]   ;;  %v3515_v3 = vcombine.high %v84_v60, %v92_v61 }
  0xbf   :  { %2575 = vmatpush1.bf16.msra.mxu1 %v4330_v4  ;;  %v4378_v4 = vld [vmem:[%s5739_s1 + $0x370] ss:$8 sps:$4 sm:$0xff]  }
  0xc0   :  { %3027 = vmatpush1.bf16.msra.mxu0 %v4333_v5  ;;  %2657 = vmatprep.subr.bf16.mxu1 %v4338_v6  ;;  %v4381_v5 = vld [vmem:[%s5739_s1 + $0x770] ss:$8 sps:$4 sm:$0xff]   ;;  %v4386_v6 = vld [vmem:[%s5739_s1 + $0x384] ss:$8 sps:$4 sm:$0xff]  }
  0xc1   :  { %3109 = vmatprep.subr.bf16.mxu0 %v4341_v7  ;;  %v4389_v7 = vld [vmem:[%s5739_s1 + $0x784] ss:$8 sps:$4 sm:$0xff]   ;;  %v128_v40 = vld [vmem:[%s5740_s0 + $0x390] sm:$0xff]  ;;  %v21_v60 = vld [vmem:[%s5740_s0 + $0x38] sm:$0xff] }
  0xc2   :  { %2577 = vmatmul.mubr.bf16.vlgmr.msra.gmra.mrb[0].mxu1 %v3442_v12  ;;  %v100_v12 = vld [vmem:[%s5740_s0 + $0x2b0] sm:$0xff]  ;;  %v29_v61 = vld [vmem:[%s5740_s0 + $0x78] sm:$0xff] }
  0xc3   :  { %3029 = vmatmul.mubr.bf16.vlgmr.msra.gmra.mrb[0].mxu0 %v3450_v13  ;;  %2658 = vmatpush1.bf16.msra.mxu1 %v4336_v8  ;;  %v96_v8 = vld [vmem:[%s5740_s0 + $0x290] sm:$0xff] }
  0xc4   :  { %3110 = vmatpush1.bf16.msra.mxu0 %v4339_v9  ;;  %2659 = vmatprep.subr.bf16.mxu1 %v4344_v16  ;;  %v3506_v9 = vcombine.low %v80_v56, %v88_v59  ;;  %v108_v13 = vld [vmem:[%s5740_s0 + $0x2f0] sm:$0xff]  ;;  %v17_v56 = vld [vmem:[%s5740_s0 + $0x18] sm:$0xff] }
  0xc5   :  { %3111 = vmatprep.subr.bf16.mxu0 %v4347_v17  ;;  %2586 = vmatprep.mubr.bf16.mxu1 %v3459_v18  ;;  %v4392_v16 = vld [vmem:[%s5739_s1 + $0x394] ss:$8 sps:$4 sm:$0xff]   ;;  %v3523_v18 = vcombine.high %v96_v8, %v104_v11  ;;  %v3530_v26 = vcombine.low %v100_v12, %v108_v13 }
  0xc6   :  { %3038 = vmatprep.mubr.bf16.mxu0 %v3467_v19  ;;  %v4395_v17 = vld [vmem:[%s5739_s1 + $0x794] ss:$8 sps:$4 sm:$0xff]   ;;  %v3531_v19 = vcombine.high %v100_v12, %v108_v13 }
  0xc7   :  { %2660 = vmatpush1.bf16.msra.mxu1 %v4342_v20  ;;  %v4390_v20 = vld [vmem:[%s5739_s1 + $0x390] ss:$8 sps:$4 sm:$0xff]  }
  0xc8   :  { %3112 = vmatpush1.bf16.msra.mxu0 %v4345_v21  ;;  %2661 = vmatprep.subr.bf16.mxu1 %v4350_v22  ;;  %v4393_v21 = vld [vmem:[%s5739_s1 + $0x790] ss:$8 sps:$4 sm:$0xff]   ;;  %v4398_v22 = vld [vmem:[%s5739_s1 + $0x3a4] ss:$8 sps:$4 sm:$0xff]  }
  0xc9   :  { %3113 = vmatprep.subr.bf16.mxu0 %v4353_v23  ;;  %v4401_v23 = vld [vmem:[%s5739_s1 + $0x7a4] ss:$8 sps:$4 sm:$0xff]   ;;  %v136_v43 = vld [vmem:[%s5740_s0 + $0x3d0] sm:$0xff]  ;;  %v25_v59 = vld [vmem:[%s5740_s0 + $0x58] sm:$0xff] }
  0xca   :  { %2587 = vmatmul.mubr.bf16.gmra.mrb[4].mxu1 %v3458_v28  ;;  %v116_v28 = vld [vmem:[%s5740_s0 + $0x330] sm:$0xff] }
  0xcb   :  { %3039 = vmatmul.mubr.bf16.gmra.mrb[4].mxu0 %v3466_v29  ;;  %2662 = vmatpush1.bf16.msra.mxu1 %v4348_v24  ;;  %v112_v24 = vld [vmem:[%s5740_s0 + $0x310] sm:$0xff] }
  0xcc   :  { %3114 = vmatpush1.bf16.msra.mxu0 %v4351_v25  ;;  %2663 = vmatprep.subr.bf16.mxu1 %v4356_v32  ;;  %v3522_v25 = vcombine.low %v96_v8, %v104_v11  ;;  %v124_v29 = vld [vmem:[%s5740_s0 + $0x370] sm:$0xff]  ;;  %v37_v8 = vld [vmem:[%s5740_s0 + $0xb8] sm:$0xff]  ;;  %v3452_v11 = vcombine.low %v21_v60, %v29_v61 }
  0xcd   :  { %3115 = vmatprep.subr.bf16.mxu0 %v4359_v33  ;;  %2596 = vmatprep.mubr.bf16.mxu1 %v3475_v34  ;;  %v4404_v32 = vld [vmem:[%s5739_s1 + $0x3b4] ss:$8 sps:$4 sm:$0xff]   ;;  %v3539_v34 = vcombine.high %v112_v24, %v120_v27 }
  0xce   :  { %3048 = vmatprep.mubr.bf16.mxu0 %v3483_v35  ;;  %v4407_v33 = vld [vmem:[%s5739_s1 + $0x7b4] ss:$8 sps:$4 sm:$0xff]   ;;  %v3547_v35 = vcombine.high %v116_v28, %v124_v29 }
  0xcf   :  { %2664 = vmatpush1.bf16.msra.mxu1 %v4354_v36  ;;  %v4402_v36 = vld [vmem:[%s5739_s1 + $0x3b0] ss:$8 sps:$4 sm:$0xff]  }
  0xd0   :  { %3116 = vmatpush1.bf16.msra.mxu0 %v4357_v37  ;;  %2665 = vmatprep.subr.bf16.mxu1 %v4362_v38  ;;  %v4405_v37 = vld [vmem:[%s5739_s1 + $0x7b0] ss:$8 sps:$4 sm:$0xff]   ;;  %v4410_v38 = vld [vmem:[%s5739_s1 + $0x3c4] ss:$8 sps:$4 sm:$0xff]  }
  0xd1   :  { %3117 = vmatprep.subr.bf16.mxu0 %v4365_v39  ;;  %v4413_v39 = vld [vmem:[%s5739_s1 + $0x7c4] ss:$8 sps:$4 sm:$0xff]  }
  0xd2   :  { %2597 = vmatmul.mubr.bf16.gmra.mrb[8].mxu1 %v3474_v41  ;;  %v3538_v41 = vcombine.low %v112_v24, %v120_v27  ;;  %v69_v24 = vld [vmem:[%s5740_s0 + $0x1b8] sm:$0xff] }
  0xd3   :  { %3049 = vmatmul.mubr.bf16.gmra.mrb[8].mxu0 %v3482_v42  ;;  %2666 = vmatpush1.bf16.msra.mxu1 %v4360_v46  ;;  %v3546_v42 = vcombine.low %v116_v28, %v124_v29  ;;  %v4408_v46 = vld [vmem:[%s5739_s1 + $0x3c0] ss:$8 sps:$4 sm:$0xff]  }
  0xd4   :  { %3118 = vmatpush1.bf16.msra.mxu0 %v4363_v47  ;;  %2667 = vmatprep.subr.bf16.mxu1 %v4368_v48  ;;  %v4411_v47 = vld [vmem:[%s5739_s1 + $0x7c0] ss:$8 sps:$4 sm:$0xff]   ;;  %v4416_v48 = vld [vmem:[%s5739_s1 + $0x3d4] ss:$8 sps:$4 sm:$0xff]  }
  0xd5   :  { %3119 = vmatprep.subr.bf16.mxu0 %v4371_v49  ;;  %2606 = vmatprep.mubr.bf16.mxu1 %v3491_v50  ;;  %v4419_v49 = vld [vmem:[%s5739_s1 + $0x7d4] ss:$8 sps:$4 sm:$0xff]   ;;  %v3555_v50 = vcombine.high %v128_v40, %v136_v43 }
  0xd6   :  { %3058 = vmatprep.mubr.bf16.mxu0 %v3499_v51  ;;  %v3563_v51 = vcombine.high %v132_v44, %v140_v45 }
  0xd7   :  { %2668 = vmatpush1.bf16.msra.mxu1 %v4366_v52  ;;  %v4414_v52 = vld [vmem:[%s5739_s1 + $0x3d0] ss:$8 sps:$4 sm:$0xff]  }
  0xd8   :  { %3120 = vmatpush1.bf16.msra.mxu0 %v4369_v53  ;;  %2669 = vmatprep.subr.bf16.mxu1 %v4374_v54  ;;  %v4417_v53 = vld [vmem:[%s5739_s1 + $0x7d0] ss:$8 sps:$4 sm:$0xff]   ;;  %v4422_v54 = vld [vmem:[%s5739_s1 + $0x3e4] ss:$8 sps:$4 sm:$0xff]  }
  0xd9   :  { %3121 = vmatprep.subr.bf16.mxu0 %v4377_v55  ;;  %v4425_v55 = vld [vmem:[%s5739_s1 + $0x7e4] ss:$8 sps:$4 sm:$0xff]  }
  0xda   :  { %2607 = vmatmul.mubr.bf16.gmra.mrb[12].mxu1 %v3490_v57  ;;  %v3554_v57 = vcombine.low %v128_v40, %v136_v43  ;;  %v101_v40 = vld [vmem:[%s5740_s0 + $0x2b8] sm:$0xff] }
  0xdb   :  { %3059 = vmatmul.mubr.bf16.gmra.mrb[12].mxu0 %v3498_v58  ;;  %2670 = vmatpush1.bf16.msra.mxu1 %v4372_v62  ;;  %v3562_v58 = vcombine.low %v132_v44, %v140_v45  ;;  %v4420_v62 = vld [vmem:[%s5739_s1 + $0x3e0] ss:$8 sps:$4 sm:$0xff]  }
  0xdc   :  { %3122 = vmatpush1.bf16.msra.mxu0 %v4375_v63  ;;  %2671 = vmatprep.subr.bf16.mxu1 %v4380_v0  ;;  %v4423_v63 = vld [vmem:[%s5739_s1 + $0x7e0] ss:$8 sps:$4 sm:$0xff]   ;;  %v4428_v0 = vld [vmem:[%s5739_s1 + $0x3f4] ss:$8 sps:$4 sm:$0xff]  }
  0xdd   :  { %3123 = vmatprep.subr.bf16.mxu0 %v4383_v1  ;;  %2616 = vmatprep.mubr.bf16.mxu1 %v3507_v2  ;;  %v4431_v1 = vld [vmem:[%s5739_s1 + $0x7f4] ss:$8 sps:$4 sm:$0xff]   ;;  %v3445_v2 = vcombine.high %v17_v56, %v25_v59 }
  0xde   :  { %3068 = vmatprep.mubr.bf16.mxu0 %v3515_v3  ;;  %v3453_v3 = vcombine.high %v21_v60, %v29_v61 }
  0xdf   :  { %2672 = vmatpush1.bf16.msra.mxu1 %v4378_v4  ;;  %v4426_v4 = vld [vmem:[%s5739_s1 + $0x3f0] ss:$8 sps:$4 sm:$0xff]  }
  0xe0   :  { %3124 = vmatpush1.bf16.msra.mxu0 %v4381_v5  ;;  %2673 = vmatprep.subr.bf16.mxu1 %v4386_v6  ;;  %v4429_v5 = vld [vmem:[%s5739_s1 + $0x7f0] ss:$8 sps:$4 sm:$0xff]  }
  0xe1   :  { %3125 = vmatprep.subr.bf16.mxu0 %v4389_v7  ;;  %v33_v6 = vld [vmem:[%s5740_s0 + $0x98] sm:$0xff] }
  0xe2   :  { %2617 = vmatmul.mubr.bf16.gmra.mrb[16].mxu1 %v3506_v9  ;;  %v41_v7 = vld [vmem:[%s5740_s0 + $0xd8] sm:$0xff] }
  0xe3   :  { %3069 = vmatmul.mubr.bf16.gmra.mrb[16].mxu0 %v3514_v10  ;;  %2674 = vmatpush1.bf16.msra.mxu1 %v4384_v14  ;;  %v45_v9 = vld [vmem:[%s5740_s0 + $0xf8] sm:$0xff]  ;;  %v3444_v10 = vcombine.low %v17_v56, %v25_v59  ;;  %v3461_v12 = vcombine.high %v33_v6, %v41_v7 }
  0xe4   :  { %3126 = vmatpush1.bf16.msra.mxu0 %v4387_v15  ;;  %2675 = vmatprep.subr.bf16.mxu1 %v4392_v16  ;;  %v3469_v13 = vcombine.high %v37_v8, %v45_v9  ;;  %v49_v14 = vld [vmem:[%s5740_s0 + $0x118] sm:$0xff] }
  0xe5   :  { %3127 = vmatprep.subr.bf16.mxu0 %v4395_v17  ;;  %2626 = vmatprep.mubr.bf16.mxu1 %v3523_v18  ;;  %v57_v15 = vld [vmem:[%s5740_s0 + $0x158] sm:$0xff]  ;;  %v3460_v18 = vcombine.low %v33_v6, %v41_v7 }
  0xe6   :  { %3078 = vmatprep.mubr.bf16.mxu0 %v3531_v19  ;;  %v53_v16 = vld [vmem:[%s5740_s0 + $0x138] sm:$0xff]  ;;  %v3468_v19 = vcombine.low %v37_v8, %v45_v9 }
  0xe7   :  { %2676 = vmatpush1.bf16.msra.mxu1 %v4390_v20  ;;  %v61_v17 = vld [vmem:[%s5740_s0 + $0x178] sm:$0xff]  ;;  %v3477_v20 = vcombine.high %v49_v14, %v57_v15 }
  0xe8   :  { %3128 = vmatpush1.bf16.msra.mxu0 %v4393_v21  ;;  %2677 = vmatprep.subr.bf16.mxu1 %v4398_v22  ;;  %v3485_v21 = vcombine.high %v53_v16, %v61_v17  ;;  %v65_v22 = vld [vmem:[%s5740_s0 + $0x198] sm:$0xff]  ;;  %v3484_v27 = vcombine.low %v53_v16, %v61_v17 }
  0xe9   :  { %3129 = vmatprep.subr.bf16.mxu0 %v4401_v23  ;;  %v73_v23 = vld [vmem:[%s5740_s0 + $0x1d8] sm:$0xff] }
  0xea   :  { %2627 = vmatmul.mubr.bf16.gmra.mrb[20].mxu1 %v3522_v25  ;;  %v77_v25 = vld [vmem:[%s5740_s0 + $0x1f8] sm:$0xff]  ;;  %v3493_v28 = vcombine.high %v65_v22, %v73_v23 }
  0xeb   :  { %3079 = vmatmul.mubr.bf16.gmra.mrb[20].mxu0 %v3530_v26  ;;  %2678 = vmatpush1.bf16.msra.mxu1 %v4396_v30  ;;  %v3476_v26 = vcombine.low %v49_v14, %v57_v15  ;;  %v3501_v29 = vcombine.high %v69_v24, %v77_v25  ;;  %v81_v30 = vld [vmem:[%s5740_s0 + $0x218] sm:$0xff] }
  0xec   :  { %3130 = vmatpush1.bf16.msra.mxu0 %v4399_v31  ;;  %2679 = vmatprep.subr.bf16.mxu1 %v4404_v32  ;;  %v89_v31 = vld [vmem:[%s5740_s0 + $0x258] sm:$0xff] }
  0xed   :  { %3131 = vmatprep.subr.bf16.mxu0 %v4407_v33  ;;  %2636 = vmatprep.mubr.bf16.mxu1 %v3539_v34  ;;  %v85_v32 = vld [vmem:[%s5740_s0 + $0x238] sm:$0xff]  ;;  %v3492_v34 = vcombine.low %v65_v22, %v73_v23 }
  0xee   :  { %3088 = vmatprep.mubr.bf16.mxu0 %v3547_v35  ;;  %v93_v33 = vld [vmem:[%s5740_s0 + $0x278] sm:$0xff]  ;;  %v3500_v35 = vcombine.low %v69_v24, %v77_v25 }
  0xef   :  { %2680 = vmatpush1.bf16.msra.mxu1 %v4402_v36  ;;  %v3509_v36 = vcombine.high %v81_v30, %v89_v31  ;;  %v3516_v43 = vcombine.low %v85_v32, %v93_v33  ;;  %v133_v56 = vld [vmem:[%s5740_s0 + $0x3b8] sm:$0xff] }
  0xf0   :  { %3132 = vmatpush1.bf16.msra.mxu0 %v4405_v37  ;;  %2681 = vmatprep.subr.bf16.mxu1 %v4410_v38  ;;  %v3517_v37 = vcombine.high %v85_v32, %v93_v33  ;;  %v97_v38 = vld [vmem:[%s5740_s0 + $0x298] sm:$0xff] }
  0xf1   :  { %3133 = vmatprep.subr.bf16.mxu0 %v4413_v39  ;;  %v105_v39 = vld [vmem:[%s5740_s0 + $0x2d8] sm:$0xff] }
  0xf2   :  { %2637 = vmatmul.mubr.bf16.gmra.mrb[24].mxu1 %v3538_v41  ;;  %v109_v41 = vld [vmem:[%s5740_s0 + $0x2f8] sm:$0xff]  ;;  %v3525_v44 = vcombine.high %v97_v38, %v105_v39 }
  0xf3   :  { %3089 = vmatmul.mubr.bf16.gmra.mrb[24].mxu0 %v3546_v42  ;;  %2682 = vmatpush1.bf16.msra.mxu1 %v4408_v46  ;;  %v3508_v42 = vcombine.low %v81_v30, %v89_v31  ;;  %v3533_v45 = vcombine.high %v101_v40, %v109_v41  ;;  %v113_v46 = vld [vmem:[%s5740_s0 + $0x318] sm:$0xff] }
  0xf4   :  { %3134 = vmatpush1.bf16.msra.mxu0 %v4411_v47  ;;  %2683 = vmatprep.subr.bf16.mxu1 %v4416_v48  ;;  %v121_v47 = vld [vmem:[%s5740_s0 + $0x358] sm:$0xff] }
  0xf5   :  { %3135 = vmatprep.subr.bf16.mxu0 %v4419_v49  ;;  %2646 = vmatprep.mubr.bf16.mxu1 %v3555_v50  ;;  %v117_v48 = vld [vmem:[%s5740_s0 + $0x338] sm:$0xff]  ;;  %v3524_v50 = vcombine.low %v97_v38, %v105_v39 }
  0xf6   :  { %3098 = vmatprep.mubr.bf16.mxu0 %v3563_v51  ;;  %v125_v49 = vld [vmem:[%s5740_s0 + $0x378] sm:$0xff]  ;;  %v3532_v51 = vcombine.low %v101_v40, %v109_v41 }
  0xf7   :  { %2684 = vmatpush1.bf16.msra.mxu1 %v4414_v52  ;;  %v3541_v52 = vcombine.high %v113_v46, %v121_v47  ;;  %v3548_v59 = vcombine.low %v117_v48, %v125_v49 }
  0xf8   :  { %3136 = vmatpush1.bf16.msra.mxu0 %v4417_v53  ;;  %2685 = vmatprep.subr.bf16.mxu1 %v4422_v54  ;;  %v3549_v53 = vcombine.high %v117_v48, %v125_v49  ;;  %v129_v54 = vld [vmem:[%s5740_s0 + $0x398] sm:$0xff] }
  0xf9   :  { %3137 = vmatprep.subr.bf16.mxu0 %v4425_v55  ;;  %v137_v55 = vld [vmem:[%s5740_s0 + $0x3d8] sm:$0xff] }
  0xfa   :  { %2647 = vmatmul.mubr.bf16.gmra.mrb[28].mxu1 %v3554_v57  ;;  %v141_v57 = vld [vmem:[%s5740_s0 + $0x3f8] sm:$0xff]  ;;  %v3557_v60 = vcombine.high %v129_v54, %v137_v55 }
  0xfb   :  { %3099 = vmatmul.mubr.bf16.gmra.mrb[28].mxu0 %v3562_v58  ;;  %2686 = vmatpush1.bf16.msra.mxu1 %v4420_v62  ;;  %v3540_v58 = vcombine.low %v113_v46, %v121_v47  ;;  %v3565_v61 = vcombine.high %v133_v56, %v141_v57  ;;  %v3556_v62 = vcombine.low %v129_v54, %v137_v55 }
  0xfc   :  { %3138 = vmatpush1.bf16.msra.mxu0 %v4423_v63  ;;  %2687 = vmatprep.subr.bf16.mxu1 %v4428_v0  ;;  %v3564_v63 = vcombine.low %v133_v56, %v141_v57  ;;  %v3258_v0 = vlaneseq }
  0xfd   :  { %3139 = vmatprep.subr.bf16.mxu0 %v4431_v1  ;;  %2689 = vmatprep.mubr.bf16.mxu1 %v3445_v2  ;;  %v4432_v2 = vmov 0.0  }
  0xfe   :  { %3141 = vmatprep.mubr.bf16.mxu0 %v3453_v3  ;;  %vm5612_vm0 = vcmp.lt.s32.totalorder %v3258_v0, 256 }
  0xff   :  { %2688 = vmatpush1.bf16.msra.mxu1 %v4426_v4  ;;  %3262 = vst.msk [vmem:[%s5741_s3] sm:$0x3] %vm5612_vm0, %v4432_v2  ;;  %3263 = vst.msk [vmem:[%s5742_s4] sm:$0x3] %vm5612_vm0, %v4432_v2 }
 0x100   :  { %3140 = vmatpush1.bf16.msra.mxu0 %v4429_v5 }
 0x102   :  { %2690 = vmatmul.mubr.bf16.vlgmr.msra.gmra.mrb[0].mxu1 %v3444_v10 }
 0x103   :  { %3142 = vmatmul.mubr.bf16.vlgmr.msra.gmra.mrb[0].mxu0 %v3452_v11  ;;  %2699 = vmatprep.mubr.bf16.mxu1 %v3461_v12 }
 0x104   :  { %3151 = vmatprep.mubr.bf16.mxu0 %v3469_v13 }
 0x10a   :  { %2700 = vmatmul.mubr.bf16.gmra.mrb[4].mxu1 %v3460_v18 }
 0x10b   :  { %3152 = vmatmul.mubr.bf16.gmra.mrb[4].mxu0 %v3468_v19  ;;  %2709 = vmatprep.mubr.bf16.mxu1 %v3477_v20 }
 0x10c   :  { %3161 = vmatprep.mubr.bf16.mxu0 %v3485_v21 }
 0x112   :  { %2710 = vmatmul.mubr.bf16.gmra.mrb[8].mxu1 %v3476_v26 }
 0x113   :  { %3162 = vmatmul.mubr.bf16.gmra.mrb[8].mxu0 %v3484_v27  ;;  %2719 = vmatprep.mubr.bf16.mxu1 %v3493_v28 }
 0x114   :  { %3171 = vmatprep.mubr.bf16.mxu0 %v3501_v29 }
 0x11a   :  { %2720 = vmatmul.mubr.bf16.gmra.mrb[12].mxu1 %v3492_v34 }
 0x11b   :  { %3172 = vmatmul.mubr.bf16.gmra.mrb[12].mxu0 %v3500_v35  ;;  %2729 = vmatprep.mubr.bf16.mxu1 %v3509_v36 }
 0x11c   :  { %3181 = vmatprep.mubr.bf16.mxu0 %v3517_v37 }
 0x122   :  { %2730 = vmatmul.mubr.bf16.gmra.mrb[16].mxu1 %v3508_v42 }
 0x123   :  { %3182 = vmatmul.mubr.bf16.gmra.mrb[16].mxu0 %v3516_v43  ;;  %2739 = vmatprep.mubr.bf16.mxu1 %v3525_v44 }
 0x124   :  { %3191 = vmatprep.mubr.bf16.mxu0 %v3533_v45 }
 0x12a   :  { %2740 = vmatmul.mubr.bf16.gmra.mrb[20].mxu1 %v3524_v50 }
 0x12b   :  { %3192 = vmatmul.mubr.bf16.gmra.mrb[20].mxu0 %v3532_v51  ;;  %2749 = vmatprep.mubr.bf16.mxu1 %v3541_v52 }
 0x12c   :  { %3201 = vmatprep.mubr.bf16.mxu0 %v3549_v53 }
 0x132   :  { %2750 = vmatmul.mubr.bf16.gmra.mrb[24].mxu1 %v3540_v58 }
 0x133   :  { %3202 = vmatmul.mubr.bf16.gmra.mrb[24].mxu0 %v3548_v59  ;;  %2759 = vmatprep.mubr.bf16.mxu1 %v3557_v60 }
 0x134   :  { %3211 = vmatprep.mubr.bf16.mxu0 %v3565_v61 }
 0x13a   :  { %2760 = vmatmul.mubr.bf16.gmra.mrb[28].mxu1 %v3556_v62 }
 0x13b   :  { %3212 = vmatmul.mubr.bf16.gmra.mrb[28].mxu0 %v3564_v63 }
 0x1d5   :  { %v2691_v3 = vpop.f32.mrb[0].mxu1 }
 0x1d6   :  { %v3143_v4 = vpop.f32.mrb[0].mxu0  ;;  %v2693_v6 = vpop.f32.mrb[1].mxu1 }
 0x1d7   :  { %v3822_v5 = vadd.f32 %v3143_v4, %v2691_v3  ;;  %v3145_v7 = vpop.f32.mrb[1].mxu0  ;;  %v2695_v9 = vpop.f32.mrb[2].mxu1 }
 0x1d8   :  { %v3823_v8 = vadd.f32 %v3145_v7, %v2693_v6  ;;  %v3147_v10 = vpop.f32.mrb[2].mxu0  ;;  %v2697_v12 = vpop.f32.mrb[3].mxu1 }
 0x1d9   :  { %3222 = vst [vmem:[%s5743_s2] sm:$0xff] %v3822_v5  ;;  %v3824_v11 = vadd.f32 %v3147_v10, %v2695_v9  ;;  %v3149_v13 = vpop.f32.mrb[3].mxu0  ;;  %v3332_v15 = vmul.f32 %v3822_v5, %v3822_v5 }
 0x1da   :  { %3223 = vst [vmem:[%s5743_s2 + $0x8] sm:$0xff] %v3823_v8  ;;  %v3825_v14 = vadd.f32 %v3149_v13, %v2697_v12  ;;  %v3333_v18 = vmul.f32 %v3823_v8, %v3823_v8 }
 0x1db   :  { %3224 = vst [vmem:[%s5743_s2 + $0x10] sm:$0xff] %v3824_v11  ;;  %v3265_v16 = vadd.f32 %v3824_v11, %v3822_v5  ;;  %v3334_v17 = vmul.f32 %v3824_v11, %v3824_v11 }
 0x1dc   :  { %3225 = vst [vmem:[%s5743_s2 + $0x18] sm:$0xff] %v3825_v14  ;;  %v3286_v19 = vadd.f32 %v3825_v14, %v3823_v8  ;;  %v3335_v20 = vmul.f32 %v3825_v14, %v3825_v14 }
 0x1dd   :  { %v3364_v21 = vadd.f32 %v3334_v17, %v3332_v15  ;;  %v2701_v23 = vpop.f32.mrb[4].mxu1 }
 0x1de   :  { %v3385_v22 = vadd.f32 %v3335_v20, %v3333_v18  ;;  %v3153_v24 = vpop.f32.mrb[4].mxu0  ;;  %v2703_v26 = vpop.f32.mrb[5].mxu1 }
 0x1df   :  { %v3826_v25 = vadd.f32 %v3153_v24, %v2701_v23  ;;  %v3155_v27 = vpop.f32.mrb[5].mxu0  ;;  %v2705_v29 = vpop.f32.mrb[6].mxu1 }
 0x1e0   :  { %v3827_v28 = vadd.f32 %v3155_v27, %v2703_v26  ;;  %v3157_v30 = vpop.f32.mrb[6].mxu0  ;;  %v2707_v34 = vpop.f32.mrb[7].mxu1 }
 0x1e1   :  { %3226 = vst [vmem:[%s5743_s2 + $0x20] sm:$0xff] %v3826_v25  ;;  %v3266_v31 = vadd.f32 %v3826_v25, %v3265_v16  ;;  %v3336_v32 = vmul.f32 %v3826_v25, %v3826_v25  ;;  %v3828_v33 = vadd.f32 %v3157_v30, %v2705_v29  ;;  %v3159_v35 = vpop.f32.mrb[7].mxu0 }
 0x1e2   :  { %3227 = vst [vmem:[%s5743_s2 + $0x28] sm:$0xff] %v3827_v28  ;;  %v3287_v36 = vadd.f32 %v3827_v28, %v3286_v19  ;;  %v3337_v37 = vmul.f32 %v3827_v28, %v3827_v28  ;;  %v3829_v38 = vadd.f32 %v3159_v35, %v2707_v34 }
 0x1e3   :  { %v3365_v39 = vadd.f32 %v3364_v21, %v3336_v32  ;;  %3228 = vst [vmem:[%s5743_s2 + $0x30] sm:$0xff] %v3828_v33  ;;  %v3267_v40 = vadd.f32 %v3828_v33, %v3266_v31  ;;  %v3338_v41 = vmul.f32 %v3828_v33, %v3828_v33 }
 0x1e4   :  { %v3386_v42 = vadd.f32 %v3385_v22, %v3337_v37  ;;  %3229 = vst [vmem:[%s5743_s2 + $0x38] sm:$0xff] %v3829_v38  ;;  %v3288_v43 = vadd.f32 %v3829_v38, %v3287_v36  ;;  %v3339_v44 = vmul.f32 %v3829_v38, %v3829_v38 }
 0x1e5   :  { %v3366_v45 = vadd.f32 %v3365_v39, %v3338_v41  ;;  %v2711_v47 = vpop.f32.mrb[8].mxu1 }
 0x1e6   :  { %v3387_v46 = vadd.f32 %v3386_v42, %v3339_v44  ;;  %v3163_v48 = vpop.f32.mrb[8].mxu0  ;;  %v2713_v50 = vpop.f32.mrb[9].mxu1 }
 0x1e7   :  { %v3830_v49 = vadd.f32 %v3163_v48, %v2711_v47  ;;  %v3165_v51 = vpop.f32.mrb[9].mxu0  ;;  %v2715_v53 = vpop.f32.mrb[10].mxu1 }
 0x1e8   :  { %v3831_v52 = vadd.f32 %v3165_v51, %v2713_v50  ;;  %v3167_v54 = vpop.f32.mrb[10].mxu0  ;;  %v2717_v58 = vpop.f32.mrb[11].mxu1 }
 0x1e9   :  { %3230 = vst [vmem:[%s5743_s2 + $0x40] sm:$0xff] %v3830_v49  ;;  %v3268_v55 = vadd.f32 %v3830_v49, %v3267_v40  ;;  %v3340_v56 = vmul.f32 %v3830_v49, %v3830_v49  ;;  %v3832_v57 = vadd.f32 %v3167_v54, %v2715_v53  ;;  %v3169_v59 = vpop.f32.mrb[11].mxu0 }
 0x1ea   :  { %3231 = vst [vmem:[%s5743_s2 + $0x48] sm:$0xff] %v3831_v52  ;;  %v3289_v60 = vadd.f32 %v3831_v52, %v3288_v43  ;;  %v3341_v61 = vmul.f32 %v3831_v52, %v3831_v52  ;;  %v3833_v62 = vadd.f32 %v3169_v59, %v2717_v58 }
 0x1eb   :  { %v3367_v63 = vadd.f32 %v3366_v45, %v3340_v56  ;;  %3232 = vst [vmem:[%s5743_s2 + $0x50] sm:$0xff] %v3832_v57  ;;  %v3269_v2 = vadd.f32 %v3832_v57, %v3268_v55  ;;  %v3342_v3 = vmul.f32 %v3832_v57, %v3832_v57 }
 0x1ec   :  { %v3388_v4 = vadd.f32 %v3387_v46, %v3341_v61  ;;  %3233 = vst [vmem:[%s5743_s2 + $0x58] sm:$0xff] %v3833_v62  ;;  %v3290_v5 = vadd.f32 %v3833_v62, %v3289_v60  ;;  %v3343_v6 = vmul.f32 %v3833_v62, %v3833_v62 }
 0x1ed   :  { %v3368_v7 = vadd.f32 %v3367_v63, %v3342_v3  ;;  %v2721_v9 = vpop.f32.mrb[12].mxu1 }
 0x1ee   :  { %v3389_v8 = vadd.f32 %v3388_v4, %v3343_v6  ;;  %v3173_v10 = vpop.f32.mrb[12].mxu0  ;;  %v2723_v12 = vpop.f32.mrb[13].mxu1 }
 0x1ef   :  { %v3834_v11 = vadd.f32 %v3173_v10, %v2721_v9  ;;  %v3175_v13 = vpop.f32.mrb[13].mxu0  ;;  %v2725_v15 = vpop.f32.mrb[14].mxu1 }
 0x1f0   :  { %v3835_v14 = vadd.f32 %v3175_v13, %v2723_v12  ;;  %v3177_v16 = vpop.f32.mrb[14].mxu0  ;;  %v2727_v20 = vpop.f32.mrb[15].mxu1 }
 0x1f1   :  { %3234 = vst [vmem:[%s5743_s2 + $0x60] sm:$0xff] %v3834_v11  ;;  %v3270_v17 = vadd.f32 %v3834_v11, %v3269_v2  ;;  %v3344_v18 = vmul.f32 %v3834_v11, %v3834_v11  ;;  %v3836_v19 = vadd.f32 %v3177_v16, %v2725_v15  ;;  %v3179_v21 = vpop.f32.mrb[15].mxu0 }
 0x1f2   :  { %3235 = vst [vmem:[%s5743_s2 + $0x68] sm:$0xff] %v3835_v14  ;;  %v3291_v22 = vadd.f32 %v3835_v14, %v3290_v5  ;;  %v3345_v23 = vmul.f32 %v3835_v14, %v3835_v14  ;;  %v3837_v24 = vadd.f32 %v3179_v21, %v2727_v20 }
 0x1f3   :  { %v3369_v25 = vadd.f32 %v3368_v7, %v3344_v18  ;;  %3236 = vst [vmem:[%s5743_s2 + $0x70] sm:$0xff] %v3836_v19  ;;  %v3271_v26 = vadd.f32 %v3836_v19, %v3270_v17  ;;  %v3346_v27 = vmul.f32 %v3836_v19, %v3836_v19 }
 0x1f4   :  { %v3390_v28 = vadd.f32 %v3389_v8, %v3345_v23  ;;  %3237 = vst [vmem:[%s5743_s2 + $0x78] sm:$0xff] %v3837_v24  ;;  %v3292_v29 = vadd.f32 %v3837_v24, %v3291_v22  ;;  %v3347_v30 = vmul.f32 %v3837_v24, %v3837_v24 }
 0x1f5   :  { %v3370_v31 = vadd.f32 %v3369_v25, %v3346_v27  ;;  %v2731_v33 = vpop.f32.mrb[16].mxu1 }
 0x1f6   :  { %v3391_v32 = vadd.f32 %v3390_v28, %v3347_v30  ;;  %v3183_v34 = vpop.f32.mrb[16].mxu0  ;;  %v2733_v36 = vpop.f32.mrb[17].mxu1 }
 0x1f7   :  { %v3838_v35 = vadd.f32 %v3183_v34, %v2731_v33  ;;  %v3185_v37 = vpop.f32.mrb[17].mxu0  ;;  %v2735_v39 = vpop.f32.mrb[18].mxu1 }
 0x1f8   :  { %v3839_v38 = vadd.f32 %v3185_v37, %v2733_v36  ;;  %v3187_v40 = vpop.f32.mrb[18].mxu0  ;;  %v2737_v44 = vpop.f32.mrb[19].mxu1 }
 0x1f9   :  { %3238 = vst [vmem:[%s5743_s2 + $0x80] sm:$0xff] %v3838_v35  ;;  %v3272_v41 = vadd.f32 %v3838_v35, %v3271_v26  ;;  %v3348_v42 = vmul.f32 %v3838_v35, %v3838_v35  ;;  %v3840_v43 = vadd.f32 %v3187_v40, %v2735_v39  ;;  %v3189_v45 = vpop.f32.mrb[19].mxu0 }
 0x1fa   :  { %3239 = vst [vmem:[%s5743_s2 + $0x88] sm:$0xff] %v3839_v38  ;;  %v3293_v46 = vadd.f32 %v3839_v38, %v3292_v29  ;;  %v3349_v47 = vmul.f32 %v3839_v38, %v3839_v38  ;;  %v3841_v48 = vadd.f32 %v3189_v45, %v2737_v44 }
 0x1fb   :  { %v3371_v49 = vadd.f32 %v3370_v31, %v3348_v42  ;;  %3240 = vst [vmem:[%s5743_s2 + $0x90] sm:$0xff] %v3840_v43  ;;  %v3273_v50 = vadd.f32 %v3840_v43, %v3272_v41  ;;  %v3350_v51 = vmul.f32 %v3840_v43, %v3840_v43 }
 0x1fc   :  { %v3392_v52 = vadd.f32 %v3391_v32, %v3349_v47  ;;  %3241 = vst [vmem:[%s5743_s2 + $0x98] sm:$0xff] %v3841_v48  ;;  %v3294_v53 = vadd.f32 %v3841_v48, %v3293_v46  ;;  %v3351_v54 = vmul.f32 %v3841_v48, %v3841_v48 }
 0x1fd   :  { %v3372_v55 = vadd.f32 %v3371_v49, %v3350_v51  ;;  %v2741_v57 = vpop.f32.mrb[20].mxu1 }
 0x1fe   :  { %v3393_v56 = vadd.f32 %v3392_v52, %v3351_v54  ;;  %v3193_v58 = vpop.f32.mrb[20].mxu0  ;;  %v2743_v60 = vpop.f32.mrb[21].mxu1 }
 0x1ff   :  { %v3842_v59 = vadd.f32 %v3193_v58, %v2741_v57  ;;  %v3195_v61 = vpop.f32.mrb[21].mxu0  ;;  %v2745_v63 = vpop.f32.mrb[22].mxu1 }
 0x200   :  { %v3843_v62 = vadd.f32 %v3195_v61, %v2743_v60  ;;  %v3197_v2 = vpop.f32.mrb[22].mxu0  ;;  %v2747_v6 = vpop.f32.mrb[23].mxu1 }
 0x201   :  { %3242 = vst [vmem:[%s5743_s2 + $0xa0] sm:$0xff] %v3842_v59  ;;  %v3274_v3 = vadd.f32 %v3842_v59, %v3273_v50  ;;  %v3352_v4 = vmul.f32 %v3842_v59, %v3842_v59  ;;  %v3844_v5 = vadd.f32 %v3197_v2, %v2745_v63  ;;  %v3199_v7 = vpop.f32.mrb[23].mxu0 }
 0x202   :  { %3243 = vst [vmem:[%s5743_s2 + $0xa8] sm:$0xff] %v3843_v62  ;;  %v3295_v8 = vadd.f32 %v3843_v62, %v3294_v53  ;;  %v3353_v9 = vmul.f32 %v3843_v62, %v3843_v62  ;;  %v3845_v10 = vadd.f32 %v3199_v7, %v2747_v6 }
 0x203   :  { %v3373_v11 = vadd.f32 %v3372_v55, %v3352_v4  ;;  %3244 = vst [vmem:[%s5743_s2 + $0xb0] sm:$0xff] %v3844_v5  ;;  %v3275_v12 = vadd.f32 %v3844_v5, %v3274_v3  ;;  %v3354_v13 = vmul.f32 %v3844_v5, %v3844_v5 }
 0x204   :  { %v3394_v14 = vadd.f32 %v3393_v56, %v3353_v9  ;;  %3245 = vst [vmem:[%s5743_s2 + $0xb8] sm:$0xff] %v3845_v10  ;;  %v3296_v15 = vadd.f32 %v3845_v10, %v3295_v8  ;;  %v3355_v16 = vmul.f32 %v3845_v10, %v3845_v10  ;;  %v4433_v10 = vmov 1966171168  }
 0x205   :  { %v3374_v17 = vadd.f32 %v3373_v11, %v3354_v13  ;;  %v2751_v19 = vpop.f32.mrb[24].mxu1  ;;  %v3311_v11 = vunpack.c.l.s4 %v4433_v10 }
 0x206   :  { %v3395_v18 = vadd.f32 %v3394_v14, %v3355_v16  ;;  %v3203_v20 = vpop.f32.mrb[24].mxu0  ;;  %v2753_v22 = vpop.f32.mrb[25].mxu1 }
 0x207   :  { %v3846_v21 = vadd.f32 %v3203_v20, %v2751_v19  ;;  %v3205_v23 = vpop.f32.mrb[25].mxu0  ;;  %v2755_v25 = vpop.f32.mrb[26].mxu1  ;;  %v3312_v20 = vunpack.c.0.s8 %v3311_v11 }
 0x208   :  { %v3847_v24 = vadd.f32 %v3205_v23, %v2753_v22  ;;  %v3207_v26 = vpop.f32.mrb[26].mxu0  ;;  %v2757_v30 = vpop.f32.mrb[27].mxu1 }
 0x209   :  { %3246 = vst [vmem:[%s5743_s2 + $0xc0] sm:$0xff] %v3846_v21  ;;  %v3276_v27 = vadd.f32 %v3846_v21, %v3275_v12  ;;  %v3356_v28 = vmul.f32 %v3846_v21, %v3846_v21  ;;  %v3848_v29 = vadd.f32 %v3207_v26, %v2755_v25  ;;  %v3209_v31 = vpop.f32.mrb[27].mxu0  ;;  %v3314_v21 = vshrl.u32 %v3258_v0, 7 }
 0x20a   :  { %3247 = vst [vmem:[%s5743_s2 + $0xc8] sm:$0xff] %v3847_v24  ;;  %v3297_v32 = vadd.f32 %v3847_v24, %v3296_v15  ;;  %v3357_v33 = vmul.f32 %v3847_v24, %v3847_v24  ;;  %v3849_v34 = vadd.f32 %v3209_v31, %v2757_v30 }
 0x20b   :  { %v3375_v35 = vadd.f32 %v3374_v17, %v3356_v28  ;;  %3248 = vst [vmem:[%s5743_s2 + $0xd0] sm:$0xff] %v3848_v29  ;;  %v3277_v36 = vadd.f32 %v3848_v29, %v3276_v27  ;;  %v3358_v37 = vmul.f32 %v3848_v29, %v3848_v29  ;;  %v3315_v30 = vsub.s32 %v3312_v20, %v3314_v21 }
 0x20c   :  { %v3396_v38 = vadd.f32 %v3395_v18, %v3357_v33  ;;  %3249 = vst [vmem:[%s5743_s2 + $0xd8] sm:$0xff] %v3849_v34  ;;  %v3298_v39 = vadd.f32 %v3849_v34, %v3297_v32  ;;  %v3359_v40 = vmul.f32 %v3849_v34, %v3849_v34 }
 0x20d   :  { %v3376_v41 = vadd.f32 %v3375_v35, %v3358_v37  ;;  %v2761_v43 = vpop.f32.mrb[28].mxu1  ;;  %v3264_v37 = vld [vmem:[%s5741_s3] sm:$0x3] }
 0x20e   :  { %v3397_v42 = vadd.f32 %v3396_v38, %v3359_v40  ;;  %v3213_v44 = vpop.f32.mrb[28].mxu0  ;;  %v2763_v46 = vpop.f32.mrb[29].mxu1 }
 0x20f   :  { %v3850_v45 = vadd.f32 %v3213_v44, %v2761_v43  ;;  %v3215_v47 = vpop.f32.mrb[29].mxu0  ;;  %v2765_v49 = vpop.f32.mrb[30].mxu1 }
 0x210   :  { %v3851_v48 = vadd.f32 %v3215_v47, %v2763_v46  ;;  %v3217_v50 = vpop.f32.mrb[30].mxu0  ;;  %v2767_v54 = vpop.f32.mrb[31].mxu1 }
 0x211   :  { %3250 = vst [vmem:[%s5743_s2 + $0xe0] sm:$0xff] %v3850_v45  ;;  %v3278_v51 = vadd.f32 %v3850_v45, %v3277_v36  ;;  %v3360_v52 = vmul.f32 %v3850_v45, %v3850_v45  ;;  %v3852_v53 = vadd.f32 %v3217_v50, %v2765_v49  ;;  %v3219_v55 = vpop.f32.mrb[31].mxu0 }
 0x212   :  { %3251 = vst [vmem:[%s5743_s2 + $0xe8] sm:$0xff] %v3851_v48  ;;  %v3299_v56 = vadd.f32 %v3851_v48, %v3298_v39  ;;  %v3361_v57 = vmul.f32 %v3851_v48, %v3851_v48  ;;  %v3853_v58 = vadd.f32 %v3219_v55, %v2767_v54  ;;  %v3331_v39 = vld [vmem:[%s5742_s4] sm:$0x3] }
 0x213   :  { %v3377_v59 = vadd.f32 %v3376_v41, %v3360_v52  ;;  %3252 = vst [vmem:[%s5743_s2 + $0xf0] sm:$0xff] %v3852_v53  ;;  %v3279_v60 = vadd.f32 %v3852_v53, %v3278_v51  ;;  %v3362_v61 = vmul.f32 %v3852_v53, %v3852_v53 }
 0x214   :  { %v3398_v62 = vadd.f32 %v3397_v42, %v3361_v57  ;;  %3253 = vst [vmem:[%s5743_s2 + $0xf8] sm:$0xff] %v3853_v58  ;;  %v3300_v63 = vadd.f32 %v3853_v58, %v3299_v56  ;;  %v3363_v2 = vmul.f32 %v3853_v58, %v3853_v58 }
 0x215   :  { %v3280_v3 = vrot.slane %v3279_v60, 4  ;;  %v3378_v4 = vadd.f32 %v3377_v59, %v3362_v61 }
 0x216   :  { %v3301_v5 = vrot.slane %v3300_v63, 4  ;;  %v3399_v6 = vadd.f32 %v3398_v62, %v3363_v2 }
 0x217   :  { %v3281_v7 = vadd.f32 %v3280_v3, %v3279_v60  ;;  %v3379_v8 = vrot.slane %v3378_v4, 4 }
 0x218   :  { %v3302_v9 = vadd.f32 %v3301_v5, %v3300_v63  ;;  %v3400_v12 = vrot.slane %v3399_v6, 4 }
 0x219   :  { %v3282_v13 = vrot.slane %v3281_v7, 2  ;;  %v3380_v14 = vadd.f32 %v3379_v8, %v3378_v4 }
 0x21a   :  { %v3303_v15 = vrot.slane %v3302_v9, 2  ;;  %v3401_v16 = vadd.f32 %v3400_v12, %v3399_v6 }
 0x21b   :  { %v3283_v17 = vadd.f32 %v3282_v13, %v3281_v7  ;;  %v3381_v18 = vrot.slane %v3380_v14, 2 }
 0x21c   :  { %v3304_v19 = vadd.f32 %v3303_v15, %v3302_v9  ;;  %v3402_v22 = vrot.slane %v3401_v16, 2 }
 0x21d   :  { %v3284_v23 = vrot.slane %v3283_v17, 1  ;;  %v3382_v24 = vadd.f32 %v3381_v18, %v3380_v14 }
 0x21e   :  { %v3305_v25 = vrot.slane %v3304_v19, 1  ;;  %v3403_v26 = vadd.f32 %v3402_v22, %v3401_v16 }
 0x21f   :  { %v3285_v27 = vadd.f32 %v3284_v23, %v3283_v17  ;;  %v3383_v28 = vrot.slane %v3382_v24, 1 }
 0x220   :  { %v3306_v29 = vadd.f32 %v3305_v25, %v3304_v19  ;;  %v3404_v31 = vrot.slane %v3403_v26, 1 }
 0x221   :  { %v3384_v32 = vadd.f32 %v3383_v28, %v3382_v24 }
 0x222   :  { %v3309_v33 = vcombine.low %v3285_v27, %v3306_v29  ;;  %v3405_v34 = vadd.f32 %v3404_v31, %v3403_v26 }
 0x224   :  { %v3316_v35 = vrot.slane %v3309_v33, %v3315_v30  ;;  %v3408_v36 = vcombine.low %v3384_v32, %v3405_v34 }
 0x226   :  { %v3323_v0 = vrot.slane %v3316_v35, %v3315_v30  ;;  %v3415_v38 = vrot.slane %v3408_v36, %v3315_v30 }
 0x228   :  { %v3325_v40 = vadd.f32 %v3323_v0, %v3264_v37  ;;  %v3422_v41 = vrot.slane %v3415_v38, %v3315_v30 }
 0x22a   :  { %3330 = vst.msk [vmem:[%s5741_s3] sm:$0x3] %vm5612_vm0, %v3325_v40  ;;  %v3424_v42 = vadd.f32 %v3422_v41, %v3331_v39 }
 0x22c   :  { %3425 = vst.msk [vmem:[%s5742_s4] sm:$0x3] %vm5612_vm0, %v3424_v42 }

// kernel: discriminator_forward.11
= control target key start
LH: loop header
LB: loop body
LE: loop exit
PB: predicated region body
PF: predicated region fallthrough
CT: control target
= control target key end

     0   :  { %v48_v0 = vlaneseq  ;;  %s621_s1 = inlined_call_operand.vmem [shape: f32[1,256], index: 1, kind: input, shape index: {}]   ;;  %s622_s2 = inlined_call_operand.vmem [shape: f32[1,256], index: 2, kind: input, shape index: {}]   ;;  %s623_s0 = inlined_call_operand.vmem [shape: f32[128,256], index: 0, kind: input, shape index: {}]   ;;  %s624_s3 = inlined_call_operand.vmem [shape: bf16[128,256], index: 3, kind: output, shape index: {}]  }
   0x1   :  { %v46_v2 = vld [vmem:[%s621_s1] sm:$0x3]  ;;  %v15_v5 = vld [vmem:[%s623_s0 + $0x8] sm:$0xff]  ;;  %v16_v8 = vld [vmem:[%s623_s0 + $0x10] sm:$0xff] }
   0x2   :  { %v49_v1 = vshrl.u32 %v48_v0, 7  ;;  %v90_v3 = vld [vmem:[%s622_s2] sm:$0x3]  ;;  %v17_v9 = vld [vmem:[%s623_s0 + $0x18] sm:$0xff]  ;;  %v19_v15 = vld [vmem:[%s623_s0 + $0x28] sm:$0xff] }
   0x3   :  { %v14_v4 = vld [vmem:[%s623_s0] sm:$0xff]  ;;  %v20_v16 = vld [vmem:[%s623_s0 + $0x30] sm:$0xff]  ;;  %v21_v17 = vld [vmem:[%s623_s0 + $0x38] sm:$0xff] }
   0x4   :  { %v50_v6 = vsub.s32 0, %v49_v1  ;;  %v54_v7 = vsub.s32 1, %v49_v1  ;;  %v18_v10 = vld [vmem:[%s623_s0 + $0x20] sm:$0xff]  ;;  %v23_v45 = vld [vmem:[%s623_s0 + $0x48] sm:$0xff]  ;;  %v24_v46 = vld [vmem:[%s623_s0 + $0x50] sm:$0xff] }
   0x5   :  { %v22_v40 = vld [vmem:[%s623_s0 + $0x40] sm:$0xff]  ;;  %v25_v47 = vld [vmem:[%s623_s0 + $0x58] sm:$0xff]  ;;  %v27_v59 = vld [vmem:[%s623_s0 + $0x68] sm:$0xff] }
   0x6   :  { %v419_v11 = vrot.slane %v46_v2, %v50_v6  ;;  %v421_v12 = vrot.slane %v46_v2, %v54_v7  ;;  %v423_v13 = vrot.slane %v90_v3, %v50_v6  ;;  %v425_v14 = vrot.slane %v90_v3, %v54_v7  ;;  %v26_v58 = vld [vmem:[%s623_s0 + $0x60] sm:$0xff]  ;;  %v28_v7 = vld [vmem:[%s623_s0 + $0x70] sm:$0xff] }
   0x8   :  { %v58_v18 = vmul.f32 %v419_v11, %v14_v4  ;;  %v59_v19 = vmul.f32 %v421_v12, %v15_v5  ;;  %v60_v20 = vmul.f32 %v419_v11, %v16_v8  ;;  %v61_v21 = vmul.f32 %v421_v12, %v17_v9  ;;  %v29_v8 = vld [vmem:[%s623_s0 + $0x78] sm:$0xff] }
   0x9   :  { %v62_v22 = vmul.f32 %v419_v11, %v18_v10  ;;  %v63_v23 = vmul.f32 %v421_v12, %v19_v15  ;;  %v64_v24 = vmul.f32 %v419_v11, %v20_v16  ;;  %v65_v25 = vmul.f32 %v421_v12, %v21_v17 }
   0xa   :  { %v102_v26 = vadd.f32 %v423_v13, %v58_v18  ;;  %v103_v27 = vadd.f32 %v425_v14, %v59_v19  ;;  %v104_v28 = vadd.f32 %v423_v13, %v60_v20  ;;  %v105_v29 = vadd.f32 %v425_v14, %v61_v21 }
   0xb   :  { %v106_v30 = vadd.f32 %v423_v13, %v62_v22  ;;  %v107_v31 = vadd.f32 %v425_v14, %v63_v23  ;;  %v108_v32 = vadd.f32 %v423_v13, %v64_v24  ;;  %v109_v33 = vadd.f32 %v425_v14, %v65_v25  ;;  %v30_v22 = vld [vmem:[%s623_s0 + $0x80] sm:$0xff]  ;;  %v31_v23 = vld [vmem:[%s623_s0 + $0x88] sm:$0xff] }
   0xc   :  { %vm134_vm0 = vcmp.ge.f32.partialorder %v102_v26, 0.0  ;;  %vm135_vm1 = vcmp.ge.f32.partialorder %v103_v27, 0.0  ;;  %v166_v34 = vmul.f32 0.2, %v102_v26  ;;  %v167_v35 = vmul.f32 0.2, %v103_v27 }
   0xd   :  { %vm136_vm2 = vcmp.ge.f32.partialorder %v104_v28, 0.0  ;;  %vm137_vm3 = vcmp.ge.f32.partialorder %v105_v29, 0.0  ;;  %v168_v36 = vmul.f32 0.2, %v104_v28  ;;  %v169_v37 = vmul.f32 0.2, %v105_v29 }
   0xe   :  { %v198_v38 = vsel %vm134_vm0, %v102_v26, %v166_v34  ;;  %v199_v39 = vsel %vm135_vm1, %v103_v27, %v167_v35  ;;  %vm138_vm4 = vcmp.ge.f32.partialorder %v106_v30, 0.0  ;;  %vm139_vm5 = vcmp.ge.f32.partialorder %v107_v31, 0.0  ;;  %v32_v27 = vld [vmem:[%s623_s0 + $0x90] sm:$0xff] }
   0xf   :  { %v362_v41 = vpack.c.bf16 %v199_v39, %v198_v38  ;;  %v200_v42 = vsel %vm136_vm2, %v104_v28, %v168_v36  ;;  %v201_v43 = vsel %vm137_vm3, %v105_v29, %v169_v37  ;;  %v170_v44 = vmul.f32 0.2, %v106_v30  ;;  %v33_v28 = vld [vmem:[%s623_s0 + $0x98] sm:$0xff] }
  0x10   :  { %v363_v48 = vpack.c.bf16 %v201_v43, %v200_v42  ;;  %v171_v49 = vmul.f32 0.2, %v107_v31  ;;  %vm140_vm6 = vcmp.ge.f32.partialorder %v108_v32, 0.0  ;;  %vm141_vm7 = vcmp.ge.f32.partialorder %v109_v33, 0.0 }
  0x11   :  { %326 = vst [vmem:[%s624_s3] sm:$0xff] %v362_v41  ;;  %v202_v50 = vsel %vm138_vm4, %v106_v30, %v170_v44  ;;  %v172_v51 = vmul.f32 0.2, %v108_v32  ;;  %v173_v52 = vmul.f32 0.2, %v109_v33  ;;  %v66_v53 = vmul.f32 %v419_v11, %v22_v40  ;;  %v34_v40 = vld [vmem:[%s623_s0 + $0xa0] sm:$0xff]  ;;  %v35_v41 = vld [vmem:[%s623_s0 + $0xa8] sm:$0xff] }
  0x12   :  { %327 = vst [vmem:[%s624_s3 + $0x8] sm:$0xff] %v363_v48  ;;  %v203_v54 = vsel %vm139_vm5, %v107_v31, %v171_v49  ;;  %v67_v55 = vmul.f32 %v421_v12, %v23_v45  ;;  %v68_v56 = vmul.f32 %v419_v11, %v24_v46  ;;  %v69_v57 = vmul.f32 %v421_v12, %v25_v47 }
  0x13   :  { %v364_v60 = vpack.c.bf16 %v203_v54, %v202_v50  ;;  %v204_v61 = vsel %vm140_vm6, %v108_v32, %v172_v51  ;;  %v205_v62 = vsel %vm141_vm7, %v109_v33, %v173_v52  ;;  %v110_v63 = vadd.f32 %v423_v13, %v66_v53  ;;  %v36_v54 = vld [vmem:[%s623_s0 + $0xb0] sm:$0xff] }
  0x14   :  { %v365_v0 = vpack.c.bf16 %v205_v62, %v204_v61  ;;  %v111_v1 = vadd.f32 %v425_v14, %v67_v55  ;;  %v112_v2 = vadd.f32 %v423_v13, %v68_v56  ;;  %v113_v3 = vadd.f32 %v425_v14, %v69_v57  ;;  %v37_v55 = vld [vmem:[%s623_s0 + $0xb8] sm:$0xff] }
  0x15   :  { %328 = vst [vmem:[%s624_s3 + $0x10] sm:$0xff] %v364_v60  ;;  %vm142_vm8 = vcmp.ge.f32.partialorder %v110_v63, 0.0  ;;  %v174_v4 = vmul.f32 0.2, %v110_v63  ;;  %v70_v5 = vmul.f32 %v419_v11, %v26_v58  ;;  %v71_v6 = vmul.f32 %v421_v12, %v27_v59 }
  0x16   :  { %329 = vst [vmem:[%s624_s3 + $0x18] sm:$0xff] %v365_v0  ;;  %vm143_vm9 = vcmp.ge.f32.partialorder %v111_v1, 0.0  ;;  %v175_v9 = vmul.f32 0.2, %v111_v1  ;;  %vm144_vm10 = vcmp.ge.f32.partialorder %v112_v2, 0.0  ;;  %vm145_vm11 = vcmp.ge.f32.partialorder %v113_v3, 0.0 }
  0x17   :  { %v206_v10 = vsel %vm142_vm8, %v110_v63, %v174_v4  ;;  %v176_v15 = vmul.f32 0.2, %v112_v2  ;;  %v177_v16 = vmul.f32 0.2, %v113_v3  ;;  %v114_v17 = vadd.f32 %v423_v13, %v70_v5 }
  0x18   :  { %v207_v18 = vsel %vm143_vm9, %v111_v1, %v175_v9  ;;  %v115_v19 = vadd.f32 %v425_v14, %v71_v6  ;;  %v72_v20 = vmul.f32 %v419_v11, %v28_v7  ;;  %v73_v21 = vmul.f32 %v421_v12, %v29_v8  ;;  %v40_v7 = vld [vmem:[%s623_s0 + $0xd0] sm:$0xff]  ;;  %v41_v8 = vld [vmem:[%s623_s0 + $0xd8] sm:$0xff] }
  0x19   :  { %v366_v24 = vpack.c.bf16 %v207_v18, %v206_v10  ;;  %v208_v25 = vsel %vm144_vm10, %v112_v2, %v176_v15  ;;  %v209_v26 = vsel %vm145_vm11, %v113_v3, %v177_v16  ;;  %vm146_vm12 = vcmp.ge.f32.partialorder %v114_v17, 0.0  ;;  %v38_v2 = vld [vmem:[%s623_s0 + $0xc0] sm:$0xff]  ;;  %v39_v3 = vld [vmem:[%s623_s0 + $0xc8] sm:$0xff] }
  0x1a   :  { %v367_v29 = vpack.c.bf16 %v209_v26, %v208_v25  ;;  %vm147_vm13 = vcmp.ge.f32.partialorder %v115_v19, 0.0  ;;  %v178_v30 = vmul.f32 0.2, %v114_v17  ;;  %v179_v31 = vmul.f32 0.2, %v115_v19  ;;  %v43_v25 = vld [vmem:[%s623_s0 + $0xe8] sm:$0xff] }
  0x1b   :  { %330 = vst [vmem:[%s624_s3 + $0x20] sm:$0xff] %v366_v24  ;;  %v116_v32 = vadd.f32 %v423_v13, %v72_v20  ;;  %v117_v33 = vadd.f32 %v425_v14, %v73_v21  ;;  %v74_v34 = vmul.f32 %v419_v11, %v30_v22  ;;  %v75_v35 = vmul.f32 %v421_v12, %v31_v23  ;;  %v42_v24 = vld [vmem:[%s623_s0 + $0xe0] sm:$0xff] }
  0x1c   :  { %331 = vst [vmem:[%s624_s3 + $0x28] sm:$0xff] %v367_v29  ;;  %v210_v36 = vsel %vm146_vm12, %v114_v17, %v178_v30  ;;  %v211_v37 = vsel %vm147_vm13, %v115_v19, %v179_v31  ;;  %v76_v38 = vmul.f32 %v419_v11, %v32_v27  ;;  %v77_v39 = vmul.f32 %v421_v12, %v33_v28 }
  0x1d   :  { %v368_v42 = vpack.c.bf16 %v211_v37, %v210_v36  ;;  %vm148_vm14 = vcmp.ge.f32.partialorder %v116_v32, 0.0  ;;  %vm149_vm15 = vcmp.ge.f32.partialorder %v117_v33, 0.0  ;;  %v180_v43 = vmul.f32 0.2, %v116_v32 }
  0x1e   :  { %v181_v44 = vmul.f32 0.2, %v117_v33  ;;  %v118_v45 = vadd.f32 %v423_v13, %v74_v34  ;;  %v119_v46 = vadd.f32 %v425_v14, %v75_v35  ;;  %v120_v47 = vadd.f32 %v423_v13, %v76_v38  ;;  %v44_v38 = vld [vmem:[%s623_s0 + $0xf0] sm:$0xff] }
  0x1f   :  { %332 = vst [vmem:[%s624_s3 + $0x30] sm:$0xff] %v368_v42  ;;  %v212_v48 = vsel %vm148_vm14, %v116_v32, %v180_v43  ;;  %v121_v49 = vadd.f32 %v425_v14, %v77_v39  ;;  %v78_v50 = vmul.f32 %v419_v11, %v34_v40  ;;  %v79_v51 = vmul.f32 %v421_v12, %v35_v41  ;;  %v45_v39 = vld [vmem:[%s623_s0 + $0xf8] sm:$0xff] }
  0x20   :  { %v213_v52 = vsel %vm149_vm15, %v117_v33, %v181_v44  ;;  %vm150_vm0 = vcmp.ge.f32.partialorder %v118_v45, 0.0  ;;  %vm151_vm1 = vcmp.ge.f32.partialorder %v119_v46, 0.0  ;;  %v182_v53 = vmul.f32 0.2, %v118_v45 }
  0x21   :  { %v369_v56 = vpack.c.bf16 %v213_v52, %v212_v48  ;;  %v183_v57 = vmul.f32 0.2, %v119_v46  ;;  %vm152_vm2 = vcmp.ge.f32.partialorder %v120_v47, 0.0  ;;  %vm153_vm3 = vcmp.ge.f32.partialorder %v121_v49, 0.0 }
  0x22   :  { %v214_v58 = vsel %vm150_vm0, %v118_v45, %v182_v53  ;;  %v184_v59 = vmul.f32 0.2, %v120_v47  ;;  %v185_v60 = vmul.f32 0.2, %v121_v49  ;;  %v122_v61 = vadd.f32 %v423_v13, %v78_v50 }
  0x23   :  { %333 = vst [vmem:[%s624_s3 + $0x38] sm:$0xff] %v369_v56  ;;  %v215_v62 = vsel %vm151_vm1, %v119_v46, %v183_v57  ;;  %v123_v63 = vadd.f32 %v425_v14, %v79_v51  ;;  %v80_v0 = vmul.f32 %v419_v11, %v36_v54  ;;  %v81_v1 = vmul.f32 %v421_v12, %v37_v55 }
  0x24   :  { %v370_v4 = vpack.c.bf16 %v215_v62, %v214_v58  ;;  %v216_v5 = vsel %vm152_vm2, %v120_v47, %v184_v59  ;;  %v217_v6 = vsel %vm153_vm3, %v121_v49, %v185_v60  ;;  %vm154_vm4 = vcmp.ge.f32.partialorder %v122_v61, 0.0 }
  0x25   :  { %v371_v9 = vpack.c.bf16 %v217_v6, %v216_v5  ;;  %vm155_vm5 = vcmp.ge.f32.partialorder %v123_v63, 0.0  ;;  %v186_v10 = vmul.f32 0.2, %v122_v61  ;;  %v187_v15 = vmul.f32 0.2, %v123_v63 }
  0x26   :  { %334 = vst [vmem:[%s624_s3 + $0x40] sm:$0xff] %v370_v4  ;;  %v124_v16 = vadd.f32 %v423_v13, %v80_v0  ;;  %v125_v17 = vadd.f32 %v425_v14, %v81_v1  ;;  %v82_v18 = vmul.f32 %v419_v11, %v38_v2  ;;  %v83_v19 = vmul.f32 %v421_v12, %v39_v3 }
  0x27   :  { %335 = vst [vmem:[%s624_s3 + $0x48] sm:$0xff] %v371_v9  ;;  %v218_v20 = vsel %vm154_vm4, %v122_v61, %v186_v10  ;;  %v219_v21 = vsel %vm155_vm5, %v123_v63, %v187_v15  ;;  %v84_v22 = vmul.f32 %v419_v11, %v40_v7  ;;  %v85_v23 = vmul.f32 %v421_v12, %v41_v8 }
  0x28   :  { %v372_v26 = vpack.c.bf16 %v219_v21, %v218_v20  ;;  %vm156_vm6 = vcmp.ge.f32.partialorder %v124_v16, 0.0  ;;  %vm157_vm7 = vcmp.ge.f32.partialorder %v125_v17, 0.0  ;;  %v188_v27 = vmul.f32 0.2, %v124_v16 }
  0x29   :  { %v189_v28 = vmul.f32 0.2, %v125_v17  ;;  %v126_v29 = vadd.f32 %v423_v13, %v82_v18  ;;  %v127_v30 = vadd.f32 %v425_v14, %v83_v19  ;;  %v128_v31 = vadd.f32 %v423_v13, %v84_v22 }
  0x2a   :  { %336 = vst [vmem:[%s624_s3 + $0x50] sm:$0xff] %v372_v26  ;;  %v220_v32 = vsel %vm156_vm6, %v124_v16, %v188_v27  ;;  %v129_v33 = vadd.f32 %v425_v14, %v85_v23  ;;  %v86_v34 = vmul.f32 %v419_v11, %v42_v24  ;;  %v87_v35 = vmul.f32 %v421_v12, %v43_v25 }
  0x2b   :  { %v221_v36 = vsel %vm157_vm7, %v125_v17, %v189_v28  ;;  %vm158_vm8 = vcmp.ge.f32.partialorder %v126_v29, 0.0  ;;  %vm159_vm9 = vcmp.ge.f32.partialorder %v127_v30, 0.0  ;;  %v190_v37 = vmul.f32 0.2, %v126_v29 }
  0x2c   :  { %v373_v40 = vpack.c.bf16 %v221_v36, %v220_v32  ;;  %v191_v41 = vmul.f32 0.2, %v127_v30  ;;  %vm160_vm10 = vcmp.ge.f32.partialorder %v128_v31, 0.0  ;;  %vm161_vm11 = vcmp.ge.f32.partialorder %v129_v33, 0.0 }
  0x2d   :  { %v222_v42 = vsel %vm158_vm8, %v126_v29, %v190_v37  ;;  %v192_v43 = vmul.f32 0.2, %v128_v31  ;;  %v193_v44 = vmul.f32 0.2, %v129_v33  ;;  %v130_v45 = vadd.f32 %v423_v13, %v86_v34 }
  0x2e   :  { %337 = vst [vmem:[%s624_s3 + $0x58] sm:$0xff] %v373_v40  ;;  %v223_v46 = vsel %vm159_vm9, %v127_v30, %v191_v41  ;;  %v131_v47 = vadd.f32 %v425_v14, %v87_v35  ;;  %v88_v48 = vmul.f32 %v419_v11, %v44_v38  ;;  %v89_v49 = vmul.f32 %v421_v12, %v45_v39 }
  0x2f   :  { %v374_v50 = vpack.c.bf16 %v223_v46, %v222_v42  ;;  %v224_v51 = vsel %vm160_vm10, %v128_v31, %v192_v43  ;;  %v225_v52 = vsel %vm161_vm11, %v129_v33, %v193_v44  ;;  %vm162_vm12 = vcmp.ge.f32.partialorder %v130_v45, 0.0 }
  0x30   :  { %v375_v53 = vpack.c.bf16 %v225_v52, %v224_v51  ;;  %vm163_vm13 = vcmp.ge.f32.partialorder %v131_v47, 0.0  ;;  %v194_v54 = vmul.f32 0.2, %v130_v45  ;;  %v195_v55 = vmul.f32 0.2, %v131_v47 }
  0x31   :  { %338 = vst [vmem:[%s624_s3 + $0x60] sm:$0xff] %v374_v50  ;;  %v132_v56 = vadd.f32 %v423_v13, %v88_v48  ;;  %v133_v57 = vadd.f32 %v425_v14, %v89_v49 }
  0x32   :  { %339 = vst [vmem:[%s624_s3 + $0x68] sm:$0xff] %v375_v53  ;;  %v226_v11 = vsel %vm162_vm12, %v130_v45, %v194_v54  ;;  %v227_v12 = vsel %vm163_vm13, %v131_v47, %v195_v55 }
  0x33   :  { %v376_v58 = vpack.c.bf16 %v227_v12, %v226_v11  ;;  %vm164_vm14 = vcmp.ge.f32.partialorder %v132_v56, 0.0  ;;  %vm165_vm15 = vcmp.ge.f32.partialorder %v133_v57, 0.0  ;;  %v196_v59 = vmul.f32 0.2, %v132_v56 }
  0x34   :  { %v197_v60 = vmul.f32 0.2, %v133_v57 }
  0x35   :  { %340 = vst [vmem:[%s624_s3 + $0x70] sm:$0xff] %v376_v58  ;;  %v228_v61 = vsel %vm164_vm14, %v132_v56, %v196_v59 }
  0x36   :  { %v229_v62 = vsel %vm165_vm15, %v133_v57, %v197_v60 }
  0x37   :  { %v377_v13 = vpack.c.bf16 %v229_v62, %v228_v61 }
  0x39   :  { %341 = vst [vmem:[%s624_s3 + $0x78] sm:$0xff] %v377_v13 }

// kernel: discriminator_forward.13
= control target key start
LH: loop header
LB: loop body
LE: loop exit
PB: predicated region body
PF: predicated region fallthrough
CT: control target
= control target key end

     0   :  { %v35_v0 = vlaneseq  ;;  %s425_s0 = inlined_call_operand.vmem [shape: f32[2,16,512], index: 0, kind: input, shape index: {}]   ;;  %s426_s1 = inlined_call_operand.vmem [shape: f32[1,1,512], index: 1, kind: input, shape index: {}]   ;;  %s427_s2 = inlined_call_operand.vmem [shape: f32[1,1,512], index: 2, kind: input, shape index: {}]   ;;  %s428_s3 = inlined_call_operand.vmem [shape: f32[1,16,512], index: 3, kind: input, shape index: {}]   ;;  %s429_s4 = inlined_call_operand.vmem [shape: f32[2,1], index: 4, kind: output, shape index: {}]  }
   0x1   :  { %v25_v2 = vld [vmem:[%s425_s0 + $0x40] sm:$0xff]  ;;  %v26_v3 = vld [vmem:[%s425_s0 + $0x48] sm:$0xff]  ;;  %v27_v11 = vld [vmem:[%s425_s0 + $0x50] sm:$0xff] }
   0x2   :  { %v275_v1 = vshrl.u32 %v35_v0, 7  ;;  %v33_v4 = vld [vmem:[%s426_s1] sm:$0xf]  ;;  %v286_v5 = vand.u32 127, %v35_v0  ;;  %v28_v12 = vld [vmem:[%s425_s0 + $0x58] sm:$0xff]  ;;  %v18_v19 = vld [vmem:[%s425_s0 + $0x8] sm:$0xff] }
   0x3   :  { %v71_v10 = vld [vmem:[%s427_s2] sm:$0xf]  ;;  %v19_v20 = vld [vmem:[%s425_s0 + $0x10] sm:$0xff]  ;;  %v20_v21 = vld [vmem:[%s425_s0 + $0x18] sm:$0xff] }
   0x4   :  { %v37_v6 = vsub.s32 0, %v275_v1  ;;  %v41_v7 = vsub.s32 1, %v275_v1  ;;  %v45_v8 = vsub.s32 2, %v275_v1  ;;  %v49_v9 = vsub.s32 3, %v275_v1  ;;  %v17_v13 = vld [vmem:[%s425_s0] sm:$0xff]  ;;  %v158_v44 = vld [vmem:[%s428_s3 + $0x8] sm:$0xff] }
   0x5   :  { %v306_v14 = vsub.s32 %v286_v5, %v275_v1  ;;  %v29_v38 = vld [vmem:[%s425_s0 + $0x60] sm:$0xff]  ;;  %v159_v45 = vld [vmem:[%s428_s3 + $0x10] sm:$0xff]  ;;  %v160_v51 = vld [vmem:[%s428_s3 + $0x18] sm:$0xff] }
   0x6   :  { %v308_v15 = vrot.slane %v33_v4, %v37_v6  ;;  %v310_v16 = vrot.slane %v33_v4, %v41_v7  ;;  %v312_v17 = vrot.slane %v33_v4, %v45_v8  ;;  %v314_v18 = vrot.slane %v33_v4, %v49_v9  ;;  %v157_v39 = vld [vmem:[%s428_s3] sm:$0xff]  ;;  %v30_v55 = vld [vmem:[%s425_s0 + $0x68] sm:$0xff]  ;;  %v31_v56 = vld [vmem:[%s425_s0 + $0x70] sm:$0xff] }
   0x7   :  { %v325_v22 = vrot.slane %v71_v10, %v37_v6  ;;  %v327_v23 = vrot.slane %v71_v10, %v41_v7  ;;  %v329_v24 = vrot.slane %v71_v10, %v45_v8  ;;  %v331_v25 = vrot.slane %v71_v10, %v49_v9  ;;  %v32_v61 = vld [vmem:[%s425_s0 + $0x78] sm:$0xff] }
   0x8   :  { %v63_v26 = vmul.f32 %v308_v15, %v25_v2  ;;  %v64_v27 = vmul.f32 %v310_v16, %v26_v3  ;;  %v65_v28 = vmul.f32 %v312_v17, %v27_v11  ;;  %v66_v29 = vmul.f32 %v314_v18, %v28_v12 }
   0x9   :  { %v55_v30 = vmul.f32 %v308_v15, %v17_v13  ;;  %v56_v31 = vmul.f32 %v310_v16, %v18_v19  ;;  %v57_v32 = vmul.f32 %v312_v17, %v19_v20  ;;  %v58_v33 = vmul.f32 %v314_v18, %v20_v21 }
   0xa   :  { %v101_v34 = vadd.f32 %v325_v22, %v63_v26  ;;  %v102_v35 = vadd.f32 %v327_v23, %v64_v27  ;;  %v103_v36 = vadd.f32 %v329_v24, %v65_v28  ;;  %v104_v37 = vadd.f32 %v331_v25, %v66_v29  ;;  %v161_v29 = vld [vmem:[%s428_s3 + $0x20] sm:$0xff] }
   0xb   :  { %v93_v40 = vadd.f32 %v325_v22, %v55_v30  ;;  %v94_v41 = vadd.f32 %v327_v23, %v56_v31  ;;  %v95_v42 = vadd.f32 %v329_v24, %v57_v32  ;;  %v96_v43 = vadd.f32 %v331_v25, %v58_v33 }
   0xc   :  { %vm117_vm0 = vcmp.ge.f32.partialorder %v101_v34, 0.0  ;;  %vm118_vm1 = vcmp.ge.f32.partialorder %v102_v35, 0.0  ;;  %vm119_vm2 = vcmp.ge.f32.partialorder %v103_v36, 0.0  ;;  %vm120_vm3 = vcmp.ge.f32.partialorder %v104_v37, 0.0 }
   0xd   :  { %v133_v46 = vmul.f32 0.2, %v101_v34  ;;  %v134_v47 = vmul.f32 0.2, %v102_v35  ;;  %v135_v48 = vmul.f32 0.2, %v103_v36  ;;  %v67_v49 = vmul.f32 %v308_v15, %v29_v38 }
   0xe   :  { %v136_v50 = vmul.f32 0.2, %v104_v37  ;;  %vm109_vm4 = vcmp.ge.f32.partialorder %v93_v40, 0.0  ;;  %vm110_vm5 = vcmp.ge.f32.partialorder %v94_v41, 0.0  ;;  %vm111_vm6 = vcmp.ge.f32.partialorder %v95_v42, 0.0 }
   0xf   :  { %v149_v52 = vsel %vm117_vm0, %v101_v34, %v133_v46  ;;  %v150_v53 = vsel %vm118_vm1, %v102_v35, %v134_v47  ;;  %v151_v54 = vsel %vm119_vm2, %v103_v36, %v135_v48  ;;  %vm112_vm7 = vcmp.ge.f32.partialorder %v96_v43, 0.0  ;;  %v162_v34 = vld [vmem:[%s428_s3 + $0x28] sm:$0xff]  ;;  %v163_v35 = vld [vmem:[%s428_s3 + $0x30] sm:$0xff]  ;;  %v21_v36 = vld [vmem:[%s425_s0 + $0x20] sm:$0xff] }
  0x10   :  { %v152_v57 = vsel %vm120_vm3, %v104_v37, %v136_v50  ;;  %v173_v58 = vmul.f32 %v157_v39, %v149_v52  ;;  %v174_v59 = vmul.f32 %v158_v44, %v150_v53  ;;  %v175_v60 = vmul.f32 %v159_v45, %v151_v54  ;;  %v164_v46 = vld [vmem:[%s428_s3 + $0x38] sm:$0xff] }
  0x11   :  { %v176_v62 = vmul.f32 %v160_v51, %v152_v57  ;;  %v125_v63 = vmul.f32 0.2, %v93_v40  ;;  %v126_v0 = vmul.f32 0.2, %v94_v41  ;;  %v127_v2 = vmul.f32 0.2, %v95_v42 }
  0x12   :  { %v191_v3 = vadd.f32 %v174_v59, %v173_v58  ;;  %v128_v4 = vmul.f32 0.2, %v96_v43  ;;  %v68_v6 = vmul.f32 %v310_v16, %v30_v55  ;;  %v69_v7 = vmul.f32 %v312_v17, %v31_v56  ;;  %v24_v47 = vld [vmem:[%s425_s0 + $0x38] sm:$0xff] }
  0x13   :  { %v141_v8 = vsel %vm109_vm4, %v93_v40, %v125_v63  ;;  %v142_v9 = vsel %vm110_vm5, %v94_v41, %v126_v0  ;;  %v143_v10 = vsel %vm111_vm6, %v95_v42, %v127_v2  ;;  %v70_v11 = vmul.f32 %v314_v18, %v32_v61  ;;  %v22_v41 = vld [vmem:[%s425_s0 + $0x28] sm:$0xff]  ;;  %v23_v42 = vld [vmem:[%s425_s0 + $0x30] sm:$0xff] }
  0x14   :  { %v192_v12 = vadd.f32 %v191_v3, %v175_v60  ;;  %v144_v13 = vsel %vm112_vm7, %v96_v43, %v128_v4  ;;  %v165_v19 = vmul.f32 %v157_v39, %v141_v8  ;;  %v166_v20 = vmul.f32 %v158_v44, %v142_v9 }
  0x15   :  { %v167_v21 = vmul.f32 %v159_v45, %v143_v10  ;;  %v168_v26 = vmul.f32 %v160_v51, %v144_v13  ;;  %v105_v27 = vadd.f32 %v325_v22, %v67_v49  ;;  %v106_v28 = vadd.f32 %v327_v23, %v68_v6 }
  0x16   :  { %v193_v30 = vadd.f32 %v192_v12, %v176_v62  ;;  %v181_v31 = vadd.f32 %v166_v20, %v165_v19  ;;  %v107_v32 = vadd.f32 %v329_v24, %v69_v7  ;;  %v108_v33 = vadd.f32 %v331_v25, %v70_v11 }
  0x17   :  { %vm121_vm8 = vcmp.ge.f32.partialorder %v105_v27, 0.0  ;;  %vm122_vm9 = vcmp.ge.f32.partialorder %v106_v28, 0.0  ;;  %v137_v37 = vmul.f32 0.2, %v105_v27  ;;  %v138_v38 = vmul.f32 0.2, %v106_v28 }
  0x18   :  { %194 = vadd.xlane.f32.xlu1 %v193_v30  ;;  %v182_v39 = vadd.f32 %v181_v31, %v167_v21  ;;  %vm123_vm10 = vcmp.ge.f32.partialorder %v107_v32, 0.0  ;;  %vm124_vm11 = vcmp.ge.f32.partialorder %v108_v33, 0.0  ;;  %v139_v40 = vmul.f32 0.2, %v107_v32 }
  0x19   :  { %v140_v43 = vmul.f32 0.2, %v108_v33  ;;  %v153_v44 = vsel %vm121_vm8, %v105_v27, %v137_v37  ;;  %v154_v45 = vsel %vm122_vm9, %v106_v28, %v138_v38  ;;  %v59_v48 = vmul.f32 %v308_v15, %v21_v36 }
  0x1a   :  { %v183_v49 = vadd.f32 %v182_v39, %v168_v26  ;;  %v155_v50 = vsel %vm123_vm10, %v107_v32, %v139_v40  ;;  %v177_v51 = vmul.f32 %v161_v29, %v153_v44  ;;  %v178_v52 = vmul.f32 %v162_v34, %v154_v45 }
  0x1b   :  { %v156_v53 = vsel %vm124_vm11, %v108_v33, %v140_v43  ;;  %v179_v54 = vmul.f32 %v163_v35, %v155_v50  ;;  %v60_v55 = vmul.f32 %v310_v16, %v22_v41  ;;  %v61_v56 = vmul.f32 %v312_v17, %v23_v42 }
  0x1c   :  { %184 = vadd.xlane.f32.xlu0 %v183_v49  ;;  %v180_v57 = vmul.f32 %v164_v46, %v156_v53  ;;  %v196_v58 = vadd.f32 %v178_v52, %v177_v51  ;;  %v62_v59 = vmul.f32 %v314_v18, %v24_v47  ;;  %v97_v60 = vadd.f32 %v325_v22, %v59_v48 }
  0x1d   :  { %v98_v61 = vadd.f32 %v327_v23, %v60_v55  ;;  %v99_v15 = vadd.f32 %v329_v24, %v61_v56  ;;  %v211_v11 = vadd.s32 4294967288, %v286_v5  ;;  %vm216_vm0 = vcmask 130112  }
  0x1e   :  { %v197_v62 = vadd.f32 %v196_v58, %v179_v54  ;;  %v100_v63 = vadd.f32 %v331_v25, %v62_v59  ;;  %vm113_vm12 = vcmp.ge.f32.partialorder %v97_v60, 0.0  ;;  %v129_v0 = vmul.f32 0.2, %v97_v60 }
  0x1f   :  { %vm114_vm13 = vcmp.ge.f32.partialorder %v98_v61, 0.0  ;;  %vm115_vm14 = vcmp.ge.f32.partialorder %v99_v15, 0.0  ;;  %v130_v16 = vmul.f32 0.2, %v98_v61  ;;  %v131_v17 = vmul.f32 0.2, %v99_v15 }
  0x20   :  { %v198_v2 = vadd.f32 %v197_v62, %v180_v57  ;;  %vm116_vm15 = vcmp.ge.f32.partialorder %v100_v63, 0.0  ;;  %v132_v3 = vmul.f32 0.2, %v100_v63  ;;  %v145_v4 = vsel %vm113_vm12, %v97_v60, %v129_v0 }
  0x21   :  { %v146_v18 = vsel %vm114_vm13, %v98_v61, %v130_v16  ;;  %v147_v6 = vsel %vm115_vm14, %v99_v15, %v131_v17  ;;  %v169_v22 = vmul.f32 %v161_v29, %v145_v4  ;;  %v214_v12 = vsub.s32 %v211_v11, %v275_v1 }
  0x22   :  { %199 = vadd.xlane.f32.xlu1 %v198_v2  ;;  %v148_v23 = vsel %vm116_vm15, %v100_v63, %v132_v3  ;;  %v170_v7 = vmul.f32 %v162_v34, %v146_v18  ;;  %v171_v24 = vmul.f32 %v163_v35, %v147_v6  ;;  %vm227_vm1 = vcmask 1041409  }
  0x23   :  { %v172_v8 = vmul.f32 %v164_v46, %v148_v23  ;;  %vm230_vm2 = vcmask 123904   ;;  %vm240_vm3 = vcmask 1024  }
  0x24   :  { %v186_v9 = vadd.f32 %v170_v7, %v169_v22 }
  0x26   :  { %v187_v25 = vadd.f32 %v186_v9, %v171_v24 }
  0x28   :  { %v188_v10 = vadd.f32 %v187_v25, %v172_v8 }
  0x2a   :  { %189 = vadd.xlane.f32.xlu0 %v188_v10 }
  0xa5   :  { %v195_v13 = vpop.xlane.xlu1 %194 }
  0xa6   :  { %v221_v20 = vrot.slane %v195_v13, %v306_v14 }
  0xa9   :  { %v185_v26 = vpop.xlane.xlu0 %184 }
  0xaa   :  { %v210_v29 = vrot.slane %v185_v26, %v306_v14 }
  0xaf   :  { %v200_v19 = vpop.xlane.xlu1 %199 }
  0xb0   :  { %v225_v21 = vrot.slane %v200_v19, %v214_v12 }
  0xb2   :  { %v226_v27 = vsel %vm216_vm0, %v225_v21, %v221_v20 }
  0xb7   :  { %v190_v28 = vpop.xlane.xlu0 %189 }
  0xb8   :  { %v215_v30 = vrot.slane %v190_v28, %v214_v12 }
  0xba   :  { %v217_v31 = vsel %vm216_vm0, %v215_v30, %v210_v29 }
  0xbb   :  { %v228_v32 = vsel %vm227_vm1, %v226_v27, %v217_v31 }
  0xbc   :  { %v231_v33 = vsel %vm230_vm2, %v228_v32, 0.0 }
  0xbd   :  { %232 = vadd.xlane.f32.xlu0 %v231_v33 }
 0x14a   :  { %v233_v5 = vpop.xlane.xlu0 %232 }
 0x14b   :  { %v234_v1 = vsub.f32 0.0, %v233_v5 }
 0x14d   :  { %v235_v34 = vmul.f32 1.442695, %v234_v1 }
 0x14f   :  { %246 = vpow2.f32 %v235_v34 }
 0x159   :  { %v247_v35 = vpop.eup %246 }
 0x15a   :  { %v237_v36 = vadd.f32 1.0, %v247_v35 }
 0x15c   :  { %248 = vrcp.f32 %v237_v36 }
 0x166   :  { %v249_v37 = vpop.eup %248 }
 0x167   :  { %241 = vst.msk [vmem:[%s429_s4] sm:$0x3] %vm240_vm3, %v249_v37 }

// kernel: discriminator_forward.12
= control target key start
LH: loop header
LB: loop body
LE: loop exit
PB: predicated region body
PF: predicated region fallthrough
CT: control target
= control target key end

     0   :  { %s14795_s1 = inlined_call_operand.vmem [shape: bf16[4096,512], index: 1, kind: input, shape index: {}]   ;;  %s14796_s0 = inlined_call_operand.vmem [shape: bf16[32,4096], index: 0, kind: input, shape index: {}]   ;;  %s14797_s3 = inlined_call_operand.vmem [shape: f32[1,512], index: 3, kind: output, shape index: {1}]   ;;  %s14798_s4 = inlined_call_operand.vmem [shape: f32[1,512], index: 4, kind: output, shape index: {2}]   ;;  %s14799_s2 = inlined_call_operand.vmem [shape: f32[32,512], index: 2, kind: output, shape index: {0}]  }
   0x1   :  { %v9762_v0 = vld [vmem:[%s14795_s1 + $0x4] ss:$16 sps:$4 sm:$0xff]   ;;  %v9764_v1 = vld [vmem:[%s14795_s1 + $0xc] ss:$16 sps:$4 sm:$0xff]   ;;  %v9766_v2 = vld [vmem:[%s14795_s1] ss:$16 sps:$4 sm:$0xff]  }
   0x2   :  { %6542 = vmatprep.subr.bf16.mxu0 %v9762_v0  ;;  %v9767_v3 = vld [vmem:[%s14795_s1 + $0x8] ss:$16 sps:$4 sm:$0xff]   ;;  %7390 = vmatprep.subr.bf16.mxu1 %v9764_v1  ;;  %v9768_v4 = vld [vmem:[%s14795_s1 + $0x24] ss:$16 sps:$4 sm:$0xff]   ;;  %v9770_v5 = vld [vmem:[%s14795_s1 + $0x2c] ss:$16 sps:$4 sm:$0xff]  }
   0x3   :  { %6543 = vmatpush1.bf16.msra.mxu0 %v9766_v2  ;;  %7391 = vmatpush1.bf16.msra.mxu1 %v9767_v3  ;;  %v9772_v6 = vld [vmem:[%s14795_s1 + $0x20] ss:$16 sps:$4 sm:$0xff]   ;;  %v9773_v7 = vld [vmem:[%s14795_s1 + $0x28] ss:$16 sps:$4 sm:$0xff]   ;;  %v9774_v8 = vld [vmem:[%s14795_s1 + $0x44] ss:$16 sps:$4 sm:$0xff]  }
   0x4   :  { %6544 = vmatprep.subr.bf16.mxu0 %v9768_v4  ;;  %7392 = vmatprep.subr.bf16.mxu1 %v9770_v5  ;;  %v9776_v9 = vld [vmem:[%s14795_s1 + $0x4c] ss:$16 sps:$4 sm:$0xff]   ;;  %v9778_v10 = vld [vmem:[%s14795_s1 + $0x40] ss:$16 sps:$4 sm:$0xff]   ;;  %v9779_v11 = vld [vmem:[%s14795_s1 + $0x48] ss:$16 sps:$4 sm:$0xff]  }
   0x5   :  { %v9780_v12 = vld [vmem:[%s14795_s1 + $0x64] ss:$16 sps:$4 sm:$0xff]   ;;  %v9782_v13 = vld [vmem:[%s14795_s1 + $0x6c] ss:$16 sps:$4 sm:$0xff]   ;;  %v9784_v14 = vld [vmem:[%s14795_s1 + $0x60] ss:$16 sps:$4 sm:$0xff]  }
   0x6   :  { %v9785_v15 = vld [vmem:[%s14795_s1 + $0x68] ss:$16 sps:$4 sm:$0xff]   ;;  %v9786_v16 = vld [vmem:[%s14795_s1 + $0x84] ss:$16 sps:$4 sm:$0xff]   ;;  %v9788_v17 = vld [vmem:[%s14795_s1 + $0x8c] ss:$16 sps:$4 sm:$0xff]  }
   0x7   :  { %6545 = vmatpush1.bf16.msra.mxu0 %v9772_v6  ;;  %7393 = vmatpush1.bf16.msra.mxu1 %v9773_v7  ;;  %v9790_v18 = vld [vmem:[%s14795_s1 + $0x80] ss:$16 sps:$4 sm:$0xff]   ;;  %v9791_v19 = vld [vmem:[%s14795_s1 + $0x88] ss:$16 sps:$4 sm:$0xff]   ;;  %v9792_v20 = vld [vmem:[%s14795_s1 + $0xa4] ss:$16 sps:$4 sm:$0xff]  }
   0x8   :  { %6546 = vmatprep.subr.bf16.mxu0 %v9774_v8  ;;  %7394 = vmatprep.subr.bf16.mxu1 %v9776_v9  ;;  %v9794_v21 = vld [vmem:[%s14795_s1 + $0xac] ss:$16 sps:$4 sm:$0xff]   ;;  %v9796_v22 = vld [vmem:[%s14795_s1 + $0xa0] ss:$16 sps:$4 sm:$0xff]   ;;  %v9797_v23 = vld [vmem:[%s14795_s1 + $0xa8] ss:$16 sps:$4 sm:$0xff]  }
   0x9   :  { %v9798_v24 = vld [vmem:[%s14795_s1 + $0xc4] ss:$16 sps:$4 sm:$0xff]   ;;  %v9800_v25 = vld [vmem:[%s14795_s1 + $0xcc] ss:$16 sps:$4 sm:$0xff]   ;;  %v9802_v26 = vld [vmem:[%s14795_s1 + $0xc0] ss:$16 sps:$4 sm:$0xff]  }
   0xa   :  { %v9803_v27 = vld [vmem:[%s14795_s1 + $0xc8] ss:$16 sps:$4 sm:$0xff]   ;;  %v9804_v28 = vld [vmem:[%s14795_s1 + $0xe4] ss:$16 sps:$4 sm:$0xff]   ;;  %v9806_v29 = vld [vmem:[%s14795_s1 + $0xec] ss:$16 sps:$4 sm:$0xff]  }
   0xb   :  { %6547 = vmatpush1.bf16.msra.mxu0 %v9778_v10  ;;  %7395 = vmatpush1.bf16.msra.mxu1 %v9779_v11  ;;  %v9808_v30 = vld [vmem:[%s14795_s1 + $0xe0] ss:$16 sps:$4 sm:$0xff]   ;;  %v9809_v31 = vld [vmem:[%s14795_s1 + $0xe8] ss:$16 sps:$4 sm:$0xff]   ;;  %v9810_v32 = vld [vmem:[%s14795_s1 + $0x104] ss:$16 sps:$4 sm:$0xff]  }
   0xc   :  { %6548 = vmatprep.subr.bf16.mxu0 %v9780_v12  ;;  %7396 = vmatprep.subr.bf16.mxu1 %v9782_v13  ;;  %v9812_v33 = vld [vmem:[%s14795_s1 + $0x10c] ss:$16 sps:$4 sm:$0xff]   ;;  %v9814_v34 = vld [vmem:[%s14795_s1 + $0x100] ss:$16 sps:$4 sm:$0xff]   ;;  %v9815_v35 = vld [vmem:[%s14795_s1 + $0x108] ss:$16 sps:$4 sm:$0xff]  }
   0xd   :  { %v9816_v36 = vld [vmem:[%s14795_s1 + $0x124] ss:$16 sps:$4 sm:$0xff]   ;;  %v9818_v37 = vld [vmem:[%s14795_s1 + $0x12c] ss:$16 sps:$4 sm:$0xff]   ;;  %v9820_v38 = vld [vmem:[%s14795_s1 + $0x120] ss:$16 sps:$4 sm:$0xff]  }
   0xe   :  { %v9821_v39 = vld [vmem:[%s14795_s1 + $0x128] ss:$16 sps:$4 sm:$0xff]   ;;  %v9822_v40 = vld [vmem:[%s14795_s1 + $0x144] ss:$16 sps:$4 sm:$0xff]   ;;  %v9824_v41 = vld [vmem:[%s14795_s1 + $0x14c] ss:$16 sps:$4 sm:$0xff]  }
   0xf   :  { %6549 = vmatpush1.bf16.msra.mxu0 %v9784_v14  ;;  %7397 = vmatpush1.bf16.msra.mxu1 %v9785_v15  ;;  %v9826_v42 = vld [vmem:[%s14795_s1 + $0x140] ss:$16 sps:$4 sm:$0xff]   ;;  %v9827_v43 = vld [vmem:[%s14795_s1 + $0x148] ss:$16 sps:$4 sm:$0xff]   ;;  %v9828_v44 = vld [vmem:[%s14795_s1 + $0x164] ss:$16 sps:$4 sm:$0xff]  }
  0x10   :  { %6550 = vmatprep.subr.bf16.mxu0 %v9786_v16  ;;  %7398 = vmatprep.subr.bf16.mxu1 %v9788_v17  ;;  %v9830_v45 = vld [vmem:[%s14795_s1 + $0x16c] ss:$16 sps:$4 sm:$0xff]   ;;  %v14_v46 = vld [vmem:[%s14796_s0] sm:$0xff]  ;;  %v9833_v49 = vld [vmem:[%s14795_s1 + $0x168] ss:$16 sps:$4 sm:$0xff]  }
  0x11   :  { %v30_v47 = vld [vmem:[%s14796_s0 + $0x80] sm:$0xff]  ;;  %v9836_v52 = vld [vmem:[%s14795_s1 + $0x18c] ss:$16 sps:$4 sm:$0xff]   ;;  %v9839_v54 = vld [vmem:[%s14795_s1 + $0x188] ss:$16 sps:$4 sm:$0xff]  }
  0x12   :  { %v9832_v48 = vld [vmem:[%s14795_s1 + $0x160] ss:$16 sps:$4 sm:$0xff]   ;;  %v8433_v50 = vcombine.high %v14_v46, %v30_v47  ;;  %v9834_v51 = vld [vmem:[%s14795_s1 + $0x184] ss:$16 sps:$4 sm:$0xff]   ;;  %v9842_v56 = vld [vmem:[%s14795_s1 + $0x1ac] ss:$16 sps:$4 sm:$0xff]   ;;  %v8432_v5 = vcombine.low %v14_v46, %v30_v47 }
  0x13   :  { %6551 = vmatpush1.bf16.msra.mxu0 %v9790_v18  ;;  %7399 = vmatpush1.bf16.msra.mxu1 %v9791_v19  ;;  %v9838_v53 = vld [vmem:[%s14795_s1 + $0x180] ss:$16 sps:$4 sm:$0xff]   ;;  %v9840_v55 = vld [vmem:[%s14795_s1 + $0x1a4] ss:$16 sps:$4 sm:$0xff]   ;;  %v9845_v58 = vld [vmem:[%s14795_s1 + $0x1a8] ss:$16 sps:$4 sm:$0xff]  }
  0x14   :  { %6552 = vmatprep.subr.bf16.mxu0 %v9792_v20  ;;  %7400 = vmatprep.subr.bf16.mxu1 %v9794_v21  ;;  %v9844_v57 = vld [vmem:[%s14795_s1 + $0x1a0] ss:$16 sps:$4 sm:$0xff]   ;;  %v9846_v59 = vld [vmem:[%s14795_s1 + $0x1c4] ss:$16 sps:$4 sm:$0xff]   ;;  %v9848_v60 = vld [vmem:[%s14795_s1 + $0x1cc] ss:$16 sps:$4 sm:$0xff]  }
  0x15   :  { %6574 = vmatprep.mubr.bf16.mxu0 %v8433_v50  ;;  %7422 = vmatprep.mubr.bf16.mxu1 %v8433_v50  ;;  %v9850_v61 = vld [vmem:[%s14795_s1 + $0x1c0] ss:$16 sps:$4 sm:$0xff]   ;;  %v9851_v62 = vld [vmem:[%s14795_s1 + $0x1c8] ss:$16 sps:$4 sm:$0xff]   ;;  %v9852_v63 = vld [vmem:[%s14795_s1 + $0x1e4] ss:$16 sps:$4 sm:$0xff]  }
  0x16   :  { %v9854_v0 = vld [vmem:[%s14795_s1 + $0x1ec] ss:$16 sps:$4 sm:$0xff]   ;;  %v9856_v1 = vld [vmem:[%s14795_s1 + $0x1e0] ss:$16 sps:$4 sm:$0xff]   ;;  %v9857_v2 = vld [vmem:[%s14795_s1 + $0x1e8] ss:$16 sps:$4 sm:$0xff]  }
  0x17   :  { %6553 = vmatpush1.bf16.msra.mxu0 %v9796_v22  ;;  %7401 = vmatpush1.bf16.msra.mxu1 %v9797_v23  ;;  %v9860_v3 = vld [vmem:[%s14795_s1 + $0x204] ss:$16 sps:$4 sm:$0xff]   ;;  %v9863_v4 = vld [vmem:[%s14795_s1 + $0x20c] ss:$16 sps:$4 sm:$0xff]   ;;  %v9858_v6 = vld [vmem:[%s14795_s1 + $0x200] ss:$16 sps:$4 sm:$0xff]  }
  0x18   :  { %6554 = vmatprep.subr.bf16.mxu0 %v9798_v24  ;;  %7402 = vmatprep.subr.bf16.mxu1 %v9800_v25  ;;  %v9861_v7 = vld [vmem:[%s14795_s1 + $0x208] ss:$16 sps:$4 sm:$0xff]   ;;  %v9866_v8 = vld [vmem:[%s14795_s1 + $0x224] ss:$16 sps:$4 sm:$0xff]   ;;  %v9869_v9 = vld [vmem:[%s14795_s1 + $0x22c] ss:$16 sps:$4 sm:$0xff]  }
  0x19   :  { %v9864_v10 = vld [vmem:[%s14795_s1 + $0x220] ss:$16 sps:$4 sm:$0xff]   ;;  %v9867_v11 = vld [vmem:[%s14795_s1 + $0x228] ss:$16 sps:$4 sm:$0xff]   ;;  %v9872_v12 = vld [vmem:[%s14795_s1 + $0x244] ss:$16 sps:$4 sm:$0xff]  }
  0x1a   :  { %v9875_v13 = vld [vmem:[%s14795_s1 + $0x24c] ss:$16 sps:$4 sm:$0xff]   ;;  %v9870_v14 = vld [vmem:[%s14795_s1 + $0x240] ss:$16 sps:$4 sm:$0xff]   ;;  %v9873_v15 = vld [vmem:[%s14795_s1 + $0x248] ss:$16 sps:$4 sm:$0xff]  }
  0x1b   :  { %6555 = vmatpush1.bf16.msra.mxu0 %v9802_v26  ;;  %7403 = vmatpush1.bf16.msra.mxu1 %v9803_v27  ;;  %v9878_v16 = vld [vmem:[%s14795_s1 + $0x264] ss:$16 sps:$4 sm:$0xff]   ;;  %v9881_v17 = vld [vmem:[%s14795_s1 + $0x26c] ss:$16 sps:$4 sm:$0xff]   ;;  %v9876_v18 = vld [vmem:[%s14795_s1 + $0x260] ss:$16 sps:$4 sm:$0xff]  }
  0x1c   :  { %6556 = vmatprep.subr.bf16.mxu0 %v9804_v28  ;;  %7404 = vmatprep.subr.bf16.mxu1 %v9806_v29  ;;  %v9879_v19 = vld [vmem:[%s14795_s1 + $0x268] ss:$16 sps:$4 sm:$0xff]   ;;  %v9884_v20 = vld [vmem:[%s14795_s1 + $0x284] ss:$16 sps:$4 sm:$0xff]   ;;  %v9887_v21 = vld [vmem:[%s14795_s1 + $0x28c] ss:$16 sps:$4 sm:$0xff]  }
  0x1d   :  { %v9882_v22 = vld [vmem:[%s14795_s1 + $0x280] ss:$16 sps:$4 sm:$0xff]   ;;  %v9885_v23 = vld [vmem:[%s14795_s1 + $0x288] ss:$16 sps:$4 sm:$0xff]   ;;  %v9890_v24 = vld [vmem:[%s14795_s1 + $0x2a4] ss:$16 sps:$4 sm:$0xff]  }
  0x1e   :  { %v9893_v25 = vld [vmem:[%s14795_s1 + $0x2ac] ss:$16 sps:$4 sm:$0xff]   ;;  %v46_v26 = vld [vmem:[%s14796_s0 + $0x100] sm:$0xff]  ;;  %v9909_v46 = vld [vmem:[%s14795_s1 + $0x308] ss:$16 sps:$4 sm:$0xff]  }
  0x1f   :  { %6557 = vmatpush1.bf16.msra.mxu0 %v9808_v30  ;;  %7405 = vmatpush1.bf16.msra.mxu1 %v9809_v31  ;;  %v62_v27 = vld [vmem:[%s14796_s0 + $0x180] sm:$0xff]  ;;  %v9891_v30 = vld [vmem:[%s14795_s1 + $0x2a8] ss:$16 sps:$4 sm:$0xff]  }
  0x20   :  { %6558 = vmatprep.subr.bf16.mxu0 %v9810_v32  ;;  %7406 = vmatprep.subr.bf16.mxu1 %v9812_v33  ;;  %v8465_v28 = vcombine.high %v46_v26, %v62_v27  ;;  %v9888_v29 = vld [vmem:[%s14795_s1 + $0x2a0] ss:$16 sps:$4 sm:$0xff]   ;;  %v8464_v31 = vcombine.low %v46_v26, %v62_v27  ;;  %v9896_v32 = vld [vmem:[%s14795_s1 + $0x2c4] ss:$16 sps:$4 sm:$0xff]   ;;  %v9899_v33 = vld [vmem:[%s14795_s1 + $0x2cc] ss:$16 sps:$4 sm:$0xff]  }
  0x21   :  { %v9914_v47 = vld [vmem:[%s14795_s1 + $0x324] ss:$16 sps:$4 sm:$0xff]   ;;  %v9915_v50 = vld [vmem:[%s14795_s1 + $0x328] ss:$16 sps:$4 sm:$0xff]  }
  0x22   :  { %v11779_v27 = vld [vmem:[%s14796_s0 + $0x90] sm:$0xff] }
  0x23   :  { %6559 = vmatpush1.bf16.msra.mxu0 %v9814_v34  ;;  %7407 = vmatpush1.bf16.msra.mxu1 %v9815_v35  ;;  %v11610_v34 = vld [vmem:[%s14796_s0 + $0x8] sm:$0xff] }
  0x24   :  { %6560 = vmatprep.subr.bf16.mxu0 %v9816_v36  ;;  %7408 = vmatprep.subr.bf16.mxu1 %v9818_v37  ;;  %v11615_v35 = vld [vmem:[%s14796_s0 + $0x88] sm:$0xff]  ;;  %v9894_v36 = vld [vmem:[%s14795_s1 + $0x2c0] ss:$16 sps:$4 sm:$0xff]  }
  0x25   :  { %v9897_v37 = vld [vmem:[%s14795_s1 + $0x2c8] ss:$16 sps:$4 sm:$0xff]  }
  0x27   :  { %6561 = vmatpush1.bf16.msra.mxu0 %v9820_v38  ;;  %7409 = vmatpush1.bf16.msra.mxu1 %v9821_v39  ;;  %v8435_v38 = vcombine.high %v11610_v34, %v11615_v35  ;;  %v9902_v39 = vld [vmem:[%s14795_s1 + $0x2e4] ss:$16 sps:$4 sm:$0xff]  }
  0x28   :  { %6562 = vmatprep.subr.bf16.mxu0 %v9822_v40  ;;  %7410 = vmatprep.subr.bf16.mxu1 %v9824_v41  ;;  %v9905_v40 = vld [vmem:[%s14795_s1 + $0x2ec] ss:$16 sps:$4 sm:$0xff]   ;;  %v9900_v41 = vld [vmem:[%s14795_s1 + $0x2e0] ss:$16 sps:$4 sm:$0xff]  }
  0x2b   :  { %6563 = vmatpush1.bf16.msra.mxu0 %v9826_v42  ;;  %7411 = vmatpush1.bf16.msra.mxu1 %v9827_v43  ;;  %v9903_v42 = vld [vmem:[%s14795_s1 + $0x2e8] ss:$16 sps:$4 sm:$0xff]   ;;  %v9908_v43 = vld [vmem:[%s14795_s1 + $0x304] ss:$16 sps:$4 sm:$0xff]  }
  0x2c   :  { %6564 = vmatprep.subr.bf16.mxu0 %v9828_v44  ;;  %7412 = vmatprep.subr.bf16.mxu1 %v9830_v45  ;;  %v9911_v44 = vld [vmem:[%s14795_s1 + $0x30c] ss:$16 sps:$4 sm:$0xff]   ;;  %v9906_v45 = vld [vmem:[%s14795_s1 + $0x300] ss:$16 sps:$4 sm:$0xff]  }
  0x2f   :  { %6565 = vmatpush1.bf16.msra.mxu0 %v9832_v48  ;;  %7413 = vmatpush1.bf16.msra.mxu1 %v9833_v49  ;;  %v9917_v48 = vld [vmem:[%s14795_s1 + $0x32c] ss:$16 sps:$4 sm:$0xff]   ;;  %v9912_v49 = vld [vmem:[%s14795_s1 + $0x320] ss:$16 sps:$4 sm:$0xff]  }
  0x30   :  { %6566 = vmatprep.subr.bf16.mxu0 %v9834_v51  ;;  %7414 = vmatprep.subr.bf16.mxu1 %v9836_v52  ;;  %v9920_v51 = vld [vmem:[%s14795_s1 + $0x344] ss:$16 sps:$4 sm:$0xff]   ;;  %v9923_v52 = vld [vmem:[%s14795_s1 + $0x34c] ss:$16 sps:$4 sm:$0xff]  }
  0x33   :  { %6567 = vmatpush1.bf16.msra.mxu0 %v9838_v53  ;;  %7415 = vmatpush1.bf16.msra.mxu1 %v9839_v54  ;;  %v9918_v53 = vld [vmem:[%s14795_s1 + $0x340] ss:$16 sps:$4 sm:$0xff]   ;;  %v9921_v54 = vld [vmem:[%s14795_s1 + $0x348] ss:$16 sps:$4 sm:$0xff]  }
  0x34   :  { %6568 = vmatprep.subr.bf16.mxu0 %v9840_v55  ;;  %7416 = vmatprep.subr.bf16.mxu1 %v9842_v56  ;;  %v9926_v55 = vld [vmem:[%s14795_s1 + $0x364] ss:$16 sps:$4 sm:$0xff]   ;;  %v9929_v56 = vld [vmem:[%s14795_s1 + $0x36c] ss:$16 sps:$4 sm:$0xff]  }
  0x37   :  { %6569 = vmatpush1.bf16.msra.mxu0 %v9844_v57  ;;  %7417 = vmatpush1.bf16.msra.mxu1 %v9845_v58  ;;  %v9924_v57 = vld [vmem:[%s14795_s1 + $0x360] ss:$16 sps:$4 sm:$0xff]   ;;  %v9927_v58 = vld [vmem:[%s14795_s1 + $0x368] ss:$16 sps:$4 sm:$0xff]  }
  0x38   :  { %6570 = vmatprep.subr.bf16.mxu0 %v9846_v59  ;;  %7418 = vmatprep.subr.bf16.mxu1 %v9848_v60  ;;  %v9932_v59 = vld [vmem:[%s14795_s1 + $0x384] ss:$16 sps:$4 sm:$0xff]   ;;  %v9935_v60 = vld [vmem:[%s14795_s1 + $0x38c] ss:$16 sps:$4 sm:$0xff]  }
  0x3b   :  { %6571 = vmatpush1.bf16.msra.mxu0 %v9850_v61  ;;  %7419 = vmatpush1.bf16.msra.mxu1 %v9851_v62  ;;  %v9930_v61 = vld [vmem:[%s14795_s1 + $0x380] ss:$16 sps:$4 sm:$0xff]   ;;  %v9933_v62 = vld [vmem:[%s14795_s1 + $0x388] ss:$16 sps:$4 sm:$0xff]  }
  0x3c   :  { %6572 = vmatprep.subr.bf16.mxu0 %v9852_v63  ;;  %7420 = vmatprep.subr.bf16.mxu1 %v9854_v0  ;;  %v9938_v63 = vld [vmem:[%s14795_s1 + $0x3a4] ss:$16 sps:$4 sm:$0xff]   ;;  %v9941_v0 = vld [vmem:[%s14795_s1 + $0x3ac] ss:$16 sps:$4 sm:$0xff]  }
  0x3f   :  { %6573 = vmatpush1.bf16.msra.mxu0 %v9856_v1  ;;  %7421 = vmatpush1.bf16.msra.mxu1 %v9857_v2  ;;  %v9936_v1 = vld [vmem:[%s14795_s1 + $0x3a0] ss:$16 sps:$4 sm:$0xff]   ;;  %v9939_v2 = vld [vmem:[%s14795_s1 + $0x3a8] ss:$16 sps:$4 sm:$0xff]  }
  0x40   :  { %6595 = vmatprep.subr.bf16.mxu0 %v9860_v3  ;;  %7443 = vmatprep.subr.bf16.mxu1 %v9863_v4  ;;  %v9944_v3 = vld [vmem:[%s14795_s1 + $0x3c4] ss:$16 sps:$4 sm:$0xff]   ;;  %v9947_v4 = vld [vmem:[%s14795_s1 + $0x3cc] ss:$16 sps:$4 sm:$0xff]  }
  0x42   :  { %6575 = vmatmul.mubr.bf16.vlgmr.msra.gmra.mrb[0].mxu0 %v8432_v5  ;;  %7423 = vmatmul.mubr.bf16.vlgmr.msra.gmra.mrb[0].mxu1 %v8432_v5  ;;  %v9942_v5 = vld [vmem:[%s14795_s1 + $0x3c0] ss:$16 sps:$4 sm:$0xff]  }
  0x43   :  { %6596 = vmatpush1.bf16.msra.mxu0 %v9858_v6  ;;  %7444 = vmatpush1.bf16.msra.mxu1 %v9861_v7  ;;  %v9945_v6 = vld [vmem:[%s14795_s1 + $0x3c8] ss:$16 sps:$4 sm:$0xff]   ;;  %v9950_v7 = vld [vmem:[%s14795_s1 + $0x3e4] ss:$16 sps:$4 sm:$0xff]  }
  0x44   :  { %6597 = vmatprep.subr.bf16.mxu0 %v9866_v8  ;;  %7445 = vmatprep.subr.bf16.mxu1 %v9869_v9  ;;  %v9953_v8 = vld [vmem:[%s14795_s1 + $0x3ec] ss:$16 sps:$4 sm:$0xff]   ;;  %v9948_v9 = vld [vmem:[%s14795_s1 + $0x3e0] ss:$16 sps:$4 sm:$0xff]  }
  0x45   :  { %6584 = vmatprep.mubr.bf16.mxu0 %v8465_v28  ;;  %7432 = vmatprep.mubr.bf16.mxu1 %v8465_v28  ;;  %v9966_v28 = vld [vmem:[%s14795_s1 + $0x440] ss:$16 sps:$4 sm:$0xff]  }
  0x47   :  { %6598 = vmatpush1.bf16.msra.mxu0 %v9864_v10  ;;  %7446 = vmatpush1.bf16.msra.mxu1 %v9867_v11  ;;  %v9951_v10 = vld [vmem:[%s14795_s1 + $0x3e8] ss:$16 sps:$4 sm:$0xff]   ;;  %v9956_v11 = vld [vmem:[%s14795_s1 + $0x404] ss:$16 sps:$4 sm:$0xff]  }
  0x48   :  { %6599 = vmatprep.subr.bf16.mxu0 %v9872_v12  ;;  %7447 = vmatprep.subr.bf16.mxu1 %v9875_v13  ;;  %v9959_v12 = vld [vmem:[%s14795_s1 + $0x40c] ss:$16 sps:$4 sm:$0xff]   ;;  %v9954_v13 = vld [vmem:[%s14795_s1 + $0x400] ss:$16 sps:$4 sm:$0xff]  }
  0x4a   :  { %6585 = vmatmul.mubr.bf16.gmra.mrb[4].mxu0 %v8464_v31  ;;  %7433 = vmatmul.mubr.bf16.gmra.mrb[4].mxu1 %v8464_v31  ;;  %v9977_v31 = vld [vmem:[%s14795_s1 + $0x46c] ss:$16 sps:$4 sm:$0xff]  }
  0x4b   :  { %6600 = vmatpush1.bf16.msra.mxu0 %v9870_v14  ;;  %7448 = vmatpush1.bf16.msra.mxu1 %v9873_v15  ;;  %v9957_v14 = vld [vmem:[%s14795_s1 + $0x408] ss:$16 sps:$4 sm:$0xff]   ;;  %v8434_v15 = vcombine.low %v11610_v34, %v11615_v35  ;;  %v9980_v35 = vld [vmem:[%s14795_s1 + $0x484] ss:$16 sps:$4 sm:$0xff]  }
  0x4c   :  { %6601 = vmatprep.subr.bf16.mxu0 %v9878_v16  ;;  %7449 = vmatprep.subr.bf16.mxu1 %v9881_v17  ;;  %v47_v16 = vld [vmem:[%s14796_s0 + $0x108] sm:$0xff] }
  0x4d   :  { %6627 = vmatprep.mubr.bf16.mxu0 %v8435_v38  ;;  %7475 = vmatprep.mubr.bf16.mxu1 %v8435_v38  ;;  %v63_v17 = vld [vmem:[%s14796_s0 + $0x188] sm:$0xff] }
  0x4e   :  { %v8466_v26 = vcombine.low %v47_v16, %v63_v17  ;;  %v9975_v34 = vld [vmem:[%s14795_s1 + $0x468] ss:$16 sps:$4 sm:$0xff]  }
  0x4f   :  { %6602 = vmatpush1.bf16.msra.mxu0 %v9876_v18  ;;  %7450 = vmatpush1.bf16.msra.mxu1 %v9879_v19  ;;  %v9962_v18 = vld [vmem:[%s14795_s1 + $0x424] ss:$16 sps:$4 sm:$0xff]   ;;  %v9965_v19 = vld [vmem:[%s14795_s1 + $0x42c] ss:$16 sps:$4 sm:$0xff]   ;;  %v9981_v38 = vld [vmem:[%s14795_s1 + $0x488] ss:$16 sps:$4 sm:$0xff]  }
  0x50   :  { %6603 = vmatprep.subr.bf16.mxu0 %v9884_v20  ;;  %7451 = vmatprep.subr.bf16.mxu1 %v9887_v21  ;;  %v8467_v20 = vcombine.high %v47_v16, %v63_v17  ;;  %v9960_v21 = vld [vmem:[%s14795_s1 + $0x420] ss:$16 sps:$4 sm:$0xff]   ;;  %v10049_v16 = vld [vmem:[%s14795_s1 + $0x5ec] ss:$16 sps:$4 sm:$0xff]  }
  0x51   :  { %v10044_v17 = vld [vmem:[%s14795_s1 + $0x5e0] ss:$16 sps:$4 sm:$0xff]  }
  0x53   :  { %6604 = vmatpush1.bf16.msra.mxu0 %v9882_v22  ;;  %7452 = vmatpush1.bf16.msra.mxu1 %v9885_v23  ;;  %v9963_v22 = vld [vmem:[%s14795_s1 + $0x428] ss:$16 sps:$4 sm:$0xff]   ;;  %v9968_v23 = vld [vmem:[%s14795_s1 + $0x444] ss:$16 sps:$4 sm:$0xff]  }
  0x54   :  { %6605 = vmatprep.subr.bf16.mxu0 %v9890_v24  ;;  %7453 = vmatprep.subr.bf16.mxu1 %v9893_v25  ;;  %v9971_v24 = vld [vmem:[%s14795_s1 + $0x44c] ss:$16 sps:$4 sm:$0xff]   ;;  %v11774_v25 = vld [vmem:[%s14796_s0 + $0x10] sm:$0xff] }
  0x57   :  { %6606 = vmatpush1.bf16.msra.mxu0 %v9888_v29  ;;  %7454 = vmatpush1.bf16.msra.mxu1 %v9891_v30  ;;  %v9969_v29 = vld [vmem:[%s14795_s1 + $0x448] ss:$16 sps:$4 sm:$0xff]   ;;  %v9974_v30 = vld [vmem:[%s14795_s1 + $0x464] ss:$16 sps:$4 sm:$0xff]  }
  0x58   :  { %6607 = vmatprep.subr.bf16.mxu0 %v9896_v32  ;;  %7455 = vmatprep.subr.bf16.mxu1 %v9899_v33  ;;  %v8437_v32 = vcombine.high %v11774_v25, %v11779_v27  ;;  %v9972_v33 = vld [vmem:[%s14795_s1 + $0x460] ss:$16 sps:$4 sm:$0xff]  }
  0x5b   :  { %6608 = vmatpush1.bf16.msra.mxu0 %v9894_v36  ;;  %7456 = vmatpush1.bf16.msra.mxu1 %v9897_v37  ;;  %v9983_v36 = vld [vmem:[%s14795_s1 + $0x48c] ss:$16 sps:$4 sm:$0xff]   ;;  %v9978_v37 = vld [vmem:[%s14795_s1 + $0x480] ss:$16 sps:$4 sm:$0xff]  }
  0x5c   :  { %6609 = vmatprep.subr.bf16.mxu0 %v9902_v39  ;;  %7457 = vmatprep.subr.bf16.mxu1 %v9905_v40  ;;  %v9986_v39 = vld [vmem:[%s14795_s1 + $0x4a4] ss:$16 sps:$4 sm:$0xff]   ;;  %v9989_v40 = vld [vmem:[%s14795_s1 + $0x4ac] ss:$16 sps:$4 sm:$0xff]  }
  0x5f   :  { %6610 = vmatpush1.bf16.msra.mxu0 %v9900_v41  ;;  %7458 = vmatpush1.bf16.msra.mxu1 %v9903_v42  ;;  %v9984_v41 = vld [vmem:[%s14795_s1 + $0x4a0] ss:$16 sps:$4 sm:$0xff]   ;;  %v9987_v42 = vld [vmem:[%s14795_s1 + $0x4a8] ss:$16 sps:$4 sm:$0xff]  }
  0x60   :  { %6611 = vmatprep.subr.bf16.mxu0 %v9908_v43  ;;  %7459 = vmatprep.subr.bf16.mxu1 %v9911_v44  ;;  %v9992_v43 = vld [vmem:[%s14795_s1 + $0x4c4] ss:$16 sps:$4 sm:$0xff]   ;;  %v9995_v44 = vld [vmem:[%s14795_s1 + $0x4cc] ss:$16 sps:$4 sm:$0xff]  }
  0x63   :  { %6612 = vmatpush1.bf16.msra.mxu0 %v9906_v45  ;;  %7460 = vmatpush1.bf16.msra.mxu1 %v9909_v46  ;;  %v9990_v45 = vld [vmem:[%s14795_s1 + $0x4c0] ss:$16 sps:$4 sm:$0xff]   ;;  %v9993_v46 = vld [vmem:[%s14795_s1 + $0x4c8] ss:$16 sps:$4 sm:$0xff]  }
  0x64   :  { %6613 = vmatprep.subr.bf16.mxu0 %v9914_v47  ;;  %7461 = vmatprep.subr.bf16.mxu1 %v9917_v48  ;;  %v9998_v47 = vld [vmem:[%s14795_s1 + $0x4e4] ss:$16 sps:$4 sm:$0xff]   ;;  %v10001_v48 = vld [vmem:[%s14795_s1 + $0x4ec] ss:$16 sps:$4 sm:$0xff]  }
  0x67   :  { %6614 = vmatpush1.bf16.msra.mxu0 %v9912_v49  ;;  %7462 = vmatpush1.bf16.msra.mxu1 %v9915_v50  ;;  %v9996_v49 = vld [vmem:[%s14795_s1 + $0x4e0] ss:$16 sps:$4 sm:$0xff]   ;;  %v9999_v50 = vld [vmem:[%s14795_s1 + $0x4e8] ss:$16 sps:$4 sm:$0xff]  }
  0x68   :  { %6615 = vmatprep.subr.bf16.mxu0 %v9920_v51  ;;  %7463 = vmatprep.subr.bf16.mxu1 %v9923_v52  ;;  %v10004_v51 = vld [vmem:[%s14795_s1 + $0x504] ss:$16 sps:$4 sm:$0xff]   ;;  %v10007_v52 = vld [vmem:[%s14795_s1 + $0x50c] ss:$16 sps:$4 sm:$0xff]  }
  0x6b   :  { %6616 = vmatpush1.bf16.msra.mxu0 %v9918_v53  ;;  %7464 = vmatpush1.bf16.msra.mxu1 %v9921_v54  ;;  %v10002_v53 = vld [vmem:[%s14795_s1 + $0x500] ss:$16 sps:$4 sm:$0xff]   ;;  %v10005_v54 = vld [vmem:[%s14795_s1 + $0x508] ss:$16 sps:$4 sm:$0xff]  }
  0x6c   :  { %6617 = vmatprep.subr.bf16.mxu0 %v9926_v55  ;;  %7465 = vmatprep.subr.bf16.mxu1 %v9929_v56  ;;  %v10010_v55 = vld [vmem:[%s14795_s1 + $0x524] ss:$16 sps:$4 sm:$0xff]   ;;  %v10013_v56 = vld [vmem:[%s14795_s1 + $0x52c] ss:$16 sps:$4 sm:$0xff]  }
  0x6f   :  { %6618 = vmatpush1.bf16.msra.mxu0 %v9924_v57  ;;  %7466 = vmatpush1.bf16.msra.mxu1 %v9927_v58  ;;  %v10008_v57 = vld [vmem:[%s14795_s1 + $0x520] ss:$16 sps:$4 sm:$0xff]   ;;  %v10011_v58 = vld [vmem:[%s14795_s1 + $0x528] ss:$16 sps:$4 sm:$0xff]  }
  0x70   :  { %6619 = vmatprep.subr.bf16.mxu0 %v9932_v59  ;;  %7467 = vmatprep.subr.bf16.mxu1 %v9935_v60  ;;  %v10016_v59 = vld [vmem:[%s14795_s1 + $0x544] ss:$16 sps:$4 sm:$0xff]   ;;  %v10019_v60 = vld [vmem:[%s14795_s1 + $0x54c] ss:$16 sps:$4 sm:$0xff]  }
  0x73   :  { %6620 = vmatpush1.bf16.msra.mxu0 %v9930_v61  ;;  %7468 = vmatpush1.bf16.msra.mxu1 %v9933_v62  ;;  %v10014_v61 = vld [vmem:[%s14795_s1 + $0x540] ss:$16 sps:$4 sm:$0xff]   ;;  %v10017_v62 = vld [vmem:[%s14795_s1 + $0x548] ss:$16 sps:$4 sm:$0xff]  }
  0x74   :  { %6621 = vmatprep.subr.bf16.mxu0 %v9938_v63  ;;  %7469 = vmatprep.subr.bf16.mxu1 %v9941_v0  ;;  %v10022_v63 = vld [vmem:[%s14795_s1 + $0x564] ss:$16 sps:$4 sm:$0xff]   ;;  %v10025_v0 = vld [vmem:[%s14795_s1 + $0x56c] ss:$16 sps:$4 sm:$0xff]  }
  0x77   :  { %6622 = vmatpush1.bf16.msra.mxu0 %v9936_v1  ;;  %7470 = vmatpush1.bf16.msra.mxu1 %v9939_v2  ;;  %v10020_v1 = vld [vmem:[%s14795_s1 + $0x560] ss:$16 sps:$4 sm:$0xff]   ;;  %v10023_v2 = vld [vmem:[%s14795_s1 + $0x568] ss:$16 sps:$4 sm:$0xff]  }
  0x78   :  { %6623 = vmatprep.subr.bf16.mxu0 %v9944_v3  ;;  %7471 = vmatprep.subr.bf16.mxu1 %v9947_v4  ;;  %v10028_v3 = vld [vmem:[%s14795_s1 + $0x584] ss:$16 sps:$4 sm:$0xff]   ;;  %v10031_v4 = vld [vmem:[%s14795_s1 + $0x58c] ss:$16 sps:$4 sm:$0xff]  }
  0x7b   :  { %6624 = vmatpush1.bf16.msra.mxu0 %v9942_v5  ;;  %7472 = vmatpush1.bf16.msra.mxu1 %v9945_v6  ;;  %v10026_v5 = vld [vmem:[%s14795_s1 + $0x580] ss:$16 sps:$4 sm:$0xff]   ;;  %v10029_v6 = vld [vmem:[%s14795_s1 + $0x588] ss:$16 sps:$4 sm:$0xff]  }
  0x7c   :  { %6625 = vmatprep.subr.bf16.mxu0 %v9950_v7  ;;  %7473 = vmatprep.subr.bf16.mxu1 %v9953_v8  ;;  %v10034_v7 = vld [vmem:[%s14795_s1 + $0x5a4] ss:$16 sps:$4 sm:$0xff]   ;;  %v10037_v8 = vld [vmem:[%s14795_s1 + $0x5ac] ss:$16 sps:$4 sm:$0xff]  }
  0x7f   :  { %6626 = vmatpush1.bf16.msra.mxu0 %v9948_v9  ;;  %7474 = vmatpush1.bf16.msra.mxu1 %v9951_v10  ;;  %v10032_v9 = vld [vmem:[%s14795_s1 + $0x5a0] ss:$16 sps:$4 sm:$0xff]   ;;  %v10035_v10 = vld [vmem:[%s14795_s1 + $0x5a8] ss:$16 sps:$4 sm:$0xff]  }
  0x80   :  { %6648 = vmatprep.subr.bf16.mxu0 %v9956_v11  ;;  %7496 = vmatprep.subr.bf16.mxu1 %v9959_v12  ;;  %v10040_v11 = vld [vmem:[%s14795_s1 + $0x5c4] ss:$16 sps:$4 sm:$0xff]   ;;  %v10043_v12 = vld [vmem:[%s14795_s1 + $0x5cc] ss:$16 sps:$4 sm:$0xff]  }
  0x82   :  { %6628 = vmatmul.mubr.bf16.vlgmr.msra.gmra.mrb[0].mxu0 %v8434_v15  ;;  %7476 = vmatmul.mubr.bf16.vlgmr.msra.gmra.mrb[0].mxu1 %v8434_v15  ;;  %v10046_v15 = vld [vmem:[%s14795_s1 + $0x5e4] ss:$16 sps:$4 sm:$0xff]  }
  0x83   :  { %6649 = vmatpush1.bf16.msra.mxu0 %v9954_v13  ;;  %7497 = vmatpush1.bf16.msra.mxu1 %v9957_v14  ;;  %v10038_v13 = vld [vmem:[%s14795_s1 + $0x5c0] ss:$16 sps:$4 sm:$0xff]   ;;  %v10041_v14 = vld [vmem:[%s14795_s1 + $0x5c8] ss:$16 sps:$4 sm:$0xff]  }
  0x84   :  { %6650 = vmatprep.subr.bf16.mxu0 %v9962_v18  ;;  %7498 = vmatprep.subr.bf16.mxu1 %v9965_v19  ;;  %v10047_v18 = vld [vmem:[%s14795_s1 + $0x5e8] ss:$16 sps:$4 sm:$0xff]   ;;  %v10052_v19 = vld [vmem:[%s14795_s1 + $0x604] ss:$16 sps:$4 sm:$0xff]  }
  0x85   :  { %6637 = vmatprep.mubr.bf16.mxu0 %v8467_v20  ;;  %7485 = vmatprep.mubr.bf16.mxu1 %v8467_v20  ;;  %v10055_v20 = vld [vmem:[%s14795_s1 + $0x60c] ss:$16 sps:$4 sm:$0xff]  }
  0x87   :  { %6651 = vmatpush1.bf16.msra.mxu0 %v9960_v21  ;;  %7499 = vmatpush1.bf16.msra.mxu1 %v9963_v22  ;;  %v48_v21 = vld [vmem:[%s14796_s0 + $0x110] sm:$0xff]  ;;  %v8436_v22 = vcombine.low %v11774_v25, %v11779_v27  ;;  %v10061_v27 = vld [vmem:[%s14795_s1 + $0x62c] ss:$16 sps:$4 sm:$0xff]  }
  0x88   :  { %6652 = vmatprep.subr.bf16.mxu0 %v9968_v23  ;;  %7500 = vmatprep.subr.bf16.mxu1 %v9971_v24  ;;  %v64_v23 = vld [vmem:[%s14796_s0 + $0x190] sm:$0xff] }
  0x89   :  { %v10050_v24 = vld [vmem:[%s14795_s1 + $0x600] ss:$16 sps:$4 sm:$0xff]   ;;  %v10058_v25 = vld [vmem:[%s14795_s1 + $0x624] ss:$16 sps:$4 sm:$0xff]  }
  0x8a   :  { %6638 = vmatmul.mubr.bf16.gmra.mrb[4].mxu0 %v8466_v26  ;;  %7486 = vmatmul.mubr.bf16.gmra.mrb[4].mxu1 %v8466_v26  ;;  %v10053_v26 = vld [vmem:[%s14795_s1 + $0x608] ss:$16 sps:$4 sm:$0xff]  }
  0x8b   :  { %6653 = vmatpush1.bf16.msra.mxu0 %v9966_v28  ;;  %7501 = vmatpush1.bf16.msra.mxu1 %v9969_v29  ;;  %v8469_v28 = vcombine.high %v48_v21, %v64_v23  ;;  %v10056_v29 = vld [vmem:[%s14795_s1 + $0x620] ss:$16 sps:$4 sm:$0xff]  }
  0x8c   :  { %6654 = vmatprep.subr.bf16.mxu0 %v9974_v30  ;;  %7502 = vmatprep.subr.bf16.mxu1 %v9977_v31  ;;  %v10059_v30 = vld [vmem:[%s14795_s1 + $0x628] ss:$16 sps:$4 sm:$0xff]   ;;  %v10064_v31 = vld [vmem:[%s14795_s1 + $0x644] ss:$16 sps:$4 sm:$0xff]  }
  0x8d   :  { %6680 = vmatprep.mubr.bf16.mxu0 %v8437_v32  ;;  %7528 = vmatprep.mubr.bf16.mxu1 %v8437_v32  ;;  %v10067_v32 = vld [vmem:[%s14795_s1 + $0x64c] ss:$16 sps:$4 sm:$0xff]  }
  0x8f   :  { %6655 = vmatpush1.bf16.msra.mxu0 %v9972_v33  ;;  %7503 = vmatpush1.bf16.msra.mxu1 %v9975_v34  ;;  %v11986_v33 = vld [vmem:[%s14796_s0 + $0x18] sm:$0xff]  ;;  %v8468_v34 = vcombine.low %v48_v21, %v64_v23  ;;  %v10134_v21 = vld [vmem:[%s14795_s1 + $0x7c0] ss:$16 sps:$4 sm:$0xff]   ;;  %v10142_v23 = vld [vmem:[%s14795_s1 + $0x7e4] ss:$16 sps:$4 sm:$0xff]  }
  0x90   :  { %6656 = vmatprep.subr.bf16.mxu0 %v9980_v35  ;;  %7504 = vmatprep.subr.bf16.mxu1 %v9983_v36  ;;  %v11991_v35 = vld [vmem:[%s14796_s0 + $0x98] sm:$0xff]  ;;  %v10062_v36 = vld [vmem:[%s14795_s1 + $0x640] ss:$16 sps:$4 sm:$0xff]  }
  0x93   :  { %6657 = vmatpush1.bf16.msra.mxu0 %v9978_v37  ;;  %7505 = vmatpush1.bf16.msra.mxu1 %v9981_v38  ;;  %v10065_v37 = vld [vmem:[%s14795_s1 + $0x648] ss:$16 sps:$4 sm:$0xff]   ;;  %v10070_v38 = vld [vmem:[%s14795_s1 + $0x664] ss:$16 sps:$4 sm:$0xff]  }
  0x94   :  { %6658 = vmatprep.subr.bf16.mxu0 %v9986_v39  ;;  %7506 = vmatprep.subr.bf16.mxu1 %v9989_v40  ;;  %v10073_v39 = vld [vmem:[%s14795_s1 + $0x66c] ss:$16 sps:$4 sm:$0xff]   ;;  %v8439_v40 = vcombine.high %v11986_v33, %v11991_v35 }
  0x97   :  { %6659 = vmatpush1.bf16.msra.mxu0 %v9984_v41  ;;  %7507 = vmatpush1.bf16.msra.mxu1 %v9987_v42  ;;  %v10068_v41 = vld [vmem:[%s14795_s1 + $0x660] ss:$16 sps:$4 sm:$0xff]   ;;  %v10071_v42 = vld [vmem:[%s14795_s1 + $0x668] ss:$16 sps:$4 sm:$0xff]  }
  0x98   :  { %6660 = vmatprep.subr.bf16.mxu0 %v9992_v43  ;;  %7508 = vmatprep.subr.bf16.mxu1 %v9995_v44  ;;  %v10076_v43 = vld [vmem:[%s14795_s1 + $0x684] ss:$16 sps:$4 sm:$0xff]   ;;  %v10079_v44 = vld [vmem:[%s14795_s1 + $0x68c] ss:$16 sps:$4 sm:$0xff]  }
  0x9b   :  { %6661 = vmatpush1.bf16.msra.mxu0 %v9990_v45  ;;  %7509 = vmatpush1.bf16.msra.mxu1 %v9993_v46  ;;  %v10074_v45 = vld [vmem:[%s14795_s1 + $0x680] ss:$16 sps:$4 sm:$0xff]   ;;  %v10077_v46 = vld [vmem:[%s14795_s1 + $0x688] ss:$16 sps:$4 sm:$0xff]  }
  0x9c   :  { %6662 = vmatprep.subr.bf16.mxu0 %v9998_v47  ;;  %7510 = vmatprep.subr.bf16.mxu1 %v10001_v48  ;;  %v10082_v47 = vld [vmem:[%s14795_s1 + $0x6a4] ss:$16 sps:$4 sm:$0xff]   ;;  %v10085_v48 = vld [vmem:[%s14795_s1 + $0x6ac] ss:$16 sps:$4 sm:$0xff]  }
  0x9f   :  { %6663 = vmatpush1.bf16.msra.mxu0 %v9996_v49  ;;  %7511 = vmatpush1.bf16.msra.mxu1 %v9999_v50  ;;  %v10080_v49 = vld [vmem:[%s14795_s1 + $0x6a0] ss:$16 sps:$4 sm:$0xff]   ;;  %v10083_v50 = vld [vmem:[%s14795_s1 + $0x6a8] ss:$16 sps:$4 sm:$0xff]  }
  0xa0   :  { %6664 = vmatprep.subr.bf16.mxu0 %v10004_v51  ;;  %7512 = vmatprep.subr.bf16.mxu1 %v10007_v52  ;;  %v10088_v51 = vld [vmem:[%s14795_s1 + $0x6c4] ss:$16 sps:$4 sm:$0xff]   ;;  %v10091_v52 = vld [vmem:[%s14795_s1 + $0x6cc] ss:$16 sps:$4 sm:$0xff]  }
  0xa3   :  { %6665 = vmatpush1.bf16.msra.mxu0 %v10002_v53  ;;  %7513 = vmatpush1.bf16.msra.mxu1 %v10005_v54  ;;  %v10086_v53 = vld [vmem:[%s14795_s1 + $0x6c0] ss:$16 sps:$4 sm:$0xff]   ;;  %v10089_v54 = vld [vmem:[%s14795_s1 + $0x6c8] ss:$16 sps:$4 sm:$0xff]  }
  0xa4   :  { %6666 = vmatprep.subr.bf16.mxu0 %v10010_v55  ;;  %7514 = vmatprep.subr.bf16.mxu1 %v10013_v56  ;;  %v10094_v55 = vld [vmem:[%s14795_s1 + $0x6e4] ss:$16 sps:$4 sm:$0xff]   ;;  %v10097_v56 = vld [vmem:[%s14795_s1 + $0x6ec] ss:$16 sps:$4 sm:$0xff]  }
  0xa7   :  { %6667 = vmatpush1.bf16.msra.mxu0 %v10008_v57  ;;  %7515 = vmatpush1.bf16.msra.mxu1 %v10011_v58  ;;  %v10092_v57 = vld [vmem:[%s14795_s1 + $0x6e0] ss:$16 sps:$4 sm:$0xff]   ;;  %v10095_v58 = vld [vmem:[%s14795_s1 + $0x6e8] ss:$16 sps:$4 sm:$0xff]  }
  0xa8   :  { %6668 = vmatprep.subr.bf16.mxu0 %v10016_v59  ;;  %7516 = vmatprep.subr.bf16.mxu1 %v10019_v60  ;;  %v10100_v59 = vld [vmem:[%s14795_s1 + $0x704] ss:$16 sps:$4 sm:$0xff]   ;;  %v10103_v60 = vld [vmem:[%s14795_s1 + $0x70c] ss:$16 sps:$4 sm:$0xff]  }
  0xab   :  { %6669 = vmatpush1.bf16.msra.mxu0 %v10014_v61  ;;  %7517 = vmatpush1.bf16.msra.mxu1 %v10017_v62  ;;  %v10098_v61 = vld [vmem:[%s14795_s1 + $0x700] ss:$16 sps:$4 sm:$0xff]   ;;  %v10101_v62 = vld [vmem:[%s14795_s1 + $0x708] ss:$16 sps:$4 sm:$0xff]  }
  0xac   :  { %6670 = vmatprep.subr.bf16.mxu0 %v10022_v63  ;;  %7518 = vmatprep.subr.bf16.mxu1 %v10025_v0  ;;  %v10106_v63 = vld [vmem:[%s14795_s1 + $0x724] ss:$16 sps:$4 sm:$0xff]   ;;  %v10109_v0 = vld [vmem:[%s14795_s1 + $0x72c] ss:$16 sps:$4 sm:$0xff]  }
  0xaf   :  { %6671 = vmatpush1.bf16.msra.mxu0 %v10020_v1  ;;  %7519 = vmatpush1.bf16.msra.mxu1 %v10023_v2  ;;  %v10104_v1 = vld [vmem:[%s14795_s1 + $0x720] ss:$16 sps:$4 sm:$0xff]   ;;  %v10107_v2 = vld [vmem:[%s14795_s1 + $0x728] ss:$16 sps:$4 sm:$0xff]  }
  0xb0   :  { %6672 = vmatprep.subr.bf16.mxu0 %v10028_v3  ;;  %7520 = vmatprep.subr.bf16.mxu1 %v10031_v4  ;;  %v10112_v3 = vld [vmem:[%s14795_s1 + $0x744] ss:$16 sps:$4 sm:$0xff]   ;;  %v10115_v4 = vld [vmem:[%s14795_s1 + $0x74c] ss:$16 sps:$4 sm:$0xff]  }
  0xb3   :  { %6673 = vmatpush1.bf16.msra.mxu0 %v10026_v5  ;;  %7521 = vmatpush1.bf16.msra.mxu1 %v10029_v6  ;;  %v10110_v5 = vld [vmem:[%s14795_s1 + $0x740] ss:$16 sps:$4 sm:$0xff]   ;;  %v10113_v6 = vld [vmem:[%s14795_s1 + $0x748] ss:$16 sps:$4 sm:$0xff]  }
  0xb4   :  { %6674 = vmatprep.subr.bf16.mxu0 %v10034_v7  ;;  %7522 = vmatprep.subr.bf16.mxu1 %v10037_v8  ;;  %v10118_v7 = vld [vmem:[%s14795_s1 + $0x764] ss:$16 sps:$4 sm:$0xff]   ;;  %v10121_v8 = vld [vmem:[%s14795_s1 + $0x76c] ss:$16 sps:$4 sm:$0xff]  }
  0xb7   :  { %6675 = vmatpush1.bf16.msra.mxu0 %v10032_v9  ;;  %7523 = vmatpush1.bf16.msra.mxu1 %v10035_v10  ;;  %v10116_v9 = vld [vmem:[%s14795_s1 + $0x760] ss:$16 sps:$4 sm:$0xff]   ;;  %v10119_v10 = vld [vmem:[%s14795_s1 + $0x768] ss:$16 sps:$4 sm:$0xff]  }
  0xb8   :  { %6676 = vmatprep.subr.bf16.mxu0 %v10040_v11  ;;  %7524 = vmatprep.subr.bf16.mxu1 %v10043_v12  ;;  %v10124_v11 = vld [vmem:[%s14795_s1 + $0x784] ss:$16 sps:$4 sm:$0xff]   ;;  %v10127_v12 = vld [vmem:[%s14795_s1 + $0x78c] ss:$16 sps:$4 sm:$0xff]  }
  0xbb   :  { %6677 = vmatpush1.bf16.msra.mxu0 %v10038_v13  ;;  %7525 = vmatpush1.bf16.msra.mxu1 %v10041_v14  ;;  %v10122_v13 = vld [vmem:[%s14795_s1 + $0x780] ss:$16 sps:$4 sm:$0xff]   ;;  %v10125_v14 = vld [vmem:[%s14795_s1 + $0x788] ss:$16 sps:$4 sm:$0xff]  }
  0xbc   :  { %6678 = vmatprep.subr.bf16.mxu0 %v10046_v15  ;;  %7526 = vmatprep.subr.bf16.mxu1 %v10049_v16  ;;  %v10130_v15 = vld [vmem:[%s14795_s1 + $0x7a4] ss:$16 sps:$4 sm:$0xff]   ;;  %v10133_v16 = vld [vmem:[%s14795_s1 + $0x7ac] ss:$16 sps:$4 sm:$0xff]  }
  0xbf   :  { %6679 = vmatpush1.bf16.msra.mxu0 %v10044_v17  ;;  %7527 = vmatpush1.bf16.msra.mxu1 %v10047_v18  ;;  %v10128_v17 = vld [vmem:[%s14795_s1 + $0x7a0] ss:$16 sps:$4 sm:$0xff]   ;;  %v10131_v18 = vld [vmem:[%s14795_s1 + $0x7a8] ss:$16 sps:$4 sm:$0xff]  }
  0xc0   :  { %6701 = vmatprep.subr.bf16.mxu0 %v10052_v19  ;;  %7549 = vmatprep.subr.bf16.mxu1 %v10055_v20  ;;  %v10136_v19 = vld [vmem:[%s14795_s1 + $0x7c4] ss:$16 sps:$4 sm:$0xff]   ;;  %v10139_v20 = vld [vmem:[%s14795_s1 + $0x7cc] ss:$16 sps:$4 sm:$0xff]  }
  0xc2   :  { %6681 = vmatmul.mubr.bf16.vlgmr.msra.gmra.mrb[0].mxu0 %v8436_v22  ;;  %7529 = vmatmul.mubr.bf16.vlgmr.msra.gmra.mrb[0].mxu1 %v8436_v22  ;;  %v10137_v22 = vld [vmem:[%s14795_s1 + $0x7c8] ss:$16 sps:$4 sm:$0xff]  }
  0xc3   :  { %6702 = vmatpush1.bf16.msra.mxu0 %v10050_v24  ;;  %7550 = vmatpush1.bf16.msra.mxu1 %v10053_v26  ;;  %v10145_v24 = vld [vmem:[%s14795_s1 + $0x7ec] ss:$16 sps:$4 sm:$0xff]   ;;  %v10140_v26 = vld [vmem:[%s14795_s1 + $0x7e0] ss:$16 sps:$4 sm:$0xff]  }
  0xc4   :  { %6703 = vmatprep.subr.bf16.mxu0 %v10058_v25  ;;  %7551 = vmatprep.subr.bf16.mxu1 %v10061_v27  ;;  %v10143_v25 = vld [vmem:[%s14795_s1 + $0x7e8] ss:$16 sps:$4 sm:$0xff]   ;;  %v10148_v27 = vld [vmem:[%s14795_s1 + $0x804] ss:$16 sps:$4 sm:$0xff]  }
  0xc5   :  { %6690 = vmatprep.mubr.bf16.mxu0 %v8469_v28  ;;  %7538 = vmatprep.mubr.bf16.mxu1 %v8469_v28  ;;  %v10151_v28 = vld [vmem:[%s14795_s1 + $0x80c] ss:$16 sps:$4 sm:$0xff]  }
  0xc7   :  { %6704 = vmatpush1.bf16.msra.mxu0 %v10056_v29  ;;  %7552 = vmatpush1.bf16.msra.mxu1 %v10059_v30  ;;  %v49_v29 = vld [vmem:[%s14796_s0 + $0x118] sm:$0xff]  ;;  %v8438_v30 = vcombine.low %v11986_v33, %v11991_v35 }
  0xc8   :  { %6705 = vmatprep.subr.bf16.mxu0 %v10064_v31  ;;  %7553 = vmatprep.subr.bf16.mxu1 %v10067_v32  ;;  %v65_v31 = vld [vmem:[%s14796_s0 + $0x198] sm:$0xff]  ;;  %v10146_v32 = vld [vmem:[%s14795_s1 + $0x800] ss:$16 sps:$4 sm:$0xff]  }
  0xc9   :  { %v10157_v33 = vld [vmem:[%s14795_s1 + $0x82c] ss:$16 sps:$4 sm:$0xff]   ;;  %v8471_v35 = vcombine.high %v49_v29, %v65_v31 }
  0xca   :  { %6691 = vmatmul.mubr.bf16.gmra.mrb[4].mxu0 %v8468_v34  ;;  %7539 = vmatmul.mubr.bf16.gmra.mrb[4].mxu1 %v8468_v34  ;;  %v10149_v34 = vld [vmem:[%s14795_s1 + $0x808] ss:$16 sps:$4 sm:$0xff]  }
  0xcb   :  { %6706 = vmatpush1.bf16.msra.mxu0 %v10062_v36  ;;  %7554 = vmatpush1.bf16.msra.mxu1 %v10065_v37  ;;  %v10154_v36 = vld [vmem:[%s14795_s1 + $0x824] ss:$16 sps:$4 sm:$0xff]   ;;  %v10152_v37 = vld [vmem:[%s14795_s1 + $0x820] ss:$16 sps:$4 sm:$0xff]  }
  0xcc   :  { %6707 = vmatprep.subr.bf16.mxu0 %v10070_v38  ;;  %7555 = vmatprep.subr.bf16.mxu1 %v10073_v39  ;;  %v10155_v38 = vld [vmem:[%s14795_s1 + $0x828] ss:$16 sps:$4 sm:$0xff]   ;;  %v10160_v39 = vld [vmem:[%s14795_s1 + $0x844] ss:$16 sps:$4 sm:$0xff]  }
  0xcd   :  { %6733 = vmatprep.mubr.bf16.mxu0 %v8439_v40  ;;  %7581 = vmatprep.mubr.bf16.mxu1 %v8439_v40  ;;  %v10163_v40 = vld [vmem:[%s14795_s1 + $0x84c] ss:$16 sps:$4 sm:$0xff]  }
  0xcf   :  { %6708 = vmatpush1.bf16.msra.mxu0 %v10068_v41  ;;  %7556 = vmatpush1.bf16.msra.mxu1 %v10071_v42  ;;  %v12198_v41 = vld [vmem:[%s14796_s0 + $0x20] sm:$0xff]  ;;  %v8470_v42 = vcombine.low %v49_v29, %v65_v31 }
  0xd0   :  { %6709 = vmatprep.subr.bf16.mxu0 %v10076_v43  ;;  %7557 = vmatprep.subr.bf16.mxu1 %v10079_v44  ;;  %v12203_v43 = vld [vmem:[%s14796_s0 + $0xa0] sm:$0xff] }
  0xd1   :  { %v10158_v44 = vld [vmem:[%s14795_s1 + $0x840] ss:$16 sps:$4 sm:$0xff]   ;;  %v10238_v31 = vld [vmem:[%s14795_s1 + $0x9e4] ss:$16 sps:$4 sm:$0xff]  }
  0xd2   :  { %v10230_v29 = vld [vmem:[%s14795_s1 + $0x9c0] ss:$16 sps:$4 sm:$0xff]  }
  0xd3   :  { %6710 = vmatpush1.bf16.msra.mxu0 %v10074_v45  ;;  %7558 = vmatpush1.bf16.msra.mxu1 %v10077_v46  ;;  %v10161_v45 = vld [vmem:[%s14795_s1 + $0x848] ss:$16 sps:$4 sm:$0xff]   ;;  %v10166_v46 = vld [vmem:[%s14795_s1 + $0x864] ss:$16 sps:$4 sm:$0xff]  }
  0xd4   :  { %6711 = vmatprep.subr.bf16.mxu0 %v10082_v47  ;;  %7559 = vmatprep.subr.bf16.mxu1 %v10085_v48  ;;  %v10169_v47 = vld [vmem:[%s14795_s1 + $0x86c] ss:$16 sps:$4 sm:$0xff]   ;;  %v8441_v48 = vcombine.high %v12198_v41, %v12203_v43 }
  0xd7   :  { %6712 = vmatpush1.bf16.msra.mxu0 %v10080_v49  ;;  %7560 = vmatpush1.bf16.msra.mxu1 %v10083_v50  ;;  %v10164_v49 = vld [vmem:[%s14795_s1 + $0x860] ss:$16 sps:$4 sm:$0xff]   ;;  %v10167_v50 = vld [vmem:[%s14795_s1 + $0x868] ss:$16 sps:$4 sm:$0xff]  }
  0xd8   :  { %6713 = vmatprep.subr.bf16.mxu0 %v10088_v51  ;;  %7561 = vmatprep.subr.bf16.mxu1 %v10091_v52  ;;  %v10172_v51 = vld [vmem:[%s14795_s1 + $0x884] ss:$16 sps:$4 sm:$0xff]   ;;  %v10175_v52 = vld [vmem:[%s14795_s1 + $0x88c] ss:$16 sps:$4 sm:$0xff]  }
  0xdb   :  { %6714 = vmatpush1.bf16.msra.mxu0 %v10086_v53  ;;  %7562 = vmatpush1.bf16.msra.mxu1 %v10089_v54  ;;  %v10170_v53 = vld [vmem:[%s14795_s1 + $0x880] ss:$16 sps:$4 sm:$0xff]   ;;  %v10173_v54 = vld [vmem:[%s14795_s1 + $0x888] ss:$16 sps:$4 sm:$0xff]  }
  0xdc   :  { %6715 = vmatprep.subr.bf16.mxu0 %v10094_v55  ;;  %7563 = vmatprep.subr.bf16.mxu1 %v10097_v56  ;;  %v10178_v55 = vld [vmem:[%s14795_s1 + $0x8a4] ss:$16 sps:$4 sm:$0xff]   ;;  %v10181_v56 = vld [vmem:[%s14795_s1 + $0x8ac] ss:$16 sps:$4 sm:$0xff]  }
  0xdf   :  { %6716 = vmatpush1.bf16.msra.mxu0 %v10092_v57  ;;  %7564 = vmatpush1.bf16.msra.mxu1 %v10095_v58  ;;  %v10176_v57 = vld [vmem:[%s14795_s1 + $0x8a0] ss:$16 sps:$4 sm:$0xff]   ;;  %v10179_v58 = vld [vmem:[%s14795_s1 + $0x8a8] ss:$16 sps:$4 sm:$0xff]  }
  0xe0   :  { %6717 = vmatprep.subr.bf16.mxu0 %v10100_v59  ;;  %7565 = vmatprep.subr.bf16.mxu1 %v10103_v60  ;;  %v10184_v59 = vld [vmem:[%s14795_s1 + $0x8c4] ss:$16 sps:$4 sm:$0xff]   ;;  %v10187_v60 = vld [vmem:[%s14795_s1 + $0x8cc] ss:$16 sps:$4 sm:$0xff]  }
  0xe3   :  { %6718 = vmatpush1.bf16.msra.mxu0 %v10098_v61  ;;  %7566 = vmatpush1.bf16.msra.mxu1 %v10101_v62  ;;  %v10182_v61 = vld [vmem:[%s14795_s1 + $0x8c0] ss:$16 sps:$4 sm:$0xff]   ;;  %v10185_v62 = vld [vmem:[%s14795_s1 + $0x8c8] ss:$16 sps:$4 sm:$0xff]  }
  0xe4   :  { %6719 = vmatprep.subr.bf16.mxu0 %v10106_v63  ;;  %7567 = vmatprep.subr.bf16.mxu1 %v10109_v0  ;;  %v10190_v63 = vld [vmem:[%s14795_s1 + $0x8e4] ss:$16 sps:$4 sm:$0xff]   ;;  %v10193_v0 = vld [vmem:[%s14795_s1 + $0x8ec] ss:$16 sps:$4 sm:$0xff]  }
  0xe7   :  { %6720 = vmatpush1.bf16.msra.mxu0 %v10104_v1  ;;  %7568 = vmatpush1.bf16.msra.mxu1 %v10107_v2  ;;  %v10188_v1 = vld [vmem:[%s14795_s1 + $0x8e0] ss:$16 sps:$4 sm:$0xff]   ;;  %v10191_v2 = vld [vmem:[%s14795_s1 + $0x8e8] ss:$16 sps:$4 sm:$0xff]  }
  0xe8   :  { %6721 = vmatprep.subr.bf16.mxu0 %v10112_v3  ;;  %7569 = vmatprep.subr.bf16.mxu1 %v10115_v4  ;;  %v10196_v3 = vld [vmem:[%s14795_s1 + $0x904] ss:$16 sps:$4 sm:$0xff]   ;;  %v10199_v4 = vld [vmem:[%s14795_s1 + $0x90c] ss:$16 sps:$4 sm:$0xff]  }
  0xeb   :  { %6722 = vmatpush1.bf16.msra.mxu0 %v10110_v5  ;;  %7570 = vmatpush1.bf16.msra.mxu1 %v10113_v6  ;;  %v10194_v5 = vld [vmem:[%s14795_s1 + $0x900] ss:$16 sps:$4 sm:$0xff]   ;;  %v10197_v6 = vld [vmem:[%s14795_s1 + $0x908] ss:$16 sps:$4 sm:$0xff]  }
  0xec   :  { %6723 = vmatprep.subr.bf16.mxu0 %v10118_v7  ;;  %7571 = vmatprep.subr.bf16.mxu1 %v10121_v8  ;;  %v10202_v7 = vld [vmem:[%s14795_s1 + $0x924] ss:$16 sps:$4 sm:$0xff]   ;;  %v10205_v8 = vld [vmem:[%s14795_s1 + $0x92c] ss:$16 sps:$4 sm:$0xff]  }
  0xef   :  { %6724 = vmatpush1.bf16.msra.mxu0 %v10116_v9  ;;  %7572 = vmatpush1.bf16.msra.mxu1 %v10119_v10  ;;  %v10200_v9 = vld [vmem:[%s14795_s1 + $0x920] ss:$16 sps:$4 sm:$0xff]   ;;  %v10203_v10 = vld [vmem:[%s14795_s1 + $0x928] ss:$16 sps:$4 sm:$0xff]  }
  0xf0   :  { %6725 = vmatprep.subr.bf16.mxu0 %v10124_v11  ;;  %7573 = vmatprep.subr.bf16.mxu1 %v10127_v12  ;;  %v10208_v11 = vld [vmem:[%s14795_s1 + $0x944] ss:$16 sps:$4 sm:$0xff]   ;;  %v10211_v12 = vld [vmem:[%s14795_s1 + $0x94c] ss:$16 sps:$4 sm:$0xff]  }
  0xf3   :  { %6726 = vmatpush1.bf16.msra.mxu0 %v10122_v13  ;;  %7574 = vmatpush1.bf16.msra.mxu1 %v10125_v14  ;;  %v10206_v13 = vld [vmem:[%s14795_s1 + $0x940] ss:$16 sps:$4 sm:$0xff]   ;;  %v10209_v14 = vld [vmem:[%s14795_s1 + $0x948] ss:$16 sps:$4 sm:$0xff]  }
  0xf4   :  { %6727 = vmatprep.subr.bf16.mxu0 %v10130_v15  ;;  %7575 = vmatprep.subr.bf16.mxu1 %v10133_v16  ;;  %v10214_v15 = vld [vmem:[%s14795_s1 + $0x964] ss:$16 sps:$4 sm:$0xff]   ;;  %v10217_v16 = vld [vmem:[%s14795_s1 + $0x96c] ss:$16 sps:$4 sm:$0xff]  }
  0xf7   :  { %6728 = vmatpush1.bf16.msra.mxu0 %v10128_v17  ;;  %7576 = vmatpush1.bf16.msra.mxu1 %v10131_v18  ;;  %v10212_v17 = vld [vmem:[%s14795_s1 + $0x960] ss:$16 sps:$4 sm:$0xff]   ;;  %v10215_v18 = vld [vmem:[%s14795_s1 + $0x968] ss:$16 sps:$4 sm:$0xff]  }
  0xf8   :  { %6729 = vmatprep.subr.bf16.mxu0 %v10136_v19  ;;  %7577 = vmatprep.subr.bf16.mxu1 %v10139_v20  ;;  %v10220_v19 = vld [vmem:[%s14795_s1 + $0x984] ss:$16 sps:$4 sm:$0xff]   ;;  %v10223_v20 = vld [vmem:[%s14795_s1 + $0x98c] ss:$16 sps:$4 sm:$0xff]  }
  0xfb   :  { %6730 = vmatpush1.bf16.msra.mxu0 %v10134_v21  ;;  %7578 = vmatpush1.bf16.msra.mxu1 %v10137_v22  ;;  %v10218_v21 = vld [vmem:[%s14795_s1 + $0x980] ss:$16 sps:$4 sm:$0xff]   ;;  %v10221_v22 = vld [vmem:[%s14795_s1 + $0x988] ss:$16 sps:$4 sm:$0xff]  }
  0xfc   :  { %6731 = vmatprep.subr.bf16.mxu0 %v10142_v23  ;;  %7579 = vmatprep.subr.bf16.mxu1 %v10145_v24  ;;  %v10226_v23 = vld [vmem:[%s14795_s1 + $0x9a4] ss:$16 sps:$4 sm:$0xff]   ;;  %v10229_v24 = vld [vmem:[%s14795_s1 + $0x9ac] ss:$16 sps:$4 sm:$0xff]  }
  0xff   :  { %6732 = vmatpush1.bf16.msra.mxu0 %v10140_v26  ;;  %7580 = vmatpush1.bf16.msra.mxu1 %v10143_v25  ;;  %v10224_v26 = vld [vmem:[%s14795_s1 + $0x9a0] ss:$16 sps:$4 sm:$0xff]   ;;  %v10227_v25 = vld [vmem:[%s14795_s1 + $0x9a8] ss:$16 sps:$4 sm:$0xff]  }
 0x100   :  { %6754 = vmatprep.subr.bf16.mxu0 %v10148_v27  ;;  %7602 = vmatprep.subr.bf16.mxu1 %v10151_v28  ;;  %v10232_v27 = vld [vmem:[%s14795_s1 + $0x9c4] ss:$16 sps:$4 sm:$0xff]   ;;  %v10235_v28 = vld [vmem:[%s14795_s1 + $0x9cc] ss:$16 sps:$4 sm:$0xff]  }
 0x102   :  { %6734 = vmatmul.mubr.bf16.vlgmr.msra.gmra.mrb[0].mxu0 %v8438_v30  ;;  %7582 = vmatmul.mubr.bf16.vlgmr.msra.gmra.mrb[0].mxu1 %v8438_v30  ;;  %v10233_v30 = vld [vmem:[%s14795_s1 + $0x9c8] ss:$16 sps:$4 sm:$0xff]  }
 0x103   :  { %6755 = vmatpush1.bf16.msra.mxu0 %v10146_v32  ;;  %7603 = vmatpush1.bf16.msra.mxu1 %v10149_v34  ;;  %v10241_v32 = vld [vmem:[%s14795_s1 + $0x9ec] ss:$16 sps:$4 sm:$0xff]   ;;  %v10236_v34 = vld [vmem:[%s14795_s1 + $0x9e0] ss:$16 sps:$4 sm:$0xff]  }
 0x104   :  { %6756 = vmatprep.subr.bf16.mxu0 %v10154_v36  ;;  %7604 = vmatprep.subr.bf16.mxu1 %v10157_v33  ;;  %v10239_v36 = vld [vmem:[%s14795_s1 + $0x9e8] ss:$16 sps:$4 sm:$0xff]   ;;  %v10244_v33 = vld [vmem:[%s14795_s1 + $0xa04] ss:$16 sps:$4 sm:$0xff]  }
 0x105   :  { %6743 = vmatprep.mubr.bf16.mxu0 %v8471_v35  ;;  %7591 = vmatprep.mubr.bf16.mxu1 %v8471_v35  ;;  %v10247_v35 = vld [vmem:[%s14795_s1 + $0xa0c] ss:$16 sps:$4 sm:$0xff]  }
 0x107   :  { %6757 = vmatpush1.bf16.msra.mxu0 %v10152_v37  ;;  %7605 = vmatpush1.bf16.msra.mxu1 %v10155_v38  ;;  %v50_v37 = vld [vmem:[%s14796_s0 + $0x120] sm:$0xff] }
 0x108   :  { %6758 = vmatprep.subr.bf16.mxu0 %v10160_v39  ;;  %7606 = vmatprep.subr.bf16.mxu1 %v10163_v40  ;;  %v66_v38 = vld [vmem:[%s14796_s0 + $0x1a0] sm:$0xff]  ;;  %v8440_v39 = vcombine.low %v12198_v41, %v12203_v43  ;;  %v10253_v41 = vld [vmem:[%s14795_s1 + $0xa2c] ss:$16 sps:$4 sm:$0xff]  }
 0x109   :  { %v10242_v40 = vld [vmem:[%s14795_s1 + $0xa00] ss:$16 sps:$4 sm:$0xff]  }
 0x10a   :  { %6744 = vmatmul.mubr.bf16.gmra.mrb[4].mxu0 %v8470_v42  ;;  %7592 = vmatmul.mubr.bf16.gmra.mrb[4].mxu1 %v8470_v42  ;;  %v10245_v42 = vld [vmem:[%s14795_s1 + $0xa08] ss:$16 sps:$4 sm:$0xff]   ;;  %v10248_v43 = vld [vmem:[%s14795_s1 + $0xa20] ss:$16 sps:$4 sm:$0xff]  }
 0x10b   :  { %6759 = vmatpush1.bf16.msra.mxu0 %v10158_v44  ;;  %7607 = vmatpush1.bf16.msra.mxu1 %v10161_v45  ;;  %v10250_v44 = vld [vmem:[%s14795_s1 + $0xa24] ss:$16 sps:$4 sm:$0xff]   ;;  %v10251_v45 = vld [vmem:[%s14795_s1 + $0xa28] ss:$16 sps:$4 sm:$0xff]  }
 0x10c   :  { %6760 = vmatprep.subr.bf16.mxu0 %v10166_v46  ;;  %7608 = vmatprep.subr.bf16.mxu1 %v10169_v47  ;;  %v8473_v46 = vcombine.high %v50_v37, %v66_v38  ;;  %v10256_v47 = vld [vmem:[%s14795_s1 + $0xa44] ss:$16 sps:$4 sm:$0xff]  }
 0x10d   :  { %6786 = vmatprep.mubr.bf16.mxu0 %v8441_v48  ;;  %7634 = vmatprep.mubr.bf16.mxu1 %v8441_v48  ;;  %v10259_v48 = vld [vmem:[%s14795_s1 + $0xa4c] ss:$16 sps:$4 sm:$0xff]  }
 0x10f   :  { %6761 = vmatpush1.bf16.msra.mxu0 %v10164_v49  ;;  %7609 = vmatpush1.bf16.msra.mxu1 %v10167_v50  ;;  %v12410_v49 = vld [vmem:[%s14796_s0 + $0x28] sm:$0xff] }
 0x110   :  { %6762 = vmatprep.subr.bf16.mxu0 %v10172_v51  ;;  %7610 = vmatprep.subr.bf16.mxu1 %v10175_v52  ;;  %v12415_v50 = vld [vmem:[%s14796_s0 + $0xa8] sm:$0xff]  ;;  %v8472_v51 = vcombine.low %v50_v37, %v66_v38  ;;  %v10254_v52 = vld [vmem:[%s14795_s1 + $0xa40] ss:$16 sps:$4 sm:$0xff]  }
 0x111   :  { %v10326_v37 = vld [vmem:[%s14795_s1 + $0xbc0] ss:$16 sps:$4 sm:$0xff]   ;;  %v10329_v38 = vld [vmem:[%s14795_s1 + $0xbc8] ss:$16 sps:$4 sm:$0xff]  }
 0x113   :  { %6763 = vmatpush1.bf16.msra.mxu0 %v10170_v53  ;;  %7611 = vmatpush1.bf16.msra.mxu1 %v10173_v54  ;;  %v10257_v53 = vld [vmem:[%s14795_s1 + $0xa48] ss:$16 sps:$4 sm:$0xff]   ;;  %v10262_v54 = vld [vmem:[%s14795_s1 + $0xa64] ss:$16 sps:$4 sm:$0xff]  }
 0x114   :  { %6764 = vmatprep.subr.bf16.mxu0 %v10178_v55  ;;  %7612 = vmatprep.subr.bf16.mxu1 %v10181_v56  ;;  %v10265_v55 = vld [vmem:[%s14795_s1 + $0xa6c] ss:$16 sps:$4 sm:$0xff]   ;;  %v8443_v56 = vcombine.high %v12410_v49, %v12415_v50 }
 0x117   :  { %6765 = vmatpush1.bf16.msra.mxu0 %v10176_v57  ;;  %7613 = vmatpush1.bf16.msra.mxu1 %v10179_v58  ;;  %v10260_v57 = vld [vmem:[%s14795_s1 + $0xa60] ss:$16 sps:$4 sm:$0xff]   ;;  %v10263_v58 = vld [vmem:[%s14795_s1 + $0xa68] ss:$16 sps:$4 sm:$0xff]  }
 0x118   :  { %6766 = vmatprep.subr.bf16.mxu0 %v10184_v59  ;;  %7614 = vmatprep.subr.bf16.mxu1 %v10187_v60  ;;  %v10268_v59 = vld [vmem:[%s14795_s1 + $0xa84] ss:$16 sps:$4 sm:$0xff]   ;;  %v10271_v60 = vld [vmem:[%s14795_s1 + $0xa8c] ss:$16 sps:$4 sm:$0xff]  }
 0x11b   :  { %6767 = vmatpush1.bf16.msra.mxu0 %v10182_v61  ;;  %7615 = vmatpush1.bf16.msra.mxu1 %v10185_v62  ;;  %v10266_v61 = vld [vmem:[%s14795_s1 + $0xa80] ss:$16 sps:$4 sm:$0xff]   ;;  %v10269_v62 = vld [vmem:[%s14795_s1 + $0xa88] ss:$16 sps:$4 sm:$0xff]  }
 0x11c   :  { %6768 = vmatprep.subr.bf16.mxu0 %v10190_v63  ;;  %7616 = vmatprep.subr.bf16.mxu1 %v10193_v0  ;;  %v10274_v63 = vld [vmem:[%s14795_s1 + $0xaa4] ss:$16 sps:$4 sm:$0xff]   ;;  %v10277_v0 = vld [vmem:[%s14795_s1 + $0xaac] ss:$16 sps:$4 sm:$0xff]  }
 0x11f   :  { %6769 = vmatpush1.bf16.msra.mxu0 %v10188_v1  ;;  %7617 = vmatpush1.bf16.msra.mxu1 %v10191_v2  ;;  %v10272_v1 = vld [vmem:[%s14795_s1 + $0xaa0] ss:$16 sps:$4 sm:$0xff]   ;;  %v10275_v2 = vld [vmem:[%s14795_s1 + $0xaa8] ss:$16 sps:$4 sm:$0xff]  }
 0x120   :  { %6770 = vmatprep.subr.bf16.mxu0 %v10196_v3  ;;  %7618 = vmatprep.subr.bf16.mxu1 %v10199_v4  ;;  %v10280_v3 = vld [vmem:[%s14795_s1 + $0xac4] ss:$16 sps:$4 sm:$0xff]   ;;  %v10283_v4 = vld [vmem:[%s14795_s1 + $0xacc] ss:$16 sps:$4 sm:$0xff]  }
 0x123   :  { %6771 = vmatpush1.bf16.msra.mxu0 %v10194_v5  ;;  %7619 = vmatpush1.bf16.msra.mxu1 %v10197_v6  ;;  %v10278_v5 = vld [vmem:[%s14795_s1 + $0xac0] ss:$16 sps:$4 sm:$0xff]   ;;  %v10281_v6 = vld [vmem:[%s14795_s1 + $0xac8] ss:$16 sps:$4 sm:$0xff]  }
 0x124   :  { %6772 = vmatprep.subr.bf16.mxu0 %v10202_v7  ;;  %7620 = vmatprep.subr.bf16.mxu1 %v10205_v8  ;;  %v10286_v7 = vld [vmem:[%s14795_s1 + $0xae4] ss:$16 sps:$4 sm:$0xff]   ;;  %v10289_v8 = vld [vmem:[%s14795_s1 + $0xaec] ss:$16 sps:$4 sm:$0xff]  }
 0x127   :  { %6773 = vmatpush1.bf16.msra.mxu0 %v10200_v9  ;;  %7621 = vmatpush1.bf16.msra.mxu1 %v10203_v10  ;;  %v10284_v9 = vld [vmem:[%s14795_s1 + $0xae0] ss:$16 sps:$4 sm:$0xff]   ;;  %v10287_v10 = vld [vmem:[%s14795_s1 + $0xae8] ss:$16 sps:$4 sm:$0xff]  }
 0x128   :  { %6774 = vmatprep.subr.bf16.mxu0 %v10208_v11  ;;  %7622 = vmatprep.subr.bf16.mxu1 %v10211_v12  ;;  %v10292_v11 = vld [vmem:[%s14795_s1 + $0xb04] ss:$16 sps:$4 sm:$0xff]   ;;  %v10295_v12 = vld [vmem:[%s14795_s1 + $0xb0c] ss:$16 sps:$4 sm:$0xff]  }
 0x12b   :  { %6775 = vmatpush1.bf16.msra.mxu0 %v10206_v13  ;;  %7623 = vmatpush1.bf16.msra.mxu1 %v10209_v14  ;;  %v10290_v13 = vld [vmem:[%s14795_s1 + $0xb00] ss:$16 sps:$4 sm:$0xff]   ;;  %v10293_v14 = vld [vmem:[%s14795_s1 + $0xb08] ss:$16 sps:$4 sm:$0xff]  }
 0x12c   :  { %6776 = vmatprep.subr.bf16.mxu0 %v10214_v15  ;;  %7624 = vmatprep.subr.bf16.mxu1 %v10217_v16  ;;  %v10298_v15 = vld [vmem:[%s14795_s1 + $0xb24] ss:$16 sps:$4 sm:$0xff]   ;;  %v10301_v16 = vld [vmem:[%s14795_s1 + $0xb2c] ss:$16 sps:$4 sm:$0xff]  }
 0x12f   :  { %6777 = vmatpush1.bf16.msra.mxu0 %v10212_v17  ;;  %7625 = vmatpush1.bf16.msra.mxu1 %v10215_v18  ;;  %v10296_v17 = vld [vmem:[%s14795_s1 + $0xb20] ss:$16 sps:$4 sm:$0xff]   ;;  %v10299_v18 = vld [vmem:[%s14795_s1 + $0xb28] ss:$16 sps:$4 sm:$0xff]  }
 0x130   :  { %6778 = vmatprep.subr.bf16.mxu0 %v10220_v19  ;;  %7626 = vmatprep.subr.bf16.mxu1 %v10223_v20  ;;  %v10304_v19 = vld [vmem:[%s14795_s1 + $0xb44] ss:$16 sps:$4 sm:$0xff]   ;;  %v10307_v20 = vld [vmem:[%s14795_s1 + $0xb4c] ss:$16 sps:$4 sm:$0xff]  }
 0x133   :  { %6779 = vmatpush1.bf16.msra.mxu0 %v10218_v21  ;;  %7627 = vmatpush1.bf16.msra.mxu1 %v10221_v22  ;;  %v10302_v21 = vld [vmem:[%s14795_s1 + $0xb40] ss:$16 sps:$4 sm:$0xff]   ;;  %v10305_v22 = vld [vmem:[%s14795_s1 + $0xb48] ss:$16 sps:$4 sm:$0xff]  }
 0x134   :  { %6780 = vmatprep.subr.bf16.mxu0 %v10226_v23  ;;  %7628 = vmatprep.subr.bf16.mxu1 %v10229_v24  ;;  %v10310_v23 = vld [vmem:[%s14795_s1 + $0xb64] ss:$16 sps:$4 sm:$0xff]   ;;  %v10313_v24 = vld [vmem:[%s14795_s1 + $0xb6c] ss:$16 sps:$4 sm:$0xff]  }
 0x137   :  { %6781 = vmatpush1.bf16.msra.mxu0 %v10224_v26  ;;  %7629 = vmatpush1.bf16.msra.mxu1 %v10227_v25  ;;  %v10308_v26 = vld [vmem:[%s14795_s1 + $0xb60] ss:$16 sps:$4 sm:$0xff]   ;;  %v10311_v25 = vld [vmem:[%s14795_s1 + $0xb68] ss:$16 sps:$4 sm:$0xff]  }
 0x138   :  { %6782 = vmatprep.subr.bf16.mxu0 %v10232_v27  ;;  %7630 = vmatprep.subr.bf16.mxu1 %v10235_v28  ;;  %v10316_v27 = vld [vmem:[%s14795_s1 + $0xb84] ss:$16 sps:$4 sm:$0xff]   ;;  %v10319_v28 = vld [vmem:[%s14795_s1 + $0xb8c] ss:$16 sps:$4 sm:$0xff]  }
 0x13b   :  { %6783 = vmatpush1.bf16.msra.mxu0 %v10230_v29  ;;  %7631 = vmatpush1.bf16.msra.mxu1 %v10233_v30  ;;  %v10314_v29 = vld [vmem:[%s14795_s1 + $0xb80] ss:$16 sps:$4 sm:$0xff]   ;;  %v10317_v30 = vld [vmem:[%s14795_s1 + $0xb88] ss:$16 sps:$4 sm:$0xff]  }
 0x13c   :  { %6784 = vmatprep.subr.bf16.mxu0 %v10238_v31  ;;  %7632 = vmatprep.subr.bf16.mxu1 %v10241_v32  ;;  %v10322_v31 = vld [vmem:[%s14795_s1 + $0xba4] ss:$16 sps:$4 sm:$0xff]   ;;  %v10325_v32 = vld [vmem:[%s14795_s1 + $0xbac] ss:$16 sps:$4 sm:$0xff]  }
 0x13f   :  { %6785 = vmatpush1.bf16.msra.mxu0 %v10236_v34  ;;  %7633 = vmatpush1.bf16.msra.mxu1 %v10239_v36  ;;  %v10320_v34 = vld [vmem:[%s14795_s1 + $0xba0] ss:$16 sps:$4 sm:$0xff]   ;;  %v10323_v36 = vld [vmem:[%s14795_s1 + $0xba8] ss:$16 sps:$4 sm:$0xff]  }
 0x140   :  { %6807 = vmatprep.subr.bf16.mxu0 %v10244_v33  ;;  %7655 = vmatprep.subr.bf16.mxu1 %v10247_v35  ;;  %v10328_v33 = vld [vmem:[%s14795_s1 + $0xbc4] ss:$16 sps:$4 sm:$0xff]   ;;  %v10331_v35 = vld [vmem:[%s14795_s1 + $0xbcc] ss:$16 sps:$4 sm:$0xff]  }
 0x142   :  { %6787 = vmatmul.mubr.bf16.vlgmr.msra.gmra.mrb[0].mxu0 %v8440_v39  ;;  %7635 = vmatmul.mubr.bf16.vlgmr.msra.gmra.mrb[0].mxu1 %v8440_v39  ;;  %v10334_v39 = vld [vmem:[%s14795_s1 + $0xbe4] ss:$16 sps:$4 sm:$0xff]  }
 0x143   :  { %6808 = vmatpush1.bf16.msra.mxu0 %v10242_v40  ;;  %7656 = vmatpush1.bf16.msra.mxu1 %v10245_v42  ;;  %v10337_v40 = vld [vmem:[%s14795_s1 + $0xbec] ss:$16 sps:$4 sm:$0xff]   ;;  %v10332_v42 = vld [vmem:[%s14795_s1 + $0xbe0] ss:$16 sps:$4 sm:$0xff]  }
 0x144   :  { %6809 = vmatprep.subr.bf16.mxu0 %v10250_v44  ;;  %7657 = vmatprep.subr.bf16.mxu1 %v10253_v41  ;;  %v10335_v44 = vld [vmem:[%s14795_s1 + $0xbe8] ss:$16 sps:$4 sm:$0xff]   ;;  %v10340_v41 = vld [vmem:[%s14795_s1 + $0xc04] ss:$16 sps:$4 sm:$0xff]  }
 0x145   :  { %6796 = vmatprep.mubr.bf16.mxu0 %v8473_v46  ;;  %7644 = vmatprep.mubr.bf16.mxu1 %v8473_v46  ;;  %v67_v46 = vld [vmem:[%s14796_s0 + $0x1a8] sm:$0xff] }
 0x147   :  { %6810 = vmatpush1.bf16.msra.mxu0 %v10248_v43  ;;  %7658 = vmatpush1.bf16.msra.mxu1 %v10251_v45  ;;  %v10343_v43 = vld [vmem:[%s14795_s1 + $0xc0c] ss:$16 sps:$4 sm:$0xff]  }
 0x148   :  { %6811 = vmatprep.subr.bf16.mxu0 %v10256_v47  ;;  %7659 = vmatprep.subr.bf16.mxu1 %v10259_v48  ;;  %v51_v45 = vld [vmem:[%s14796_s0 + $0x128] sm:$0xff]  ;;  %v8442_v47 = vcombine.low %v12410_v49, %v12415_v50  ;;  %v10338_v48 = vld [vmem:[%s14795_s1 + $0xc00] ss:$16 sps:$4 sm:$0xff]  }
 0x149   :  { %v10349_v49 = vld [vmem:[%s14795_s1 + $0xc2c] ss:$16 sps:$4 sm:$0xff]   ;;  %v10344_v50 = vld [vmem:[%s14795_s1 + $0xc20] ss:$16 sps:$4 sm:$0xff]  }
 0x14a   :  { %6797 = vmatmul.mubr.bf16.gmra.mrb[4].mxu0 %v8472_v51  ;;  %7645 = vmatmul.mubr.bf16.gmra.mrb[4].mxu1 %v8472_v51  ;;  %v10341_v51 = vld [vmem:[%s14795_s1 + $0xc08] ss:$16 sps:$4 sm:$0xff]  }
 0x14b   :  { %6812 = vmatpush1.bf16.msra.mxu0 %v10254_v52  ;;  %7660 = vmatpush1.bf16.msra.mxu1 %v10257_v53  ;;  %v10346_v52 = vld [vmem:[%s14795_s1 + $0xc24] ss:$16 sps:$4 sm:$0xff]   ;;  %v10347_v53 = vld [vmem:[%s14795_s1 + $0xc28] ss:$16 sps:$4 sm:$0xff]  }
 0x14c   :  { %6813 = vmatprep.subr.bf16.mxu0 %v10262_v54  ;;  %7661 = vmatprep.subr.bf16.mxu1 %v10265_v55  ;;  %v8475_v54 = vcombine.high %v51_v45, %v67_v46  ;;  %v10352_v55 = vld [vmem:[%s14795_s1 + $0xc44] ss:$16 sps:$4 sm:$0xff]  }
 0x14d   :  { %6839 = vmatprep.mubr.bf16.mxu0 %v8443_v56  ;;  %7687 = vmatprep.mubr.bf16.mxu1 %v8443_v56  ;;  %v10355_v56 = vld [vmem:[%s14795_s1 + $0xc4c] ss:$16 sps:$4 sm:$0xff]  }
 0x14f   :  { %6814 = vmatpush1.bf16.msra.mxu0 %v10260_v57  ;;  %7662 = vmatpush1.bf16.msra.mxu1 %v10263_v58  ;;  %v12622_v57 = vld [vmem:[%s14796_s0 + $0x30] sm:$0xff] }
 0x150   :  { %6815 = vmatprep.subr.bf16.mxu0 %v10268_v59  ;;  %7663 = vmatprep.subr.bf16.mxu1 %v10271_v60  ;;  %v12627_v58 = vld [vmem:[%s14796_s0 + $0xb0] sm:$0xff]  ;;  %v8474_v59 = vcombine.low %v51_v45, %v67_v46  ;;  %v10425_v46 = vld [vmem:[%s14795_s1 + $0xdc8] ss:$16 sps:$4 sm:$0xff]  }
 0x151   :  { %v10350_v60 = vld [vmem:[%s14795_s1 + $0xc40] ss:$16 sps:$4 sm:$0xff]  }
 0x152   :  { %v10422_v45 = vld [vmem:[%s14795_s1 + $0xdc0] ss:$16 sps:$4 sm:$0xff]  }
 0x153   :  { %6816 = vmatpush1.bf16.msra.mxu0 %v10266_v61  ;;  %7664 = vmatpush1.bf16.msra.mxu1 %v10269_v62  ;;  %v10353_v61 = vld [vmem:[%s14795_s1 + $0xc48] ss:$16 sps:$4 sm:$0xff]   ;;  %v10358_v62 = vld [vmem:[%s14795_s1 + $0xc64] ss:$16 sps:$4 sm:$0xff]  }
 0x154   :  { %6817 = vmatprep.subr.bf16.mxu0 %v10274_v63  ;;  %7665 = vmatprep.subr.bf16.mxu1 %v10277_v0  ;;  %v10361_v63 = vld [vmem:[%s14795_s1 + $0xc6c] ss:$16 sps:$4 sm:$0xff]   ;;  %v8445_v0 = vcombine.high %v12622_v57, %v12627_v58 }
 0x157   :  { %6818 = vmatpush1.bf16.msra.mxu0 %v10272_v1  ;;  %7666 = vmatpush1.bf16.msra.mxu1 %v10275_v2  ;;  %v10356_v1 = vld [vmem:[%s14795_s1 + $0xc60] ss:$16 sps:$4 sm:$0xff]   ;;  %v10359_v2 = vld [vmem:[%s14795_s1 + $0xc68] ss:$16 sps:$4 sm:$0xff]  }
 0x158   :  { %6819 = vmatprep.subr.bf16.mxu0 %v10280_v3  ;;  %7667 = vmatprep.subr.bf16.mxu1 %v10283_v4  ;;  %v10364_v3 = vld [vmem:[%s14795_s1 + $0xc84] ss:$16 sps:$4 sm:$0xff]   ;;  %v10367_v4 = vld [vmem:[%s14795_s1 + $0xc8c] ss:$16 sps:$4 sm:$0xff]  }
 0x15b   :  { %6820 = vmatpush1.bf16.msra.mxu0 %v10278_v5  ;;  %7668 = vmatpush1.bf16.msra.mxu1 %v10281_v6  ;;  %v10362_v5 = vld [vmem:[%s14795_s1 + $0xc80] ss:$16 sps:$4 sm:$0xff]   ;;  %v10365_v6 = vld [vmem:[%s14795_s1 + $0xc88] ss:$16 sps:$4 sm:$0xff]  }
 0x15c   :  { %6821 = vmatprep.subr.bf16.mxu0 %v10286_v7  ;;  %7669 = vmatprep.subr.bf16.mxu1 %v10289_v8  ;;  %v10370_v7 = vld [vmem:[%s14795_s1 + $0xca4] ss:$16 sps:$4 sm:$0xff]   ;;  %v10373_v8 = vld [vmem:[%s14795_s1 + $0xcac] ss:$16 sps:$4 sm:$0xff]  }
 0x15f   :  { %6822 = vmatpush1.bf16.msra.mxu0 %v10284_v9  ;;  %7670 = vmatpush1.bf16.msra.mxu1 %v10287_v10  ;;  %v10368_v9 = vld [vmem:[%s14795_s1 + $0xca0] ss:$16 sps:$4 sm:$0xff]   ;;  %v10371_v10 = vld [vmem:[%s14795_s1 + $0xca8] ss:$16 sps:$4 sm:$0xff]  }
 0x160   :  { %6823 = vmatprep.subr.bf16.mxu0 %v10292_v11  ;;  %7671 = vmatprep.subr.bf16.mxu1 %v10295_v12  ;;  %v10376_v11 = vld [vmem:[%s14795_s1 + $0xcc4] ss:$16 sps:$4 sm:$0xff]   ;;  %v10379_v12 = vld [vmem:[%s14795_s1 + $0xccc] ss:$16 sps:$4 sm:$0xff]  }
 0x163   :  { %6824 = vmatpush1.bf16.msra.mxu0 %v10290_v13  ;;  %7672 = vmatpush1.bf16.msra.mxu1 %v10293_v14  ;;  %v10374_v13 = vld [vmem:[%s14795_s1 + $0xcc0] ss:$16 sps:$4 sm:$0xff]   ;;  %v10377_v14 = vld [vmem:[%s14795_s1 + $0xcc8] ss:$16 sps:$4 sm:$0xff]  }
 0x164   :  { %6825 = vmatprep.subr.bf16.mxu0 %v10298_v15  ;;  %7673 = vmatprep.subr.bf16.mxu1 %v10301_v16  ;;  %v10382_v15 = vld [vmem:[%s14795_s1 + $0xce4] ss:$16 sps:$4 sm:$0xff]   ;;  %v10385_v16 = vld [vmem:[%s14795_s1 + $0xcec] ss:$16 sps:$4 sm:$0xff]  }
 0x167   :  { %6826 = vmatpush1.bf16.msra.mxu0 %v10296_v17  ;;  %7674 = vmatpush1.bf16.msra.mxu1 %v10299_v18  ;;  %v10380_v17 = vld [vmem:[%s14795_s1 + $0xce0] ss:$16 sps:$4 sm:$0xff]   ;;  %v10383_v18 = vld [vmem:[%s14795_s1 + $0xce8] ss:$16 sps:$4 sm:$0xff]  }
 0x168   :  { %6827 = vmatprep.subr.bf16.mxu0 %v10304_v19  ;;  %7675 = vmatprep.subr.bf16.mxu1 %v10307_v20  ;;  %v10388_v19 = vld [vmem:[%s14795_s1 + $0xd04] ss:$16 sps:$4 sm:$0xff]   ;;  %v10391_v20 = vld [vmem:[%s14795_s1 + $0xd0c] ss:$16 sps:$4 sm:$0xff]  }
 0x16b   :  { %6828 = vmatpush1.bf16.msra.mxu0 %v10302_v21  ;;  %7676 = vmatpush1.bf16.msra.mxu1 %v10305_v22  ;;  %v10386_v21 = vld [vmem:[%s14795_s1 + $0xd00] ss:$16 sps:$4 sm:$0xff]   ;;  %v10389_v22 = vld [vmem:[%s14795_s1 + $0xd08] ss:$16 sps:$4 sm:$0xff]  }
 0x16c   :  { %6829 = vmatprep.subr.bf16.mxu0 %v10310_v23  ;;  %7677 = vmatprep.subr.bf16.mxu1 %v10313_v24  ;;  %v10394_v23 = vld [vmem:[%s14795_s1 + $0xd24] ss:$16 sps:$4 sm:$0xff]   ;;  %v10397_v24 = vld [vmem:[%s14795_s1 + $0xd2c] ss:$16 sps:$4 sm:$0xff]  }
 0x16f   :  { %6830 = vmatpush1.bf16.msra.mxu0 %v10308_v26  ;;  %7678 = vmatpush1.bf16.msra.mxu1 %v10311_v25  ;;  %v10392_v26 = vld [vmem:[%s14795_s1 + $0xd20] ss:$16 sps:$4 sm:$0xff]   ;;  %v10395_v25 = vld [vmem:[%s14795_s1 + $0xd28] ss:$16 sps:$4 sm:$0xff]  }
 0x170   :  { %6831 = vmatprep.subr.bf16.mxu0 %v10316_v27  ;;  %7679 = vmatprep.subr.bf16.mxu1 %v10319_v28  ;;  %v10400_v27 = vld [vmem:[%s14795_s1 + $0xd44] ss:$16 sps:$4 sm:$0xff]   ;;  %v10403_v28 = vld [vmem:[%s14795_s1 + $0xd4c] ss:$16 sps:$4 sm:$0xff]  }
 0x173   :  { %6832 = vmatpush1.bf16.msra.mxu0 %v10314_v29  ;;  %7680 = vmatpush1.bf16.msra.mxu1 %v10317_v30  ;;  %v10398_v29 = vld [vmem:[%s14795_s1 + $0xd40] ss:$16 sps:$4 sm:$0xff]   ;;  %v10401_v30 = vld [vmem:[%s14795_s1 + $0xd48] ss:$16 sps:$4 sm:$0xff]  }
 0x174   :  { %6833 = vmatprep.subr.bf16.mxu0 %v10322_v31  ;;  %7681 = vmatprep.subr.bf16.mxu1 %v10325_v32  ;;  %v10406_v31 = vld [vmem:[%s14795_s1 + $0xd64] ss:$16 sps:$4 sm:$0xff]   ;;  %v10409_v32 = vld [vmem:[%s14795_s1 + $0xd6c] ss:$16 sps:$4 sm:$0xff]  }
 0x177   :  { %6834 = vmatpush1.bf16.msra.mxu0 %v10320_v34  ;;  %7682 = vmatpush1.bf16.msra.mxu1 %v10323_v36  ;;  %v10404_v34 = vld [vmem:[%s14795_s1 + $0xd60] ss:$16 sps:$4 sm:$0xff]   ;;  %v10407_v36 = vld [vmem:[%s14795_s1 + $0xd68] ss:$16 sps:$4 sm:$0xff]  }
 0x178   :  { %6835 = vmatprep.subr.bf16.mxu0 %v10328_v33  ;;  %7683 = vmatprep.subr.bf16.mxu1 %v10331_v35  ;;  %v10412_v33 = vld [vmem:[%s14795_s1 + $0xd84] ss:$16 sps:$4 sm:$0xff]   ;;  %v10415_v35 = vld [vmem:[%s14795_s1 + $0xd8c] ss:$16 sps:$4 sm:$0xff]  }
 0x17b   :  { %6836 = vmatpush1.bf16.msra.mxu0 %v10326_v37  ;;  %7684 = vmatpush1.bf16.msra.mxu1 %v10329_v38  ;;  %v10410_v37 = vld [vmem:[%s14795_s1 + $0xd80] ss:$16 sps:$4 sm:$0xff]   ;;  %v10413_v38 = vld [vmem:[%s14795_s1 + $0xd88] ss:$16 sps:$4 sm:$0xff]  }
 0x17c   :  { %6837 = vmatprep.subr.bf16.mxu0 %v10334_v39  ;;  %7685 = vmatprep.subr.bf16.mxu1 %v10337_v40  ;;  %v10418_v39 = vld [vmem:[%s14795_s1 + $0xda4] ss:$16 sps:$4 sm:$0xff]   ;;  %v10421_v40 = vld [vmem:[%s14795_s1 + $0xdac] ss:$16 sps:$4 sm:$0xff]  }
 0x17f   :  { %6838 = vmatpush1.bf16.msra.mxu0 %v10332_v42  ;;  %7686 = vmatpush1.bf16.msra.mxu1 %v10335_v44  ;;  %v10416_v42 = vld [vmem:[%s14795_s1 + $0xda0] ss:$16 sps:$4 sm:$0xff]   ;;  %v10419_v44 = vld [vmem:[%s14795_s1 + $0xda8] ss:$16 sps:$4 sm:$0xff]  }
 0x180   :  { %6860 = vmatprep.subr.bf16.mxu0 %v10340_v41  ;;  %7708 = vmatprep.subr.bf16.mxu1 %v10343_v43  ;;  %v10424_v41 = vld [vmem:[%s14795_s1 + $0xdc4] ss:$16 sps:$4 sm:$0xff]   ;;  %v10427_v43 = vld [vmem:[%s14795_s1 + $0xdcc] ss:$16 sps:$4 sm:$0xff]  }
 0x182   :  { %6840 = vmatmul.mubr.bf16.vlgmr.msra.gmra.mrb[0].mxu0 %v8442_v47  ;;  %7688 = vmatmul.mubr.bf16.vlgmr.msra.gmra.mrb[0].mxu1 %v8442_v47  ;;  %v10430_v47 = vld [vmem:[%s14795_s1 + $0xde4] ss:$16 sps:$4 sm:$0xff]  }
 0x183   :  { %6861 = vmatpush1.bf16.msra.mxu0 %v10338_v48  ;;  %7709 = vmatpush1.bf16.msra.mxu1 %v10341_v51  ;;  %v10433_v48 = vld [vmem:[%s14795_s1 + $0xdec] ss:$16 sps:$4 sm:$0xff]   ;;  %v10428_v51 = vld [vmem:[%s14795_s1 + $0xde0] ss:$16 sps:$4 sm:$0xff]  }
 0x184   :  { %6862 = vmatprep.subr.bf16.mxu0 %v10346_v52  ;;  %7710 = vmatprep.subr.bf16.mxu1 %v10349_v49  ;;  %v10431_v52 = vld [vmem:[%s14795_s1 + $0xde8] ss:$16 sps:$4 sm:$0xff]   ;;  %v10436_v49 = vld [vmem:[%s14795_s1 + $0xe04] ss:$16 sps:$4 sm:$0xff]  }
 0x185   :  { %6849 = vmatprep.mubr.bf16.mxu0 %v8475_v54  ;;  %7697 = vmatprep.mubr.bf16.mxu1 %v8475_v54  ;;  %v68_v54 = vld [vmem:[%s14796_s0 + $0x1b0] sm:$0xff] }
 0x187   :  { %6863 = vmatpush1.bf16.msra.mxu0 %v10344_v50  ;;  %7711 = vmatpush1.bf16.msra.mxu1 %v10347_v53  ;;  %v10439_v50 = vld [vmem:[%s14795_s1 + $0xe0c] ss:$16 sps:$4 sm:$0xff]   ;;  %v52_v53 = vld [vmem:[%s14796_s0 + $0x130] sm:$0xff] }
 0x188   :  { %6864 = vmatprep.subr.bf16.mxu0 %v10352_v55  ;;  %7712 = vmatprep.subr.bf16.mxu1 %v10355_v56  ;;  %v8444_v55 = vcombine.low %v12622_v57, %v12627_v58  ;;  %v10434_v56 = vld [vmem:[%s14795_s1 + $0xe00] ss:$16 sps:$4 sm:$0xff]   ;;  %v10445_v57 = vld [vmem:[%s14795_s1 + $0xe2c] ss:$16 sps:$4 sm:$0xff]  }
 0x189   :  { %v10440_v58 = vld [vmem:[%s14795_s1 + $0xe20] ss:$16 sps:$4 sm:$0xff]  }
 0x18a   :  { %6850 = vmatmul.mubr.bf16.gmra.mrb[4].mxu0 %v8474_v59  ;;  %7698 = vmatmul.mubr.bf16.gmra.mrb[4].mxu1 %v8474_v59  ;;  %v10437_v59 = vld [vmem:[%s14795_s1 + $0xe08] ss:$16 sps:$4 sm:$0xff]  }
 0x18b   :  { %6865 = vmatpush1.bf16.msra.mxu0 %v10350_v60  ;;  %7713 = vmatpush1.bf16.msra.mxu1 %v10353_v61  ;;  %v10442_v60 = vld [vmem:[%s14795_s1 + $0xe24] ss:$16 sps:$4 sm:$0xff]   ;;  %v10443_v61 = vld [vmem:[%s14795_s1 + $0xe28] ss:$16 sps:$4 sm:$0xff]  }
 0x18c   :  { %6866 = vmatprep.subr.bf16.mxu0 %v10358_v62  ;;  %7714 = vmatprep.subr.bf16.mxu1 %v10361_v63  ;;  %v8477_v62 = vcombine.high %v52_v53, %v68_v54  ;;  %v10448_v63 = vld [vmem:[%s14795_s1 + $0xe44] ss:$16 sps:$4 sm:$0xff]  }
 0x18d   :  { %6892 = vmatprep.mubr.bf16.mxu0 %v8445_v0  ;;  %7740 = vmatprep.mubr.bf16.mxu1 %v8445_v0  ;;  %v10451_v0 = vld [vmem:[%s14795_s1 + $0xe4c] ss:$16 sps:$4 sm:$0xff]  }
 0x18f   :  { %6867 = vmatpush1.bf16.msra.mxu0 %v10356_v1  ;;  %7715 = vmatpush1.bf16.msra.mxu1 %v10359_v2  ;;  %v12834_v1 = vld [vmem:[%s14796_s0 + $0x38] sm:$0xff] }
 0x190   :  { %6868 = vmatprep.subr.bf16.mxu0 %v10364_v3  ;;  %7716 = vmatprep.subr.bf16.mxu1 %v10367_v4  ;;  %v12839_v2 = vld [vmem:[%s14796_s0 + $0xb8] sm:$0xff]  ;;  %v8476_v3 = vcombine.low %v52_v53, %v68_v54  ;;  %v10446_v4 = vld [vmem:[%s14795_s1 + $0xe40] ss:$16 sps:$4 sm:$0xff]  }
 0x191   :  { %v10518_v53 = vld [vmem:[%s14795_s1 + $0xfc0] ss:$16 sps:$4 sm:$0xff]   ;;  %v10521_v54 = vld [vmem:[%s14795_s1 + $0xfc8] ss:$16 sps:$4 sm:$0xff]  }
 0x193   :  { %6869 = vmatpush1.bf16.msra.mxu0 %v10362_v5  ;;  %7717 = vmatpush1.bf16.msra.mxu1 %v10365_v6  ;;  %v10449_v5 = vld [vmem:[%s14795_s1 + $0xe48] ss:$16 sps:$4 sm:$0xff]   ;;  %v10454_v6 = vld [vmem:[%s14795_s1 + $0xe64] ss:$16 sps:$4 sm:$0xff]  }
 0x194   :  { %6870 = vmatprep.subr.bf16.mxu0 %v10370_v7  ;;  %7718 = vmatprep.subr.bf16.mxu1 %v10373_v8  ;;  %v10457_v7 = vld [vmem:[%s14795_s1 + $0xe6c] ss:$16 sps:$4 sm:$0xff]   ;;  %v8447_v8 = vcombine.high %v12834_v1, %v12839_v2 }
 0x197   :  { %6871 = vmatpush1.bf16.msra.mxu0 %v10368_v9  ;;  %7719 = vmatpush1.bf16.msra.mxu1 %v10371_v10  ;;  %v10452_v9 = vld [vmem:[%s14795_s1 + $0xe60] ss:$16 sps:$4 sm:$0xff]   ;;  %v10455_v10 = vld [vmem:[%s14795_s1 + $0xe68] ss:$16 sps:$4 sm:$0xff]  }
 0x198   :  { %6872 = vmatprep.subr.bf16.mxu0 %v10376_v11  ;;  %7720 = vmatprep.subr.bf16.mxu1 %v10379_v12  ;;  %v10460_v11 = vld [vmem:[%s14795_s1 + $0xe84] ss:$16 sps:$4 sm:$0xff]   ;;  %v10463_v12 = vld [vmem:[%s14795_s1 + $0xe8c] ss:$16 sps:$4 sm:$0xff]  }
 0x19b   :  { %6873 = vmatpush1.bf16.msra.mxu0 %v10374_v13  ;;  %7721 = vmatpush1.bf16.msra.mxu1 %v10377_v14  ;;  %v10458_v13 = vld [vmem:[%s14795_s1 + $0xe80] ss:$16 sps:$4 sm:$0xff]   ;;  %v10461_v14 = vld [vmem:[%s14795_s1 + $0xe88] ss:$16 sps:$4 sm:$0xff]  }
 0x19c   :  { %6874 = vmatprep.subr.bf16.mxu0 %v10382_v15  ;;  %7722 = vmatprep.subr.bf16.mxu1 %v10385_v16  ;;  %v10466_v15 = vld [vmem:[%s14795_s1 + $0xea4] ss:$16 sps:$4 sm:$0xff]   ;;  %v10469_v16 = vld [vmem:[%s14795_s1 + $0xeac] ss:$16 sps:$4 sm:$0xff]  }
 0x19f   :  { %6875 = vmatpush1.bf16.msra.mxu0 %v10380_v17  ;;  %7723 = vmatpush1.bf16.msra.mxu1 %v10383_v18  ;;  %v10464_v17 = vld [vmem:[%s14795_s1 + $0xea0] ss:$16 sps:$4 sm:$0xff]   ;;  %v10467_v18 = vld [vmem:[%s14795_s1 + $0xea8] ss:$16 sps:$4 sm:$0xff]  }
 0x1a0   :  { %6876 = vmatprep.subr.bf16.mxu0 %v10388_v19  ;;  %7724 = vmatprep.subr.bf16.mxu1 %v10391_v20  ;;  %v10472_v19 = vld [vmem:[%s14795_s1 + $0xec4] ss:$16 sps:$4 sm:$0xff]   ;;  %v10475_v20 = vld [vmem:[%s14795_s1 + $0xecc] ss:$16 sps:$4 sm:$0xff]  }
 0x1a3   :  { %6877 = vmatpush1.bf16.msra.mxu0 %v10386_v21  ;;  %7725 = vmatpush1.bf16.msra.mxu1 %v10389_v22  ;;  %v10470_v21 = vld [vmem:[%s14795_s1 + $0xec0] ss:$16 sps:$4 sm:$0xff]   ;;  %v10473_v22 = vld [vmem:[%s14795_s1 + $0xec8] ss:$16 sps:$4 sm:$0xff]  }
 0x1a4   :  { %6878 = vmatprep.subr.bf16.mxu0 %v10394_v23  ;;  %7726 = vmatprep.subr.bf16.mxu1 %v10397_v24  ;;  %v10478_v23 = vld [vmem:[%s14795_s1 + $0xee4] ss:$16 sps:$4 sm:$0xff]   ;;  %v10481_v24 = vld [vmem:[%s14795_s1 + $0xeec] ss:$16 sps:$4 sm:$0xff]  }
 0x1a7   :  { %6879 = vmatpush1.bf16.msra.mxu0 %v10392_v26  ;;  %7727 = vmatpush1.bf16.msra.mxu1 %v10395_v25  ;;  %v10476_v26 = vld [vmem:[%s14795_s1 + $0xee0] ss:$16 sps:$4 sm:$0xff]   ;;  %v10479_v25 = vld [vmem:[%s14795_s1 + $0xee8] ss:$16 sps:$4 sm:$0xff]  }
 0x1a8   :  { %6880 = vmatprep.subr.bf16.mxu0 %v10400_v27  ;;  %7728 = vmatprep.subr.bf16.mxu1 %v10403_v28  ;;  %v10484_v27 = vld [vmem:[%s14795_s1 + $0xf04] ss:$16 sps:$4 sm:$0xff]   ;;  %v10487_v28 = vld [vmem:[%s14795_s1 + $0xf0c] ss:$16 sps:$4 sm:$0xff]  }
 0x1ab   :  { %6881 = vmatpush1.bf16.msra.mxu0 %v10398_v29  ;;  %7729 = vmatpush1.bf16.msra.mxu1 %v10401_v30  ;;  %v10482_v29 = vld [vmem:[%s14795_s1 + $0xf00] ss:$16 sps:$4 sm:$0xff]   ;;  %v10485_v30 = vld [vmem:[%s14795_s1 + $0xf08] ss:$16 sps:$4 sm:$0xff]  }
 0x1ac   :  { %6882 = vmatprep.subr.bf16.mxu0 %v10406_v31  ;;  %7730 = vmatprep.subr.bf16.mxu1 %v10409_v32  ;;  %v10490_v31 = vld [vmem:[%s14795_s1 + $0xf24] ss:$16 sps:$4 sm:$0xff]   ;;  %v10493_v32 = vld [vmem:[%s14795_s1 + $0xf2c] ss:$16 sps:$4 sm:$0xff]  }
 0x1af   :  { %6883 = vmatpush1.bf16.msra.mxu0 %v10404_v34  ;;  %7731 = vmatpush1.bf16.msra.mxu1 %v10407_v36  ;;  %v10488_v34 = vld [vmem:[%s14795_s1 + $0xf20] ss:$16 sps:$4 sm:$0xff]   ;;  %v10491_v36 = vld [vmem:[%s14795_s1 + $0xf28] ss:$16 sps:$4 sm:$0xff]  }
 0x1b0   :  { %6884 = vmatprep.subr.bf16.mxu0 %v10412_v33  ;;  %7732 = vmatprep.subr.bf16.mxu1 %v10415_v35  ;;  %v10496_v33 = vld [vmem:[%s14795_s1 + $0xf44] ss:$16 sps:$4 sm:$0xff]   ;;  %v10499_v35 = vld [vmem:[%s14795_s1 + $0xf4c] ss:$16 sps:$4 sm:$0xff]  }
 0x1b3   :  { %6885 = vmatpush1.bf16.msra.mxu0 %v10410_v37  ;;  %7733 = vmatpush1.bf16.msra.mxu1 %v10413_v38  ;;  %v10494_v37 = vld [vmem:[%s14795_s1 + $0xf40] ss:$16 sps:$4 sm:$0xff]   ;;  %v10497_v38 = vld [vmem:[%s14795_s1 + $0xf48] ss:$16 sps:$4 sm:$0xff]  }
 0x1b4   :  { %6886 = vmatprep.subr.bf16.mxu0 %v10418_v39  ;;  %7734 = vmatprep.subr.bf16.mxu1 %v10421_v40  ;;  %v10502_v39 = vld [vmem:[%s14795_s1 + $0xf64] ss:$16 sps:$4 sm:$0xff]   ;;  %v10505_v40 = vld [vmem:[%s14795_s1 + $0xf6c] ss:$16 sps:$4 sm:$0xff]  }
 0x1b7   :  { %6887 = vmatpush1.bf16.msra.mxu0 %v10416_v42  ;;  %7735 = vmatpush1.bf16.msra.mxu1 %v10419_v44  ;;  %v10500_v42 = vld [vmem:[%s14795_s1 + $0xf60] ss:$16 sps:$4 sm:$0xff]   ;;  %v10503_v44 = vld [vmem:[%s14795_s1 + $0xf68] ss:$16 sps:$4 sm:$0xff]  }
 0x1b8   :  { %6888 = vmatprep.subr.bf16.mxu0 %v10424_v41  ;;  %7736 = vmatprep.subr.bf16.mxu1 %v10427_v43  ;;  %v10508_v41 = vld [vmem:[%s14795_s1 + $0xf84] ss:$16 sps:$4 sm:$0xff]   ;;  %v10511_v43 = vld [vmem:[%s14795_s1 + $0xf8c] ss:$16 sps:$4 sm:$0xff]  }
 0x1bb   :  { %6889 = vmatpush1.bf16.msra.mxu0 %v10422_v45  ;;  %7737 = vmatpush1.bf16.msra.mxu1 %v10425_v46  ;;  %v10506_v45 = vld [vmem:[%s14795_s1 + $0xf80] ss:$16 sps:$4 sm:$0xff]   ;;  %v10509_v46 = vld [vmem:[%s14795_s1 + $0xf88] ss:$16 sps:$4 sm:$0xff]  }
 0x1bc   :  { %6890 = vmatprep.subr.bf16.mxu0 %v10430_v47  ;;  %7738 = vmatprep.subr.bf16.mxu1 %v10433_v48  ;;  %v10514_v47 = vld [vmem:[%s14795_s1 + $0xfa4] ss:$16 sps:$4 sm:$0xff]   ;;  %v10517_v48 = vld [vmem:[%s14795_s1 + $0xfac] ss:$16 sps:$4 sm:$0xff]  }
 0x1bf   :  { %6891 = vmatpush1.bf16.msra.mxu0 %v10428_v51  ;;  %7739 = vmatpush1.bf16.msra.mxu1 %v10431_v52  ;;  %v10512_v51 = vld [vmem:[%s14795_s1 + $0xfa0] ss:$16 sps:$4 sm:$0xff]   ;;  %v10515_v52 = vld [vmem:[%s14795_s1 + $0xfa8] ss:$16 sps:$4 sm:$0xff]  }
 0x1c0   :  { %6913 = vmatprep.subr.bf16.mxu0 %v10436_v49  ;;  %7761 = vmatprep.subr.bf16.mxu1 %v10439_v50  ;;  %v10520_v49 = vld [vmem:[%s14795_s1 + $0xfc4] ss:$16 sps:$4 sm:$0xff]   ;;  %v10523_v50 = vld [vmem:[%s14795_s1 + $0xfcc] ss:$16 sps:$4 sm:$0xff]  }
 0x1c2   :  { %6893 = vmatmul.mubr.bf16.vlgmr.msra.gmra.mrb[0].mxu0 %v8444_v55  ;;  %7741 = vmatmul.mubr.bf16.vlgmr.msra.gmra.mrb[0].mxu1 %v8444_v55  ;;  %v10526_v55 = vld [vmem:[%s14795_s1 + $0xfe4] ss:$16 sps:$4 sm:$0xff]  }
 0x1c3   :  { %6914 = vmatpush1.bf16.msra.mxu0 %v10434_v56  ;;  %7762 = vmatpush1.bf16.msra.mxu1 %v10437_v59  ;;  %v10529_v56 = vld [vmem:[%s14795_s1 + $0xfec] ss:$16 sps:$4 sm:$0xff]   ;;  %v10524_v59 = vld [vmem:[%s14795_s1 + $0xfe0] ss:$16 sps:$4 sm:$0xff]  }
 0x1c4   :  { %6915 = vmatprep.subr.bf16.mxu0 %v10442_v60  ;;  %7763 = vmatprep.subr.bf16.mxu1 %v10445_v57  ;;  %v10527_v60 = vld [vmem:[%s14795_s1 + $0xfe8] ss:$16 sps:$4 sm:$0xff]   ;;  %v10532_v57 = vld [vmem:[%s14795_s1 + $0x1004] ss:$16 sps:$4 sm:$0xff]  }
 0x1c5   :  { %6902 = vmatprep.mubr.bf16.mxu0 %v8477_v62  ;;  %7750 = vmatprep.mubr.bf16.mxu1 %v8477_v62  ;;  %v69_v62 = vld [vmem:[%s14796_s0 + $0x1b8] sm:$0xff] }
 0x1c7   :  { %6916 = vmatpush1.bf16.msra.mxu0 %v10440_v58  ;;  %7764 = vmatpush1.bf16.msra.mxu1 %v10443_v61  ;;  %v10535_v58 = vld [vmem:[%s14795_s1 + $0x100c] ss:$16 sps:$4 sm:$0xff]  }
 0x1c8   :  { %6917 = vmatprep.subr.bf16.mxu0 %v10448_v63  ;;  %7765 = vmatprep.subr.bf16.mxu1 %v10451_v0  ;;  %v53_v61 = vld [vmem:[%s14796_s0 + $0x138] sm:$0xff]  ;;  %v8446_v63 = vcombine.low %v12834_v1, %v12839_v2  ;;  %v10530_v0 = vld [vmem:[%s14795_s1 + $0x1000] ss:$16 sps:$4 sm:$0xff]  }
 0x1c9   :  { %v10541_v1 = vld [vmem:[%s14795_s1 + $0x102c] ss:$16 sps:$4 sm:$0xff]   ;;  %v10536_v2 = vld [vmem:[%s14795_s1 + $0x1020] ss:$16 sps:$4 sm:$0xff]  }
 0x1ca   :  { %6903 = vmatmul.mubr.bf16.gmra.mrb[4].mxu0 %v8476_v3  ;;  %7751 = vmatmul.mubr.bf16.gmra.mrb[4].mxu1 %v8476_v3  ;;  %v10533_v3 = vld [vmem:[%s14795_s1 + $0x1008] ss:$16 sps:$4 sm:$0xff]  }
 0x1cb   :  { %6918 = vmatpush1.bf16.msra.mxu0 %v10446_v4  ;;  %7766 = vmatpush1.bf16.msra.mxu1 %v10449_v5  ;;  %v10538_v4 = vld [vmem:[%s14795_s1 + $0x1024] ss:$16 sps:$4 sm:$0xff]   ;;  %v10539_v5 = vld [vmem:[%s14795_s1 + $0x1028] ss:$16 sps:$4 sm:$0xff]  }
 0x1cc   :  { %6919 = vmatprep.subr.bf16.mxu0 %v10454_v6  ;;  %7767 = vmatprep.subr.bf16.mxu1 %v10457_v7  ;;  %v8479_v6 = vcombine.high %v53_v61, %v69_v62  ;;  %v10544_v7 = vld [vmem:[%s14795_s1 + $0x1044] ss:$16 sps:$4 sm:$0xff]  }
 0x1cd   :  { %6945 = vmatprep.mubr.bf16.mxu0 %v8447_v8  ;;  %7793 = vmatprep.mubr.bf16.mxu1 %v8447_v8  ;;  %v10547_v8 = vld [vmem:[%s14795_s1 + $0x104c] ss:$16 sps:$4 sm:$0xff]  }
 0x1cf   :  { %6920 = vmatpush1.bf16.msra.mxu0 %v10452_v9  ;;  %7768 = vmatpush1.bf16.msra.mxu1 %v10455_v10  ;;  %v13046_v9 = vld [vmem:[%s14796_s0 + $0x40] sm:$0xff] }
 0x1d0   :  { %6921 = vmatprep.subr.bf16.mxu0 %v10460_v11  ;;  %7769 = vmatprep.subr.bf16.mxu1 %v10463_v12  ;;  %v13051_v10 = vld [vmem:[%s14796_s0 + $0xc0] sm:$0xff]  ;;  %v8478_v11 = vcombine.low %v53_v61, %v69_v62  ;;  %v10617_v62 = vld [vmem:[%s14795_s1 + $0x11c8] ss:$16 sps:$4 sm:$0xff]  }
 0x1d1   :  { %v10542_v12 = vld [vmem:[%s14795_s1 + $0x1040] ss:$16 sps:$4 sm:$0xff]  }
 0x1d2   :  { %v10614_v61 = vld [vmem:[%s14795_s1 + $0x11c0] ss:$16 sps:$4 sm:$0xff]  }
 0x1d3   :  { %6922 = vmatpush1.bf16.msra.mxu0 %v10458_v13  ;;  %7770 = vmatpush1.bf16.msra.mxu1 %v10461_v14  ;;  %v10545_v13 = vld [vmem:[%s14795_s1 + $0x1048] ss:$16 sps:$4 sm:$0xff]   ;;  %v10550_v14 = vld [vmem:[%s14795_s1 + $0x1064] ss:$16 sps:$4 sm:$0xff]  }
 0x1d4   :  { %6923 = vmatprep.subr.bf16.mxu0 %v10466_v15  ;;  %7771 = vmatprep.subr.bf16.mxu1 %v10469_v16  ;;  %v10553_v15 = vld [vmem:[%s14795_s1 + $0x106c] ss:$16 sps:$4 sm:$0xff]   ;;  %v8449_v16 = vcombine.high %v13046_v9, %v13051_v10 }
 0x1d7   :  { %6924 = vmatpush1.bf16.msra.mxu0 %v10464_v17  ;;  %7772 = vmatpush1.bf16.msra.mxu1 %v10467_v18  ;;  %v10548_v17 = vld [vmem:[%s14795_s1 + $0x1060] ss:$16 sps:$4 sm:$0xff]   ;;  %v10551_v18 = vld [vmem:[%s14795_s1 + $0x1068] ss:$16 sps:$4 sm:$0xff]  }
 0x1d8   :  { %6925 = vmatprep.subr.bf16.mxu0 %v10472_v19  ;;  %7773 = vmatprep.subr.bf16.mxu1 %v10475_v20  ;;  %v10556_v19 = vld [vmem:[%s14795_s1 + $0x1084] ss:$16 sps:$4 sm:$0xff]   ;;  %v10559_v20 = vld [vmem:[%s14795_s1 + $0x108c] ss:$16 sps:$4 sm:$0xff]  }
 0x1db   :  { %6926 = vmatpush1.bf16.msra.mxu0 %v10470_v21  ;;  %7774 = vmatpush1.bf16.msra.mxu1 %v10473_v22  ;;  %v10554_v21 = vld [vmem:[%s14795_s1 + $0x1080] ss:$16 sps:$4 sm:$0xff]   ;;  %v10557_v22 = vld [vmem:[%s14795_s1 + $0x1088] ss:$16 sps:$4 sm:$0xff]  }
 0x1dc   :  { %6927 = vmatprep.subr.bf16.mxu0 %v10478_v23  ;;  %7775 = vmatprep.subr.bf16.mxu1 %v10481_v24  ;;  %v10562_v23 = vld [vmem:[%s14795_s1 + $0x10a4] ss:$16 sps:$4 sm:$0xff]   ;;  %v10565_v24 = vld [vmem:[%s14795_s1 + $0x10ac] ss:$16 sps:$4 sm:$0xff]  }
 0x1df   :  { %6928 = vmatpush1.bf16.msra.mxu0 %v10476_v26  ;;  %7776 = vmatpush1.bf16.msra.mxu1 %v10479_v25  ;;  %v10560_v26 = vld [vmem:[%s14795_s1 + $0x10a0] ss:$16 sps:$4 sm:$0xff]   ;;  %v10563_v25 = vld [vmem:[%s14795_s1 + $0x10a8] ss:$16 sps:$4 sm:$0xff]  }
 0x1e0   :  { %6929 = vmatprep.subr.bf16.mxu0 %v10484_v27  ;;  %7777 = vmatprep.subr.bf16.mxu1 %v10487_v28  ;;  %v10568_v27 = vld [vmem:[%s14795_s1 + $0x10c4] ss:$16 sps:$4 sm:$0xff]   ;;  %v10571_v28 = vld [vmem:[%s14795_s1 + $0x10cc] ss:$16 sps:$4 sm:$0xff]  }
 0x1e3   :  { %6930 = vmatpush1.bf16.msra.mxu0 %v10482_v29  ;;  %7778 = vmatpush1.bf16.msra.mxu1 %v10485_v30  ;;  %v10566_v29 = vld [vmem:[%s14795_s1 + $0x10c0] ss:$16 sps:$4 sm:$0xff]   ;;  %v10569_v30 = vld [vmem:[%s14795_s1 + $0x10c8] ss:$16 sps:$4 sm:$0xff]  }
 0x1e4   :  { %6931 = vmatprep.subr.bf16.mxu0 %v10490_v31  ;;  %7779 = vmatprep.subr.bf16.mxu1 %v10493_v32  ;;  %v10574_v31 = vld [vmem:[%s14795_s1 + $0x10e4] ss:$16 sps:$4 sm:$0xff]   ;;  %v10577_v32 = vld [vmem:[%s14795_s1 + $0x10ec] ss:$16 sps:$4 sm:$0xff]  }
 0x1e7   :  { %6932 = vmatpush1.bf16.msra.mxu0 %v10488_v34  ;;  %7780 = vmatpush1.bf16.msra.mxu1 %v10491_v36  ;;  %v10572_v34 = vld [vmem:[%s14795_s1 + $0x10e0] ss:$16 sps:$4 sm:$0xff]   ;;  %v10575_v36 = vld [vmem:[%s14795_s1 + $0x10e8] ss:$16 sps:$4 sm:$0xff]  }
 0x1e8   :  { %6933 = vmatprep.subr.bf16.mxu0 %v10496_v33  ;;  %7781 = vmatprep.subr.bf16.mxu1 %v10499_v35  ;;  %v10580_v33 = vld [vmem:[%s14795_s1 + $0x1104] ss:$16 sps:$4 sm:$0xff]   ;;  %v10583_v35 = vld [vmem:[%s14795_s1 + $0x110c] ss:$16 sps:$4 sm:$0xff]  }
 0x1eb   :  { %6934 = vmatpush1.bf16.msra.mxu0 %v10494_v37  ;;  %7782 = vmatpush1.bf16.msra.mxu1 %v10497_v38  ;;  %v10578_v37 = vld [vmem:[%s14795_s1 + $0x1100] ss:$16 sps:$4 sm:$0xff]   ;;  %v10581_v38 = vld [vmem:[%s14795_s1 + $0x1108] ss:$16 sps:$4 sm:$0xff]  }
 0x1ec   :  { %6935 = vmatprep.subr.bf16.mxu0 %v10502_v39  ;;  %7783 = vmatprep.subr.bf16.mxu1 %v10505_v40  ;;  %v10586_v39 = vld [vmem:[%s14795_s1 + $0x1124] ss:$16 sps:$4 sm:$0xff]   ;;  %v10589_v40 = vld [vmem:[%s14795_s1 + $0x112c] ss:$16 sps:$4 sm:$0xff]  }
 0x1ef   :  { %6936 = vmatpush1.bf16.msra.mxu0 %v10500_v42  ;;  %7784 = vmatpush1.bf16.msra.mxu1 %v10503_v44  ;;  %v10584_v42 = vld [vmem:[%s14795_s1 + $0x1120] ss:$16 sps:$4 sm:$0xff]   ;;  %v10587_v44 = vld [vmem:[%s14795_s1 + $0x1128] ss:$16 sps:$4 sm:$0xff]  }
 0x1f0   :  { %6937 = vmatprep.subr.bf16.mxu0 %v10508_v41  ;;  %7785 = vmatprep.subr.bf16.mxu1 %v10511_v43  ;;  %v10592_v41 = vld [vmem:[%s14795_s1 + $0x1144] ss:$16 sps:$4 sm:$0xff]   ;;  %v10595_v43 = vld [vmem:[%s14795_s1 + $0x114c] ss:$16 sps:$4 sm:$0xff]  }
 0x1f3   :  { %6938 = vmatpush1.bf16.msra.mxu0 %v10506_v45  ;;  %7786 = vmatpush1.bf16.msra.mxu1 %v10509_v46  ;;  %v10590_v45 = vld [vmem:[%s14795_s1 + $0x1140] ss:$16 sps:$4 sm:$0xff]   ;;  %v10593_v46 = vld [vmem:[%s14795_s1 + $0x1148] ss:$16 sps:$4 sm:$0xff]  }
 0x1f4   :  { %6939 = vmatprep.subr.bf16.mxu0 %v10514_v47  ;;  %7787 = vmatprep.subr.bf16.mxu1 %v10517_v48  ;;  %v10598_v47 = vld [vmem:[%s14795_s1 + $0x1164] ss:$16 sps:$4 sm:$0xff]   ;;  %v10601_v48 = vld [vmem:[%s14795_s1 + $0x116c] ss:$16 sps:$4 sm:$0xff]  }
 0x1f7   :  { %6940 = vmatpush1.bf16.msra.mxu0 %v10512_v51  ;;  %7788 = vmatpush1.bf16.msra.mxu1 %v10515_v52  ;;  %v10596_v51 = vld [vmem:[%s14795_s1 + $0x1160] ss:$16 sps:$4 sm:$0xff]   ;;  %v10599_v52 = vld [vmem:[%s14795_s1 + $0x1168] ss:$16 sps:$4 sm:$0xff]  }
 0x1f8   :  { %6941 = vmatprep.subr.bf16.mxu0 %v10520_v49  ;;  %7789 = vmatprep.subr.bf16.mxu1 %v10523_v50  ;;  %v10604_v49 = vld [vmem:[%s14795_s1 + $0x1184] ss:$16 sps:$4 sm:$0xff]   ;;  %v10607_v50 = vld [vmem:[%s14795_s1 + $0x118c] ss:$16 sps:$4 sm:$0xff]  }
 0x1fb   :  { %6942 = vmatpush1.bf16.msra.mxu0 %v10518_v53  ;;  %7790 = vmatpush1.bf16.msra.mxu1 %v10521_v54  ;;  %v10602_v53 = vld [vmem:[%s14795_s1 + $0x1180] ss:$16 sps:$4 sm:$0xff]   ;;  %v10605_v54 = vld [vmem:[%s14795_s1 + $0x1188] ss:$16 sps:$4 sm:$0xff]  }
 0x1fc   :  { %6943 = vmatprep.subr.bf16.mxu0 %v10526_v55  ;;  %7791 = vmatprep.subr.bf16.mxu1 %v10529_v56  ;;  %v10610_v55 = vld [vmem:[%s14795_s1 + $0x11a4] ss:$16 sps:$4 sm:$0xff]   ;;  %v10613_v56 = vld [vmem:[%s14795_s1 + $0x11ac] ss:$16 sps:$4 sm:$0xff]  }
 0x1ff   :  { %6944 = vmatpush1.bf16.msra.mxu0 %v10524_v59  ;;  %7792 = vmatpush1.bf16.msra.mxu1 %v10527_v60  ;;  %v10608_v59 = vld [vmem:[%s14795_s1 + $0x11a0] ss:$16 sps:$4 sm:$0xff]   ;;  %v10611_v60 = vld [vmem:[%s14795_s1 + $0x11a8] ss:$16 sps:$4 sm:$0xff]  }
 0x200   :  { %6966 = vmatprep.subr.bf16.mxu0 %v10532_v57  ;;  %7814 = vmatprep.subr.bf16.mxu1 %v10535_v58  ;;  %v10616_v57 = vld [vmem:[%s14795_s1 + $0x11c4] ss:$16 sps:$4 sm:$0xff]   ;;  %v10619_v58 = vld [vmem:[%s14795_s1 + $0x11cc] ss:$16 sps:$4 sm:$0xff]  }
 0x202   :  { %6946 = vmatmul.mubr.bf16.vlgmr.msra.gmra.mrb[0].mxu0 %v8446_v63  ;;  %7794 = vmatmul.mubr.bf16.vlgmr.msra.gmra.mrb[0].mxu1 %v8446_v63  ;;  %v10622_v63 = vld [vmem:[%s14795_s1 + $0x11e4] ss:$16 sps:$4 sm:$0xff]  }
 0x203   :  { %6967 = vmatpush1.bf16.msra.mxu0 %v10530_v0  ;;  %7815 = vmatpush1.bf16.msra.mxu1 %v10533_v3  ;;  %v10625_v0 = vld [vmem:[%s14795_s1 + $0x11ec] ss:$16 sps:$4 sm:$0xff]   ;;  %v10620_v3 = vld [vmem:[%s14795_s1 + $0x11e0] ss:$16 sps:$4 sm:$0xff]  }
 0x204   :  { %6968 = vmatprep.subr.bf16.mxu0 %v10538_v4  ;;  %7816 = vmatprep.subr.bf16.mxu1 %v10541_v1  ;;  %v10623_v4 = vld [vmem:[%s14795_s1 + $0x11e8] ss:$16 sps:$4 sm:$0xff]   ;;  %v10628_v1 = vld [vmem:[%s14795_s1 + $0x1204] ss:$16 sps:$4 sm:$0xff]  }
 0x205   :  { %6955 = vmatprep.mubr.bf16.mxu0 %v8479_v6  ;;  %7803 = vmatprep.mubr.bf16.mxu1 %v8479_v6  ;;  %v70_v6 = vld [vmem:[%s14796_s0 + $0x1c0] sm:$0xff] }
 0x207   :  { %6969 = vmatpush1.bf16.msra.mxu0 %v10536_v2  ;;  %7817 = vmatpush1.bf16.msra.mxu1 %v10539_v5  ;;  %v10631_v2 = vld [vmem:[%s14795_s1 + $0x120c] ss:$16 sps:$4 sm:$0xff]   ;;  %v54_v5 = vld [vmem:[%s14796_s0 + $0x140] sm:$0xff] }
 0x208   :  { %6970 = vmatprep.subr.bf16.mxu0 %v10544_v7  ;;  %7818 = vmatprep.subr.bf16.mxu1 %v10547_v8  ;;  %v8448_v7 = vcombine.low %v13046_v9, %v13051_v10  ;;  %v10626_v8 = vld [vmem:[%s14795_s1 + $0x1200] ss:$16 sps:$4 sm:$0xff]   ;;  %v10637_v9 = vld [vmem:[%s14795_s1 + $0x122c] ss:$16 sps:$4 sm:$0xff]  }
 0x209   :  { %v10632_v10 = vld [vmem:[%s14795_s1 + $0x1220] ss:$16 sps:$4 sm:$0xff]  }
 0x20a   :  { %6956 = vmatmul.mubr.bf16.gmra.mrb[4].mxu0 %v8478_v11  ;;  %7804 = vmatmul.mubr.bf16.gmra.mrb[4].mxu1 %v8478_v11  ;;  %v10629_v11 = vld [vmem:[%s14795_s1 + $0x1208] ss:$16 sps:$4 sm:$0xff]  }
 0x20b   :  { %6971 = vmatpush1.bf16.msra.mxu0 %v10542_v12  ;;  %7819 = vmatpush1.bf16.msra.mxu1 %v10545_v13  ;;  %v10634_v12 = vld [vmem:[%s14795_s1 + $0x1224] ss:$16 sps:$4 sm:$0xff]   ;;  %v10635_v13 = vld [vmem:[%s14795_s1 + $0x1228] ss:$16 sps:$4 sm:$0xff]  }
 0x20c   :  { %6972 = vmatprep.subr.bf16.mxu0 %v10550_v14  ;;  %7820 = vmatprep.subr.bf16.mxu1 %v10553_v15  ;;  %v8481_v14 = vcombine.high %v54_v5, %v70_v6  ;;  %v10640_v15 = vld [vmem:[%s14795_s1 + $0x1244] ss:$16 sps:$4 sm:$0xff]  }
 0x20d   :  { %6998 = vmatprep.mubr.bf16.mxu0 %v8449_v16  ;;  %7846 = vmatprep.mubr.bf16.mxu1 %v8449_v16  ;;  %v10643_v16 = vld [vmem:[%s14795_s1 + $0x124c] ss:$16 sps:$4 sm:$0xff]  }
 0x20f   :  { %6973 = vmatpush1.bf16.msra.mxu0 %v10548_v17  ;;  %7821 = vmatpush1.bf16.msra.mxu1 %v10551_v18  ;;  %v13258_v17 = vld [vmem:[%s14796_s0 + $0x48] sm:$0xff] }
 0x210   :  { %6974 = vmatprep.subr.bf16.mxu0 %v10556_v19  ;;  %7822 = vmatprep.subr.bf16.mxu1 %v10559_v20  ;;  %v13263_v18 = vld [vmem:[%s14796_s0 + $0xc8] sm:$0xff]  ;;  %v8480_v19 = vcombine.low %v54_v5, %v70_v6  ;;  %v10638_v20 = vld [vmem:[%s14795_s1 + $0x1240] ss:$16 sps:$4 sm:$0xff]  }
 0x211   :  { %v10710_v5 = vld [vmem:[%s14795_s1 + $0x13c0] ss:$16 sps:$4 sm:$0xff]   ;;  %v10713_v6 = vld [vmem:[%s14795_s1 + $0x13c8] ss:$16 sps:$4 sm:$0xff]  }
 0x213   :  { %6975 = vmatpush1.bf16.msra.mxu0 %v10554_v21  ;;  %7823 = vmatpush1.bf16.msra.mxu1 %v10557_v22  ;;  %v10641_v21 = vld [vmem:[%s14795_s1 + $0x1248] ss:$16 sps:$4 sm:$0xff]   ;;  %v10646_v22 = vld [vmem:[%s14795_s1 + $0x1264] ss:$16 sps:$4 sm:$0xff]  }
 0x214   :  { %6976 = vmatprep.subr.bf16.mxu0 %v10562_v23  ;;  %7824 = vmatprep.subr.bf16.mxu1 %v10565_v24  ;;  %v10649_v23 = vld [vmem:[%s14795_s1 + $0x126c] ss:$16 sps:$4 sm:$0xff]   ;;  %v8451_v24 = vcombine.high %v13258_v17, %v13263_v18 }
 0x217   :  { %6977 = vmatpush1.bf16.msra.mxu0 %v10560_v26  ;;  %7825 = vmatpush1.bf16.msra.mxu1 %v10563_v25  ;;  %v10644_v26 = vld [vmem:[%s14795_s1 + $0x1260] ss:$16 sps:$4 sm:$0xff]   ;;  %v10647_v25 = vld [vmem:[%s14795_s1 + $0x1268] ss:$16 sps:$4 sm:$0xff]  }
 0x218   :  { %6978 = vmatprep.subr.bf16.mxu0 %v10568_v27  ;;  %7826 = vmatprep.subr.bf16.mxu1 %v10571_v28  ;;  %v10652_v27 = vld [vmem:[%s14795_s1 + $0x1284] ss:$16 sps:$4 sm:$0xff]   ;;  %v10655_v28 = vld [vmem:[%s14795_s1 + $0x128c] ss:$16 sps:$4 sm:$0xff]  }
 0x21b   :  { %6979 = vmatpush1.bf16.msra.mxu0 %v10566_v29  ;;  %7827 = vmatpush1.bf16.msra.mxu1 %v10569_v30  ;;  %v10650_v29 = vld [vmem:[%s14795_s1 + $0x1280] ss:$16 sps:$4 sm:$0xff]   ;;  %v10653_v30 = vld [vmem:[%s14795_s1 + $0x1288] ss:$16 sps:$4 sm:$0xff]  }
 0x21c   :  { %6980 = vmatprep.subr.bf16.mxu0 %v10574_v31  ;;  %7828 = vmatprep.subr.bf16.mxu1 %v10577_v32  ;;  %v10658_v31 = vld [vmem:[%s14795_s1 + $0x12a4] ss:$16 sps:$4 sm:$0xff]   ;;  %v10661_v32 = vld [vmem:[%s14795_s1 + $0x12ac] ss:$16 sps:$4 sm:$0xff]  }
 0x21f   :  { %6981 = vmatpush1.bf16.msra.mxu0 %v10572_v34  ;;  %7829 = vmatpush1.bf16.msra.mxu1 %v10575_v36  ;;  %v10656_v34 = vld [vmem:[%s14795_s1 + $0x12a0] ss:$16 sps:$4 sm:$0xff]   ;;  %v10659_v36 = vld [vmem:[%s14795_s1 + $0x12a8] ss:$16 sps:$4 sm:$0xff]  }
 0x220   :  { %6982 = vmatprep.subr.bf16.mxu0 %v10580_v33  ;;  %7830 = vmatprep.subr.bf16.mxu1 %v10583_v35  ;;  %v10664_v33 = vld [vmem:[%s14795_s1 + $0x12c4] ss:$16 sps:$4 sm:$0xff]   ;;  %v10667_v35 = vld [vmem:[%s14795_s1 + $0x12cc] ss:$16 sps:$4 sm:$0xff]  }
 0x223   :  { %6983 = vmatpush1.bf16.msra.mxu0 %v10578_v37  ;;  %7831 = vmatpush1.bf16.msra.mxu1 %v10581_v38  ;;  %v10662_v37 = vld [vmem:[%s14795_s1 + $0x12c0] ss:$16 sps:$4 sm:$0xff]   ;;  %v10665_v38 = vld [vmem:[%s14795_s1 + $0x12c8] ss:$16 sps:$4 sm:$0xff]  }
 0x224   :  { %6984 = vmatprep.subr.bf16.mxu0 %v10586_v39  ;;  %7832 = vmatprep.subr.bf16.mxu1 %v10589_v40  ;;  %v10670_v39 = vld [vmem:[%s14795_s1 + $0x12e4] ss:$16 sps:$4 sm:$0xff]   ;;  %v10673_v40 = vld [vmem:[%s14795_s1 + $0x12ec] ss:$16 sps:$4 sm:$0xff]  }
 0x227   :  { %6985 = vmatpush1.bf16.msra.mxu0 %v10584_v42  ;;  %7833 = vmatpush1.bf16.msra.mxu1 %v10587_v44  ;;  %v10668_v42 = vld [vmem:[%s14795_s1 + $0x12e0] ss:$16 sps:$4 sm:$0xff]   ;;  %v10671_v44 = vld [vmem:[%s14795_s1 + $0x12e8] ss:$16 sps:$4 sm:$0xff]  }
 0x228   :  { %6986 = vmatprep.subr.bf16.mxu0 %v10592_v41  ;;  %7834 = vmatprep.subr.bf16.mxu1 %v10595_v43  ;;  %v10676_v41 = vld [vmem:[%s14795_s1 + $0x1304] ss:$16 sps:$4 sm:$0xff]   ;;  %v10679_v43 = vld [vmem:[%s14795_s1 + $0x130c] ss:$16 sps:$4 sm:$0xff]  }
 0x22b   :  { %6987 = vmatpush1.bf16.msra.mxu0 %v10590_v45  ;;  %7835 = vmatpush1.bf16.msra.mxu1 %v10593_v46  ;;  %v10674_v45 = vld [vmem:[%s14795_s1 + $0x1300] ss:$16 sps:$4 sm:$0xff]   ;;  %v10677_v46 = vld [vmem:[%s14795_s1 + $0x1308] ss:$16 sps:$4 sm:$0xff]  }
 0x22c   :  { %6988 = vmatprep.subr.bf16.mxu0 %v10598_v47  ;;  %7836 = vmatprep.subr.bf16.mxu1 %v10601_v48  ;;  %v10682_v47 = vld [vmem:[%s14795_s1 + $0x1324] ss:$16 sps:$4 sm:$0xff]   ;;  %v10685_v48 = vld [vmem:[%s14795_s1 + $0x132c] ss:$16 sps:$4 sm:$0xff]  }
 0x22f   :  { %6989 = vmatpush1.bf16.msra.mxu0 %v10596_v51  ;;  %7837 = vmatpush1.bf16.msra.mxu1 %v10599_v52  ;;  %v10680_v51 = vld [vmem:[%s14795_s1 + $0x1320] ss:$16 sps:$4 sm:$0xff]   ;;  %v10683_v52 = vld [vmem:[%s14795_s1 + $0x1328] ss:$16 sps:$4 sm:$0xff]  }
 0x230   :  { %6990 = vmatprep.subr.bf16.mxu0 %v10604_v49  ;;  %7838 = vmatprep.subr.bf16.mxu1 %v10607_v50  ;;  %v10688_v49 = vld [vmem:[%s14795_s1 + $0x1344] ss:$16 sps:$4 sm:$0xff]   ;;  %v10691_v50 = vld [vmem:[%s14795_s1 + $0x134c] ss:$16 sps:$4 sm:$0xff]  }
 0x233   :  { %6991 = vmatpush1.bf16.msra.mxu0 %v10602_v53  ;;  %7839 = vmatpush1.bf16.msra.mxu1 %v10605_v54  ;;  %v10686_v53 = vld [vmem:[%s14795_s1 + $0x1340] ss:$16 sps:$4 sm:$0xff]   ;;  %v10689_v54 = vld [vmem:[%s14795_s1 + $0x1348] ss:$16 sps:$4 sm:$0xff]  }
 0x234   :  { %6992 = vmatprep.subr.bf16.mxu0 %v10610_v55  ;;  %7840 = vmatprep.subr.bf16.mxu1 %v10613_v56  ;;  %v10694_v55 = vld [vmem:[%s14795_s1 + $0x1364] ss:$16 sps:$4 sm:$0xff]   ;;  %v10697_v56 = vld [vmem:[%s14795_s1 + $0x136c] ss:$16 sps:$4 sm:$0xff]  }
 0x237   :  { %6993 = vmatpush1.bf16.msra.mxu0 %v10608_v59  ;;  %7841 = vmatpush1.bf16.msra.mxu1 %v10611_v60  ;;  %v10692_v59 = vld [vmem:[%s14795_s1 + $0x1360] ss:$16 sps:$4 sm:$0xff]   ;;  %v10695_v60 = vld [vmem:[%s14795_s1 + $0x1368] ss:$16 sps:$4 sm:$0xff]  }
 0x238   :  { %6994 = vmatprep.subr.bf16.mxu0 %v10616_v57  ;;  %7842 = vmatprep.subr.bf16.mxu1 %v10619_v58  ;;  %v10700_v57 = vld [vmem:[%s14795_s1 + $0x1384] ss:$16 sps:$4 sm:$0xff]   ;;  %v10703_v58 = vld [vmem:[%s14795_s1 + $0x138c] ss:$16 sps:$4 sm:$0xff]  }
 0x23b   :  { %6995 = vmatpush1.bf16.msra.mxu0 %v10614_v61  ;;  %7843 = vmatpush1.bf16.msra.mxu1 %v10617_v62  ;;  %v10698_v61 = vld [vmem:[%s14795_s1 + $0x1380] ss:$16 sps:$4 sm:$0xff]   ;;  %v10701_v62 = vld [vmem:[%s14795_s1 + $0x1388] ss:$16 sps:$4 sm:$0xff]  }
 0x23c   :  { %6996 = vmatprep.subr.bf16.mxu0 %v10622_v63  ;;  %7844 = vmatprep.subr.bf16.mxu1 %v10625_v0  ;;  %v10706_v63 = vld [vmem:[%s14795_s1 + $0x13a4] ss:$16 sps:$4 sm:$0xff]   ;;  %v10709_v0 = vld [vmem:[%s14795_s1 + $0x13ac] ss:$16 sps:$4 sm:$0xff]  }
 0x23f   :  { %6997 = vmatpush1.bf16.msra.mxu0 %v10620_v3  ;;  %7845 = vmatpush1.bf16.msra.mxu1 %v10623_v4  ;;  %v10704_v3 = vld [vmem:[%s14795_s1 + $0x13a0] ss:$16 sps:$4 sm:$0xff]   ;;  %v10707_v4 = vld [vmem:[%s14795_s1 + $0x13a8] ss:$16 sps:$4 sm:$0xff]  }
 0x240   :  { %7019 = vmatprep.subr.bf16.mxu0 %v10628_v1  ;;  %7867 = vmatprep.subr.bf16.mxu1 %v10631_v2  ;;  %v10712_v1 = vld [vmem:[%s14795_s1 + $0x13c4] ss:$16 sps:$4 sm:$0xff]   ;;  %v10715_v2 = vld [vmem:[%s14795_s1 + $0x13cc] ss:$16 sps:$4 sm:$0xff]  }
 0x242   :  { %6999 = vmatmul.mubr.bf16.vlgmr.msra.gmra.mrb[0].mxu0 %v8448_v7  ;;  %7847 = vmatmul.mubr.bf16.vlgmr.msra.gmra.mrb[0].mxu1 %v8448_v7  ;;  %v10718_v7 = vld [vmem:[%s14795_s1 + $0x13e4] ss:$16 sps:$4 sm:$0xff]  }
 0x243   :  { %7020 = vmatpush1.bf16.msra.mxu0 %v10626_v8  ;;  %7868 = vmatpush1.bf16.msra.mxu1 %v10629_v11  ;;  %v10721_v8 = vld [vmem:[%s14795_s1 + $0x13ec] ss:$16 sps:$4 sm:$0xff]   ;;  %v10716_v11 = vld [vmem:[%s14795_s1 + $0x13e0] ss:$16 sps:$4 sm:$0xff]  }
 0x244   :  { %7021 = vmatprep.subr.bf16.mxu0 %v10634_v12  ;;  %7869 = vmatprep.subr.bf16.mxu1 %v10637_v9  ;;  %v10719_v12 = vld [vmem:[%s14795_s1 + $0x13e8] ss:$16 sps:$4 sm:$0xff]   ;;  %v10724_v9 = vld [vmem:[%s14795_s1 + $0x1404] ss:$16 sps:$4 sm:$0xff]  }
 0x245   :  { %7008 = vmatprep.mubr.bf16.mxu0 %v8481_v14  ;;  %7856 = vmatprep.mubr.bf16.mxu1 %v8481_v14  ;;  %v55_v14 = vld [vmem:[%s14796_s0 + $0x148] sm:$0xff] }
 0x247   :  { %7022 = vmatpush1.bf16.msra.mxu0 %v10632_v10  ;;  %7870 = vmatpush1.bf16.msra.mxu1 %v10635_v13  ;;  %v10727_v10 = vld [vmem:[%s14795_s1 + $0x140c] ss:$16 sps:$4 sm:$0xff]   ;;  %v8450_v13 = vcombine.low %v13258_v17, %v13263_v18  ;;  %v10730_v17 = vld [vmem:[%s14795_s1 + $0x1424] ss:$16 sps:$4 sm:$0xff]  }
 0x248   :  { %7023 = vmatprep.subr.bf16.mxu0 %v10640_v15  ;;  %7871 = vmatprep.subr.bf16.mxu1 %v10643_v16  ;;  %v71_v15 = vld [vmem:[%s14796_s0 + $0x1c8] sm:$0xff]  ;;  %v10722_v16 = vld [vmem:[%s14795_s1 + $0x1400] ss:$16 sps:$4 sm:$0xff]  }
 0x249   :  { %v10733_v18 = vld [vmem:[%s14795_s1 + $0x142c] ss:$16 sps:$4 sm:$0xff]  }
 0x24a   :  { %7009 = vmatmul.mubr.bf16.gmra.mrb[4].mxu0 %v8480_v19  ;;  %7857 = vmatmul.mubr.bf16.gmra.mrb[4].mxu1 %v8480_v19  ;;  %v10725_v19 = vld [vmem:[%s14795_s1 + $0x1408] ss:$16 sps:$4 sm:$0xff]  }
 0x24b   :  { %7024 = vmatpush1.bf16.msra.mxu0 %v10638_v20  ;;  %7872 = vmatpush1.bf16.msra.mxu1 %v10641_v21  ;;  %v8483_v20 = vcombine.high %v55_v14, %v71_v15  ;;  %v10728_v21 = vld [vmem:[%s14795_s1 + $0x1420] ss:$16 sps:$4 sm:$0xff]  }
 0x24c   :  { %7025 = vmatprep.subr.bf16.mxu0 %v10646_v22  ;;  %7873 = vmatprep.subr.bf16.mxu1 %v10649_v23  ;;  %v10731_v22 = vld [vmem:[%s14795_s1 + $0x1428] ss:$16 sps:$4 sm:$0xff]   ;;  %v10736_v23 = vld [vmem:[%s14795_s1 + $0x1444] ss:$16 sps:$4 sm:$0xff]  }
 0x24d   :  { %7051 = vmatprep.mubr.bf16.mxu0 %v8451_v24  ;;  %7899 = vmatprep.mubr.bf16.mxu1 %v8451_v24  ;;  %v10739_v24 = vld [vmem:[%s14795_s1 + $0x144c] ss:$16 sps:$4 sm:$0xff]  }
 0x24f   :  { %7026 = vmatpush1.bf16.msra.mxu0 %v10644_v26  ;;  %7874 = vmatpush1.bf16.msra.mxu1 %v10647_v25  ;;  %v8482_v26 = vcombine.low %v55_v14, %v71_v15  ;;  %v13470_v25 = vld [vmem:[%s14796_s0 + $0x50] sm:$0xff]  ;;  %v10809_v14 = vld [vmem:[%s14795_s1 + $0x15c8] ss:$16 sps:$4 sm:$0xff]  }
 0x250   :  { %7027 = vmatprep.subr.bf16.mxu0 %v10652_v27  ;;  %7875 = vmatprep.subr.bf16.mxu1 %v10655_v28  ;;  %v13475_v27 = vld [vmem:[%s14796_s0 + $0xd0] sm:$0xff] }
 0x251   :  { %v10734_v28 = vld [vmem:[%s14795_s1 + $0x1440] ss:$16 sps:$4 sm:$0xff]   ;;  %v10814_v15 = vld [vmem:[%s14795_s1 + $0x15e4] ss:$16 sps:$4 sm:$0xff]  }
 0x253   :  { %7028 = vmatpush1.bf16.msra.mxu0 %v10650_v29  ;;  %7876 = vmatpush1.bf16.msra.mxu1 %v10653_v30  ;;  %v10737_v29 = vld [vmem:[%s14795_s1 + $0x1448] ss:$16 sps:$4 sm:$0xff]   ;;  %v10742_v30 = vld [vmem:[%s14795_s1 + $0x1464] ss:$16 sps:$4 sm:$0xff]  }
 0x254   :  { %7029 = vmatprep.subr.bf16.mxu0 %v10658_v31  ;;  %7877 = vmatprep.subr.bf16.mxu1 %v10661_v32  ;;  %v10745_v31 = vld [vmem:[%s14795_s1 + $0x146c] ss:$16 sps:$4 sm:$0xff]   ;;  %v8453_v32 = vcombine.high %v13470_v25, %v13475_v27 }
 0x257   :  { %7030 = vmatpush1.bf16.msra.mxu0 %v10656_v34  ;;  %7878 = vmatpush1.bf16.msra.mxu1 %v10659_v36  ;;  %v10740_v34 = vld [vmem:[%s14795_s1 + $0x1460] ss:$16 sps:$4 sm:$0xff]   ;;  %v10743_v36 = vld [vmem:[%s14795_s1 + $0x1468] ss:$16 sps:$4 sm:$0xff]  }
 0x258   :  { %7031 = vmatprep.subr.bf16.mxu0 %v10664_v33  ;;  %7879 = vmatprep.subr.bf16.mxu1 %v10667_v35  ;;  %v10748_v33 = vld [vmem:[%s14795_s1 + $0x1484] ss:$16 sps:$4 sm:$0xff]   ;;  %v10751_v35 = vld [vmem:[%s14795_s1 + $0x148c] ss:$16 sps:$4 sm:$0xff]  }
 0x25b   :  { %7032 = vmatpush1.bf16.msra.mxu0 %v10662_v37  ;;  %7880 = vmatpush1.bf16.msra.mxu1 %v10665_v38  ;;  %v10746_v37 = vld [vmem:[%s14795_s1 + $0x1480] ss:$16 sps:$4 sm:$0xff]   ;;  %v10749_v38 = vld [vmem:[%s14795_s1 + $0x1488] ss:$16 sps:$4 sm:$0xff]  }
 0x25c   :  { %7033 = vmatprep.subr.bf16.mxu0 %v10670_v39  ;;  %7881 = vmatprep.subr.bf16.mxu1 %v10673_v40  ;;  %v10754_v39 = vld [vmem:[%s14795_s1 + $0x14a4] ss:$16 sps:$4 sm:$0xff]   ;;  %v10757_v40 = vld [vmem:[%s14795_s1 + $0x14ac] ss:$16 sps:$4 sm:$0xff]  }
 0x25f   :  { %7034 = vmatpush1.bf16.msra.mxu0 %v10668_v42  ;;  %7882 = vmatpush1.bf16.msra.mxu1 %v10671_v44  ;;  %v10752_v42 = vld [vmem:[%s14795_s1 + $0x14a0] ss:$16 sps:$4 sm:$0xff]   ;;  %v10755_v44 = vld [vmem:[%s14795_s1 + $0x14a8] ss:$16 sps:$4 sm:$0xff]  }
 0x260   :  { %7035 = vmatprep.subr.bf16.mxu0 %v10676_v41  ;;  %7883 = vmatprep.subr.bf16.mxu1 %v10679_v43  ;;  %v10760_v41 = vld [vmem:[%s14795_s1 + $0x14c4] ss:$16 sps:$4 sm:$0xff]   ;;  %v10763_v43 = vld [vmem:[%s14795_s1 + $0x14cc] ss:$16 sps:$4 sm:$0xff]  }
 0x263   :  { %7036 = vmatpush1.bf16.msra.mxu0 %v10674_v45  ;;  %7884 = vmatpush1.bf16.msra.mxu1 %v10677_v46  ;;  %v10758_v45 = vld [vmem:[%s14795_s1 + $0x14c0] ss:$16 sps:$4 sm:$0xff]   ;;  %v10761_v46 = vld [vmem:[%s14795_s1 + $0x14c8] ss:$16 sps:$4 sm:$0xff]  }
 0x264   :  { %7037 = vmatprep.subr.bf16.mxu0 %v10682_v47  ;;  %7885 = vmatprep.subr.bf16.mxu1 %v10685_v48  ;;  %v10766_v47 = vld [vmem:[%s14795_s1 + $0x14e4] ss:$16 sps:$4 sm:$0xff]   ;;  %v10769_v48 = vld [vmem:[%s14795_s1 + $0x14ec] ss:$16 sps:$4 sm:$0xff]  }
 0x267   :  { %7038 = vmatpush1.bf16.msra.mxu0 %v10680_v51  ;;  %7886 = vmatpush1.bf16.msra.mxu1 %v10683_v52  ;;  %v10764_v51 = vld [vmem:[%s14795_s1 + $0x14e0] ss:$16 sps:$4 sm:$0xff]   ;;  %v10767_v52 = vld [vmem:[%s14795_s1 + $0x14e8] ss:$16 sps:$4 sm:$0xff]  }
 0x268   :  { %7039 = vmatprep.subr.bf16.mxu0 %v10688_v49  ;;  %7887 = vmatprep.subr.bf16.mxu1 %v10691_v50  ;;  %v10772_v49 = vld [vmem:[%s14795_s1 + $0x1504] ss:$16 sps:$4 sm:$0xff]   ;;  %v10775_v50 = vld [vmem:[%s14795_s1 + $0x150c] ss:$16 sps:$4 sm:$0xff]  }
 0x26b   :  { %7040 = vmatpush1.bf16.msra.mxu0 %v10686_v53  ;;  %7888 = vmatpush1.bf16.msra.mxu1 %v10689_v54  ;;  %v10770_v53 = vld [vmem:[%s14795_s1 + $0x1500] ss:$16 sps:$4 sm:$0xff]   ;;  %v10773_v54 = vld [vmem:[%s14795_s1 + $0x1508] ss:$16 sps:$4 sm:$0xff]  }
 0x26c   :  { %7041 = vmatprep.subr.bf16.mxu0 %v10694_v55  ;;  %7889 = vmatprep.subr.bf16.mxu1 %v10697_v56  ;;  %v10778_v55 = vld [vmem:[%s14795_s1 + $0x1524] ss:$16 sps:$4 sm:$0xff]   ;;  %v10781_v56 = vld [vmem:[%s14795_s1 + $0x152c] ss:$16 sps:$4 sm:$0xff]  }
 0x26f   :  { %7042 = vmatpush1.bf16.msra.mxu0 %v10692_v59  ;;  %7890 = vmatpush1.bf16.msra.mxu1 %v10695_v60  ;;  %v10776_v59 = vld [vmem:[%s14795_s1 + $0x1520] ss:$16 sps:$4 sm:$0xff]   ;;  %v10779_v60 = vld [vmem:[%s14795_s1 + $0x1528] ss:$16 sps:$4 sm:$0xff]  }
 0x270   :  { %7043 = vmatprep.subr.bf16.mxu0 %v10700_v57  ;;  %7891 = vmatprep.subr.bf16.mxu1 %v10703_v58  ;;  %v10784_v57 = vld [vmem:[%s14795_s1 + $0x1544] ss:$16 sps:$4 sm:$0xff]   ;;  %v10787_v58 = vld [vmem:[%s14795_s1 + $0x154c] ss:$16 sps:$4 sm:$0xff]  }
 0x273   :  { %7044 = vmatpush1.bf16.msra.mxu0 %v10698_v61  ;;  %7892 = vmatpush1.bf16.msra.mxu1 %v10701_v62  ;;  %v10782_v61 = vld [vmem:[%s14795_s1 + $0x1540] ss:$16 sps:$4 sm:$0xff]   ;;  %v10785_v62 = vld [vmem:[%s14795_s1 + $0x1548] ss:$16 sps:$4 sm:$0xff]  }
 0x274   :  { %7045 = vmatprep.subr.bf16.mxu0 %v10706_v63  ;;  %7893 = vmatprep.subr.bf16.mxu1 %v10709_v0  ;;  %v10790_v63 = vld [vmem:[%s14795_s1 + $0x1564] ss:$16 sps:$4 sm:$0xff]   ;;  %v10793_v0 = vld [vmem:[%s14795_s1 + $0x156c] ss:$16 sps:$4 sm:$0xff]  }
 0x277   :  { %7046 = vmatpush1.bf16.msra.mxu0 %v10704_v3  ;;  %7894 = vmatpush1.bf16.msra.mxu1 %v10707_v4  ;;  %v10788_v3 = vld [vmem:[%s14795_s1 + $0x1560] ss:$16 sps:$4 sm:$0xff]   ;;  %v10791_v4 = vld [vmem:[%s14795_s1 + $0x1568] ss:$16 sps:$4 sm:$0xff]  }
 0x278   :  { %7047 = vmatprep.subr.bf16.mxu0 %v10712_v1  ;;  %7895 = vmatprep.subr.bf16.mxu1 %v10715_v2  ;;  %v10796_v1 = vld [vmem:[%s14795_s1 + $0x1584] ss:$16 sps:$4 sm:$0xff]   ;;  %v10799_v2 = vld [vmem:[%s14795_s1 + $0x158c] ss:$16 sps:$4 sm:$0xff]  }
 0x27b   :  { %7048 = vmatpush1.bf16.msra.mxu0 %v10710_v5  ;;  %7896 = vmatpush1.bf16.msra.mxu1 %v10713_v6  ;;  %v10794_v5 = vld [vmem:[%s14795_s1 + $0x1580] ss:$16 sps:$4 sm:$0xff]   ;;  %v10797_v6 = vld [vmem:[%s14795_s1 + $0x1588] ss:$16 sps:$4 sm:$0xff]  }
 0x27c   :  { %7049 = vmatprep.subr.bf16.mxu0 %v10718_v7  ;;  %7897 = vmatprep.subr.bf16.mxu1 %v10721_v8  ;;  %v10802_v7 = vld [vmem:[%s14795_s1 + $0x15a4] ss:$16 sps:$4 sm:$0xff]   ;;  %v10805_v8 = vld [vmem:[%s14795_s1 + $0x15ac] ss:$16 sps:$4 sm:$0xff]  }
 0x27f   :  { %7050 = vmatpush1.bf16.msra.mxu0 %v10716_v11  ;;  %7898 = vmatpush1.bf16.msra.mxu1 %v10719_v12  ;;  %v10800_v11 = vld [vmem:[%s14795_s1 + $0x15a0] ss:$16 sps:$4 sm:$0xff]   ;;  %v10803_v12 = vld [vmem:[%s14795_s1 + $0x15a8] ss:$16 sps:$4 sm:$0xff]  }
 0x280   :  { %7072 = vmatprep.subr.bf16.mxu0 %v10724_v9  ;;  %7920 = vmatprep.subr.bf16.mxu1 %v10727_v10  ;;  %v10808_v9 = vld [vmem:[%s14795_s1 + $0x15c4] ss:$16 sps:$4 sm:$0xff]   ;;  %v10811_v10 = vld [vmem:[%s14795_s1 + $0x15cc] ss:$16 sps:$4 sm:$0xff]  }
 0x282   :  { %7052 = vmatmul.mubr.bf16.vlgmr.msra.gmra.mrb[0].mxu0 %v8450_v13  ;;  %7900 = vmatmul.mubr.bf16.vlgmr.msra.gmra.mrb[0].mxu1 %v8450_v13  ;;  %v10806_v13 = vld [vmem:[%s14795_s1 + $0x15c0] ss:$16 sps:$4 sm:$0xff]  }
 0x283   :  { %7073 = vmatpush1.bf16.msra.mxu0 %v10722_v16  ;;  %7921 = vmatpush1.bf16.msra.mxu1 %v10725_v19  ;;  %v10817_v16 = vld [vmem:[%s14795_s1 + $0x15ec] ss:$16 sps:$4 sm:$0xff]   ;;  %v10812_v19 = vld [vmem:[%s14795_s1 + $0x15e0] ss:$16 sps:$4 sm:$0xff]  }
 0x284   :  { %7074 = vmatprep.subr.bf16.mxu0 %v10730_v17  ;;  %7922 = vmatprep.subr.bf16.mxu1 %v10733_v18  ;;  %v10815_v17 = vld [vmem:[%s14795_s1 + $0x15e8] ss:$16 sps:$4 sm:$0xff]   ;;  %v10820_v18 = vld [vmem:[%s14795_s1 + $0x1604] ss:$16 sps:$4 sm:$0xff]  }
 0x285   :  { %7061 = vmatprep.mubr.bf16.mxu0 %v8483_v20  ;;  %7909 = vmatprep.mubr.bf16.mxu1 %v8483_v20  ;;  %v10823_v20 = vld [vmem:[%s14795_s1 + $0x160c] ss:$16 sps:$4 sm:$0xff]  }
 0x287   :  { %7075 = vmatpush1.bf16.msra.mxu0 %v10728_v21  ;;  %7923 = vmatpush1.bf16.msra.mxu1 %v10731_v22  ;;  %v8452_v21 = vcombine.low %v13470_v25, %v13475_v27  ;;  %v56_v22 = vld [vmem:[%s14796_s0 + $0x150] sm:$0xff]  ;;  %v10829_v27 = vld [vmem:[%s14795_s1 + $0x162c] ss:$16 sps:$4 sm:$0xff]  }
 0x288   :  { %7076 = vmatprep.subr.bf16.mxu0 %v10736_v23  ;;  %7924 = vmatprep.subr.bf16.mxu1 %v10739_v24  ;;  %v72_v23 = vld [vmem:[%s14796_s0 + $0x1d0] sm:$0xff] }
 0x289   :  { %v10818_v24 = vld [vmem:[%s14795_s1 + $0x1600] ss:$16 sps:$4 sm:$0xff]   ;;  %v10826_v25 = vld [vmem:[%s14795_s1 + $0x1624] ss:$16 sps:$4 sm:$0xff]  }
 0x28a   :  { %7062 = vmatmul.mubr.bf16.gmra.mrb[4].mxu0 %v8482_v26  ;;  %7910 = vmatmul.mubr.bf16.gmra.mrb[4].mxu1 %v8482_v26  ;;  %v10821_v26 = vld [vmem:[%s14795_s1 + $0x1608] ss:$16 sps:$4 sm:$0xff]  }
 0x28b   :  { %7077 = vmatpush1.bf16.msra.mxu0 %v10734_v28  ;;  %7925 = vmatpush1.bf16.msra.mxu1 %v10737_v29  ;;  %v8485_v28 = vcombine.high %v56_v22, %v72_v23  ;;  %v10824_v29 = vld [vmem:[%s14795_s1 + $0x1620] ss:$16 sps:$4 sm:$0xff]  }
 0x28c   :  { %7078 = vmatprep.subr.bf16.mxu0 %v10742_v30  ;;  %7926 = vmatprep.subr.bf16.mxu1 %v10745_v31  ;;  %v10827_v30 = vld [vmem:[%s14795_s1 + $0x1628] ss:$16 sps:$4 sm:$0xff]   ;;  %v10832_v31 = vld [vmem:[%s14795_s1 + $0x1644] ss:$16 sps:$4 sm:$0xff]  }
 0x28d   :  { %7104 = vmatprep.mubr.bf16.mxu0 %v8453_v32  ;;  %7952 = vmatprep.mubr.bf16.mxu1 %v8453_v32  ;;  %v10835_v32 = vld [vmem:[%s14795_s1 + $0x164c] ss:$16 sps:$4 sm:$0xff]  }
 0x28f   :  { %7079 = vmatpush1.bf16.msra.mxu0 %v10740_v34  ;;  %7927 = vmatpush1.bf16.msra.mxu1 %v10743_v36  ;;  %v8484_v34 = vcombine.low %v56_v22, %v72_v23  ;;  %v13682_v36 = vld [vmem:[%s14796_s0 + $0x58] sm:$0xff]  ;;  %v10910_v23 = vld [vmem:[%s14795_s1 + $0x17e4] ss:$16 sps:$4 sm:$0xff]  }
 0x290   :  { %7080 = vmatprep.subr.bf16.mxu0 %v10748_v33  ;;  %7928 = vmatprep.subr.bf16.mxu1 %v10751_v35  ;;  %v13687_v33 = vld [vmem:[%s14796_s0 + $0xd8] sm:$0xff]  ;;  %v10830_v35 = vld [vmem:[%s14795_s1 + $0x1640] ss:$16 sps:$4 sm:$0xff]  }
 0x291   :  { %v10905_v22 = vld [vmem:[%s14795_s1 + $0x17c8] ss:$16 sps:$4 sm:$0xff]  }
 0x293   :  { %7081 = vmatpush1.bf16.msra.mxu0 %v10746_v37  ;;  %7929 = vmatpush1.bf16.msra.mxu1 %v10749_v38  ;;  %v10833_v37 = vld [vmem:[%s14795_s1 + $0x1648] ss:$16 sps:$4 sm:$0xff]   ;;  %v10838_v38 = vld [vmem:[%s14795_s1 + $0x1664] ss:$16 sps:$4 sm:$0xff]  }
 0x294   :  { %7082 = vmatprep.subr.bf16.mxu0 %v10754_v39  ;;  %7930 = vmatprep.subr.bf16.mxu1 %v10757_v40  ;;  %v10841_v39 = vld [vmem:[%s14795_s1 + $0x166c] ss:$16 sps:$4 sm:$0xff]   ;;  %v8455_v40 = vcombine.high %v13682_v36, %v13687_v33 }
 0x297   :  { %7083 = vmatpush1.bf16.msra.mxu0 %v10752_v42  ;;  %7931 = vmatpush1.bf16.msra.mxu1 %v10755_v44  ;;  %v10836_v42 = vld [vmem:[%s14795_s1 + $0x1660] ss:$16 sps:$4 sm:$0xff]   ;;  %v10839_v44 = vld [vmem:[%s14795_s1 + $0x1668] ss:$16 sps:$4 sm:$0xff]  }
 0x298   :  { %7084 = vmatprep.subr.bf16.mxu0 %v10760_v41  ;;  %7932 = vmatprep.subr.bf16.mxu1 %v10763_v43  ;;  %v10844_v41 = vld [vmem:[%s14795_s1 + $0x1684] ss:$16 sps:$4 sm:$0xff]   ;;  %v10847_v43 = vld [vmem:[%s14795_s1 + $0x168c] ss:$16 sps:$4 sm:$0xff]  }
 0x29b   :  { %7085 = vmatpush1.bf16.msra.mxu0 %v10758_v45  ;;  %7933 = vmatpush1.bf16.msra.mxu1 %v10761_v46  ;;  %v10842_v45 = vld [vmem:[%s14795_s1 + $0x1680] ss:$16 sps:$4 sm:$0xff]   ;;  %v10845_v46 = vld [vmem:[%s14795_s1 + $0x1688] ss:$16 sps:$4 sm:$0xff]  }
 0x29c   :  { %7086 = vmatprep.subr.bf16.mxu0 %v10766_v47  ;;  %7934 = vmatprep.subr.bf16.mxu1 %v10769_v48  ;;  %v10850_v47 = vld [vmem:[%s14795_s1 + $0x16a4] ss:$16 sps:$4 sm:$0xff]   ;;  %v10853_v48 = vld [vmem:[%s14795_s1 + $0x16ac] ss:$16 sps:$4 sm:$0xff]  }
 0x29f   :  { %7087 = vmatpush1.bf16.msra.mxu0 %v10764_v51  ;;  %7935 = vmatpush1.bf16.msra.mxu1 %v10767_v52  ;;  %v10848_v51 = vld [vmem:[%s14795_s1 + $0x16a0] ss:$16 sps:$4 sm:$0xff]   ;;  %v10851_v52 = vld [vmem:[%s14795_s1 + $0x16a8] ss:$16 sps:$4 sm:$0xff]  }
 0x2a0   :  { %7088 = vmatprep.subr.bf16.mxu0 %v10772_v49  ;;  %7936 = vmatprep.subr.bf16.mxu1 %v10775_v50  ;;  %v10856_v49 = vld [vmem:[%s14795_s1 + $0x16c4] ss:$16 sps:$4 sm:$0xff]   ;;  %v10859_v50 = vld [vmem:[%s14795_s1 + $0x16cc] ss:$16 sps:$4 sm:$0xff]  }
 0x2a3   :  { %7089 = vmatpush1.bf16.msra.mxu0 %v10770_v53  ;;  %7937 = vmatpush1.bf16.msra.mxu1 %v10773_v54  ;;  %v10854_v53 = vld [vmem:[%s14795_s1 + $0x16c0] ss:$16 sps:$4 sm:$0xff]   ;;  %v10857_v54 = vld [vmem:[%s14795_s1 + $0x16c8] ss:$16 sps:$4 sm:$0xff]  }
 0x2a4   :  { %7090 = vmatprep.subr.bf16.mxu0 %v10778_v55  ;;  %7938 = vmatprep.subr.bf16.mxu1 %v10781_v56  ;;  %v10862_v55 = vld [vmem:[%s14795_s1 + $0x16e4] ss:$16 sps:$4 sm:$0xff]   ;;  %v10865_v56 = vld [vmem:[%s14795_s1 + $0x16ec] ss:$16 sps:$4 sm:$0xff]  }
 0x2a7   :  { %7091 = vmatpush1.bf16.msra.mxu0 %v10776_v59  ;;  %7939 = vmatpush1.bf16.msra.mxu1 %v10779_v60  ;;  %v10860_v59 = vld [vmem:[%s14795_s1 + $0x16e0] ss:$16 sps:$4 sm:$0xff]   ;;  %v10863_v60 = vld [vmem:[%s14795_s1 + $0x16e8] ss:$16 sps:$4 sm:$0xff]  }
 0x2a8   :  { %7092 = vmatprep.subr.bf16.mxu0 %v10784_v57  ;;  %7940 = vmatprep.subr.bf16.mxu1 %v10787_v58  ;;  %v10868_v57 = vld [vmem:[%s14795_s1 + $0x1704] ss:$16 sps:$4 sm:$0xff]   ;;  %v10871_v58 = vld [vmem:[%s14795_s1 + $0x170c] ss:$16 sps:$4 sm:$0xff]  }
 0x2ab   :  { %7093 = vmatpush1.bf16.msra.mxu0 %v10782_v61  ;;  %7941 = vmatpush1.bf16.msra.mxu1 %v10785_v62  ;;  %v10866_v61 = vld [vmem:[%s14795_s1 + $0x1700] ss:$16 sps:$4 sm:$0xff]   ;;  %v10869_v62 = vld [vmem:[%s14795_s1 + $0x1708] ss:$16 sps:$4 sm:$0xff]  }
 0x2ac   :  { %7094 = vmatprep.subr.bf16.mxu0 %v10790_v63  ;;  %7942 = vmatprep.subr.bf16.mxu1 %v10793_v0  ;;  %v10874_v63 = vld [vmem:[%s14795_s1 + $0x1724] ss:$16 sps:$4 sm:$0xff]   ;;  %v10877_v0 = vld [vmem:[%s14795_s1 + $0x172c] ss:$16 sps:$4 sm:$0xff]  }
 0x2af   :  { %7095 = vmatpush1.bf16.msra.mxu0 %v10788_v3  ;;  %7943 = vmatpush1.bf16.msra.mxu1 %v10791_v4  ;;  %v10872_v3 = vld [vmem:[%s14795_s1 + $0x1720] ss:$16 sps:$4 sm:$0xff]   ;;  %v10875_v4 = vld [vmem:[%s14795_s1 + $0x1728] ss:$16 sps:$4 sm:$0xff]  }
 0x2b0   :  { %7096 = vmatprep.subr.bf16.mxu0 %v10796_v1  ;;  %7944 = vmatprep.subr.bf16.mxu1 %v10799_v2  ;;  %v10880_v1 = vld [vmem:[%s14795_s1 + $0x1744] ss:$16 sps:$4 sm:$0xff]   ;;  %v10883_v2 = vld [vmem:[%s14795_s1 + $0x174c] ss:$16 sps:$4 sm:$0xff]  }
 0x2b3   :  { %7097 = vmatpush1.bf16.msra.mxu0 %v10794_v5  ;;  %7945 = vmatpush1.bf16.msra.mxu1 %v10797_v6  ;;  %v10878_v5 = vld [vmem:[%s14795_s1 + $0x1740] ss:$16 sps:$4 sm:$0xff]   ;;  %v10881_v6 = vld [vmem:[%s14795_s1 + $0x1748] ss:$16 sps:$4 sm:$0xff]  }
 0x2b4   :  { %7098 = vmatprep.subr.bf16.mxu0 %v10802_v7  ;;  %7946 = vmatprep.subr.bf16.mxu1 %v10805_v8  ;;  %v10886_v7 = vld [vmem:[%s14795_s1 + $0x1764] ss:$16 sps:$4 sm:$0xff]   ;;  %v10889_v8 = vld [vmem:[%s14795_s1 + $0x176c] ss:$16 sps:$4 sm:$0xff]  }
 0x2b7   :  { %7099 = vmatpush1.bf16.msra.mxu0 %v10800_v11  ;;  %7947 = vmatpush1.bf16.msra.mxu1 %v10803_v12  ;;  %v10884_v11 = vld [vmem:[%s14795_s1 + $0x1760] ss:$16 sps:$4 sm:$0xff]   ;;  %v10887_v12 = vld [vmem:[%s14795_s1 + $0x1768] ss:$16 sps:$4 sm:$0xff]  }
 0x2b8   :  { %7100 = vmatprep.subr.bf16.mxu0 %v10808_v9  ;;  %7948 = vmatprep.subr.bf16.mxu1 %v10811_v10  ;;  %v10892_v9 = vld [vmem:[%s14795_s1 + $0x1784] ss:$16 sps:$4 sm:$0xff]   ;;  %v10895_v10 = vld [vmem:[%s14795_s1 + $0x178c] ss:$16 sps:$4 sm:$0xff]  }
 0x2bb   :  { %7101 = vmatpush1.bf16.msra.mxu0 %v10806_v13  ;;  %7949 = vmatpush1.bf16.msra.mxu1 %v10809_v14  ;;  %v10890_v13 = vld [vmem:[%s14795_s1 + $0x1780] ss:$16 sps:$4 sm:$0xff]   ;;  %v10893_v14 = vld [vmem:[%s14795_s1 + $0x1788] ss:$16 sps:$4 sm:$0xff]  }
 0x2bc   :  { %7102 = vmatprep.subr.bf16.mxu0 %v10814_v15  ;;  %7950 = vmatprep.subr.bf16.mxu1 %v10817_v16  ;;  %v10898_v15 = vld [vmem:[%s14795_s1 + $0x17a4] ss:$16 sps:$4 sm:$0xff]   ;;  %v10901_v16 = vld [vmem:[%s14795_s1 + $0x17ac] ss:$16 sps:$4 sm:$0xff]  }
 0x2bf   :  { %7103 = vmatpush1.bf16.msra.mxu0 %v10812_v19  ;;  %7951 = vmatpush1.bf16.msra.mxu1 %v10815_v17  ;;  %v10896_v19 = vld [vmem:[%s14795_s1 + $0x17a0] ss:$16 sps:$4 sm:$0xff]   ;;  %v10899_v17 = vld [vmem:[%s14795_s1 + $0x17a8] ss:$16 sps:$4 sm:$0xff]  }
 0x2c0   :  { %7125 = vmatprep.subr.bf16.mxu0 %v10820_v18  ;;  %7973 = vmatprep.subr.bf16.mxu1 %v10823_v20  ;;  %v10904_v18 = vld [vmem:[%s14795_s1 + $0x17c4] ss:$16 sps:$4 sm:$0xff]   ;;  %v10907_v20 = vld [vmem:[%s14795_s1 + $0x17cc] ss:$16 sps:$4 sm:$0xff]  }
 0x2c2   :  { %7105 = vmatmul.mubr.bf16.vlgmr.msra.gmra.mrb[0].mxu0 %v8452_v21  ;;  %7953 = vmatmul.mubr.bf16.vlgmr.msra.gmra.mrb[0].mxu1 %v8452_v21  ;;  %v10902_v21 = vld [vmem:[%s14795_s1 + $0x17c0] ss:$16 sps:$4 sm:$0xff]  }
 0x2c3   :  { %7126 = vmatpush1.bf16.msra.mxu0 %v10818_v24  ;;  %7974 = vmatpush1.bf16.msra.mxu1 %v10821_v26  ;;  %v10913_v24 = vld [vmem:[%s14795_s1 + $0x17ec] ss:$16 sps:$4 sm:$0xff]   ;;  %v10908_v26 = vld [vmem:[%s14795_s1 + $0x17e0] ss:$16 sps:$4 sm:$0xff]  }
 0x2c4   :  { %7127 = vmatprep.subr.bf16.mxu0 %v10826_v25  ;;  %7975 = vmatprep.subr.bf16.mxu1 %v10829_v27  ;;  %v10911_v25 = vld [vmem:[%s14795_s1 + $0x17e8] ss:$16 sps:$4 sm:$0xff]   ;;  %v10916_v27 = vld [vmem:[%s14795_s1 + $0x1804] ss:$16 sps:$4 sm:$0xff]  }
 0x2c5   :  { %7114 = vmatprep.mubr.bf16.mxu0 %v8485_v28  ;;  %7962 = vmatprep.mubr.bf16.mxu1 %v8485_v28  ;;  %v10919_v28 = vld [vmem:[%s14795_s1 + $0x180c] ss:$16 sps:$4 sm:$0xff]  }
 0x2c7   :  { %7128 = vmatpush1.bf16.msra.mxu0 %v10824_v29  ;;  %7976 = vmatpush1.bf16.msra.mxu1 %v10827_v30  ;;  %v8454_v29 = vcombine.low %v13682_v36, %v13687_v33  ;;  %v57_v30 = vld [vmem:[%s14796_s0 + $0x158] sm:$0xff]  ;;  %v10922_v36 = vld [vmem:[%s14795_s1 + $0x1824] ss:$16 sps:$4 sm:$0xff]  }
 0x2c8   :  { %7129 = vmatprep.subr.bf16.mxu0 %v10832_v31  ;;  %7977 = vmatprep.subr.bf16.mxu1 %v10835_v32  ;;  %v73_v31 = vld [vmem:[%s14796_s0 + $0x1d8] sm:$0xff]  ;;  %v10914_v32 = vld [vmem:[%s14795_s1 + $0x1800] ss:$16 sps:$4 sm:$0xff]  }
 0x2c9   :  { %v10925_v33 = vld [vmem:[%s14795_s1 + $0x182c] ss:$16 sps:$4 sm:$0xff]  }
 0x2ca   :  { %7115 = vmatmul.mubr.bf16.gmra.mrb[4].mxu0 %v8484_v34  ;;  %7963 = vmatmul.mubr.bf16.gmra.mrb[4].mxu1 %v8484_v34  ;;  %v10917_v34 = vld [vmem:[%s14795_s1 + $0x1808] ss:$16 sps:$4 sm:$0xff]  }
 0x2cb   :  { %7130 = vmatpush1.bf16.msra.mxu0 %v10830_v35  ;;  %7978 = vmatpush1.bf16.msra.mxu1 %v10833_v37  ;;  %v8487_v35 = vcombine.high %v57_v30, %v73_v31  ;;  %v10920_v37 = vld [vmem:[%s14795_s1 + $0x1820] ss:$16 sps:$4 sm:$0xff]  }
 0x2cc   :  { %7131 = vmatprep.subr.bf16.mxu0 %v10838_v38  ;;  %7979 = vmatprep.subr.bf16.mxu1 %v10841_v39  ;;  %v10923_v38 = vld [vmem:[%s14795_s1 + $0x1828] ss:$16 sps:$4 sm:$0xff]   ;;  %v10928_v39 = vld [vmem:[%s14795_s1 + $0x1844] ss:$16 sps:$4 sm:$0xff]  }
 0x2cd   :  { %7157 = vmatprep.mubr.bf16.mxu0 %v8455_v40  ;;  %8005 = vmatprep.mubr.bf16.mxu1 %v8455_v40  ;;  %v10931_v40 = vld [vmem:[%s14795_s1 + $0x184c] ss:$16 sps:$4 sm:$0xff]  }
 0x2cf   :  { %7132 = vmatpush1.bf16.msra.mxu0 %v10836_v42  ;;  %7980 = vmatpush1.bf16.msra.mxu1 %v10839_v44  ;;  %v8486_v42 = vcombine.low %v57_v30, %v73_v31  ;;  %v13894_v44 = vld [vmem:[%s14796_s0 + $0x60] sm:$0xff]  ;;  %v11001_v30 = vld [vmem:[%s14795_s1 + $0x19c8] ss:$16 sps:$4 sm:$0xff]  }
 0x2d0   :  { %7133 = vmatprep.subr.bf16.mxu0 %v10844_v41  ;;  %7981 = vmatprep.subr.bf16.mxu1 %v10847_v43  ;;  %v13899_v41 = vld [vmem:[%s14796_s0 + $0xe0] sm:$0xff] }
 0x2d1   :  { %v10926_v43 = vld [vmem:[%s14795_s1 + $0x1840] ss:$16 sps:$4 sm:$0xff]   ;;  %v11006_v31 = vld [vmem:[%s14795_s1 + $0x19e4] ss:$16 sps:$4 sm:$0xff]  }
 0x2d3   :  { %7134 = vmatpush1.bf16.msra.mxu0 %v10842_v45  ;;  %7982 = vmatpush1.bf16.msra.mxu1 %v10845_v46  ;;  %v10929_v45 = vld [vmem:[%s14795_s1 + $0x1848] ss:$16 sps:$4 sm:$0xff]   ;;  %v10934_v46 = vld [vmem:[%s14795_s1 + $0x1864] ss:$16 sps:$4 sm:$0xff]  }
 0x2d4   :  { %7135 = vmatprep.subr.bf16.mxu0 %v10850_v47  ;;  %7983 = vmatprep.subr.bf16.mxu1 %v10853_v48  ;;  %v10937_v47 = vld [vmem:[%s14795_s1 + $0x186c] ss:$16 sps:$4 sm:$0xff]   ;;  %v8457_v48 = vcombine.high %v13894_v44, %v13899_v41 }
 0x2d7   :  { %7136 = vmatpush1.bf16.msra.mxu0 %v10848_v51  ;;  %7984 = vmatpush1.bf16.msra.mxu1 %v10851_v52  ;;  %v10932_v51 = vld [vmem:[%s14795_s1 + $0x1860] ss:$16 sps:$4 sm:$0xff]   ;;  %v10935_v52 = vld [vmem:[%s14795_s1 + $0x1868] ss:$16 sps:$4 sm:$0xff]  }
 0x2d8   :  { %7137 = vmatprep.subr.bf16.mxu0 %v10856_v49  ;;  %7985 = vmatprep.subr.bf16.mxu1 %v10859_v50  ;;  %v10940_v49 = vld [vmem:[%s14795_s1 + $0x1884] ss:$16 sps:$4 sm:$0xff]   ;;  %v10943_v50 = vld [vmem:[%s14795_s1 + $0x188c] ss:$16 sps:$4 sm:$0xff]  }
 0x2db   :  { %7138 = vmatpush1.bf16.msra.mxu0 %v10854_v53  ;;  %7986 = vmatpush1.bf16.msra.mxu1 %v10857_v54  ;;  %v10938_v53 = vld [vmem:[%s14795_s1 + $0x1880] ss:$16 sps:$4 sm:$0xff]   ;;  %v10941_v54 = vld [vmem:[%s14795_s1 + $0x1888] ss:$16 sps:$4 sm:$0xff]  }
 0x2dc   :  { %7139 = vmatprep.subr.bf16.mxu0 %v10862_v55  ;;  %7987 = vmatprep.subr.bf16.mxu1 %v10865_v56  ;;  %v10946_v55 = vld [vmem:[%s14795_s1 + $0x18a4] ss:$16 sps:$4 sm:$0xff]   ;;  %v10949_v56 = vld [vmem:[%s14795_s1 + $0x18ac] ss:$16 sps:$4 sm:$0xff]  }
 0x2df   :  { %7140 = vmatpush1.bf16.msra.mxu0 %v10860_v59  ;;  %7988 = vmatpush1.bf16.msra.mxu1 %v10863_v60  ;;  %v10944_v59 = vld [vmem:[%s14795_s1 + $0x18a0] ss:$16 sps:$4 sm:$0xff]   ;;  %v10947_v60 = vld [vmem:[%s14795_s1 + $0x18a8] ss:$16 sps:$4 sm:$0xff]  }
 0x2e0   :  { %7141 = vmatprep.subr.bf16.mxu0 %v10868_v57  ;;  %7989 = vmatprep.subr.bf16.mxu1 %v10871_v58  ;;  %v10952_v57 = vld [vmem:[%s14795_s1 + $0x18c4] ss:$16 sps:$4 sm:$0xff]   ;;  %v10955_v58 = vld [vmem:[%s14795_s1 + $0x18cc] ss:$16 sps:$4 sm:$0xff]  }
 0x2e3   :  { %7142 = vmatpush1.bf16.msra.mxu0 %v10866_v61  ;;  %7990 = vmatpush1.bf16.msra.mxu1 %v10869_v62  ;;  %v10950_v61 = vld [vmem:[%s14795_s1 + $0x18c0] ss:$16 sps:$4 sm:$0xff]   ;;  %v10953_v62 = vld [vmem:[%s14795_s1 + $0x18c8] ss:$16 sps:$4 sm:$0xff]  }
 0x2e4   :  { %7143 = vmatprep.subr.bf16.mxu0 %v10874_v63  ;;  %7991 = vmatprep.subr.bf16.mxu1 %v10877_v0  ;;  %v10958_v63 = vld [vmem:[%s14795_s1 + $0x18e4] ss:$16 sps:$4 sm:$0xff]   ;;  %v10961_v0 = vld [vmem:[%s14795_s1 + $0x18ec] ss:$16 sps:$4 sm:$0xff]  }
 0x2e7   :  { %7144 = vmatpush1.bf16.msra.mxu0 %v10872_v3  ;;  %7992 = vmatpush1.bf16.msra.mxu1 %v10875_v4  ;;  %v10956_v3 = vld [vmem:[%s14795_s1 + $0x18e0] ss:$16 sps:$4 sm:$0xff]   ;;  %v10959_v4 = vld [vmem:[%s14795_s1 + $0x18e8] ss:$16 sps:$4 sm:$0xff]  }
 0x2e8   :  { %7145 = vmatprep.subr.bf16.mxu0 %v10880_v1  ;;  %7993 = vmatprep.subr.bf16.mxu1 %v10883_v2  ;;  %v10964_v1 = vld [vmem:[%s14795_s1 + $0x1904] ss:$16 sps:$4 sm:$0xff]   ;;  %v10967_v2 = vld [vmem:[%s14795_s1 + $0x190c] ss:$16 sps:$4 sm:$0xff]  }
 0x2eb   :  { %7146 = vmatpush1.bf16.msra.mxu0 %v10878_v5  ;;  %7994 = vmatpush1.bf16.msra.mxu1 %v10881_v6  ;;  %v10962_v5 = vld [vmem:[%s14795_s1 + $0x1900] ss:$16 sps:$4 sm:$0xff]   ;;  %v10965_v6 = vld [vmem:[%s14795_s1 + $0x1908] ss:$16 sps:$4 sm:$0xff]  }
 0x2ec   :  { %7147 = vmatprep.subr.bf16.mxu0 %v10886_v7  ;;  %7995 = vmatprep.subr.bf16.mxu1 %v10889_v8  ;;  %v10970_v7 = vld [vmem:[%s14795_s1 + $0x1924] ss:$16 sps:$4 sm:$0xff]   ;;  %v10973_v8 = vld [vmem:[%s14795_s1 + $0x192c] ss:$16 sps:$4 sm:$0xff]  }
 0x2ef   :  { %7148 = vmatpush1.bf16.msra.mxu0 %v10884_v11  ;;  %7996 = vmatpush1.bf16.msra.mxu1 %v10887_v12  ;;  %v10968_v11 = vld [vmem:[%s14795_s1 + $0x1920] ss:$16 sps:$4 sm:$0xff]   ;;  %v10971_v12 = vld [vmem:[%s14795_s1 + $0x1928] ss:$16 sps:$4 sm:$0xff]  }
 0x2f0   :  { %7149 = vmatprep.subr.bf16.mxu0 %v10892_v9  ;;  %7997 = vmatprep.subr.bf16.mxu1 %v10895_v10  ;;  %v10976_v9 = vld [vmem:[%s14795_s1 + $0x1944] ss:$16 sps:$4 sm:$0xff]   ;;  %v10979_v10 = vld [vmem:[%s14795_s1 + $0x194c] ss:$16 sps:$4 sm:$0xff]  }
 0x2f3   :  { %7150 = vmatpush1.bf16.msra.mxu0 %v10890_v13  ;;  %7998 = vmatpush1.bf16.msra.mxu1 %v10893_v14  ;;  %v10974_v13 = vld [vmem:[%s14795_s1 + $0x1940] ss:$16 sps:$4 sm:$0xff]   ;;  %v10977_v14 = vld [vmem:[%s14795_s1 + $0x1948] ss:$16 sps:$4 sm:$0xff]  }
 0x2f4   :  { %7151 = vmatprep.subr.bf16.mxu0 %v10898_v15  ;;  %7999 = vmatprep.subr.bf16.mxu1 %v10901_v16  ;;  %v10982_v15 = vld [vmem:[%s14795_s1 + $0x1964] ss:$16 sps:$4 sm:$0xff]   ;;  %v10985_v16 = vld [vmem:[%s14795_s1 + $0x196c] ss:$16 sps:$4 sm:$0xff]  }
 0x2f7   :  { %7152 = vmatpush1.bf16.msra.mxu0 %v10896_v19  ;;  %8000 = vmatpush1.bf16.msra.mxu1 %v10899_v17  ;;  %v10980_v19 = vld [vmem:[%s14795_s1 + $0x1960] ss:$16 sps:$4 sm:$0xff]   ;;  %v10983_v17 = vld [vmem:[%s14795_s1 + $0x1968] ss:$16 sps:$4 sm:$0xff]  }
 0x2f8   :  { %7153 = vmatprep.subr.bf16.mxu0 %v10904_v18  ;;  %8001 = vmatprep.subr.bf16.mxu1 %v10907_v20  ;;  %v10988_v18 = vld [vmem:[%s14795_s1 + $0x1984] ss:$16 sps:$4 sm:$0xff]   ;;  %v10991_v20 = vld [vmem:[%s14795_s1 + $0x198c] ss:$16 sps:$4 sm:$0xff]  }
 0x2fb   :  { %7154 = vmatpush1.bf16.msra.mxu0 %v10902_v21  ;;  %8002 = vmatpush1.bf16.msra.mxu1 %v10905_v22  ;;  %v10986_v21 = vld [vmem:[%s14795_s1 + $0x1980] ss:$16 sps:$4 sm:$0xff]   ;;  %v10989_v22 = vld [vmem:[%s14795_s1 + $0x1988] ss:$16 sps:$4 sm:$0xff]  }
 0x2fc   :  { %7155 = vmatprep.subr.bf16.mxu0 %v10910_v23  ;;  %8003 = vmatprep.subr.bf16.mxu1 %v10913_v24  ;;  %v10994_v23 = vld [vmem:[%s14795_s1 + $0x19a4] ss:$16 sps:$4 sm:$0xff]   ;;  %v10997_v24 = vld [vmem:[%s14795_s1 + $0x19ac] ss:$16 sps:$4 sm:$0xff]  }
 0x2ff   :  { %7156 = vmatpush1.bf16.msra.mxu0 %v10908_v26  ;;  %8004 = vmatpush1.bf16.msra.mxu1 %v10911_v25  ;;  %v10992_v26 = vld [vmem:[%s14795_s1 + $0x19a0] ss:$16 sps:$4 sm:$0xff]   ;;  %v10995_v25 = vld [vmem:[%s14795_s1 + $0x19a8] ss:$16 sps:$4 sm:$0xff]  }
 0x300   :  { %7178 = vmatprep.subr.bf16.mxu0 %v10916_v27  ;;  %8026 = vmatprep.subr.bf16.mxu1 %v10919_v28  ;;  %v11000_v27 = vld [vmem:[%s14795_s1 + $0x19c4] ss:$16 sps:$4 sm:$0xff]   ;;  %v11003_v28 = vld [vmem:[%s14795_s1 + $0x19cc] ss:$16 sps:$4 sm:$0xff]  }
 0x302   :  { %7158 = vmatmul.mubr.bf16.vlgmr.msra.gmra.mrb[0].mxu0 %v8454_v29  ;;  %8006 = vmatmul.mubr.bf16.vlgmr.msra.gmra.mrb[0].mxu1 %v8454_v29  ;;  %v10998_v29 = vld [vmem:[%s14795_s1 + $0x19c0] ss:$16 sps:$4 sm:$0xff]  }
 0x303   :  { %7179 = vmatpush1.bf16.msra.mxu0 %v10914_v32  ;;  %8027 = vmatpush1.bf16.msra.mxu1 %v10917_v34  ;;  %v11009_v32 = vld [vmem:[%s14795_s1 + $0x19ec] ss:$16 sps:$4 sm:$0xff]   ;;  %v11004_v34 = vld [vmem:[%s14795_s1 + $0x19e0] ss:$16 sps:$4 sm:$0xff]  }
 0x304   :  { %7180 = vmatprep.subr.bf16.mxu0 %v10922_v36  ;;  %8028 = vmatprep.subr.bf16.mxu1 %v10925_v33  ;;  %v11007_v36 = vld [vmem:[%s14795_s1 + $0x19e8] ss:$16 sps:$4 sm:$0xff]   ;;  %v11012_v33 = vld [vmem:[%s14795_s1 + $0x1a04] ss:$16 sps:$4 sm:$0xff]  }
 0x305   :  { %7167 = vmatprep.mubr.bf16.mxu0 %v8487_v35  ;;  %8015 = vmatprep.mubr.bf16.mxu1 %v8487_v35  ;;  %v11015_v35 = vld [vmem:[%s14795_s1 + $0x1a0c] ss:$16 sps:$4 sm:$0xff]  }
 0x307   :  { %7181 = vmatpush1.bf16.msra.mxu0 %v10920_v37  ;;  %8029 = vmatpush1.bf16.msra.mxu1 %v10923_v38  ;;  %v8456_v37 = vcombine.low %v13894_v44, %v13899_v41  ;;  %v58_v38 = vld [vmem:[%s14796_s0 + $0x160] sm:$0xff]  ;;  %v11021_v41 = vld [vmem:[%s14795_s1 + $0x1a2c] ss:$16 sps:$4 sm:$0xff]  }
 0x308   :  { %7182 = vmatprep.subr.bf16.mxu0 %v10928_v39  ;;  %8030 = vmatprep.subr.bf16.mxu1 %v10931_v40  ;;  %v74_v39 = vld [vmem:[%s14796_s0 + $0x1e0] sm:$0xff] }
 0x309   :  { %v11010_v40 = vld [vmem:[%s14795_s1 + $0x1a00] ss:$16 sps:$4 sm:$0xff]   ;;  %v11018_v44 = vld [vmem:[%s14795_s1 + $0x1a24] ss:$16 sps:$4 sm:$0xff]  }
 0x30a   :  { %7168 = vmatmul.mubr.bf16.gmra.mrb[4].mxu0 %v8486_v42  ;;  %8016 = vmatmul.mubr.bf16.gmra.mrb[4].mxu1 %v8486_v42  ;;  %v11013_v42 = vld [vmem:[%s14795_s1 + $0x1a08] ss:$16 sps:$4 sm:$0xff]  }
 0x30b   :  { %7183 = vmatpush1.bf16.msra.mxu0 %v10926_v43  ;;  %8031 = vmatpush1.bf16.msra.mxu1 %v10929_v45  ;;  %v8489_v43 = vcombine.high %v58_v38, %v74_v39  ;;  %v11016_v45 = vld [vmem:[%s14795_s1 + $0x1a20] ss:$16 sps:$4 sm:$0xff]  }
 0x30c   :  { %7184 = vmatprep.subr.bf16.mxu0 %v10934_v46  ;;  %8032 = vmatprep.subr.bf16.mxu1 %v10937_v47  ;;  %v11019_v46 = vld [vmem:[%s14795_s1 + $0x1a28] ss:$16 sps:$4 sm:$0xff]   ;;  %v11024_v47 = vld [vmem:[%s14795_s1 + $0x1a44] ss:$16 sps:$4 sm:$0xff]  }
 0x30d   :  { %7210 = vmatprep.mubr.bf16.mxu0 %v8457_v48  ;;  %8058 = vmatprep.mubr.bf16.mxu1 %v8457_v48  ;;  %v11027_v48 = vld [vmem:[%s14795_s1 + $0x1a4c] ss:$16 sps:$4 sm:$0xff]  }
 0x30f   :  { %7185 = vmatpush1.bf16.msra.mxu0 %v10932_v51  ;;  %8033 = vmatpush1.bf16.msra.mxu1 %v10935_v52  ;;  %v8488_v51 = vcombine.low %v58_v38, %v74_v39  ;;  %v14106_v52 = vld [vmem:[%s14796_s0 + $0x68] sm:$0xff]  ;;  %v11102_v39 = vld [vmem:[%s14795_s1 + $0x1be4] ss:$16 sps:$4 sm:$0xff]  }
 0x310   :  { %7186 = vmatprep.subr.bf16.mxu0 %v10940_v49  ;;  %8034 = vmatprep.subr.bf16.mxu1 %v10943_v50  ;;  %v14111_v49 = vld [vmem:[%s14796_s0 + $0xe8] sm:$0xff]  ;;  %v11022_v50 = vld [vmem:[%s14795_s1 + $0x1a40] ss:$16 sps:$4 sm:$0xff]  }
 0x311   :  { %v11097_v38 = vld [vmem:[%s14795_s1 + $0x1bc8] ss:$16 sps:$4 sm:$0xff]  }
 0x313   :  { %7187 = vmatpush1.bf16.msra.mxu0 %v10938_v53  ;;  %8035 = vmatpush1.bf16.msra.mxu1 %v10941_v54  ;;  %v11025_v53 = vld [vmem:[%s14795_s1 + $0x1a48] ss:$16 sps:$4 sm:$0xff]   ;;  %v11030_v54 = vld [vmem:[%s14795_s1 + $0x1a64] ss:$16 sps:$4 sm:$0xff]  }
 0x314   :  { %7188 = vmatprep.subr.bf16.mxu0 %v10946_v55  ;;  %8036 = vmatprep.subr.bf16.mxu1 %v10949_v56  ;;  %v11033_v55 = vld [vmem:[%s14795_s1 + $0x1a6c] ss:$16 sps:$4 sm:$0xff]   ;;  %v8459_v56 = vcombine.high %v14106_v52, %v14111_v49 }
 0x317   :  { %7189 = vmatpush1.bf16.msra.mxu0 %v10944_v59  ;;  %8037 = vmatpush1.bf16.msra.mxu1 %v10947_v60  ;;  %v11028_v59 = vld [vmem:[%s14795_s1 + $0x1a60] ss:$16 sps:$4 sm:$0xff]   ;;  %v11031_v60 = vld [vmem:[%s14795_s1 + $0x1a68] ss:$16 sps:$4 sm:$0xff]  }
 0x318   :  { %7190 = vmatprep.subr.bf16.mxu0 %v10952_v57  ;;  %8038 = vmatprep.subr.bf16.mxu1 %v10955_v58  ;;  %v11036_v57 = vld [vmem:[%s14795_s1 + $0x1a84] ss:$16 sps:$4 sm:$0xff]   ;;  %v11039_v58 = vld [vmem:[%s14795_s1 + $0x1a8c] ss:$16 sps:$4 sm:$0xff]  }
 0x31b   :  { %7191 = vmatpush1.bf16.msra.mxu0 %v10950_v61  ;;  %8039 = vmatpush1.bf16.msra.mxu1 %v10953_v62  ;;  %v11034_v61 = vld [vmem:[%s14795_s1 + $0x1a80] ss:$16 sps:$4 sm:$0xff]   ;;  %v11037_v62 = vld [vmem:[%s14795_s1 + $0x1a88] ss:$16 sps:$4 sm:$0xff]  }
 0x31c   :  { %7192 = vmatprep.subr.bf16.mxu0 %v10958_v63  ;;  %8040 = vmatprep.subr.bf16.mxu1 %v10961_v0  ;;  %v11042_v63 = vld [vmem:[%s14795_s1 + $0x1aa4] ss:$16 sps:$4 sm:$0xff]   ;;  %v11045_v0 = vld [vmem:[%s14795_s1 + $0x1aac] ss:$16 sps:$4 sm:$0xff]  }
 0x31f   :  { %7193 = vmatpush1.bf16.msra.mxu0 %v10956_v3  ;;  %8041 = vmatpush1.bf16.msra.mxu1 %v10959_v4  ;;  %v11040_v3 = vld [vmem:[%s14795_s1 + $0x1aa0] ss:$16 sps:$4 sm:$0xff]   ;;  %v11043_v4 = vld [vmem:[%s14795_s1 + $0x1aa8] ss:$16 sps:$4 sm:$0xff]  }
 0x320   :  { %7194 = vmatprep.subr.bf16.mxu0 %v10964_v1  ;;  %8042 = vmatprep.subr.bf16.mxu1 %v10967_v2  ;;  %v11048_v1 = vld [vmem:[%s14795_s1 + $0x1ac4] ss:$16 sps:$4 sm:$0xff]   ;;  %v11051_v2 = vld [vmem:[%s14795_s1 + $0x1acc] ss:$16 sps:$4 sm:$0xff]  }
 0x323   :  { %7195 = vmatpush1.bf16.msra.mxu0 %v10962_v5  ;;  %8043 = vmatpush1.bf16.msra.mxu1 %v10965_v6  ;;  %v11046_v5 = vld [vmem:[%s14795_s1 + $0x1ac0] ss:$16 sps:$4 sm:$0xff]   ;;  %v11049_v6 = vld [vmem:[%s14795_s1 + $0x1ac8] ss:$16 sps:$4 sm:$0xff]  }
 0x324   :  { %7196 = vmatprep.subr.bf16.mxu0 %v10970_v7  ;;  %8044 = vmatprep.subr.bf16.mxu1 %v10973_v8  ;;  %v11054_v7 = vld [vmem:[%s14795_s1 + $0x1ae4] ss:$16 sps:$4 sm:$0xff]   ;;  %v11057_v8 = vld [vmem:[%s14795_s1 + $0x1aec] ss:$16 sps:$4 sm:$0xff]  }
 0x327   :  { %7197 = vmatpush1.bf16.msra.mxu0 %v10968_v11  ;;  %8045 = vmatpush1.bf16.msra.mxu1 %v10971_v12  ;;  %v11052_v11 = vld [vmem:[%s14795_s1 + $0x1ae0] ss:$16 sps:$4 sm:$0xff]   ;;  %v11055_v12 = vld [vmem:[%s14795_s1 + $0x1ae8] ss:$16 sps:$4 sm:$0xff]  }
 0x328   :  { %7198 = vmatprep.subr.bf16.mxu0 %v10976_v9  ;;  %8046 = vmatprep.subr.bf16.mxu1 %v10979_v10  ;;  %v11060_v9 = vld [vmem:[%s14795_s1 + $0x1b04] ss:$16 sps:$4 sm:$0xff]   ;;  %v11063_v10 = vld [vmem:[%s14795_s1 + $0x1b0c] ss:$16 sps:$4 sm:$0xff]  }
 0x32b   :  { %7199 = vmatpush1.bf16.msra.mxu0 %v10974_v13  ;;  %8047 = vmatpush1.bf16.msra.mxu1 %v10977_v14  ;;  %v11058_v13 = vld [vmem:[%s14795_s1 + $0x1b00] ss:$16 sps:$4 sm:$0xff]   ;;  %v11061_v14 = vld [vmem:[%s14795_s1 + $0x1b08] ss:$16 sps:$4 sm:$0xff]  }
 0x32c   :  { %7200 = vmatprep.subr.bf16.mxu0 %v10982_v15  ;;  %8048 = vmatprep.subr.bf16.mxu1 %v10985_v16  ;;  %v11066_v15 = vld [vmem:[%s14795_s1 + $0x1b24] ss:$16 sps:$4 sm:$0xff]   ;;  %v11069_v16 = vld [vmem:[%s14795_s1 + $0x1b2c] ss:$16 sps:$4 sm:$0xff]  }
 0x32f   :  { %7201 = vmatpush1.bf16.msra.mxu0 %v10980_v19  ;;  %8049 = vmatpush1.bf16.msra.mxu1 %v10983_v17  ;;  %v11064_v19 = vld [vmem:[%s14795_s1 + $0x1b20] ss:$16 sps:$4 sm:$0xff]   ;;  %v11067_v17 = vld [vmem:[%s14795_s1 + $0x1b28] ss:$16 sps:$4 sm:$0xff]  }
 0x330   :  { %7202 = vmatprep.subr.bf16.mxu0 %v10988_v18  ;;  %8050 = vmatprep.subr.bf16.mxu1 %v10991_v20  ;;  %v11072_v18 = vld [vmem:[%s14795_s1 + $0x1b44] ss:$16 sps:$4 sm:$0xff]   ;;  %v11075_v20 = vld [vmem:[%s14795_s1 + $0x1b4c] ss:$16 sps:$4 sm:$0xff]  }
 0x333   :  { %7203 = vmatpush1.bf16.msra.mxu0 %v10986_v21  ;;  %8051 = vmatpush1.bf16.msra.mxu1 %v10989_v22  ;;  %v11070_v21 = vld [vmem:[%s14795_s1 + $0x1b40] ss:$16 sps:$4 sm:$0xff]   ;;  %v11073_v22 = vld [vmem:[%s14795_s1 + $0x1b48] ss:$16 sps:$4 sm:$0xff]  }
 0x334   :  { %7204 = vmatprep.subr.bf16.mxu0 %v10994_v23  ;;  %8052 = vmatprep.subr.bf16.mxu1 %v10997_v24  ;;  %v11078_v23 = vld [vmem:[%s14795_s1 + $0x1b64] ss:$16 sps:$4 sm:$0xff]   ;;  %v11081_v24 = vld [vmem:[%s14795_s1 + $0x1b6c] ss:$16 sps:$4 sm:$0xff]  }
 0x337   :  { %7205 = vmatpush1.bf16.msra.mxu0 %v10992_v26  ;;  %8053 = vmatpush1.bf16.msra.mxu1 %v10995_v25  ;;  %v11076_v26 = vld [vmem:[%s14795_s1 + $0x1b60] ss:$16 sps:$4 sm:$0xff]   ;;  %v11079_v25 = vld [vmem:[%s14795_s1 + $0x1b68] ss:$16 sps:$4 sm:$0xff]  }
 0x338   :  { %7206 = vmatprep.subr.bf16.mxu0 %v11000_v27  ;;  %8054 = vmatprep.subr.bf16.mxu1 %v11003_v28  ;;  %v11084_v27 = vld [vmem:[%s14795_s1 + $0x1b84] ss:$16 sps:$4 sm:$0xff]   ;;  %v11087_v28 = vld [vmem:[%s14795_s1 + $0x1b8c] ss:$16 sps:$4 sm:$0xff]  }
 0x33b   :  { %7207 = vmatpush1.bf16.msra.mxu0 %v10998_v29  ;;  %8055 = vmatpush1.bf16.msra.mxu1 %v11001_v30  ;;  %v11082_v29 = vld [vmem:[%s14795_s1 + $0x1b80] ss:$16 sps:$4 sm:$0xff]   ;;  %v11085_v30 = vld [vmem:[%s14795_s1 + $0x1b88] ss:$16 sps:$4 sm:$0xff]  }
 0x33c   :  { %7208 = vmatprep.subr.bf16.mxu0 %v11006_v31  ;;  %8056 = vmatprep.subr.bf16.mxu1 %v11009_v32  ;;  %v11090_v31 = vld [vmem:[%s14795_s1 + $0x1ba4] ss:$16 sps:$4 sm:$0xff]   ;;  %v11093_v32 = vld [vmem:[%s14795_s1 + $0x1bac] ss:$16 sps:$4 sm:$0xff]  }
 0x33f   :  { %7209 = vmatpush1.bf16.msra.mxu0 %v11004_v34  ;;  %8057 = vmatpush1.bf16.msra.mxu1 %v11007_v36  ;;  %v11088_v34 = vld [vmem:[%s14795_s1 + $0x1ba0] ss:$16 sps:$4 sm:$0xff]   ;;  %v11091_v36 = vld [vmem:[%s14795_s1 + $0x1ba8] ss:$16 sps:$4 sm:$0xff]  }
 0x340   :  { %7231 = vmatprep.subr.bf16.mxu0 %v11012_v33  ;;  %8079 = vmatprep.subr.bf16.mxu1 %v11015_v35  ;;  %v11096_v33 = vld [vmem:[%s14795_s1 + $0x1bc4] ss:$16 sps:$4 sm:$0xff]   ;;  %v11099_v35 = vld [vmem:[%s14795_s1 + $0x1bcc] ss:$16 sps:$4 sm:$0xff]  }
 0x342   :  { %7211 = vmatmul.mubr.bf16.vlgmr.msra.gmra.mrb[0].mxu0 %v8456_v37  ;;  %8059 = vmatmul.mubr.bf16.vlgmr.msra.gmra.mrb[0].mxu1 %v8456_v37  ;;  %v11094_v37 = vld [vmem:[%s14795_s1 + $0x1bc0] ss:$16 sps:$4 sm:$0xff]  }
 0x343   :  { %7232 = vmatpush1.bf16.msra.mxu0 %v11010_v40  ;;  %8080 = vmatpush1.bf16.msra.mxu1 %v11013_v42  ;;  %v11105_v40 = vld [vmem:[%s14795_s1 + $0x1bec] ss:$16 sps:$4 sm:$0xff]   ;;  %v11100_v42 = vld [vmem:[%s14795_s1 + $0x1be0] ss:$16 sps:$4 sm:$0xff]  }
 0x344   :  { %7233 = vmatprep.subr.bf16.mxu0 %v11018_v44  ;;  %8081 = vmatprep.subr.bf16.mxu1 %v11021_v41  ;;  %v11103_v44 = vld [vmem:[%s14795_s1 + $0x1be8] ss:$16 sps:$4 sm:$0xff]   ;;  %v11108_v41 = vld [vmem:[%s14795_s1 + $0x1c04] ss:$16 sps:$4 sm:$0xff]  }
 0x345   :  { %7220 = vmatprep.mubr.bf16.mxu0 %v8489_v43  ;;  %8068 = vmatprep.mubr.bf16.mxu1 %v8489_v43  ;;  %v11111_v43 = vld [vmem:[%s14795_s1 + $0x1c0c] ss:$16 sps:$4 sm:$0xff]  }
 0x347   :  { %7234 = vmatpush1.bf16.msra.mxu0 %v11016_v45  ;;  %8082 = vmatpush1.bf16.msra.mxu1 %v11019_v46  ;;  %v8458_v45 = vcombine.low %v14106_v52, %v14111_v49  ;;  %v59_v46 = vld [vmem:[%s14796_s0 + $0x168] sm:$0xff]  ;;  %v11114_v52 = vld [vmem:[%s14795_s1 + $0x1c24] ss:$16 sps:$4 sm:$0xff]  }
 0x348   :  { %7235 = vmatprep.subr.bf16.mxu0 %v11024_v47  ;;  %8083 = vmatprep.subr.bf16.mxu1 %v11027_v48  ;;  %v75_v47 = vld [vmem:[%s14796_s0 + $0x1e8] sm:$0xff]  ;;  %v11106_v48 = vld [vmem:[%s14795_s1 + $0x1c00] ss:$16 sps:$4 sm:$0xff]  }
 0x349   :  { %v11117_v49 = vld [vmem:[%s14795_s1 + $0x1c2c] ss:$16 sps:$4 sm:$0xff]  }
 0x34a   :  { %7221 = vmatmul.mubr.bf16.gmra.mrb[4].mxu0 %v8488_v51  ;;  %8069 = vmatmul.mubr.bf16.gmra.mrb[4].mxu1 %v8488_v51  ;;  %v11109_v51 = vld [vmem:[%s14795_s1 + $0x1c08] ss:$16 sps:$4 sm:$0xff]  }
 0x34b   :  { %7236 = vmatpush1.bf16.msra.mxu0 %v11022_v50  ;;  %8084 = vmatpush1.bf16.msra.mxu1 %v11025_v53  ;;  %v8491_v50 = vcombine.high %v59_v46, %v75_v47  ;;  %v11112_v53 = vld [vmem:[%s14795_s1 + $0x1c20] ss:$16 sps:$4 sm:$0xff]  }
 0x34c   :  { %7237 = vmatprep.subr.bf16.mxu0 %v11030_v54  ;;  %8085 = vmatprep.subr.bf16.mxu1 %v11033_v55  ;;  %v11115_v54 = vld [vmem:[%s14795_s1 + $0x1c28] ss:$16 sps:$4 sm:$0xff]   ;;  %v11120_v55 = vld [vmem:[%s14795_s1 + $0x1c44] ss:$16 sps:$4 sm:$0xff]  }
 0x34d   :  { %7263 = vmatprep.mubr.bf16.mxu0 %v8459_v56  ;;  %8111 = vmatprep.mubr.bf16.mxu1 %v8459_v56  ;;  %v11123_v56 = vld [vmem:[%s14795_s1 + $0x1c4c] ss:$16 sps:$4 sm:$0xff]  }
 0x34f   :  { %7238 = vmatpush1.bf16.msra.mxu0 %v11028_v59  ;;  %8086 = vmatpush1.bf16.msra.mxu1 %v11031_v60  ;;  %v8490_v59 = vcombine.low %v59_v46, %v75_v47  ;;  %v14318_v60 = vld [vmem:[%s14796_s0 + $0x70] sm:$0xff]  ;;  %v11193_v46 = vld [vmem:[%s14795_s1 + $0x1dc8] ss:$16 sps:$4 sm:$0xff]  }
 0x350   :  { %7239 = vmatprep.subr.bf16.mxu0 %v11036_v57  ;;  %8087 = vmatprep.subr.bf16.mxu1 %v11039_v58  ;;  %v14323_v57 = vld [vmem:[%s14796_s0 + $0xf0] sm:$0xff] }
 0x351   :  { %v11118_v58 = vld [vmem:[%s14795_s1 + $0x1c40] ss:$16 sps:$4 sm:$0xff]   ;;  %v11198_v47 = vld [vmem:[%s14795_s1 + $0x1de4] ss:$16 sps:$4 sm:$0xff]  }
 0x353   :  { %7240 = vmatpush1.bf16.msra.mxu0 %v11034_v61  ;;  %8088 = vmatpush1.bf16.msra.mxu1 %v11037_v62  ;;  %v11121_v61 = vld [vmem:[%s14795_s1 + $0x1c48] ss:$16 sps:$4 sm:$0xff]   ;;  %v11126_v62 = vld [vmem:[%s14795_s1 + $0x1c64] ss:$16 sps:$4 sm:$0xff]  }
 0x354   :  { %7241 = vmatprep.subr.bf16.mxu0 %v11042_v63  ;;  %8089 = vmatprep.subr.bf16.mxu1 %v11045_v0  ;;  %v11129_v63 = vld [vmem:[%s14795_s1 + $0x1c6c] ss:$16 sps:$4 sm:$0xff]   ;;  %v8461_v0 = vcombine.high %v14318_v60, %v14323_v57 }
 0x357   :  { %7242 = vmatpush1.bf16.msra.mxu0 %v11040_v3  ;;  %8090 = vmatpush1.bf16.msra.mxu1 %v11043_v4  ;;  %v11124_v3 = vld [vmem:[%s14795_s1 + $0x1c60] ss:$16 sps:$4 sm:$0xff]   ;;  %v11127_v4 = vld [vmem:[%s14795_s1 + $0x1c68] ss:$16 sps:$4 sm:$0xff]  }
 0x358   :  { %7243 = vmatprep.subr.bf16.mxu0 %v11048_v1  ;;  %8091 = vmatprep.subr.bf16.mxu1 %v11051_v2  ;;  %v11132_v1 = vld [vmem:[%s14795_s1 + $0x1c84] ss:$16 sps:$4 sm:$0xff]   ;;  %v11135_v2 = vld [vmem:[%s14795_s1 + $0x1c8c] ss:$16 sps:$4 sm:$0xff]  }
 0x35b   :  { %7244 = vmatpush1.bf16.msra.mxu0 %v11046_v5  ;;  %8092 = vmatpush1.bf16.msra.mxu1 %v11049_v6  ;;  %v11130_v5 = vld [vmem:[%s14795_s1 + $0x1c80] ss:$16 sps:$4 sm:$0xff]   ;;  %v11133_v6 = vld [vmem:[%s14795_s1 + $0x1c88] ss:$16 sps:$4 sm:$0xff]  }
 0x35c   :  { %7245 = vmatprep.subr.bf16.mxu0 %v11054_v7  ;;  %8093 = vmatprep.subr.bf16.mxu1 %v11057_v8  ;;  %v11138_v7 = vld [vmem:[%s14795_s1 + $0x1ca4] ss:$16 sps:$4 sm:$0xff]   ;;  %v11141_v8 = vld [vmem:[%s14795_s1 + $0x1cac] ss:$16 sps:$4 sm:$0xff]  }
 0x35f   :  { %7246 = vmatpush1.bf16.msra.mxu0 %v11052_v11  ;;  %8094 = vmatpush1.bf16.msra.mxu1 %v11055_v12  ;;  %v11136_v11 = vld [vmem:[%s14795_s1 + $0x1ca0] ss:$16 sps:$4 sm:$0xff]   ;;  %v11139_v12 = vld [vmem:[%s14795_s1 + $0x1ca8] ss:$16 sps:$4 sm:$0xff]  }
 0x360   :  { %7247 = vmatprep.subr.bf16.mxu0 %v11060_v9  ;;  %8095 = vmatprep.subr.bf16.mxu1 %v11063_v10  ;;  %v11144_v9 = vld [vmem:[%s14795_s1 + $0x1cc4] ss:$16 sps:$4 sm:$0xff]   ;;  %v11147_v10 = vld [vmem:[%s14795_s1 + $0x1ccc] ss:$16 sps:$4 sm:$0xff]  }
 0x363   :  { %7248 = vmatpush1.bf16.msra.mxu0 %v11058_v13  ;;  %8096 = vmatpush1.bf16.msra.mxu1 %v11061_v14  ;;  %v11142_v13 = vld [vmem:[%s14795_s1 + $0x1cc0] ss:$16 sps:$4 sm:$0xff]   ;;  %v11145_v14 = vld [vmem:[%s14795_s1 + $0x1cc8] ss:$16 sps:$4 sm:$0xff]  }
 0x364   :  { %7249 = vmatprep.subr.bf16.mxu0 %v11066_v15  ;;  %8097 = vmatprep.subr.bf16.mxu1 %v11069_v16  ;;  %v11150_v15 = vld [vmem:[%s14795_s1 + $0x1ce4] ss:$16 sps:$4 sm:$0xff]   ;;  %v11153_v16 = vld [vmem:[%s14795_s1 + $0x1cec] ss:$16 sps:$4 sm:$0xff]  }
 0x367   :  { %7250 = vmatpush1.bf16.msra.mxu0 %v11064_v19  ;;  %8098 = vmatpush1.bf16.msra.mxu1 %v11067_v17  ;;  %v11148_v19 = vld [vmem:[%s14795_s1 + $0x1ce0] ss:$16 sps:$4 sm:$0xff]   ;;  %v11151_v17 = vld [vmem:[%s14795_s1 + $0x1ce8] ss:$16 sps:$4 sm:$0xff]  }
 0x368   :  { %7251 = vmatprep.subr.bf16.mxu0 %v11072_v18  ;;  %8099 = vmatprep.subr.bf16.mxu1 %v11075_v20  ;;  %v11156_v18 = vld [vmem:[%s14795_s1 + $0x1d04] ss:$16 sps:$4 sm:$0xff]   ;;  %v11159_v20 = vld [vmem:[%s14795_s1 + $0x1d0c] ss:$16 sps:$4 sm:$0xff]  }
 0x36b   :  { %7252 = vmatpush1.bf16.msra.mxu0 %v11070_v21  ;;  %8100 = vmatpush1.bf16.msra.mxu1 %v11073_v22  ;;  %v11154_v21 = vld [vmem:[%s14795_s1 + $0x1d00] ss:$16 sps:$4 sm:$0xff]   ;;  %v11157_v22 = vld [vmem:[%s14795_s1 + $0x1d08] ss:$16 sps:$4 sm:$0xff]  }
 0x36c   :  { %7253 = vmatprep.subr.bf16.mxu0 %v11078_v23  ;;  %8101 = vmatprep.subr.bf16.mxu1 %v11081_v24  ;;  %v11162_v23 = vld [vmem:[%s14795_s1 + $0x1d24] ss:$16 sps:$4 sm:$0xff]   ;;  %v11165_v24 = vld [vmem:[%s14795_s1 + $0x1d2c] ss:$16 sps:$4 sm:$0xff]  }
 0x36f   :  { %7254 = vmatpush1.bf16.msra.mxu0 %v11076_v26  ;;  %8102 = vmatpush1.bf16.msra.mxu1 %v11079_v25  ;;  %v11160_v26 = vld [vmem:[%s14795_s1 + $0x1d20] ss:$16 sps:$4 sm:$0xff]   ;;  %v11163_v25 = vld [vmem:[%s14795_s1 + $0x1d28] ss:$16 sps:$4 sm:$0xff]  }
 0x370   :  { %7255 = vmatprep.subr.bf16.mxu0 %v11084_v27  ;;  %8103 = vmatprep.subr.bf16.mxu1 %v11087_v28  ;;  %v11168_v27 = vld [vmem:[%s14795_s1 + $0x1d44] ss:$16 sps:$4 sm:$0xff]   ;;  %v11171_v28 = vld [vmem:[%s14795_s1 + $0x1d4c] ss:$16 sps:$4 sm:$0xff]  }
 0x373   :  { %7256 = vmatpush1.bf16.msra.mxu0 %v11082_v29  ;;  %8104 = vmatpush1.bf16.msra.mxu1 %v11085_v30  ;;  %v11166_v29 = vld [vmem:[%s14795_s1 + $0x1d40] ss:$16 sps:$4 sm:$0xff]   ;;  %v11169_v30 = vld [vmem:[%s14795_s1 + $0x1d48] ss:$16 sps:$4 sm:$0xff]  }
 0x374   :  { %7257 = vmatprep.subr.bf16.mxu0 %v11090_v31  ;;  %8105 = vmatprep.subr.bf16.mxu1 %v11093_v32  ;;  %v11174_v31 = vld [vmem:[%s14795_s1 + $0x1d64] ss:$16 sps:$4 sm:$0xff]   ;;  %v11177_v32 = vld [vmem:[%s14795_s1 + $0x1d6c] ss:$16 sps:$4 sm:$0xff]  }
 0x377   :  { %7258 = vmatpush1.bf16.msra.mxu0 %v11088_v34  ;;  %8106 = vmatpush1.bf16.msra.mxu1 %v11091_v36  ;;  %v11172_v34 = vld [vmem:[%s14795_s1 + $0x1d60] ss:$16 sps:$4 sm:$0xff]   ;;  %v11175_v36 = vld [vmem:[%s14795_s1 + $0x1d68] ss:$16 sps:$4 sm:$0xff]  }
 0x378   :  { %7259 = vmatprep.subr.bf16.mxu0 %v11096_v33  ;;  %8107 = vmatprep.subr.bf16.mxu1 %v11099_v35  ;;  %v11180_v33 = vld [vmem:[%s14795_s1 + $0x1d84] ss:$16 sps:$4 sm:$0xff]   ;;  %v11183_v35 = vld [vmem:[%s14795_s1 + $0x1d8c] ss:$16 sps:$4 sm:$0xff]  }
 0x37b   :  { %7260 = vmatpush1.bf16.msra.mxu0 %v11094_v37  ;;  %8108 = vmatpush1.bf16.msra.mxu1 %v11097_v38  ;;  %v11178_v37 = vld [vmem:[%s14795_s1 + $0x1d80] ss:$16 sps:$4 sm:$0xff]   ;;  %v11181_v38 = vld [vmem:[%s14795_s1 + $0x1d88] ss:$16 sps:$4 sm:$0xff]  }
 0x37c   :  { %7261 = vmatprep.subr.bf16.mxu0 %v11102_v39  ;;  %8109 = vmatprep.subr.bf16.mxu1 %v11105_v40  ;;  %v11186_v39 = vld [vmem:[%s14795_s1 + $0x1da4] ss:$16 sps:$4 sm:$0xff]   ;;  %v11189_v40 = vld [vmem:[%s14795_s1 + $0x1dac] ss:$16 sps:$4 sm:$0xff]  }
 0x37f   :  { %7262 = vmatpush1.bf16.msra.mxu0 %v11100_v42  ;;  %8110 = vmatpush1.bf16.msra.mxu1 %v11103_v44  ;;  %v11184_v42 = vld [vmem:[%s14795_s1 + $0x1da0] ss:$16 sps:$4 sm:$0xff]   ;;  %v11187_v44 = vld [vmem:[%s14795_s1 + $0x1da8] ss:$16 sps:$4 sm:$0xff]  }
 0x380   :  { %7284 = vmatprep.subr.bf16.mxu0 %v11108_v41  ;;  %8132 = vmatprep.subr.bf16.mxu1 %v11111_v43  ;;  %v11192_v41 = vld [vmem:[%s14795_s1 + $0x1dc4] ss:$16 sps:$4 sm:$0xff]   ;;  %v11195_v43 = vld [vmem:[%s14795_s1 + $0x1dcc] ss:$16 sps:$4 sm:$0xff]  }
 0x382   :  { %7264 = vmatmul.mubr.bf16.vlgmr.msra.gmra.mrb[0].mxu0 %v8458_v45  ;;  %8112 = vmatmul.mubr.bf16.vlgmr.msra.gmra.mrb[0].mxu1 %v8458_v45  ;;  %v11190_v45 = vld [vmem:[%s14795_s1 + $0x1dc0] ss:$16 sps:$4 sm:$0xff]  }
 0x383   :  { %7285 = vmatpush1.bf16.msra.mxu0 %v11106_v48  ;;  %8133 = vmatpush1.bf16.msra.mxu1 %v11109_v51  ;;  %v11201_v48 = vld [vmem:[%s14795_s1 + $0x1dec] ss:$16 sps:$4 sm:$0xff]   ;;  %v11196_v51 = vld [vmem:[%s14795_s1 + $0x1de0] ss:$16 sps:$4 sm:$0xff]  }
 0x384   :  { %7286 = vmatprep.subr.bf16.mxu0 %v11114_v52  ;;  %8134 = vmatprep.subr.bf16.mxu1 %v11117_v49  ;;  %v11199_v52 = vld [vmem:[%s14795_s1 + $0x1de8] ss:$16 sps:$4 sm:$0xff]   ;;  %v11204_v49 = vld [vmem:[%s14795_s1 + $0x1e04] ss:$16 sps:$4 sm:$0xff]  }
 0x385   :  { %7273 = vmatprep.mubr.bf16.mxu0 %v8491_v50  ;;  %8121 = vmatprep.mubr.bf16.mxu1 %v8491_v50  ;;  %v11207_v50 = vld [vmem:[%s14795_s1 + $0x1e0c] ss:$16 sps:$4 sm:$0xff]  }
 0x387   :  { %7287 = vmatpush1.bf16.msra.mxu0 %v11112_v53  ;;  %8135 = vmatpush1.bf16.msra.mxu1 %v11115_v54  ;;  %v8460_v53 = vcombine.low %v14318_v60, %v14323_v57  ;;  %v60_v54 = vld [vmem:[%s14796_s0 + $0x170] sm:$0xff]  ;;  %v11213_v57 = vld [vmem:[%s14795_s1 + $0x1e2c] ss:$16 sps:$4 sm:$0xff]  }
 0x388   :  { %7288 = vmatprep.subr.bf16.mxu0 %v11120_v55  ;;  %8136 = vmatprep.subr.bf16.mxu1 %v11123_v56  ;;  %v76_v55 = vld [vmem:[%s14796_s0 + $0x1f0] sm:$0xff] }
 0x389   :  { %v11202_v56 = vld [vmem:[%s14795_s1 + $0x1e00] ss:$16 sps:$4 sm:$0xff]   ;;  %v11210_v60 = vld [vmem:[%s14795_s1 + $0x1e24] ss:$16 sps:$4 sm:$0xff]  }
 0x38a   :  { %7274 = vmatmul.mubr.bf16.gmra.mrb[4].mxu0 %v8490_v59  ;;  %8122 = vmatmul.mubr.bf16.gmra.mrb[4].mxu1 %v8490_v59  ;;  %v11205_v59 = vld [vmem:[%s14795_s1 + $0x1e08] ss:$16 sps:$4 sm:$0xff]  }
 0x38b   :  { %7289 = vmatpush1.bf16.msra.mxu0 %v11118_v58  ;;  %8137 = vmatpush1.bf16.msra.mxu1 %v11121_v61  ;;  %v8493_v58 = vcombine.high %v60_v54, %v76_v55  ;;  %v11208_v61 = vld [vmem:[%s14795_s1 + $0x1e20] ss:$16 sps:$4 sm:$0xff]  }
 0x38c   :  { %7290 = vmatprep.subr.bf16.mxu0 %v11126_v62  ;;  %8138 = vmatprep.subr.bf16.mxu1 %v11129_v63  ;;  %v11211_v62 = vld [vmem:[%s14795_s1 + $0x1e28] ss:$16 sps:$4 sm:$0xff]   ;;  %v11216_v63 = vld [vmem:[%s14795_s1 + $0x1e44] ss:$16 sps:$4 sm:$0xff]  }
 0x38d   :  { %7316 = vmatprep.mubr.bf16.mxu0 %v8461_v0  ;;  %8164 = vmatprep.mubr.bf16.mxu1 %v8461_v0  ;;  %v11219_v0 = vld [vmem:[%s14795_s1 + $0x1e4c] ss:$16 sps:$4 sm:$0xff]  }
 0x38f   :  { %7291 = vmatpush1.bf16.msra.mxu0 %v11124_v3  ;;  %8139 = vmatpush1.bf16.msra.mxu1 %v11127_v4  ;;  %v8492_v3 = vcombine.low %v60_v54, %v76_v55  ;;  %v14530_v4 = vld [vmem:[%s14796_s0 + $0x78] sm:$0xff]  ;;  %v11294_v55 = vld [vmem:[%s14795_s1 + $0x1fe4] ss:$16 sps:$4 sm:$0xff]  }
 0x390   :  { %7292 = vmatprep.subr.bf16.mxu0 %v11132_v1  ;;  %8140 = vmatprep.subr.bf16.mxu1 %v11135_v2  ;;  %v14535_v1 = vld [vmem:[%s14796_s0 + $0xf8] sm:$0xff]  ;;  %v11214_v2 = vld [vmem:[%s14795_s1 + $0x1e40] ss:$16 sps:$4 sm:$0xff]  }
 0x391   :  { %v11289_v54 = vld [vmem:[%s14795_s1 + $0x1fc8] ss:$16 sps:$4 sm:$0xff]  }
 0x393   :  { %7293 = vmatpush1.bf16.msra.mxu0 %v11130_v5  ;;  %8141 = vmatpush1.bf16.msra.mxu1 %v11133_v6  ;;  %v11217_v5 = vld [vmem:[%s14795_s1 + $0x1e48] ss:$16 sps:$4 sm:$0xff]   ;;  %v11222_v6 = vld [vmem:[%s14795_s1 + $0x1e64] ss:$16 sps:$4 sm:$0xff]  }
 0x394   :  { %7294 = vmatprep.subr.bf16.mxu0 %v11138_v7  ;;  %8142 = vmatprep.subr.bf16.mxu1 %v11141_v8  ;;  %v11225_v7 = vld [vmem:[%s14795_s1 + $0x1e6c] ss:$16 sps:$4 sm:$0xff]   ;;  %v8463_v8 = vcombine.high %v14530_v4, %v14535_v1 }
 0x397   :  { %7295 = vmatpush1.bf16.msra.mxu0 %v11136_v11  ;;  %8143 = vmatpush1.bf16.msra.mxu1 %v11139_v12  ;;  %v11220_v11 = vld [vmem:[%s14795_s1 + $0x1e60] ss:$16 sps:$4 sm:$0xff]   ;;  %v11223_v12 = vld [vmem:[%s14795_s1 + $0x1e68] ss:$16 sps:$4 sm:$0xff]  }
 0x398   :  { %7296 = vmatprep.subr.bf16.mxu0 %v11144_v9  ;;  %8144 = vmatprep.subr.bf16.mxu1 %v11147_v10  ;;  %v11228_v9 = vld [vmem:[%s14795_s1 + $0x1e84] ss:$16 sps:$4 sm:$0xff]   ;;  %v11231_v10 = vld [vmem:[%s14795_s1 + $0x1e8c] ss:$16 sps:$4 sm:$0xff]  }
 0x39b   :  { %7297 = vmatpush1.bf16.msra.mxu0 %v11142_v13  ;;  %8145 = vmatpush1.bf16.msra.mxu1 %v11145_v14  ;;  %v11226_v13 = vld [vmem:[%s14795_s1 + $0x1e80] ss:$16 sps:$4 sm:$0xff]   ;;  %v11229_v14 = vld [vmem:[%s14795_s1 + $0x1e88] ss:$16 sps:$4 sm:$0xff]  }
 0x39c   :  { %7298 = vmatprep.subr.bf16.mxu0 %v11150_v15  ;;  %8146 = vmatprep.subr.bf16.mxu1 %v11153_v16  ;;  %v11234_v15 = vld [vmem:[%s14795_s1 + $0x1ea4] ss:$16 sps:$4 sm:$0xff]   ;;  %v11237_v16 = vld [vmem:[%s14795_s1 + $0x1eac] ss:$16 sps:$4 sm:$0xff]  }
 0x39f   :  { %7299 = vmatpush1.bf16.msra.mxu0 %v11148_v19  ;;  %8147 = vmatpush1.bf16.msra.mxu1 %v11151_v17  ;;  %v11232_v19 = vld [vmem:[%s14795_s1 + $0x1ea0] ss:$16 sps:$4 sm:$0xff]   ;;  %v11235_v17 = vld [vmem:[%s14795_s1 + $0x1ea8] ss:$16 sps:$4 sm:$0xff]  }
 0x3a0   :  { %7300 = vmatprep.subr.bf16.mxu0 %v11156_v18  ;;  %8148 = vmatprep.subr.bf16.mxu1 %v11159_v20  ;;  %v11240_v18 = vld [vmem:[%s14795_s1 + $0x1ec4] ss:$16 sps:$4 sm:$0xff]   ;;  %v11243_v20 = vld [vmem:[%s14795_s1 + $0x1ecc] ss:$16 sps:$4 sm:$0xff]  }
 0x3a3   :  { %7301 = vmatpush1.bf16.msra.mxu0 %v11154_v21  ;;  %8149 = vmatpush1.bf16.msra.mxu1 %v11157_v22  ;;  %v11238_v21 = vld [vmem:[%s14795_s1 + $0x1ec0] ss:$16 sps:$4 sm:$0xff]   ;;  %v11241_v22 = vld [vmem:[%s14795_s1 + $0x1ec8] ss:$16 sps:$4 sm:$0xff]  }
 0x3a4   :  { %7302 = vmatprep.subr.bf16.mxu0 %v11162_v23  ;;  %8150 = vmatprep.subr.bf16.mxu1 %v11165_v24  ;;  %v11246_v23 = vld [vmem:[%s14795_s1 + $0x1ee4] ss:$16 sps:$4 sm:$0xff]   ;;  %v11249_v24 = vld [vmem:[%s14795_s1 + $0x1eec] ss:$16 sps:$4 sm:$0xff]  }
 0x3a7   :  { %7303 = vmatpush1.bf16.msra.mxu0 %v11160_v26  ;;  %8151 = vmatpush1.bf16.msra.mxu1 %v11163_v25  ;;  %v11244_v26 = vld [vmem:[%s14795_s1 + $0x1ee0] ss:$16 sps:$4 sm:$0xff]   ;;  %v11247_v25 = vld [vmem:[%s14795_s1 + $0x1ee8] ss:$16 sps:$4 sm:$0xff]  }
 0x3a8   :  { %7304 = vmatprep.subr.bf16.mxu0 %v11168_v27  ;;  %8152 = vmatprep.subr.bf16.mxu1 %v11171_v28  ;;  %v11252_v27 = vld [vmem:[%s14795_s1 + $0x1f04] ss:$16 sps:$4 sm:$0xff]   ;;  %v11255_v28 = vld [vmem:[%s14795_s1 + $0x1f0c] ss:$16 sps:$4 sm:$0xff]  }
 0x3ab   :  { %7305 = vmatpush1.bf16.msra.mxu0 %v11166_v29  ;;  %8153 = vmatpush1.bf16.msra.mxu1 %v11169_v30  ;;  %v11250_v29 = vld [vmem:[%s14795_s1 + $0x1f00] ss:$16 sps:$4 sm:$0xff]   ;;  %v11253_v30 = vld [vmem:[%s14795_s1 + $0x1f08] ss:$16 sps:$4 sm:$0xff]  }
 0x3ac   :  { %7306 = vmatprep.subr.bf16.mxu0 %v11174_v31  ;;  %8154 = vmatprep.subr.bf16.mxu1 %v11177_v32  ;;  %v11258_v31 = vld [vmem:[%s14795_s1 + $0x1f24] ss:$16 sps:$4 sm:$0xff]   ;;  %v11261_v32 = vld [vmem:[%s14795_s1 + $0x1f2c] ss:$16 sps:$4 sm:$0xff]  }
 0x3af   :  { %7307 = vmatpush1.bf16.msra.mxu0 %v11172_v34  ;;  %8155 = vmatpush1.bf16.msra.mxu1 %v11175_v36  ;;  %v11256_v34 = vld [vmem:[%s14795_s1 + $0x1f20] ss:$16 sps:$4 sm:$0xff]   ;;  %v11259_v36 = vld [vmem:[%s14795_s1 + $0x1f28] ss:$16 sps:$4 sm:$0xff]  }
 0x3b0   :  { %7308 = vmatprep.subr.bf16.mxu0 %v11180_v33  ;;  %8156 = vmatprep.subr.bf16.mxu1 %v11183_v35  ;;  %v11264_v33 = vld [vmem:[%s14795_s1 + $0x1f44] ss:$16 sps:$4 sm:$0xff]   ;;  %v11267_v35 = vld [vmem:[%s14795_s1 + $0x1f4c] ss:$16 sps:$4 sm:$0xff]  }
 0x3b3   :  { %7309 = vmatpush1.bf16.msra.mxu0 %v11178_v37  ;;  %8157 = vmatpush1.bf16.msra.mxu1 %v11181_v38  ;;  %v11262_v37 = vld [vmem:[%s14795_s1 + $0x1f40] ss:$16 sps:$4 sm:$0xff]   ;;  %v11265_v38 = vld [vmem:[%s14795_s1 + $0x1f48] ss:$16 sps:$4 sm:$0xff]  }
 0x3b4   :  { %7310 = vmatprep.subr.bf16.mxu0 %v11186_v39  ;;  %8158 = vmatprep.subr.bf16.mxu1 %v11189_v40  ;;  %v11270_v39 = vld [vmem:[%s14795_s1 + $0x1f64] ss:$16 sps:$4 sm:$0xff]   ;;  %v11273_v40 = vld [vmem:[%s14795_s1 + $0x1f6c] ss:$16 sps:$4 sm:$0xff]  }
 0x3b7   :  { %7311 = vmatpush1.bf16.msra.mxu0 %v11184_v42  ;;  %8159 = vmatpush1.bf16.msra.mxu1 %v11187_v44  ;;  %v11268_v42 = vld [vmem:[%s14795_s1 + $0x1f60] ss:$16 sps:$4 sm:$0xff]   ;;  %v11271_v44 = vld [vmem:[%s14795_s1 + $0x1f68] ss:$16 sps:$4 sm:$0xff]  }
 0x3b8   :  { %7312 = vmatprep.subr.bf16.mxu0 %v11192_v41  ;;  %8160 = vmatprep.subr.bf16.mxu1 %v11195_v43  ;;  %v11276_v41 = vld [vmem:[%s14795_s1 + $0x1f84] ss:$16 sps:$4 sm:$0xff]   ;;  %v11279_v43 = vld [vmem:[%s14795_s1 + $0x1f8c] ss:$16 sps:$4 sm:$0xff]  }
 0x3bb   :  { %7313 = vmatpush1.bf16.msra.mxu0 %v11190_v45  ;;  %8161 = vmatpush1.bf16.msra.mxu1 %v11193_v46  ;;  %v11274_v45 = vld [vmem:[%s14795_s1 + $0x1f80] ss:$16 sps:$4 sm:$0xff]   ;;  %v11277_v46 = vld [vmem:[%s14795_s1 + $0x1f88] ss:$16 sps:$4 sm:$0xff]  }
 0x3bc   :  { %7314 = vmatprep.subr.bf16.mxu0 %v11198_v47  ;;  %8162 = vmatprep.subr.bf16.mxu1 %v11201_v48  ;;  %v11282_v47 = vld [vmem:[%s14795_s1 + $0x1fa4] ss:$16 sps:$4 sm:$0xff]   ;;  %v11285_v48 = vld [vmem:[%s14795_s1 + $0x1fac] ss:$16 sps:$4 sm:$0xff]  }
 0x3bf   :  { %7315 = vmatpush1.bf16.msra.mxu0 %v11196_v51  ;;  %8163 = vmatpush1.bf16.msra.mxu1 %v11199_v52  ;;  %v11280_v51 = vld [vmem:[%s14795_s1 + $0x1fa0] ss:$16 sps:$4 sm:$0xff]   ;;  %v11283_v52 = vld [vmem:[%s14795_s1 + $0x1fa8] ss:$16 sps:$4 sm:$0xff]  }
 0x3c0   :  { %7337 = vmatprep.subr.bf16.mxu0 %v11204_v49  ;;  %8185 = vmatprep.subr.bf16.mxu1 %v11207_v50  ;;  %v11288_v49 = vld [vmem:[%s14795_s1 + $0x1fc4] ss:$16 sps:$4 sm:$0xff]   ;;  %v11291_v50 = vld [vmem:[%s14795_s1 + $0x1fcc] ss:$16 sps:$4 sm:$0xff]  }
 0x3c2   :  { %7317 = vmatmul.mubr.bf16.vlgmr.msra.gmra.mrb[0].mxu0 %v8460_v53  ;;  %8165 = vmatmul.mubr.bf16.vlgmr.msra.gmra.mrb[0].mxu1 %v8460_v53  ;;  %v11286_v53 = vld [vmem:[%s14795_s1 + $0x1fc0] ss:$16 sps:$4 sm:$0xff]  }
 0x3c3   :  { %7338 = vmatpush1.bf16.msra.mxu0 %v11202_v56  ;;  %8186 = vmatpush1.bf16.msra.mxu1 %v11205_v59  ;;  %v11297_v56 = vld [vmem:[%s14795_s1 + $0x1fec] ss:$16 sps:$4 sm:$0xff]   ;;  %v11292_v59 = vld [vmem:[%s14795_s1 + $0x1fe0] ss:$16 sps:$4 sm:$0xff]  }
 0x3c4   :  { %7339 = vmatprep.subr.bf16.mxu0 %v11210_v60  ;;  %8187 = vmatprep.subr.bf16.mxu1 %v11213_v57  ;;  %v11295_v60 = vld [vmem:[%s14795_s1 + $0x1fe8] ss:$16 sps:$4 sm:$0xff]  }
 0x3c5   :  { %7326 = vmatprep.mubr.bf16.mxu0 %v8493_v58  ;;  %8174 = vmatprep.mubr.bf16.mxu1 %v8493_v58  ;;  %v61_v57 = vld [vmem:[%s14796_s0 + $0x178] sm:$0xff] }
 0x3c6   :  { %v77_v58 = vld [vmem:[%s14796_s0 + $0x1f8] sm:$0xff] }
 0x3c7   :  { %7340 = vmatpush1.bf16.msra.mxu0 %v11208_v61  ;;  %8188 = vmatpush1.bf16.msra.mxu1 %v11211_v62  ;;  %v8462_v61 = vcombine.low %v14530_v4, %v14535_v1  ;;  %v8495_v62 = vcombine.high %v61_v57, %v77_v58 }
 0x3c8   :  { %7341 = vmatprep.subr.bf16.mxu0 %v11216_v63  ;;  %8189 = vmatprep.subr.bf16.mxu1 %v11219_v0  ;;  %v8494_v63 = vcombine.low %v61_v57, %v77_v58  ;;  %v8258_v0 = vlaneseq }
 0x3ca   :  { %7327 = vmatmul.mubr.bf16.gmra.mrb[4].mxu0 %v8492_v3  ;;  %8175 = vmatmul.mubr.bf16.gmra.mrb[4].mxu1 %v8492_v3  ;;  %vm14709_vm0 = vcmp.lt.s32.totalorder %v8258_v0, 512 }
 0x3cb   :  { %7342 = vmatpush1.bf16.msra.mxu0 %v11214_v2  ;;  %8190 = vmatpush1.bf16.msra.mxu1 %v11217_v5  ;;  %v11298_v2 = vmov 0.0  }
 0x3cc   :  { %7343 = vmatprep.subr.bf16.mxu0 %v11222_v6  ;;  %8191 = vmatprep.subr.bf16.mxu1 %v11225_v7  ;;  %8262 = vst.msk [vmem:[%s14797_s3] sm:$0xf] %vm14709_vm0, %v11298_v2  ;;  %8263 = vst.msk [vmem:[%s14798_s4] sm:$0xf] %vm14709_vm0, %v11298_v2  ;;  %v11299_v7 = vmov 1966171168  }
 0x3cd   :  { %7369 = vmatprep.mubr.bf16.mxu0 %v8463_v8  ;;  %8217 = vmatprep.mubr.bf16.mxu1 %v8463_v8  ;;  %v14729_v8 = vunpack.c.l.s4 %v11299_v7 }
 0x3cf   :  { %7344 = vmatpush1.bf16.msra.mxu0 %v11220_v11  ;;  %8192 = vmatpush1.bf16.msra.mxu1 %v11223_v12 }
 0x3d0   :  { %7345 = vmatprep.subr.bf16.mxu0 %v11228_v9  ;;  %8193 = vmatprep.subr.bf16.mxu1 %v11231_v10 }
 0x3d3   :  { %7346 = vmatpush1.bf16.msra.mxu0 %v11226_v13  ;;  %8194 = vmatpush1.bf16.msra.mxu1 %v11229_v14 }
 0x3d4   :  { %7347 = vmatprep.subr.bf16.mxu0 %v11234_v15  ;;  %8195 = vmatprep.subr.bf16.mxu1 %v11237_v16 }
 0x3d7   :  { %7348 = vmatpush1.bf16.msra.mxu0 %v11232_v19  ;;  %8196 = vmatpush1.bf16.msra.mxu1 %v11235_v17 }
 0x3d8   :  { %7349 = vmatprep.subr.bf16.mxu0 %v11240_v18  ;;  %8197 = vmatprep.subr.bf16.mxu1 %v11243_v20 }
 0x3db   :  { %7350 = vmatpush1.bf16.msra.mxu0 %v11238_v21  ;;  %8198 = vmatpush1.bf16.msra.mxu1 %v11241_v22 }
 0x3dc   :  { %7351 = vmatprep.subr.bf16.mxu0 %v11246_v23  ;;  %8199 = vmatprep.subr.bf16.mxu1 %v11249_v24 }
 0x3df   :  { %7352 = vmatpush1.bf16.msra.mxu0 %v11244_v26  ;;  %8200 = vmatpush1.bf16.msra.mxu1 %v11247_v25 }
 0x3e0   :  { %7353 = vmatprep.subr.bf16.mxu0 %v11252_v27  ;;  %8201 = vmatprep.subr.bf16.mxu1 %v11255_v28 }
 0x3e3   :  { %7354 = vmatpush1.bf16.msra.mxu0 %v11250_v29  ;;  %8202 = vmatpush1.bf16.msra.mxu1 %v11253_v30 }
 0x3e4   :  { %7355 = vmatprep.subr.bf16.mxu0 %v11258_v31  ;;  %8203 = vmatprep.subr.bf16.mxu1 %v11261_v32  ;;  %v8309_v31 = vunpack.c.0.s8 %v14729_v8  ;;  %v14750_v32 = vshrl.u32 %v8258_v0, 7  ;;  %v8264_v8 = vld [vmem:[%s14797_s3] sm:$0xf] }
 0x3e7   :  { %7356 = vmatpush1.bf16.msra.mxu0 %v11256_v34  ;;  %8204 = vmatpush1.bf16.msra.mxu1 %v11259_v36 }
 0x3e8   :  { %7357 = vmatprep.subr.bf16.mxu0 %v11264_v33  ;;  %8205 = vmatprep.subr.bf16.mxu1 %v11267_v35 }
 0x3eb   :  { %7358 = vmatpush1.bf16.msra.mxu0 %v11262_v37  ;;  %8206 = vmatpush1.bf16.msra.mxu1 %v11265_v38 }
 0x3ec   :  { %7359 = vmatprep.subr.bf16.mxu0 %v11270_v39  ;;  %8207 = vmatprep.subr.bf16.mxu1 %v11273_v40 }
 0x3ef   :  { %7360 = vmatpush1.bf16.msra.mxu0 %v11268_v42  ;;  %8208 = vmatpush1.bf16.msra.mxu1 %v11271_v44 }
 0x3f0   :  { %7361 = vmatprep.subr.bf16.mxu0 %v11276_v41  ;;  %8209 = vmatprep.subr.bf16.mxu1 %v11279_v43 }
 0x3f3   :  { %7362 = vmatpush1.bf16.msra.mxu0 %v11274_v45  ;;  %8210 = vmatpush1.bf16.msra.mxu1 %v11277_v46 }
 0x3f4   :  { %7363 = vmatprep.subr.bf16.mxu0 %v11282_v47  ;;  %8211 = vmatprep.subr.bf16.mxu1 %v11285_v48 }
 0x3f7   :  { %7364 = vmatpush1.bf16.msra.mxu0 %v11280_v51  ;;  %8212 = vmatpush1.bf16.msra.mxu1 %v11283_v52 }
 0x3f8   :  { %7365 = vmatprep.subr.bf16.mxu0 %v11288_v49  ;;  %8213 = vmatprep.subr.bf16.mxu1 %v11291_v50 }
 0x3fb   :  { %7366 = vmatpush1.bf16.msra.mxu0 %v11286_v53  ;;  %8214 = vmatpush1.bf16.msra.mxu1 %v11289_v54 }
 0x3fc   :  { %7367 = vmatprep.subr.bf16.mxu0 %v11294_v55  ;;  %8215 = vmatprep.subr.bf16.mxu1 %v11297_v56 }
 0x3ff   :  { %7368 = vmatpush1.bf16.msra.mxu0 %v11292_v59  ;;  %8216 = vmatpush1.bf16.msra.mxu1 %v11295_v60 }
 0x402   :  { %7370 = vmatmul.mubr.bf16.vlgmr.msra.gmra.mrb[0].mxu0 %v8462_v61  ;;  %8218 = vmatmul.mubr.bf16.vlgmr.msra.gmra.mrb[0].mxu1 %v8462_v61 }
 0x403   :  { %7379 = vmatprep.mubr.bf16.mxu0 %v8495_v62  ;;  %8227 = vmatprep.mubr.bf16.mxu1 %v8495_v62 }
 0x40a   :  { %7380 = vmatmul.mubr.bf16.gmra.mrb[4].mxu0 %v8494_v63  ;;  %8228 = vmatmul.mubr.bf16.gmra.mrb[4].mxu1 %v8494_v63 }
 0x4d5   :  { %v7371_v4 = vpop.f32.mrb[0].mxu0  ;;  %v8219_v1 = vpop.f32.mrb[0].mxu1 }
 0x4d6   :  { %8238 = vst [vmem:[%s14799_s2] sm:$0xff] %v7371_v4  ;;  %8240 = vst [vmem:[%s14799_s2 + $0x10] sm:$0xff] %v8219_v1  ;;  %v7373_v5 = vpop.f32.mrb[1].mxu0  ;;  %v8221_v6 = vpop.f32.mrb[1].mxu1  ;;  %v8337_v11 = vmul.f32 %v7371_v4, %v7371_v4  ;;  %v8339_v12 = vmul.f32 %v8219_v1, %v8219_v1 }
 0x4d7   :  { %8239 = vst [vmem:[%s14799_s2 + $0x8] sm:$0xff] %v7373_v5  ;;  %v8338_v9 = vmul.f32 %v7373_v5, %v7373_v5  ;;  %8241 = vst [vmem:[%s14799_s2 + $0x18] sm:$0xff] %v8221_v6  ;;  %v8340_v10 = vmul.f32 %v8221_v6, %v8221_v6  ;;  %v7375_v13 = vpop.f32.mrb[2].mxu0  ;;  %v8223_v14 = vpop.f32.mrb[2].mxu1 }
 0x4d8   :  { %8242 = vst [vmem:[%s14799_s2 + $0x20] sm:$0xff] %v7375_v13  ;;  %v8265_v15 = vadd.f32 %v7375_v13, %v7371_v4  ;;  %v8341_v16 = vmul.f32 %v7375_v13, %v7375_v13  ;;  %8244 = vst [vmem:[%s14799_s2 + $0x30] sm:$0xff] %v8223_v14  ;;  %v8283_v19 = vadd.f32 %v8223_v14, %v8219_v1  ;;  %v7377_v18 = vpop.f32.mrb[3].mxu0  ;;  %v8225_v20 = vpop.f32.mrb[3].mxu1 }
 0x4d9   :  { %v8343_v17 = vmul.f32 %v8223_v14, %v8223_v14  ;;  %8243 = vst [vmem:[%s14799_s2 + $0x28] sm:$0xff] %v7377_v18  ;;  %v8274_v21 = vadd.f32 %v7377_v18, %v7373_v5  ;;  %v8342_v22 = vmul.f32 %v7377_v18, %v7377_v18  ;;  %8245 = vst [vmem:[%s14799_s2 + $0x38] sm:$0xff] %v8225_v20 }
 0x4da   :  { %v8292_v23 = vadd.f32 %v8225_v20, %v8221_v6  ;;  %v8344_v24 = vmul.f32 %v8225_v20, %v8225_v20  ;;  %v8353_v26 = vadd.f32 %v8341_v16, %v8337_v11 }
 0x4db   :  { %v8371_v25 = vadd.f32 %v8343_v17, %v8339_v12  ;;  %v8362_v27 = vadd.f32 %v8342_v22, %v8338_v9 }
 0x4dc   :  { %v8380_v28 = vadd.f32 %v8344_v24, %v8340_v10 }
 0x4dd   :  { %v7381_v29 = vpop.f32.mrb[4].mxu0  ;;  %v8229_v30 = vpop.f32.mrb[4].mxu1 }
 0x4de   :  { %8246 = vst [vmem:[%s14799_s2 + $0x40] sm:$0xff] %v7381_v29  ;;  %v8266_v34 = vadd.f32 %v8265_v15, %v7381_v29  ;;  %v8345_v36 = vmul.f32 %v7381_v29, %v7381_v29  ;;  %8248 = vst [vmem:[%s14799_s2 + $0x50] sm:$0xff] %v8229_v30  ;;  %v8284_v33 = vadd.f32 %v8283_v19, %v8229_v30  ;;  %v7383_v37 = vpop.f32.mrb[5].mxu0  ;;  %v8231_v38 = vpop.f32.mrb[5].mxu1 }
 0x4df   :  { %v8347_v35 = vmul.f32 %v8229_v30, %v8229_v30  ;;  %8247 = vst [vmem:[%s14799_s2 + $0x48] sm:$0xff] %v7383_v37  ;;  %v8275_v39 = vadd.f32 %v8274_v21, %v7383_v37  ;;  %v8346_v40 = vmul.f32 %v7383_v37, %v7383_v37  ;;  %8249 = vst [vmem:[%s14799_s2 + $0x58] sm:$0xff] %v8231_v38  ;;  %v7385_v41 = vpop.f32.mrb[6].mxu0  ;;  %v8233_v43 = vpop.f32.mrb[6].mxu1 }
 0x4e0   :  { %v8293_v42 = vadd.f32 %v8292_v23, %v8231_v38  ;;  %v8348_v44 = vmul.f32 %v8231_v38, %v8231_v38  ;;  %v8354_v45 = vadd.f32 %v8353_v26, %v8345_v36  ;;  %8250 = vst [vmem:[%s14799_s2 + $0x60] sm:$0xff] %v7385_v41  ;;  %v8267_v47 = vadd.f32 %v8266_v34, %v7385_v41  ;;  %v7387_v51 = vpop.f32.mrb[7].mxu0  ;;  %v8235_v52 = vpop.f32.mrb[7].mxu1 }
 0x4e1   :  { %v8372_v46 = vadd.f32 %v8371_v25, %v8347_v35  ;;  %v8349_v48 = vmul.f32 %v7385_v41, %v7385_v41  ;;  %8252 = vst [vmem:[%s14799_s2 + $0x70] sm:$0xff] %v8233_v43  ;;  %v8363_v49 = vadd.f32 %v8362_v27, %v8346_v40  ;;  %v8285_v53 = vadd.f32 %v8284_v33, %v8233_v43 }
 0x4e2   :  { %v8381_v50 = vadd.f32 %v8380_v28, %v8348_v44  ;;  %v8351_v54 = vmul.f32 %v8233_v43, %v8233_v43  ;;  %8251 = vst [vmem:[%s14799_s2 + $0x68] sm:$0xff] %v7387_v51  ;;  %8253 = vst [vmem:[%s14799_s2 + $0x78] sm:$0xff] %v8235_v52  ;;  %v8268_v55 = vrot.slane %v8267_v47, 4  ;;  %v8276_v59 = vadd.f32 %v8275_v39, %v7387_v51 }
 0x4e3   :  { %v8355_v56 = vadd.f32 %v8354_v45, %v8349_v48  ;;  %v8350_v60 = vmul.f32 %v7387_v51, %v7387_v51  ;;  %v8286_v57 = vrot.slane %v8285_v53, 4  ;;  %v8294_v61 = vadd.f32 %v8293_v42, %v8235_v52 }
 0x4e4   :  { %v8373_v58 = vadd.f32 %v8372_v46, %v8351_v54  ;;  %v8352_v62 = vmul.f32 %v8235_v52, %v8235_v52  ;;  %v8269_v63 = vadd.f32 %v8268_v55, %v8267_v47  ;;  %v8277_v2 = vrot.slane %v8276_v59, 4 }
 0x4e5   :  { %v8356_v0 = vrot.slane %v8355_v56, 4  ;;  %v8364_v4 = vadd.f32 %v8363_v49, %v8350_v60  ;;  %v8287_v1 = vadd.f32 %v8286_v57, %v8285_v53  ;;  %v8295_v6 = vrot.slane %v8294_v61, 4 }
 0x4e6   :  { %v8374_v5 = vrot.slane %v8373_v58, 4  ;;  %v8382_v7 = vadd.f32 %v8381_v50, %v8352_v62  ;;  %v8270_v11 = vrot.slane %v8269_v63, 2  ;;  %v8278_v9 = vadd.f32 %v8277_v2, %v8276_v59 }
 0x4e7   :  { %v8357_v12 = vadd.f32 %v8356_v0, %v8355_v56  ;;  %v8365_v10 = vrot.slane %v8364_v4, 4  ;;  %v8288_v13 = vrot.slane %v8287_v1, 2  ;;  %v8296_v15 = vadd.f32 %v8295_v6, %v8294_v61  ;;  %v8336_v61 = vld [vmem:[%s14798_s4] sm:$0xf] }
 0x4e8   :  { %v8375_v14 = vadd.f32 %v8374_v5, %v8373_v58  ;;  %v8383_v16 = vrot.slane %v8382_v7, 4  ;;  %v8271_v19 = vadd.f32 %v8270_v11, %v8269_v63  ;;  %v8279_v18 = vrot.slane %v8278_v9, 2 }
 0x4e9   :  { %v8358_v17 = vrot.slane %v8357_v12, 2  ;;  %v8366_v20 = vadd.f32 %v8365_v10, %v8364_v4  ;;  %v8289_v21 = vadd.f32 %v8288_v13, %v8287_v1  ;;  %v8297_v23 = vrot.slane %v8296_v15, 2 }
 0x4ea   :  { %v8376_v22 = vrot.slane %v8375_v14, 2  ;;  %v8384_v24 = vadd.f32 %v8383_v16, %v8382_v7  ;;  %v8272_v26 = vrot.slane %v8271_v19, 1  ;;  %v8280_v27 = vadd.f32 %v8279_v18, %v8278_v9 }
 0x4eb   :  { %v8359_v25 = vadd.f32 %v8358_v17, %v8357_v12  ;;  %v8367_v28 = vrot.slane %v8366_v20, 2  ;;  %v8290_v29 = vrot.slane %v8289_v21, 1  ;;  %v8298_v34 = vadd.f32 %v8297_v23, %v8296_v15 }
 0x4ec   :  { %v8377_v30 = vadd.f32 %v8376_v22, %v8375_v14  ;;  %v8385_v36 = vrot.slane %v8384_v24, 2  ;;  %v8273_v33 = vadd.f32 %v8272_v26, %v8271_v19  ;;  %v8281_v37 = vrot.slane %v8280_v27, 1 }
 0x4ed   :  { %v8360_v35 = vrot.slane %v8359_v25, 1  ;;  %v8368_v38 = vadd.f32 %v8367_v28, %v8366_v20  ;;  %v8291_v39 = vadd.f32 %v8290_v29, %v8289_v21  ;;  %v8299_v42 = vrot.slane %v8298_v34, 1 }
 0x4ee   :  { %v8378_v40 = vrot.slane %v8377_v30, 1  ;;  %v8386_v44 = vadd.f32 %v8385_v36, %v8384_v24  ;;  %v8282_v43 = vadd.f32 %v8281_v37, %v8280_v27  ;;  %v8312_v45 = vsub.s32 %v8309_v31, %v14750_v32 }
 0x4ef   :  { %v8361_v41 = vadd.f32 %v8360_v35, %v8359_v25  ;;  %v8369_v46 = vrot.slane %v8368_v38, 1  ;;  %v8300_v48 = vadd.f32 %v8299_v42, %v8298_v34 }
 0x4f0   :  { %v8379_v47 = vadd.f32 %v8378_v40, %v8377_v30  ;;  %v8387_v51 = vrot.slane %v8386_v44, 1  ;;  %v8305_v52 = vcombine.low %v8273_v33, %v8282_v43 }
 0x4f1   :  { %v8370_v49 = vadd.f32 %v8369_v46, %v8368_v38  ;;  %v8306_v50 = vcombine.low %v8291_v39, %v8300_v48 }
 0x4f2   :  { %v8388_v53 = vadd.f32 %v8387_v51, %v8386_v44  ;;  %v8313_v54 = vrot.slane %v8305_v52, %v8312_v45 }
 0x4f3   :  { %v8393_v55 = vcombine.low %v8361_v41, %v8370_v49  ;;  %v8320_v56 = vrot.slane %v8306_v50, %v8312_v45 }
 0x4f4   :  { %v8394_v59 = vcombine.low %v8379_v47, %v8388_v53 }
 0x4f5   :  { %v8401_v60 = vrot.slane %v8393_v55, %v8312_v45  ;;  %v8321_v57 = vcombine.low %v8313_v54, %v8320_v56 }
 0x4f6   :  { %v8408_v58 = vrot.slane %v8394_v59, %v8312_v45 }
 0x4f7   :  { %v8328_v31 = vrot.slane %v8321_v57, %v8312_v45 }
 0x4f8   :  { %v8409_v32 = vcombine.low %v8401_v60, %v8408_v58 }
 0x4f9   :  { %v8330_v62 = vadd.f32 %v8328_v31, %v8264_v8 }
 0x4fa   :  { %v8416_v63 = vrot.slane %v8409_v32, %v8312_v45 }
 0x4fb   :  { %8335 = vst.msk [vmem:[%s14797_s3] sm:$0xf] %vm14709_vm0, %v8330_v62 }
 0x4fc   :  { %v8418_v0 = vadd.f32 %v8416_v63, %v8336_v61 }
 0x4fe   :  { %8419 = vst.msk [vmem:[%s14798_s4] sm:$0xf] %vm14709_vm0, %v8418_v0 }

</bundles_post_ra>
